<compile_context>
chip_gen: v6e
topology: v6e:2x2x1
jax: 0.10.0
libtpu: 0.0.40
codegen_flags: <defaults>
</compile_context>

<pallas_src>
import functools

import jax
import jax.numpy as jnp
import numpy as np
from jax import lax
from jax.experimental import pallas as pl
from jax.experimental.pallas import tpu as pltpu


def _res_block_kernel(xp_ref, mask_ref, w1_ref, w2_ref, alpha_ref, o_ref, *, H, W):
    # xp_ref   : (N, C, S + 4E) f32  zero-padded input, spatial flattened on lanes
    # mask_ref : (1, S + 2E)    f32  1.0 on the haloed-conv1 interior, else 0.0
    # w*_ref   : (C, 9*C + 1)   f32  col (dh*3+dw)*C + ci = W[co, ci, dh, dw];
    #                                last column = bias[co]
    # alpha_ref: (1,) f32 in SMEM    shared PReLU slope
    # o_ref    : (N, C, S)      f32  result on the padded flat domain
    #   with S = (H+4)*(W+4), Wp = W+4, E = Wp+1 (max |lane shift| of a tap).
    Wp = W + 4
    S = (H + 4) * Wp
    E = Wp + 1
    N, C, _ = o_ref.shape

    alpha = alpha_ref[0]                      # SMEM scalar -> single splat
    mask = mask_ref[...]                      # (1, S + 2E), broadcast over C rows

    def conv3x3(inp, w_ref, out_w):
        # inp: (C, out_w + 2E) -> (C, out_w).
        # Bias (last weight column) broadcast once; 9 taps x C_in unrolled
        # broadcast MACs on the VPU; taps are static lane slices (XLU).
        acc = jnp.zeros((C, out_w), jnp.float32) + w_ref[:, 9 * C:9 * C + 1]
        for dh in range(3):
            for dw in range(3):
                off = (dh - 1) * Wp + (dw - 1)          # lane shift of this tap
                sh = inp[:, E + off:E + off + out_w]    # (C, out_w) lane slice
                t = dh * 3 + dw
                for ci in range(C):
                    wcol = w_ref[:, t * C + ci:t * C + ci + 1]   # (C, 1) over c_out
                    # (1, out_w) * (C, 1) -> (C, out_w): sublane-bcast of the
                    # input row, lane-bcast of the weight column, VPU MAC.
                    acc = acc + sh[ci:ci + 1, :] * wcol
        return acc

    for n in range(N):                         # batch folded into one invocation
        xp = xp_ref[n]                         # (C, S + 4E)

        # conv1 on the (H+2, W+2) haloed domain (frame is E wider than output).
        acc1 = conv3x3(xp, w1_ref, S + 2 * E)

        # PReLU (single shared alpha) + zero the halo ring: this is exactly the
        # zero-padded (pad=1) input that conv2 needs.
        r = jnp.where(acc1 >= 0.0, acc1, alpha * acc1) * mask

        # conv2 on the (H, W) domain; the zeroed ring acts as its padding.
        acc2 = conv3x3(r, w2_ref, S)

        # Residual add against the original (un-padded) pixels.
        o_ref[n] = (xp[:, 2 * E:2 * E + S] + acc2).astype(o_ref.dtype)


def _weight_table(w_pt, b):
    """(C_out, C_in, 3, 3) + (C_out,) -> (C_out, 9*C_in + 1) column table."""
    co, ci = w_pt.shape[0], w_pt.shape[1]
    cols = jnp.transpose(w_pt, (0, 2, 3, 1)).reshape(co, 9 * ci)
    return jnp.concatenate([cols, b.reshape(co, 1)], axis=1).astype(jnp.float32)


def _interior_mask(H, W):
    """(1, S + 2E) float mask: 1.0 where the haloed-conv1 result is kept."""
    Hp, Wp = H + 4, W + 4
    S, E = Hp * Wp, Wp + 1
    m = np.zeros((Hp, Wp), np.float32)
    m[2:2 + H, 2:2 + W] = 1.0
    full = np.zeros((1, S + 2 * E), np.float32)
    full[0, E:E + S] = m.reshape(-1)
    return jnp.asarray(full)


def residual_block(x_nchw, w1_pt, b1, alpha, w2_pt, b2):
    """ResidualBlock forward: x + conv2(PReLU(conv1(x))).  x is NCHW."""
    N, C, H, W = x_nchw.shape
    Hp, Wp = H + 4, W + 4
    S, E = Hp * Wp, Wp + 1

    # NCHW is already channel-major: only the zero halo pad + free reshapes
    # remain in the wrapper (no NCHW<->NHWC transposes).
    xp = jnp.pad(x_nchw.astype(jnp.float32), ((0, 0), (0, 0), (2, 2), (2, 2)))
    xp_flat = jnp.pad(xp.reshape(N, C, S), ((0, 0), (0, 0), (2 * E, 2 * E)))

    w1t = _weight_table(w1_pt, b1)
    w2t = _weight_table(w2_pt, b2)
    alpha_s = jnp.asarray(alpha, jnp.float32).reshape(1)
    mask = _interior_mask(H, W)

    kernel = functools.partial(_res_block_kernel, H=H, W=W)
    out_flat = pl.pallas_call(
        kernel,
        out_shape=jax.ShapeDtypeStruct((N, C, S), jnp.float32),
        # No grid: the whole problem (<100 KB) is VMEM-resident, so folding the
        # batch into one invocation removes per-grid-step overhead.  For large
        # batches, switch to grid=(N,) + dimension_semantics=("parallel",) so
        # v7x's two TensorCores split the images.
        in_specs=[
            pl.BlockSpec(memory_space=pltpu.MemorySpace.VMEM),   # padded input
            pl.BlockSpec(memory_space=pltpu.MemorySpace.VMEM),   # interior mask
            pl.BlockSpec(memory_space=pltpu.MemorySpace.VMEM),   # conv1 weights+bias
            pl.BlockSpec(memory_space=pltpu.MemorySpace.VMEM),   # conv2 weights+bias
            pl.BlockSpec(memory_space=pltpu.MemorySpace.SMEM),   # PReLU alpha scalar
        ],
        out_specs=pl.BlockSpec(memory_space=pltpu.MemorySpace.VMEM),
    )(xp_flat, mask, w1t, w2t, alpha_s)

    # Slice the valid (H, W) interior back out of the padded flat result.
    return out_flat.reshape(N, C, Hp, Wp)[:, :, 2:2 + H, 2:2 + W]


def residual_block_reference(x_nchw, w1_pt, b1, alpha, w2_pt, b2):
    """Pure-JAX reference matching PyTorch semantics (for validation)."""
    dn = ("NCHW", "OIHW", "NCHW")
    r = lax.conv_general_dilated(x_nchw, w1_pt, (1, 1), ((1, 1), (1, 1)),
                                 dimension_numbers=dn)
    r = r + b1.reshape(1, -1, 1, 1)
    r = jnp.where(r >= 0, r, alpha * r)                      # PReLU, shared alpha
    r = lax.conv_general_dilated(r, w2_pt, (1, 1), ((1, 1), (1, 1)),
                                 dimension_numbers=dn)
    r = r + b2.reshape(1, -1, 1, 1)
    return x_nchw + r


if __name__ == "__main__":
    N, C, H, W = 2, 4, 16, 16

    key = jax.random.PRNGKey(0)
    k1, k2, k3, k4, kx = jax.random.split(key, 5)
    fan_in = C * 3 * 3
    bound = 1.0 / (fan_in ** 0.5)
    # Deterministic synthetic parameters (PyTorch Conv2d-style uniform init).
    w1_pt = jax.random.uniform(k1, (C, C, 3, 3), jnp.float32, -bound, bound)
    b1 = jax.random.uniform(k2, (C,), jnp.float32, -bound, bound)
    w2_pt = jax.random.uniform(k3, (C, C, 3, 3), jnp.float32, -bound, bound)
    b2 = jax.random.uniform(k4, (C,), jnp.float32, -bound, bound)
    alpha = jnp.float32(0.25)  # nn.PReLU() default init

    x = jax.random.normal(kx, (N, C, H, W), jnp.float32)

    run = jax.jit(residual_block)
    out = jax.block_until_ready(run(x, w1_pt, b1, alpha, w2_pt, b2))
    ref = jax.block_until_ready(
        residual_block_reference(x, w1_pt, b1, alpha, w2_pt, b2))

    assert out.shape == (N, C, H, W), out.shape
    max_err = float(jnp.max(jnp.abs(out - ref)))
    assert jnp.allclose(out, ref, atol=1e-3, rtol=1e-3), max_err
    print("KERNEL_OK")
</pallas_src>

<mosaic_0001>
module attributes {stable_mosaic.version = 11 : i64} {
  func.func @_res_block_kernel(%arg0: memref<2x4x484xf32, #tpu.memory_space<vmem>>, %arg1: memref<1x442xf32, #tpu.memory_space<vmem>>, %arg2: memref<4x37xf32, #tpu.memory_space<vmem>>, %arg3: memref<4x37xf32, #tpu.memory_space<vmem>>, %arg4: memref<1xf32, #tpu.memory_space<smem>>, %arg5: memref<2x4x400xf32, #tpu.memory_space<vmem>>) attributes {dimension_semantics = [], scalar_prefetch = 0 : i64, scratch_operands = 0 : i64, tpu.core_type = #tpu.core_type<tc>} {
    %c0 = arith.constant 0 : index
    %0 = memref.load %arg4[%c0] : memref<1xf32, #tpu.memory_space<smem>>
    %c0_0 = arith.constant 0 : index
    %c0_1 = arith.constant 0 : index
    %1 = vector.load %arg1[%c0_0, %c0_1] : memref<1x442xf32, #tpu.memory_space<vmem>>, vector<1x442xf32>
    %c0_2 = arith.constant 0 : index
    %c0_3 = arith.constant 0 : index
    %c0_4 = arith.constant 0 : index
    %2 = vector.load %arg0[%c0_2, %c0_3, %c0_4] : memref<2x4x484xf32, #tpu.memory_space<vmem>>, vector<1x4x484xf32>
    %3 = vector.shape_cast %2 : vector<1x4x484xf32> to vector<4x484xf32>
    %cst = arith.constant 0.000000e+00 : f32
    %4 = vector.broadcast %cst : f32 to vector<4x442xf32>
    %c0_5 = arith.constant 0 : index
    %c36 = arith.constant 36 : index
    %5 = vector.load %arg2[%c0_5, %c36] : memref<4x37xf32, #tpu.memory_space<vmem>>, vector<4x1xf32>
    %6 = vector.broadcast %5 : vector<4x1xf32> to vector<4x442xf32>
    %7 = arith.addf %4, %6 : vector<4x442xf32>
    %8 = vector.extract_strided_slice %3 {offsets = [0, 0], sizes = [4, 442], strides = [1, 1]} : vector<4x484xf32> to vector<4x442xf32>
    %c0_6 = arith.constant 0 : index
    %c0_7 = arith.constant 0 : index
    %9 = vector.load %arg2[%c0_6, %c0_7] : memref<4x37xf32, #tpu.memory_space<vmem>>, vector<4x1xf32>
    %10 = vector.extract_strided_slice %8 {offsets = [0, 0], sizes = [1, 442], strides = [1, 1]} : vector<4x442xf32> to vector<1x442xf32>
    %11 = vector.broadcast %10 : vector<1x442xf32> to vector<4x442xf32>
    %12 = vector.broadcast %9 : vector<4x1xf32> to vector<4x442xf32>
    %13 = arith.mulf %11, %12 : vector<4x442xf32>
    %14 = arith.addf %7, %13 : vector<4x442xf32>
    %c0_8 = arith.constant 0 : index
    %c1 = arith.constant 1 : index
    %15 = vector.load %arg2[%c0_8, %c1] : memref<4x37xf32, #tpu.memory_space<vmem>>, vector<4x1xf32>
    %16 = vector.extract_strided_slice %8 {offsets = [1, 0], sizes = [1, 442], strides = [1, 1]} : vector<4x442xf32> to vector<1x442xf32>
    %17 = vector.broadcast %16 : vector<1x442xf32> to vector<4x442xf32>
    %18 = vector.broadcast %15 : vector<4x1xf32> to vector<4x442xf32>
    %19 = arith.mulf %17, %18 : vector<4x442xf32>
    %20 = arith.addf %14, %19 : vector<4x442xf32>
    %c0_9 = arith.constant 0 : index
    %c2 = arith.constant 2 : index
    %21 = vector.load %arg2[%c0_9, %c2] : memref<4x37xf32, #tpu.memory_space<vmem>>, vector<4x1xf32>
    %22 = vector.extract_strided_slice %8 {offsets = [2, 0], sizes = [1, 442], strides = [1, 1]} : vector<4x442xf32> to vector<1x442xf32>
    %23 = vector.broadcast %22 : vector<1x442xf32> to vector<4x442xf32>
    %24 = vector.broadcast %21 : vector<4x1xf32> to vector<4x442xf32>
    %25 = arith.mulf %23, %24 : vector<4x442xf32>
    %26 = arith.addf %20, %25 : vector<4x442xf32>
    %c0_10 = arith.constant 0 : index
    %c3 = arith.constant 3 : index
    %27 = vector.load %arg2[%c0_10, %c3] : memref<4x37xf32, #tpu.memory_space<vmem>>, vector<4x1xf32>
    %28 = vector.extract_strided_slice %8 {offsets = [3, 0], sizes = [1, 442], strides = [1, 1]} : vector<4x442xf32> to vector<1x442xf32>
    %29 = vector.broadcast %28 : vector<1x442xf32> to vector<4x442xf32>
    %30 = vector.broadcast %27 : vector<4x1xf32> to vector<4x442xf32>
    %31 = arith.mulf %29, %30 : vector<4x442xf32>
    %32 = arith.addf %26, %31 : vector<4x442xf32>
    %33 = vector.extract_strided_slice %3 {offsets = [0, 1], sizes = [4, 442], strides = [1, 1]} : vector<4x484xf32> to vector<4x442xf32>
    %c0_11 = arith.constant 0 : index
    %c4 = arith.constant 4 : index
    %34 = vector.load %arg2[%c0_11, %c4] : memref<4x37xf32, #tpu.memory_space<vmem>>, vector<4x1xf32>
    %35 = vector.extract_strided_slice %33 {offsets = [0, 0], sizes = [1, 442], strides = [1, 1]} : vector<4x442xf32> to vector<1x442xf32>
    %36 = vector.broadcast %35 : vector<1x442xf32> to vector<4x442xf32>
    %37 = vector.broadcast %34 : vector<4x1xf32> to vector<4x442xf32>
    %38 = arith.mulf %36, %37 : vector<4x442xf32>
    %39 = arith.addf %32, %38 : vector<4x442xf32>
    %c0_12 = arith.constant 0 : index
    %c5 = arith.constant 5 : index
    %40 = vector.load %arg2[%c0_12, %c5] : memref<4x37xf32, #tpu.memory_space<vmem>>, vector<4x1xf32>
    %41 = vector.extract_strided_slice %33 {offsets = [1, 0], sizes = [1, 442], strides = [1, 1]} : vector<4x442xf32> to vector<1x442xf32>
    %42 = vector.broadcast %41 : vector<1x442xf32> to vector<4x442xf32>
    %43 = vector.broadcast %40 : vector<4x1xf32> to vector<4x442xf32>
    %44 = arith.mulf %42, %43 : vector<4x442xf32>
    %45 = arith.addf %39, %44 : vector<4x442xf32>
    %c0_13 = arith.constant 0 : index
    %c6 = arith.constant 6 : index
    %46 = vector.load %arg2[%c0_13, %c6] : memref<4x37xf32, #tpu.memory_space<vmem>>, vector<4x1xf32>
    %47 = vector.extract_strided_slice %33 {offsets = [2, 0], sizes = [1, 442], strides = [1, 1]} : vector<4x442xf32> to vector<1x442xf32>
    %48 = vector.broadcast %47 : vector<1x442xf32> to vector<4x442xf32>
    %49 = vector.broadcast %46 : vector<4x1xf32> to vector<4x442xf32>
    %50 = arith.mulf %48, %49 : vector<4x442xf32>
    %51 = arith.addf %45, %50 : vector<4x442xf32>
    %c0_14 = arith.constant 0 : index
    %c7 = arith.constant 7 : index
    %52 = vector.load %arg2[%c0_14, %c7] : memref<4x37xf32, #tpu.memory_space<vmem>>, vector<4x1xf32>
    %53 = vector.extract_strided_slice %33 {offsets = [3, 0], sizes = [1, 442], strides = [1, 1]} : vector<4x442xf32> to vector<1x442xf32>
    %54 = vector.broadcast %53 : vector<1x442xf32> to vector<4x442xf32>
    %55 = vector.broadcast %52 : vector<4x1xf32> to vector<4x442xf32>
    %56 = arith.mulf %54, %55 : vector<4x442xf32>
    %57 = arith.addf %51, %56 : vector<4x442xf32>
    %58 = vector.extract_strided_slice %3 {offsets = [0, 2], sizes = [4, 442], strides = [1, 1]} : vector<4x484xf32> to vector<4x442xf32>
    %c0_15 = arith.constant 0 : index
    %c8 = arith.constant 8 : index
    %59 = vector.load %arg2[%c0_15, %c8] : memref<4x37xf32, #tpu.memory_space<vmem>>, vector<4x1xf32>
    %60 = vector.extract_strided_slice %58 {offsets = [0, 0], sizes = [1, 442], strides = [1, 1]} : vector<4x442xf32> to vector<1x442xf32>
    %61 = vector.broadcast %60 : vector<1x442xf32> to vector<4x442xf32>
    %62 = vector.broadcast %59 : vector<4x1xf32> to vector<4x442xf32>
    %63 = arith.mulf %61, %62 : vector<4x442xf32>
    %64 = arith.addf %57, %63 : vector<4x442xf32>
    %c0_16 = arith.constant 0 : index
    %c9 = arith.constant 9 : index
    %65 = vector.load %arg2[%c0_16, %c9] : memref<4x37xf32, #tpu.memory_space<vmem>>, vector<4x1xf32>
    %66 = vector.extract_strided_slice %58 {offsets = [1, 0], sizes = [1, 442], strides = [1, 1]} : vector<4x442xf32> to vector<1x442xf32>
    %67 = vector.broadcast %66 : vector<1x442xf32> to vector<4x442xf32>
    %68 = vector.broadcast %65 : vector<4x1xf32> to vector<4x442xf32>
    %69 = arith.mulf %67, %68 : vector<4x442xf32>
    %70 = arith.addf %64, %69 : vector<4x442xf32>
    %c0_17 = arith.constant 0 : index
    %c10 = arith.constant 10 : index
    %71 = vector.load %arg2[%c0_17, %c10] : memref<4x37xf32, #tpu.memory_space<vmem>>, vector<4x1xf32>
    %72 = vector.extract_strided_slice %58 {offsets = [2, 0], sizes = [1, 442], strides = [1, 1]} : vector<4x442xf32> to vector<1x442xf32>
    %73 = vector.broadcast %72 : vector<1x442xf32> to vector<4x442xf32>
    %74 = vector.broadcast %71 : vector<4x1xf32> to vector<4x442xf32>
    %75 = arith.mulf %73, %74 : vector<4x442xf32>
    %76 = arith.addf %70, %75 : vector<4x442xf32>
    %c0_18 = arith.constant 0 : index
    %c11 = arith.constant 11 : index
    %77 = vector.load %arg2[%c0_18, %c11] : memref<4x37xf32, #tpu.memory_space<vmem>>, vector<4x1xf32>
    %78 = vector.extract_strided_slice %58 {offsets = [3, 0], sizes = [1, 442], strides = [1, 1]} : vector<4x442xf32> to vector<1x442xf32>
    %79 = vector.broadcast %78 : vector<1x442xf32> to vector<4x442xf32>
    %80 = vector.broadcast %77 : vector<4x1xf32> to vector<4x442xf32>
    %81 = arith.mulf %79, %80 : vector<4x442xf32>
    %82 = arith.addf %76, %81 : vector<4x442xf32>
    %83 = vector.extract_strided_slice %3 {offsets = [0, 20], sizes = [4, 442], strides = [1, 1]} : vector<4x484xf32> to vector<4x442xf32>
    %c0_19 = arith.constant 0 : index
    %c12 = arith.constant 12 : index
    %84 = vector.load %arg2[%c0_19, %c12] : memref<4x37xf32, #tpu.memory_space<vmem>>, vector<4x1xf32>
    %85 = vector.extract_strided_slice %83 {offsets = [0, 0], sizes = [1, 442], strides = [1, 1]} : vector<4x442xf32> to vector<1x442xf32>
    %86 = vector.broadcast %85 : vector<1x442xf32> to vector<4x442xf32>
    %87 = vector.broadcast %84 : vector<4x1xf32> to vector<4x442xf32>
    %88 = arith.mulf %86, %87 : vector<4x442xf32>
    %89 = arith.addf %82, %88 : vector<4x442xf32>
    %c0_20 = arith.constant 0 : index
    %c13 = arith.constant 13 : index
    %90 = vector.load %arg2[%c0_20, %c13] : memref<4x37xf32, #tpu.memory_space<vmem>>, vector<4x1xf32>
    %91 = vector.extract_strided_slice %83 {offsets = [1, 0], sizes = [1, 442], strides = [1, 1]} : vector<4x442xf32> to vector<1x442xf32>
    %92 = vector.broadcast %91 : vector<1x442xf32> to vector<4x442xf32>
    %93 = vector.broadcast %90 : vector<4x1xf32> to vector<4x442xf32>
    %94 = arith.mulf %92, %93 : vector<4x442xf32>
    %95 = arith.addf %89, %94 : vector<4x442xf32>
    %c0_21 = arith.constant 0 : index
    %c14 = arith.constant 14 : index
    %96 = vector.load %arg2[%c0_21, %c14] : memref<4x37xf32, #tpu.memory_space<vmem>>, vector<4x1xf32>
    %97 = vector.extract_strided_slice %83 {offsets = [2, 0], sizes = [1, 442], strides = [1, 1]} : vector<4x442xf32> to vector<1x442xf32>
    %98 = vector.broadcast %97 : vector<1x442xf32> to vector<4x442xf32>
    %99 = vector.broadcast %96 : vector<4x1xf32> to vector<4x442xf32>
    %100 = arith.mulf %98, %99 : vector<4x442xf32>
    %101 = arith.addf %95, %100 : vector<4x442xf32>
    %c0_22 = arith.constant 0 : index
    %c15 = arith.constant 15 : index
    %102 = vector.load %arg2[%c0_22, %c15] : memref<4x37xf32, #tpu.memory_space<vmem>>, vector<4x1xf32>
    %103 = vector.extract_strided_slice %83 {offsets = [3, 0], sizes = [1, 442], strides = [1, 1]} : vector<4x442xf32> to vector<1x442xf32>
    %104 = vector.broadcast %103 : vector<1x442xf32> to vector<4x442xf32>
    %105 = vector.broadcast %102 : vector<4x1xf32> to vector<4x442xf32>
    %106 = arith.mulf %104, %105 : vector<4x442xf32>
    %107 = arith.addf %101, %106 : vector<4x442xf32>
    %108 = vector.extract_strided_slice %3 {offsets = [0, 21], sizes = [4, 442], strides = [1, 1]} : vector<4x484xf32> to vector<4x442xf32>
    %c0_23 = arith.constant 0 : index
    %c16 = arith.constant 16 : index
    %109 = vector.load %arg2[%c0_23, %c16] : memref<4x37xf32, #tpu.memory_space<vmem>>, vector<4x1xf32>
    %110 = vector.extract_strided_slice %108 {offsets = [0, 0], sizes = [1, 442], strides = [1, 1]} : vector<4x442xf32> to vector<1x442xf32>
    %111 = vector.broadcast %110 : vector<1x442xf32> to vector<4x442xf32>
    %112 = vector.broadcast %109 : vector<4x1xf32> to vector<4x442xf32>
    %113 = arith.mulf %111, %112 : vector<4x442xf32>
    %114 = arith.addf %107, %113 : vector<4x442xf32>
    %c0_24 = arith.constant 0 : index
    %c17 = arith.constant 17 : index
    %115 = vector.load %arg2[%c0_24, %c17] : memref<4x37xf32, #tpu.memory_space<vmem>>, vector<4x1xf32>
    %116 = vector.extract_strided_slice %108 {offsets = [1, 0], sizes = [1, 442], strides = [1, 1]} : vector<4x442xf32> to vector<1x442xf32>
    %117 = vector.broadcast %116 : vector<1x442xf32> to vector<4x442xf32>
    %118 = vector.broadcast %115 : vector<4x1xf32> to vector<4x442xf32>
    %119 = arith.mulf %117, %118 : vector<4x442xf32>
    %120 = arith.addf %114, %119 : vector<4x442xf32>
    %c0_25 = arith.constant 0 : index
    %c18 = arith.constant 18 : index
    %121 = vector.load %arg2[%c0_25, %c18] : memref<4x37xf32, #tpu.memory_space<vmem>>, vector<4x1xf32>
    %122 = vector.extract_strided_slice %108 {offsets = [2, 0], sizes = [1, 442], strides = [1, 1]} : vector<4x442xf32> to vector<1x442xf32>
    %123 = vector.broadcast %122 : vector<1x442xf32> to vector<4x442xf32>
    %124 = vector.broadcast %121 : vector<4x1xf32> to vector<4x442xf32>
    %125 = arith.mulf %123, %124 : vector<4x442xf32>
    %126 = arith.addf %120, %125 : vector<4x442xf32>
    %c0_26 = arith.constant 0 : index
    %c19 = arith.constant 19 : index
    %127 = vector.load %arg2[%c0_26, %c19] : memref<4x37xf32, #tpu.memory_space<vmem>>, vector<4x1xf32>
    %128 = vector.extract_strided_slice %108 {offsets = [3, 0], sizes = [1, 442], strides = [1, 1]} : vector<4x442xf32> to vector<1x442xf32>
    %129 = vector.broadcast %128 : vector<1x442xf32> to vector<4x442xf32>
    %130 = vector.broadcast %127 : vector<4x1xf32> to vector<4x442xf32>
    %131 = arith.mulf %129, %130 : vector<4x442xf32>
    %132 = arith.addf %126, %131 : vector<4x442xf32>
    %133 = vector.extract_strided_slice %3 {offsets = [0, 22], sizes = [4, 442], strides = [1, 1]} : vector<4x484xf32> to vector<4x442xf32>
    %c0_27 = arith.constant 0 : index
    %c20 = arith.constant 20 : index
    %134 = vector.load %arg2[%c0_27, %c20] : memref<4x37xf32, #tpu.memory_space<vmem>>, vector<4x1xf32>
    %135 = vector.extract_strided_slice %133 {offsets = [0, 0], sizes = [1, 442], strides = [1, 1]} : vector<4x442xf32> to vector<1x442xf32>
    %136 = vector.broadcast %135 : vector<1x442xf32> to vector<4x442xf32>
    %137 = vector.broadcast %134 : vector<4x1xf32> to vector<4x442xf32>
    %138 = arith.mulf %136, %137 : vector<4x442xf32>
    %139 = arith.addf %132, %138 : vector<4x442xf32>
    %c0_28 = arith.constant 0 : index
    %c21 = arith.constant 21 : index
    %140 = vector.load %arg2[%c0_28, %c21] : memref<4x37xf32, #tpu.memory_space<vmem>>, vector<4x1xf32>
    %141 = vector.extract_strided_slice %133 {offsets = [1, 0], sizes = [1, 442], strides = [1, 1]} : vector<4x442xf32> to vector<1x442xf32>
    %142 = vector.broadcast %141 : vector<1x442xf32> to vector<4x442xf32>
    %143 = vector.broadcast %140 : vector<4x1xf32> to vector<4x442xf32>
    %144 = arith.mulf %142, %143 : vector<4x442xf32>
    %145 = arith.addf %139, %144 : vector<4x442xf32>
    %c0_29 = arith.constant 0 : index
    %c22 = arith.constant 22 : index
    %146 = vector.load %arg2[%c0_29, %c22] : memref<4x37xf32, #tpu.memory_space<vmem>>, vector<4x1xf32>
    %147 = vector.extract_strided_slice %133 {offsets = [2, 0], sizes = [1, 442], strides = [1, 1]} : vector<4x442xf32> to vector<1x442xf32>
    %148 = vector.broadcast %147 : vector<1x442xf32> to vector<4x442xf32>
    %149 = vector.broadcast %146 : vector<4x1xf32> to vector<4x442xf32>
    %150 = arith.mulf %148, %149 : vector<4x442xf32>
    %151 = arith.addf %145, %150 : vector<4x442xf32>
    %c0_30 = arith.constant 0 : index
    %c23 = arith.constant 23 : index
    %152 = vector.load %arg2[%c0_30, %c23] : memref<4x37xf32, #tpu.memory_space<vmem>>, vector<4x1xf32>
    %153 = vector.extract_strided_slice %133 {offsets = [3, 0], sizes = [1, 442], strides = [1, 1]} : vector<4x442xf32> to vector<1x442xf32>
    %154 = vector.broadcast %153 : vector<1x442xf32> to vector<4x442xf32>
    %155 = vector.broadcast %152 : vector<4x1xf32> to vector<4x442xf32>
    %156 = arith.mulf %154, %155 : vector<4x442xf32>
    %157 = arith.addf %151, %156 : vector<4x442xf32>
    %158 = vector.extract_strided_slice %3 {offsets = [0, 40], sizes = [4, 442], strides = [1, 1]} : vector<4x484xf32> to vector<4x442xf32>
    %c0_31 = arith.constant 0 : index
    %c24 = arith.constant 24 : index
    %159 = vector.load %arg2[%c0_31, %c24] : memref<4x37xf32, #tpu.memory_space<vmem>>, vector<4x1xf32>
    %160 = vector.extract_strided_slice %158 {offsets = [0, 0], sizes = [1, 442], strides = [1, 1]} : vector<4x442xf32> to vector<1x442xf32>
    %161 = vector.broadcast %160 : vector<1x442xf32> to vector<4x442xf32>
    %162 = vector.broadcast %159 : vector<4x1xf32> to vector<4x442xf32>
    %163 = arith.mulf %161, %162 : vector<4x442xf32>
    %164 = arith.addf %157, %163 : vector<4x442xf32>
    %c0_32 = arith.constant 0 : index
    %c25 = arith.constant 25 : index
    %165 = vector.load %arg2[%c0_32, %c25] : memref<4x37xf32, #tpu.memory_space<vmem>>, vector<4x1xf32>
    %166 = vector.extract_strided_slice %158 {offsets = [1, 0], sizes = [1, 442], strides = [1, 1]} : vector<4x442xf32> to vector<1x442xf32>
    %167 = vector.broadcast %166 : vector<1x442xf32> to vector<4x442xf32>
    %168 = vector.broadcast %165 : vector<4x1xf32> to vector<4x442xf32>
    %169 = arith.mulf %167, %168 : vector<4x442xf32>
    %170 = arith.addf %164, %169 : vector<4x442xf32>
    %c0_33 = arith.constant 0 : index
    %c26 = arith.constant 26 : index
    %171 = vector.load %arg2[%c0_33, %c26] : memref<4x37xf32, #tpu.memory_space<vmem>>, vector<4x1xf32>
    %172 = vector.extract_strided_slice %158 {offsets = [2, 0], sizes = [1, 442], strides = [1, 1]} : vector<4x442xf32> to vector<1x442xf32>
    %173 = vector.broadcast %172 : vector<1x442xf32> to vector<4x442xf32>
    %174 = vector.broadcast %171 : vector<4x1xf32> to vector<4x442xf32>
    %175 = arith.mulf %173, %174 : vector<4x442xf32>
    %176 = arith.addf %170, %175 : vector<4x442xf32>
    %c0_34 = arith.constant 0 : index
    %c27 = arith.constant 27 : index
    %177 = vector.load %arg2[%c0_34, %c27] : memref<4x37xf32, #tpu.memory_space<vmem>>, vector<4x1xf32>
    %178 = vector.extract_strided_slice %158 {offsets = [3, 0], sizes = [1, 442], strides = [1, 1]} : vector<4x442xf32> to vector<1x442xf32>
    %179 = vector.broadcast %178 : vector<1x442xf32> to vector<4x442xf32>
    %180 = vector.broadcast %177 : vector<4x1xf32> to vector<4x442xf32>
    %181 = arith.mulf %179, %180 : vector<4x442xf32>
    %182 = arith.addf %176, %181 : vector<4x442xf32>
    %183 = vector.extract_strided_slice %3 {offsets = [0, 41], sizes = [4, 442], strides = [1, 1]} : vector<4x484xf32> to vector<4x442xf32>
    %c0_35 = arith.constant 0 : index
    %c28 = arith.constant 28 : index
    %184 = vector.load %arg2[%c0_35, %c28] : memref<4x37xf32, #tpu.memory_space<vmem>>, vector<4x1xf32>
    %185 = vector.extract_strided_slice %183 {offsets = [0, 0], sizes = [1, 442], strides = [1, 1]} : vector<4x442xf32> to vector<1x442xf32>
    %186 = vector.broadcast %185 : vector<1x442xf32> to vector<4x442xf32>
    %187 = vector.broadcast %184 : vector<4x1xf32> to vector<4x442xf32>
    %188 = arith.mulf %186, %187 : vector<4x442xf32>
    %189 = arith.addf %182, %188 : vector<4x442xf32>
    %c0_36 = arith.constant 0 : index
    %c29 = arith.constant 29 : index
    %190 = vector.load %arg2[%c0_36, %c29] : memref<4x37xf32, #tpu.memory_space<vmem>>, vector<4x1xf32>
    %191 = vector.extract_strided_slice %183 {offsets = [1, 0], sizes = [1, 442], strides = [1, 1]} : vector<4x442xf32> to vector<1x442xf32>
    %192 = vector.broadcast %191 : vector<1x442xf32> to vector<4x442xf32>
    %193 = vector.broadcast %190 : vector<4x1xf32> to vector<4x442xf32>
    %194 = arith.mulf %192, %193 : vector<4x442xf32>
    %195 = arith.addf %189, %194 : vector<4x442xf32>
    %c0_37 = arith.constant 0 : index
    %c30 = arith.constant 30 : index
    %196 = vector.load %arg2[%c0_37, %c30] : memref<4x37xf32, #tpu.memory_space<vmem>>, vector<4x1xf32>
    %197 = vector.extract_strided_slice %183 {offsets = [2, 0], sizes = [1, 442], strides = [1, 1]} : vector<4x442xf32> to vector<1x442xf32>
    %198 = vector.broadcast %197 : vector<1x442xf32> to vector<4x442xf32>
    %199 = vector.broadcast %196 : vector<4x1xf32> to vector<4x442xf32>
    %200 = arith.mulf %198, %199 : vector<4x442xf32>
    %201 = arith.addf %195, %200 : vector<4x442xf32>
    %c0_38 = arith.constant 0 : index
    %c31 = arith.constant 31 : index
    %202 = vector.load %arg2[%c0_38, %c31] : memref<4x37xf32, #tpu.memory_space<vmem>>, vector<4x1xf32>
    %203 = vector.extract_strided_slice %183 {offsets = [3, 0], sizes = [1, 442], strides = [1, 1]} : vector<4x442xf32> to vector<1x442xf32>
    %204 = vector.broadcast %203 : vector<1x442xf32> to vector<4x442xf32>
    %205 = vector.broadcast %202 : vector<4x1xf32> to vector<4x442xf32>
    %206 = arith.mulf %204, %205 : vector<4x442xf32>
    %207 = arith.addf %201, %206 : vector<4x442xf32>
    %208 = vector.extract_strided_slice %3 {offsets = [0, 42], sizes = [4, 442], strides = [1, 1]} : vector<4x484xf32> to vector<4x442xf32>
    %c0_39 = arith.constant 0 : index
    %c32 = arith.constant 32 : index
    %209 = vector.load %arg2[%c0_39, %c32] : memref<4x37xf32, #tpu.memory_space<vmem>>, vector<4x1xf32>
    %210 = vector.extract_strided_slice %208 {offsets = [0, 0], sizes = [1, 442], strides = [1, 1]} : vector<4x442xf32> to vector<1x442xf32>
    %211 = vector.broadcast %210 : vector<1x442xf32> to vector<4x442xf32>
    %212 = vector.broadcast %209 : vector<4x1xf32> to vector<4x442xf32>
    %213 = arith.mulf %211, %212 : vector<4x442xf32>
    %214 = arith.addf %207, %213 : vector<4x442xf32>
    %c0_40 = arith.constant 0 : index
    %c33 = arith.constant 33 : index
    %215 = vector.load %arg2[%c0_40, %c33] : memref<4x37xf32, #tpu.memory_space<vmem>>, vector<4x1xf32>
    %216 = vector.extract_strided_slice %208 {offsets = [1, 0], sizes = [1, 442], strides = [1, 1]} : vector<4x442xf32> to vector<1x442xf32>
    %217 = vector.broadcast %216 : vector<1x442xf32> to vector<4x442xf32>
    %218 = vector.broadcast %215 : vector<4x1xf32> to vector<4x442xf32>
    %219 = arith.mulf %217, %218 : vector<4x442xf32>
    %220 = arith.addf %214, %219 : vector<4x442xf32>
    %c0_41 = arith.constant 0 : index
    %c34 = arith.constant 34 : index
    %221 = vector.load %arg2[%c0_41, %c34] : memref<4x37xf32, #tpu.memory_space<vmem>>, vector<4x1xf32>
    %222 = vector.extract_strided_slice %208 {offsets = [2, 0], sizes = [1, 442], strides = [1, 1]} : vector<4x442xf32> to vector<1x442xf32>
    %223 = vector.broadcast %222 : vector<1x442xf32> to vector<4x442xf32>
    %224 = vector.broadcast %221 : vector<4x1xf32> to vector<4x442xf32>
    %225 = arith.mulf %223, %224 : vector<4x442xf32>
    %226 = arith.addf %220, %225 : vector<4x442xf32>
    %c0_42 = arith.constant 0 : index
    %c35 = arith.constant 35 : index
    %227 = vector.load %arg2[%c0_42, %c35] : memref<4x37xf32, #tpu.memory_space<vmem>>, vector<4x1xf32>
    %228 = vector.extract_strided_slice %208 {offsets = [3, 0], sizes = [1, 442], strides = [1, 1]} : vector<4x442xf32> to vector<1x442xf32>
    %229 = vector.broadcast %228 : vector<1x442xf32> to vector<4x442xf32>
    %230 = vector.broadcast %227 : vector<4x1xf32> to vector<4x442xf32>
    %231 = arith.mulf %229, %230 : vector<4x442xf32>
    %232 = arith.addf %226, %231 : vector<4x442xf32>
    %cst_43 = arith.constant 0.000000e+00 : f32
    %233 = vector.broadcast %cst_43 : f32 to vector<4x442xf32>
    %234 = arith.cmpf oge, %232, %233 : vector<4x442xf32>
    %235 = vector.broadcast %0 : f32 to vector<4x442xf32>
    %236 = arith.mulf %235, %232 : vector<4x442xf32>
    %237 = arith.select %234, %232, %236 : vector<4x442xi1>, vector<4x442xf32>
    %238 = vector.broadcast %1 : vector<1x442xf32> to vector<4x442xf32>
    %239 = arith.mulf %237, %238 : vector<4x442xf32>
    %cst_44 = arith.constant 0.000000e+00 : f32
    %240 = vector.broadcast %cst_44 : f32 to vector<4x400xf32>
    %c0_45 = arith.constant 0 : index
    %c36_46 = arith.constant 36 : index
    %241 = vector.load %arg3[%c0_45, %c36_46] : memref<4x37xf32, #tpu.memory_space<vmem>>, vector<4x1xf32>
    %242 = vector.broadcast %241 : vector<4x1xf32> to vector<4x400xf32>
    %243 = arith.addf %240, %242 : vector<4x400xf32>
    %244 = vector.extract_strided_slice %239 {offsets = [0, 0], sizes = [4, 400], strides = [1, 1]} : vector<4x442xf32> to vector<4x400xf32>
    %c0_47 = arith.constant 0 : index
    %c0_48 = arith.constant 0 : index
    %245 = vector.load %arg3[%c0_47, %c0_48] : memref<4x37xf32, #tpu.memory_space<vmem>>, vector<4x1xf32>
    %246 = vector.extract_strided_slice %244 {offsets = [0, 0], sizes = [1, 400], strides = [1, 1]} : vector<4x400xf32> to vector<1x400xf32>
    %247 = vector.broadcast %246 : vector<1x400xf32> to vector<4x400xf32>
    %248 = vector.broadcast %245 : vector<4x1xf32> to vector<4x400xf32>
    %249 = arith.mulf %247, %248 : vector<4x400xf32>
    %250 = arith.addf %243, %249 : vector<4x400xf32>
    %c0_49 = arith.constant 0 : index
    %c1_50 = arith.constant 1 : index
    %251 = vector.load %arg3[%c0_49, %c1_50] : memref<4x37xf32, #tpu.memory_space<vmem>>, vector<4x1xf32>
    %252 = vector.extract_strided_slice %244 {offsets = [1, 0], sizes = [1, 400], strides = [1, 1]} : vector<4x400xf32> to vector<1x400xf32>
    %253 = vector.broadcast %252 : vector<1x400xf32> to vector<4x400xf32>
    %254 = vector.broadcast %251 : vector<4x1xf32> to vector<4x400xf32>
    %255 = arith.mulf %253, %254 : vector<4x400xf32>
    %256 = arith.addf %250, %255 : vector<4x400xf32>
    %c0_51 = arith.constant 0 : index
    %c2_52 = arith.constant 2 : index
    %257 = vector.load %arg3[%c0_51, %c2_52] : memref<4x37xf32, #tpu.memory_space<vmem>>, vector<4x1xf32>
    %258 = vector.extract_strided_slice %244 {offsets = [2, 0], sizes = [1, 400], strides = [1, 1]} : vector<4x400xf32> to vector<1x400xf32>
    %259 = vector.broadcast %258 : vector<1x400xf32> to vector<4x400xf32>
    %260 = vector.broadcast %257 : vector<4x1xf32> to vector<4x400xf32>
    %261 = arith.mulf %259, %260 : vector<4x400xf32>
    %262 = arith.addf %256, %261 : vector<4x400xf32>
    %c0_53 = arith.constant 0 : index
    %c3_54 = arith.constant 3 : index
    %263 = vector.load %arg3[%c0_53, %c3_54] : memref<4x37xf32, #tpu.memory_space<vmem>>, vector<4x1xf32>
    %264 = vector.extract_strided_slice %244 {offsets = [3, 0], sizes = [1, 400], strides = [1, 1]} : vector<4x400xf32> to vector<1x400xf32>
    %265 = vector.broadcast %264 : vector<1x400xf32> to vector<4x400xf32>
    %266 = vector.broadcast %263 : vector<4x1xf32> to vector<4x400xf32>
    %267 = arith.mulf %265, %266 : vector<4x400xf32>
    %268 = arith.addf %262, %267 : vector<4x400xf32>
    %269 = vector.extract_strided_slice %239 {offsets = [0, 1], sizes = [4, 400], strides = [1, 1]} : vector<4x442xf32> to vector<4x400xf32>
    %c0_55 = arith.constant 0 : index
    %c4_56 = arith.constant 4 : index
    %270 = vector.load %arg3[%c0_55, %c4_56] : memref<4x37xf32, #tpu.memory_space<vmem>>, vector<4x1xf32>
    %271 = vector.extract_strided_slice %269 {offsets = [0, 0], sizes = [1, 400], strides = [1, 1]} : vector<4x400xf32> to vector<1x400xf32>
    %272 = vector.broadcast %271 : vector<1x400xf32> to vector<4x400xf32>
    %273 = vector.broadcast %270 : vector<4x1xf32> to vector<4x400xf32>
    %274 = arith.mulf %272, %273 : vector<4x400xf32>
    %275 = arith.addf %268, %274 : vector<4x400xf32>
    %c0_57 = arith.constant 0 : index
    %c5_58 = arith.constant 5 : index
    %276 = vector.load %arg3[%c0_57, %c5_58] : memref<4x37xf32, #tpu.memory_space<vmem>>, vector<4x1xf32>
    %277 = vector.extract_strided_slice %269 {offsets = [1, 0], sizes = [1, 400], strides = [1, 1]} : vector<4x400xf32> to vector<1x400xf32>
    %278 = vector.broadcast %277 : vector<1x400xf32> to vector<4x400xf32>
    %279 = vector.broadcast %276 : vector<4x1xf32> to vector<4x400xf32>
    %280 = arith.mulf %278, %279 : vector<4x400xf32>
    %281 = arith.addf %275, %280 : vector<4x400xf32>
    %c0_59 = arith.constant 0 : index
    %c6_60 = arith.constant 6 : index
    %282 = vector.load %arg3[%c0_59, %c6_60] : memref<4x37xf32, #tpu.memory_space<vmem>>, vector<4x1xf32>
    %283 = vector.extract_strided_slice %269 {offsets = [2, 0], sizes = [1, 400], strides = [1, 1]} : vector<4x400xf32> to vector<1x400xf32>
    %284 = vector.broadcast %283 : vector<1x400xf32> to vector<4x400xf32>
    %285 = vector.broadcast %282 : vector<4x1xf32> to vector<4x400xf32>
    %286 = arith.mulf %284, %285 : vector<4x400xf32>
    %287 = arith.addf %281, %286 : vector<4x400xf32>
    %c0_61 = arith.constant 0 : index
    %c7_62 = arith.constant 7 : index
    %288 = vector.load %arg3[%c0_61, %c7_62] : memref<4x37xf32, #tpu.memory_space<vmem>>, vector<4x1xf32>
    %289 = vector.extract_strided_slice %269 {offsets = [3, 0], sizes = [1, 400], strides = [1, 1]} : vector<4x400xf32> to vector<1x400xf32>
    %290 = vector.broadcast %289 : vector<1x400xf32> to vector<4x400xf32>
    %291 = vector.broadcast %288 : vector<4x1xf32> to vector<4x400xf32>
    %292 = arith.mulf %290, %291 : vector<4x400xf32>
    %293 = arith.addf %287, %292 : vector<4x400xf32>
    %294 = vector.extract_strided_slice %239 {offsets = [0, 2], sizes = [4, 400], strides = [1, 1]} : vector<4x442xf32> to vector<4x400xf32>
    %c0_63 = arith.constant 0 : index
    %c8_64 = arith.constant 8 : index
    %295 = vector.load %arg3[%c0_63, %c8_64] : memref<4x37xf32, #tpu.memory_space<vmem>>, vector<4x1xf32>
    %296 = vector.extract_strided_slice %294 {offsets = [0, 0], sizes = [1, 400], strides = [1, 1]} : vector<4x400xf32> to vector<1x400xf32>
    %297 = vector.broadcast %296 : vector<1x400xf32> to vector<4x400xf32>
    %298 = vector.broadcast %295 : vector<4x1xf32> to vector<4x400xf32>
    %299 = arith.mulf %297, %298 : vector<4x400xf32>
    %300 = arith.addf %293, %299 : vector<4x400xf32>
    %c0_65 = arith.constant 0 : index
    %c9_66 = arith.constant 9 : index
    %301 = vector.load %arg3[%c0_65, %c9_66] : memref<4x37xf32, #tpu.memory_space<vmem>>, vector<4x1xf32>
    %302 = vector.extract_strided_slice %294 {offsets = [1, 0], sizes = [1, 400], strides = [1, 1]} : vector<4x400xf32> to vector<1x400xf32>
    %303 = vector.broadcast %302 : vector<1x400xf32> to vector<4x400xf32>
    %304 = vector.broadcast %301 : vector<4x1xf32> to vector<4x400xf32>
    %305 = arith.mulf %303, %304 : vector<4x400xf32>
    %306 = arith.addf %300, %305 : vector<4x400xf32>
    %c0_67 = arith.constant 0 : index
    %c10_68 = arith.constant 10 : index
    %307 = vector.load %arg3[%c0_67, %c10_68] : memref<4x37xf32, #tpu.memory_space<vmem>>, vector<4x1xf32>
    %308 = vector.extract_strided_slice %294 {offsets = [2, 0], sizes = [1, 400], strides = [1, 1]} : vector<4x400xf32> to vector<1x400xf32>
    %309 = vector.broadcast %308 : vector<1x400xf32> to vector<4x400xf32>
    %310 = vector.broadcast %307 : vector<4x1xf32> to vector<4x400xf32>
    %311 = arith.mulf %309, %310 : vector<4x400xf32>
    %312 = arith.addf %306, %311 : vector<4x400xf32>
    %c0_69 = arith.constant 0 : index
    %c11_70 = arith.constant 11 : index
    %313 = vector.load %arg3[%c0_69, %c11_70] : memref<4x37xf32, #tpu.memory_space<vmem>>, vector<4x1xf32>
    %314 = vector.extract_strided_slice %294 {offsets = [3, 0], sizes = [1, 400], strides = [1, 1]} : vector<4x400xf32> to vector<1x400xf32>
    %315 = vector.broadcast %314 : vector<1x400xf32> to vector<4x400xf32>
    %316 = vector.broadcast %313 : vector<4x1xf32> to vector<4x400xf32>
    %317 = arith.mulf %315, %316 : vector<4x400xf32>
    %318 = arith.addf %312, %317 : vector<4x400xf32>
    %319 = vector.extract_strided_slice %239 {offsets = [0, 20], sizes = [4, 400], strides = [1, 1]} : vector<4x442xf32> to vector<4x400xf32>
    %c0_71 = arith.constant 0 : index
    %c12_72 = arith.constant 12 : index
    %320 = vector.load %arg3[%c0_71, %c12_72] : memref<4x37xf32, #tpu.memory_space<vmem>>, vector<4x1xf32>
    %321 = vector.extract_strided_slice %319 {offsets = [0, 0], sizes = [1, 400], strides = [1, 1]} : vector<4x400xf32> to vector<1x400xf32>
    %322 = vector.broadcast %321 : vector<1x400xf32> to vector<4x400xf32>
    %323 = vector.broadcast %320 : vector<4x1xf32> to vector<4x400xf32>
    %324 = arith.mulf %322, %323 : vector<4x400xf32>
    %325 = arith.addf %318, %324 : vector<4x400xf32>
    %c0_73 = arith.constant 0 : index
    %c13_74 = arith.constant 13 : index
    %326 = vector.load %arg3[%c0_73, %c13_74] : memref<4x37xf32, #tpu.memory_space<vmem>>, vector<4x1xf32>
    %327 = vector.extract_strided_slice %319 {offsets = [1, 0], sizes = [1, 400], strides = [1, 1]} : vector<4x400xf32> to vector<1x400xf32>
    %328 = vector.broadcast %327 : vector<1x400xf32> to vector<4x400xf32>
    %329 = vector.broadcast %326 : vector<4x1xf32> to vector<4x400xf32>
    %330 = arith.mulf %328, %329 : vector<4x400xf32>
    %331 = arith.addf %325, %330 : vector<4x400xf32>
    %c0_75 = arith.constant 0 : index
    %c14_76 = arith.constant 14 : index
    %332 = vector.load %arg3[%c0_75, %c14_76] : memref<4x37xf32, #tpu.memory_space<vmem>>, vector<4x1xf32>
    %333 = vector.extract_strided_slice %319 {offsets = [2, 0], sizes = [1, 400], strides = [1, 1]} : vector<4x400xf32> to vector<1x400xf32>
    %334 = vector.broadcast %333 : vector<1x400xf32> to vector<4x400xf32>
    %335 = vector.broadcast %332 : vector<4x1xf32> to vector<4x400xf32>
    %336 = arith.mulf %334, %335 : vector<4x400xf32>
    %337 = arith.addf %331, %336 : vector<4x400xf32>
    %c0_77 = arith.constant 0 : index
    %c15_78 = arith.constant 15 : index
    %338 = vector.load %arg3[%c0_77, %c15_78] : memref<4x37xf32, #tpu.memory_space<vmem>>, vector<4x1xf32>
    %339 = vector.extract_strided_slice %319 {offsets = [3, 0], sizes = [1, 400], strides = [1, 1]} : vector<4x400xf32> to vector<1x400xf32>
    %340 = vector.broadcast %339 : vector<1x400xf32> to vector<4x400xf32>
    %341 = vector.broadcast %338 : vector<4x1xf32> to vector<4x400xf32>
    %342 = arith.mulf %340, %341 : vector<4x400xf32>
    %343 = arith.addf %337, %342 : vector<4x400xf32>
    %344 = vector.extract_strided_slice %239 {offsets = [0, 21], sizes = [4, 400], strides = [1, 1]} : vector<4x442xf32> to vector<4x400xf32>
    %c0_79 = arith.constant 0 : index
    %c16_80 = arith.constant 16 : index
    %345 = vector.load %arg3[%c0_79, %c16_80] : memref<4x37xf32, #tpu.memory_space<vmem>>, vector<4x1xf32>
    %346 = vector.extract_strided_slice %344 {offsets = [0, 0], sizes = [1, 400], strides = [1, 1]} : vector<4x400xf32> to vector<1x400xf32>
    %347 = vector.broadcast %346 : vector<1x400xf32> to vector<4x400xf32>
    %348 = vector.broadcast %345 : vector<4x1xf32> to vector<4x400xf32>
    %349 = arith.mulf %347, %348 : vector<4x400xf32>
    %350 = arith.addf %343, %349 : vector<4x400xf32>
    %c0_81 = arith.constant 0 : index
    %c17_82 = arith.constant 17 : index
    %351 = vector.load %arg3[%c0_81, %c17_82] : memref<4x37xf32, #tpu.memory_space<vmem>>, vector<4x1xf32>
    %352 = vector.extract_strided_slice %344 {offsets = [1, 0], sizes = [1, 400], strides = [1, 1]} : vector<4x400xf32> to vector<1x400xf32>
    %353 = vector.broadcast %352 : vector<1x400xf32> to vector<4x400xf32>
    %354 = vector.broadcast %351 : vector<4x1xf32> to vector<4x400xf32>
    %355 = arith.mulf %353, %354 : vector<4x400xf32>
    %356 = arith.addf %350, %355 : vector<4x400xf32>
    %c0_83 = arith.constant 0 : index
    %c18_84 = arith.constant 18 : index
    %357 = vector.load %arg3[%c0_83, %c18_84] : memref<4x37xf32, #tpu.memory_space<vmem>>, vector<4x1xf32>
    %358 = vector.extract_strided_slice %344 {offsets = [2, 0], sizes = [1, 400], strides = [1, 1]} : vector<4x400xf32> to vector<1x400xf32>
    %359 = vector.broadcast %358 : vector<1x400xf32> to vector<4x400xf32>
    %360 = vector.broadcast %357 : vector<4x1xf32> to vector<4x400xf32>
    %361 = arith.mulf %359, %360 : vector<4x400xf32>
    %362 = arith.addf %356, %361 : vector<4x400xf32>
    %c0_85 = arith.constant 0 : index
    %c19_86 = arith.constant 19 : index
    %363 = vector.load %arg3[%c0_85, %c19_86] : memref<4x37xf32, #tpu.memory_space<vmem>>, vector<4x1xf32>
    %364 = vector.extract_strided_slice %344 {offsets = [3, 0], sizes = [1, 400], strides = [1, 1]} : vector<4x400xf32> to vector<1x400xf32>
    %365 = vector.broadcast %364 : vector<1x400xf32> to vector<4x400xf32>
    %366 = vector.broadcast %363 : vector<4x1xf32> to vector<4x400xf32>
    %367 = arith.mulf %365, %366 : vector<4x400xf32>
    %368 = arith.addf %362, %367 : vector<4x400xf32>
    %369 = vector.extract_strided_slice %239 {offsets = [0, 22], sizes = [4, 400], strides = [1, 1]} : vector<4x442xf32> to vector<4x400xf32>
    %c0_87 = arith.constant 0 : index
    %c20_88 = arith.constant 20 : index
    %370 = vector.load %arg3[%c0_87, %c20_88] : memref<4x37xf32, #tpu.memory_space<vmem>>, vector<4x1xf32>
    %371 = vector.extract_strided_slice %369 {offsets = [0, 0], sizes = [1, 400], strides = [1, 1]} : vector<4x400xf32> to vector<1x400xf32>
    %372 = vector.broadcast %371 : vector<1x400xf32> to vector<4x400xf32>
    %373 = vector.broadcast %370 : vector<4x1xf32> to vector<4x400xf32>
    %374 = arith.mulf %372, %373 : vector<4x400xf32>
    %375 = arith.addf %368, %374 : vector<4x400xf32>
    %c0_89 = arith.constant 0 : index
    %c21_90 = arith.constant 21 : index
    %376 = vector.load %arg3[%c0_89, %c21_90] : memref<4x37xf32, #tpu.memory_space<vmem>>, vector<4x1xf32>
    %377 = vector.extract_strided_slice %369 {offsets = [1, 0], sizes = [1, 400], strides = [1, 1]} : vector<4x400xf32> to vector<1x400xf32>
    %378 = vector.broadcast %377 : vector<1x400xf32> to vector<4x400xf32>
    %379 = vector.broadcast %376 : vector<4x1xf32> to vector<4x400xf32>
    %380 = arith.mulf %378, %379 : vector<4x400xf32>
    %381 = arith.addf %375, %380 : vector<4x400xf32>
    %c0_91 = arith.constant 0 : index
    %c22_92 = arith.constant 22 : index
    %382 = vector.load %arg3[%c0_91, %c22_92] : memref<4x37xf32, #tpu.memory_space<vmem>>, vector<4x1xf32>
    %383 = vector.extract_strided_slice %369 {offsets = [2, 0], sizes = [1, 400], strides = [1, 1]} : vector<4x400xf32> to vector<1x400xf32>
    %384 = vector.broadcast %383 : vector<1x400xf32> to vector<4x400xf32>
    %385 = vector.broadcast %382 : vector<4x1xf32> to vector<4x400xf32>
    %386 = arith.mulf %384, %385 : vector<4x400xf32>
    %387 = arith.addf %381, %386 : vector<4x400xf32>
    %c0_93 = arith.constant 0 : index
    %c23_94 = arith.constant 23 : index
    %388 = vector.load %arg3[%c0_93, %c23_94] : memref<4x37xf32, #tpu.memory_space<vmem>>, vector<4x1xf32>
    %389 = vector.extract_strided_slice %369 {offsets = [3, 0], sizes = [1, 400], strides = [1, 1]} : vector<4x400xf32> to vector<1x400xf32>
    %390 = vector.broadcast %389 : vector<1x400xf32> to vector<4x400xf32>
    %391 = vector.broadcast %388 : vector<4x1xf32> to vector<4x400xf32>
    %392 = arith.mulf %390, %391 : vector<4x400xf32>
    %393 = arith.addf %387, %392 : vector<4x400xf32>
    %394 = vector.extract_strided_slice %239 {offsets = [0, 40], sizes = [4, 400], strides = [1, 1]} : vector<4x442xf32> to vector<4x400xf32>
    %c0_95 = arith.constant 0 : index
    %c24_96 = arith.constant 24 : index
    %395 = vector.load %arg3[%c0_95, %c24_96] : memref<4x37xf32, #tpu.memory_space<vmem>>, vector<4x1xf32>
    %396 = vector.extract_strided_slice %394 {offsets = [0, 0], sizes = [1, 400], strides = [1, 1]} : vector<4x400xf32> to vector<1x400xf32>
    %397 = vector.broadcast %396 : vector<1x400xf32> to vector<4x400xf32>
    %398 = vector.broadcast %395 : vector<4x1xf32> to vector<4x400xf32>
    %399 = arith.mulf %397, %398 : vector<4x400xf32>
    %400 = arith.addf %393, %399 : vector<4x400xf32>
    %c0_97 = arith.constant 0 : index
    %c25_98 = arith.constant 25 : index
    %401 = vector.load %arg3[%c0_97, %c25_98] : memref<4x37xf32, #tpu.memory_space<vmem>>, vector<4x1xf32>
    %402 = vector.extract_strided_slice %394 {offsets = [1, 0], sizes = [1, 400], strides = [1, 1]} : vector<4x400xf32> to vector<1x400xf32>
    %403 = vector.broadcast %402 : vector<1x400xf32> to vector<4x400xf32>
    %404 = vector.broadcast %401 : vector<4x1xf32> to vector<4x400xf32>
    %405 = arith.mulf %403, %404 : vector<4x400xf32>
    %406 = arith.addf %400, %405 : vector<4x400xf32>
    %c0_99 = arith.constant 0 : index
    %c26_100 = arith.constant 26 : index
    %407 = vector.load %arg3[%c0_99, %c26_100] : memref<4x37xf32, #tpu.memory_space<vmem>>, vector<4x1xf32>
    %408 = vector.extract_strided_slice %394 {offsets = [2, 0], sizes = [1, 400], strides = [1, 1]} : vector<4x400xf32> to vector<1x400xf32>
    %409 = vector.broadcast %408 : vector<1x400xf32> to vector<4x400xf32>
    %410 = vector.broadcast %407 : vector<4x1xf32> to vector<4x400xf32>
    %411 = arith.mulf %409, %410 : vector<4x400xf32>
    %412 = arith.addf %406, %411 : vector<4x400xf32>
    %c0_101 = arith.constant 0 : index
    %c27_102 = arith.constant 27 : index
    %413 = vector.load %arg3[%c0_101, %c27_102] : memref<4x37xf32, #tpu.memory_space<vmem>>, vector<4x1xf32>
    %414 = vector.extract_strided_slice %394 {offsets = [3, 0], sizes = [1, 400], strides = [1, 1]} : vector<4x400xf32> to vector<1x400xf32>
    %415 = vector.broadcast %414 : vector<1x400xf32> to vector<4x400xf32>
    %416 = vector.broadcast %413 : vector<4x1xf32> to vector<4x400xf32>
    %417 = arith.mulf %415, %416 : vector<4x400xf32>
    %418 = arith.addf %412, %417 : vector<4x400xf32>
    %419 = vector.extract_strided_slice %239 {offsets = [0, 41], sizes = [4, 400], strides = [1, 1]} : vector<4x442xf32> to vector<4x400xf32>
    %c0_103 = arith.constant 0 : index
    %c28_104 = arith.constant 28 : index
    %420 = vector.load %arg3[%c0_103, %c28_104] : memref<4x37xf32, #tpu.memory_space<vmem>>, vector<4x1xf32>
    %421 = vector.extract_strided_slice %419 {offsets = [0, 0], sizes = [1, 400], strides = [1, 1]} : vector<4x400xf32> to vector<1x400xf32>
    %422 = vector.broadcast %421 : vector<1x400xf32> to vector<4x400xf32>
    %423 = vector.broadcast %420 : vector<4x1xf32> to vector<4x400xf32>
    %424 = arith.mulf %422, %423 : vector<4x400xf32>
    %425 = arith.addf %418, %424 : vector<4x400xf32>
    %c0_105 = arith.constant 0 : index
    %c29_106 = arith.constant 29 : index
    %426 = vector.load %arg3[%c0_105, %c29_106] : memref<4x37xf32, #tpu.memory_space<vmem>>, vector<4x1xf32>
    %427 = vector.extract_strided_slice %419 {offsets = [1, 0], sizes = [1, 400], strides = [1, 1]} : vector<4x400xf32> to vector<1x400xf32>
    %428 = vector.broadcast %427 : vector<1x400xf32> to vector<4x400xf32>
    %429 = vector.broadcast %426 : vector<4x1xf32> to vector<4x400xf32>
    %430 = arith.mulf %428, %429 : vector<4x400xf32>
    %431 = arith.addf %425, %430 : vector<4x400xf32>
    %c0_107 = arith.constant 0 : index
    %c30_108 = arith.constant 30 : index
    %432 = vector.load %arg3[%c0_107, %c30_108] : memref<4x37xf32, #tpu.memory_space<vmem>>, vector<4x1xf32>
    %433 = vector.extract_strided_slice %419 {offsets = [2, 0], sizes = [1, 400], strides = [1, 1]} : vector<4x400xf32> to vector<1x400xf32>
    %434 = vector.broadcast %433 : vector<1x400xf32> to vector<4x400xf32>
    %435 = vector.broadcast %432 : vector<4x1xf32> to vector<4x400xf32>
    %436 = arith.mulf %434, %435 : vector<4x400xf32>
    %437 = arith.addf %431, %436 : vector<4x400xf32>
    %c0_109 = arith.constant 0 : index
    %c31_110 = arith.constant 31 : index
    %438 = vector.load %arg3[%c0_109, %c31_110] : memref<4x37xf32, #tpu.memory_space<vmem>>, vector<4x1xf32>
    %439 = vector.extract_strided_slice %419 {offsets = [3, 0], sizes = [1, 400], strides = [1, 1]} : vector<4x400xf32> to vector<1x400xf32>
    %440 = vector.broadcast %439 : vector<1x400xf32> to vector<4x400xf32>
    %441 = vector.broadcast %438 : vector<4x1xf32> to vector<4x400xf32>
    %442 = arith.mulf %440, %441 : vector<4x400xf32>
    %443 = arith.addf %437, %442 : vector<4x400xf32>
    %444 = vector.extract_strided_slice %239 {offsets = [0, 42], sizes = [4, 400], strides = [1, 1]} : vector<4x442xf32> to vector<4x400xf32>
    %c0_111 = arith.constant 0 : index
    %c32_112 = arith.constant 32 : index
    %445 = vector.load %arg3[%c0_111, %c32_112] : memref<4x37xf32, #tpu.memory_space<vmem>>, vector<4x1xf32>
    %446 = vector.extract_strided_slice %444 {offsets = [0, 0], sizes = [1, 400], strides = [1, 1]} : vector<4x400xf32> to vector<1x400xf32>
    %447 = vector.broadcast %446 : vector<1x400xf32> to vector<4x400xf32>
    %448 = vector.broadcast %445 : vector<4x1xf32> to vector<4x400xf32>
    %449 = arith.mulf %447, %448 : vector<4x400xf32>
    %450 = arith.addf %443, %449 : vector<4x400xf32>
    %c0_113 = arith.constant 0 : index
    %c33_114 = arith.constant 33 : index
    %451 = vector.load %arg3[%c0_113, %c33_114] : memref<4x37xf32, #tpu.memory_space<vmem>>, vector<4x1xf32>
    %452 = vector.extract_strided_slice %444 {offsets = [1, 0], sizes = [1, 400], strides = [1, 1]} : vector<4x400xf32> to vector<1x400xf32>
    %453 = vector.broadcast %452 : vector<1x400xf32> to vector<4x400xf32>
    %454 = vector.broadcast %451 : vector<4x1xf32> to vector<4x400xf32>
    %455 = arith.mulf %453, %454 : vector<4x400xf32>
    %456 = arith.addf %450, %455 : vector<4x400xf32>
    %c0_115 = arith.constant 0 : index
    %c34_116 = arith.constant 34 : index
    %457 = vector.load %arg3[%c0_115, %c34_116] : memref<4x37xf32, #tpu.memory_space<vmem>>, vector<4x1xf32>
    %458 = vector.extract_strided_slice %444 {offsets = [2, 0], sizes = [1, 400], strides = [1, 1]} : vector<4x400xf32> to vector<1x400xf32>
    %459 = vector.broadcast %458 : vector<1x400xf32> to vector<4x400xf32>
    %460 = vector.broadcast %457 : vector<4x1xf32> to vector<4x400xf32>
    %461 = arith.mulf %459, %460 : vector<4x400xf32>
    %462 = arith.addf %456, %461 : vector<4x400xf32>
    %c0_117 = arith.constant 0 : index
    %c35_118 = arith.constant 35 : index
    %463 = vector.load %arg3[%c0_117, %c35_118] : memref<4x37xf32, #tpu.memory_space<vmem>>, vector<4x1xf32>
    %464 = vector.extract_strided_slice %444 {offsets = [3, 0], sizes = [1, 400], strides = [1, 1]} : vector<4x400xf32> to vector<1x400xf32>
    %465 = vector.broadcast %464 : vector<1x400xf32> to vector<4x400xf32>
    %466 = vector.broadcast %463 : vector<4x1xf32> to vector<4x400xf32>
    %467 = arith.mulf %465, %466 : vector<4x400xf32>
    %468 = arith.addf %462, %467 : vector<4x400xf32>
    %469 = vector.extract_strided_slice %3 {offsets = [0, 42], sizes = [4, 400], strides = [1, 1]} : vector<4x484xf32> to vector<4x400xf32>
    %470 = arith.addf %469, %468 : vector<4x400xf32>
    %c0_119 = arith.constant 0 : index
    %c0_120 = arith.constant 0 : index
    %c0_121 = arith.constant 0 : index
    %471 = vector.load %arg5[%c0_119, %c0_120, %c0_121] : memref<2x4x400xf32, #tpu.memory_space<vmem>>, vector<1x4x400xf32>
    %472 = vector.shape_cast %471 : vector<1x4x400xf32> to vector<4x400xf32>
    %473 = vector.shape_cast %470 : vector<4x400xf32> to vector<1x4x400xf32>
    tpu.vector_store %arg5[%c0_119, %c0_120, %c0_121], %473 {strides = array<i32>} : memref<2x4x400xf32, #tpu.memory_space<vmem>>, vector<1x4x400xf32>,
    %c1_122 = arith.constant 1 : index
    %c0_123 = arith.constant 0 : index
    %c0_124 = arith.constant 0 : index
    %474 = vector.load %arg0[%c1_122, %c0_123, %c0_124] : memref<2x4x484xf32, #tpu.memory_space<vmem>>, vector<1x4x484xf32>
    %475 = vector.shape_cast %474 : vector<1x4x484xf32> to vector<4x484xf32>
    %cst_125 = arith.constant 0.000000e+00 : f32
    %476 = vector.broadcast %cst_125 : f32 to vector<4x442xf32>
    %c0_126 = arith.constant 0 : index
    %c36_127 = arith.constant 36 : index
    %477 = vector.load %arg2[%c0_126, %c36_127] : memref<4x37xf32, #tpu.memory_space<vmem>>, vector<4x1xf32>
    %478 = vector.broadcast %477 : vector<4x1xf32> to vector<4x442xf32>
    %479 = arith.addf %476, %478 : vector<4x442xf32>
    %480 = vector.extract_strided_slice %475 {offsets = [0, 0], sizes = [4, 442], strides = [1, 1]} : vector<4x484xf32> to vector<4x442xf32>
    %c0_128 = arith.constant 0 : index
    %c0_129 = arith.constant 0 : index
    %481 = vector.load %arg2[%c0_128, %c0_129] : memref<4x37xf32, #tpu.memory_space<vmem>>, vector<4x1xf32>
    %482 = vector.extract_strided_slice %480 {offsets = [0, 0], sizes = [1, 442], strides = [1, 1]} : vector<4x442xf32> to vector<1x442xf32>
    %483 = vector.broadcast %482 : vector<1x442xf32> to vector<4x442xf32>
    %484 = vector.broadcast %481 : vector<4x1xf32> to vector<4x442xf32>
    %485 = arith.mulf %483, %484 : vector<4x442xf32>
    %486 = arith.addf %479, %485 : vector<4x442xf32>
    %c0_130 = arith.constant 0 : index
    %c1_131 = arith.constant 1 : index
    %487 = vector.load %arg2[%c0_130, %c1_131] : memref<4x37xf32, #tpu.memory_space<vmem>>, vector<4x1xf32>
    %488 = vector.extract_strided_slice %480 {offsets = [1, 0], sizes = [1, 442], strides = [1, 1]} : vector<4x442xf32> to vector<1x442xf32>
    %489 = vector.broadcast %488 : vector<1x442xf32> to vector<4x442xf32>
    %490 = vector.broadcast %487 : vector<4x1xf32> to vector<4x442xf32>
    %491 = arith.mulf %489, %490 : vector<4x442xf32>
    %492 = arith.addf %486, %491 : vector<4x442xf32>
    %c0_132 = arith.constant 0 : index
    %c2_133 = arith.constant 2 : index
    %493 = vector.load %arg2[%c0_132, %c2_133] : memref<4x37xf32, #tpu.memory_space<vmem>>, vector<4x1xf32>
    %494 = vector.extract_strided_slice %480 {offsets = [2, 0], sizes = [1, 442], strides = [1, 1]} : vector<4x442xf32> to vector<1x442xf32>
    %495 = vector.broadcast %494 : vector<1x442xf32> to vector<4x442xf32>
    %496 = vector.broadcast %493 : vector<4x1xf32> to vector<4x442xf32>
    %497 = arith.mulf %495, %496 : vector<4x442xf32>
    %498 = arith.addf %492, %497 : vector<4x442xf32>
    %c0_134 = arith.constant 0 : index
    %c3_135 = arith.constant 3 : index
    %499 = vector.load %arg2[%c0_134, %c3_135] : memref<4x37xf32, #tpu.memory_space<vmem>>, vector<4x1xf32>
    %500 = vector.extract_strided_slice %480 {offsets = [3, 0], sizes = [1, 442], strides = [1, 1]} : vector<4x442xf32> to vector<1x442xf32>
    %501 = vector.broadcast %500 : vector<1x442xf32> to vector<4x442xf32>
    %502 = vector.broadcast %499 : vector<4x1xf32> to vector<4x442xf32>
    %503 = arith.mulf %501, %502 : vector<4x442xf32>
    %504 = arith.addf %498, %503 : vector<4x442xf32>
    %505 = vector.extract_strided_slice %475 {offsets = [0, 1], sizes = [4, 442], strides = [1, 1]} : vector<4x484xf32> to vector<4x442xf32>
    %c0_136 = arith.constant 0 : index
    %c4_137 = arith.constant 4 : index
    %506 = vector.load %arg2[%c0_136, %c4_137] : memref<4x37xf32, #tpu.memory_space<vmem>>, vector<4x1xf32>
    %507 = vector.extract_strided_slice %505 {offsets = [0, 0], sizes = [1, 442], strides = [1, 1]} : vector<4x442xf32> to vector<1x442xf32>
    %508 = vector.broadcast %507 : vector<1x442xf32> to vector<4x442xf32>
    %509 = vector.broadcast %506 : vector<4x1xf32> to vector<4x442xf32>
    %510 = arith.mulf %508, %509 : vector<4x442xf32>
    %511 = arith.addf %504, %510 : vector<4x442xf32>
    %c0_138 = arith.constant 0 : index
    %c5_139 = arith.constant 5 : index
    %512 = vector.load %arg2[%c0_138, %c5_139] : memref<4x37xf32, #tpu.memory_space<vmem>>, vector<4x1xf32>
    %513 = vector.extract_strided_slice %505 {offsets = [1, 0], sizes = [1, 442], strides = [1, 1]} : vector<4x442xf32> to vector<1x442xf32>
    %514 = vector.broadcast %513 : vector<1x442xf32> to vector<4x442xf32>
    %515 = vector.broadcast %512 : vector<4x1xf32> to vector<4x442xf32>
    %516 = arith.mulf %514, %515 : vector<4x442xf32>
    %517 = arith.addf %511, %516 : vector<4x442xf32>
    %c0_140 = arith.constant 0 : index
    %c6_141 = arith.constant 6 : index
    %518 = vector.load %arg2[%c0_140, %c6_141] : memref<4x37xf32, #tpu.memory_space<vmem>>, vector<4x1xf32>
    %519 = vector.extract_strided_slice %505 {offsets = [2, 0], sizes = [1, 442], strides = [1, 1]} : vector<4x442xf32> to vector<1x442xf32>
    %520 = vector.broadcast %519 : vector<1x442xf32> to vector<4x442xf32>
    %521 = vector.broadcast %518 : vector<4x1xf32> to vector<4x442xf32>
    %522 = arith.mulf %520, %521 : vector<4x442xf32>
    %523 = arith.addf %517, %522 : vector<4x442xf32>
    %c0_142 = arith.constant 0 : index
    %c7_143 = arith.constant 7 : index
    %524 = vector.load %arg2[%c0_142, %c7_143] : memref<4x37xf32, #tpu.memory_space<vmem>>, vector<4x1xf32>
    %525 = vector.extract_strided_slice %505 {offsets = [3, 0], sizes = [1, 442], strides = [1, 1]} : vector<4x442xf32> to vector<1x442xf32>
    %526 = vector.broadcast %525 : vector<1x442xf32> to vector<4x442xf32>
    %527 = vector.broadcast %524 : vector<4x1xf32> to vector<4x442xf32>
    %528 = arith.mulf %526, %527 : vector<4x442xf32>
    %529 = arith.addf %523, %528 : vector<4x442xf32>
    %530 = vector.extract_strided_slice %475 {offsets = [0, 2], sizes = [4, 442], strides = [1, 1]} : vector<4x484xf32> to vector<4x442xf32>
    %c0_144 = arith.constant 0 : index
    %c8_145 = arith.constant 8 : index
    %531 = vector.load %arg2[%c0_144, %c8_145] : memref<4x37xf32, #tpu.memory_space<vmem>>, vector<4x1xf32>
    %532 = vector.extract_strided_slice %530 {offsets = [0, 0], sizes = [1, 442], strides = [1, 1]} : vector<4x442xf32> to vector<1x442xf32>
    %533 = vector.broadcast %532 : vector<1x442xf32> to vector<4x442xf32>
    %534 = vector.broadcast %531 : vector<4x1xf32> to vector<4x442xf32>
    %535 = arith.mulf %533, %534 : vector<4x442xf32>
    %536 = arith.addf %529, %535 : vector<4x442xf32>
    %c0_146 = arith.constant 0 : index
    %c9_147 = arith.constant 9 : index
    %537 = vector.load %arg2[%c0_146, %c9_147] : memref<4x37xf32, #tpu.memory_space<vmem>>, vector<4x1xf32>
    %538 = vector.extract_strided_slice %530 {offsets = [1, 0], sizes = [1, 442], strides = [1, 1]} : vector<4x442xf32> to vector<1x442xf32>
    %539 = vector.broadcast %538 : vector<1x442xf32> to vector<4x442xf32>
    %540 = vector.broadcast %537 : vector<4x1xf32> to vector<4x442xf32>
    %541 = arith.mulf %539, %540 : vector<4x442xf32>
    %542 = arith.addf %536, %541 : vector<4x442xf32>
    %c0_148 = arith.constant 0 : index
    %c10_149 = arith.constant 10 : index
    %543 = vector.load %arg2[%c0_148, %c10_149] : memref<4x37xf32, #tpu.memory_space<vmem>>, vector<4x1xf32>
    %544 = vector.extract_strided_slice %530 {offsets = [2, 0], sizes = [1, 442], strides = [1, 1]} : vector<4x442xf32> to vector<1x442xf32>
    %545 = vector.broadcast %544 : vector<1x442xf32> to vector<4x442xf32>
    %546 = vector.broadcast %543 : vector<4x1xf32> to vector<4x442xf32>
    %547 = arith.mulf %545, %546 : vector<4x442xf32>
    %548 = arith.addf %542, %547 : vector<4x442xf32>
    %c0_150 = arith.constant 0 : index
    %c11_151 = arith.constant 11 : index
    %549 = vector.load %arg2[%c0_150, %c11_151] : memref<4x37xf32, #tpu.memory_space<vmem>>, vector<4x1xf32>
    %550 = vector.extract_strided_slice %530 {offsets = [3, 0], sizes = [1, 442], strides = [1, 1]} : vector<4x442xf32> to vector<1x442xf32>
    %551 = vector.broadcast %550 : vector<1x442xf32> to vector<4x442xf32>
    %552 = vector.broadcast %549 : vector<4x1xf32> to vector<4x442xf32>
    %553 = arith.mulf %551, %552 : vector<4x442xf32>
    %554 = arith.addf %548, %553 : vector<4x442xf32>
    %555 = vector.extract_strided_slice %475 {offsets = [0, 20], sizes = [4, 442], strides = [1, 1]} : vector<4x484xf32> to vector<4x442xf32>
    %c0_152 = arith.constant 0 : index
    %c12_153 = arith.constant 12 : index
    %556 = vector.load %arg2[%c0_152, %c12_153] : memref<4x37xf32, #tpu.memory_space<vmem>>, vector<4x1xf32>
    %557 = vector.extract_strided_slice %555 {offsets = [0, 0], sizes = [1, 442], strides = [1, 1]} : vector<4x442xf32> to vector<1x442xf32>
    %558 = vector.broadcast %557 : vector<1x442xf32> to vector<4x442xf32>
    %559 = vector.broadcast %556 : vector<4x1xf32> to vector<4x442xf32>
    %560 = arith.mulf %558, %559 : vector<4x442xf32>
    %561 = arith.addf %554, %560 : vector<4x442xf32>
    %c0_154 = arith.constant 0 : index
    %c13_155 = arith.constant 13 : index
    %562 = vector.load %arg2[%c0_154, %c13_155] : memref<4x37xf32, #tpu.memory_space<vmem>>, vector<4x1xf32>
    %563 = vector.extract_strided_slice %555 {offsets = [1, 0], sizes = [1, 442], strides = [1, 1]} : vector<4x442xf32> to vector<1x442xf32>
    %564 = vector.broadcast %563 : vector<1x442xf32> to vector<4x442xf32>
    %565 = vector.broadcast %562 : vector<4x1xf32> to vector<4x442xf32>
    %566 = arith.mulf %564, %565 : vector<4x442xf32>
    %567 = arith.addf %561, %566 : vector<4x442xf32>
    %c0_156 = arith.constant 0 : index
    %c14_157 = arith.constant 14 : index
    %568 = vector.load %arg2[%c0_156, %c14_157] : memref<4x37xf32, #tpu.memory_space<vmem>>, vector<4x1xf32>
    %569 = vector.extract_strided_slice %555 {offsets = [2, 0], sizes = [1, 442], strides = [1, 1]} : vector<4x442xf32> to vector<1x442xf32>
    %570 = vector.broadcast %569 : vector<1x442xf32> to vector<4x442xf32>
    %571 = vector.broadcast %568 : vector<4x1xf32> to vector<4x442xf32>
    %572 = arith.mulf %570, %571 : vector<4x442xf32>
    %573 = arith.addf %567, %572 : vector<4x442xf32>
    %c0_158 = arith.constant 0 : index
    %c15_159 = arith.constant 15 : index
    %574 = vector.load %arg2[%c0_158, %c15_159] : memref<4x37xf32, #tpu.memory_space<vmem>>, vector<4x1xf32>
    %575 = vector.extract_strided_slice %555 {offsets = [3, 0], sizes = [1, 442], strides = [1, 1]} : vector<4x442xf32> to vector<1x442xf32>
    %576 = vector.broadcast %575 : vector<1x442xf32> to vector<4x442xf32>
    %577 = vector.broadcast %574 : vector<4x1xf32> to vector<4x442xf32>
    %578 = arith.mulf %576, %577 : vector<4x442xf32>
    %579 = arith.addf %573, %578 : vector<4x442xf32>
    %580 = vector.extract_strided_slice %475 {offsets = [0, 21], sizes = [4, 442], strides = [1, 1]} : vector<4x484xf32> to vector<4x442xf32>
    %c0_160 = arith.constant 0 : index
    %c16_161 = arith.constant 16 : index
    %581 = vector.load %arg2[%c0_160, %c16_161] : memref<4x37xf32, #tpu.memory_space<vmem>>, vector<4x1xf32>
    %582 = vector.extract_strided_slice %580 {offsets = [0, 0], sizes = [1, 442], strides = [1, 1]} : vector<4x442xf32> to vector<1x442xf32>
    %583 = vector.broadcast %582 : vector<1x442xf32> to vector<4x442xf32>
    %584 = vector.broadcast %581 : vector<4x1xf32> to vector<4x442xf32>
    %585 = arith.mulf %583, %584 : vector<4x442xf32>
    %586 = arith.addf %579, %585 : vector<4x442xf32>
    %c0_162 = arith.constant 0 : index
    %c17_163 = arith.constant 17 : index
    %587 = vector.load %arg2[%c0_162, %c17_163] : memref<4x37xf32, #tpu.memory_space<vmem>>, vector<4x1xf32>
    %588 = vector.extract_strided_slice %580 {offsets = [1, 0], sizes = [1, 442], strides = [1, 1]} : vector<4x442xf32> to vector<1x442xf32>
    %589 = vector.broadcast %588 : vector<1x442xf32> to vector<4x442xf32>
    %590 = vector.broadcast %587 : vector<4x1xf32> to vector<4x442xf32>
    %591 = arith.mulf %589, %590 : vector<4x442xf32>
    %592 = arith.addf %586, %591 : vector<4x442xf32>
    %c0_164 = arith.constant 0 : index
    %c18_165 = arith.constant 18 : index
    %593 = vector.load %arg2[%c0_164, %c18_165] : memref<4x37xf32, #tpu.memory_space<vmem>>, vector<4x1xf32>
    %594 = vector.extract_strided_slice %580 {offsets = [2, 0], sizes = [1, 442], strides = [1, 1]} : vector<4x442xf32> to vector<1x442xf32>
    %595 = vector.broadcast %594 : vector<1x442xf32> to vector<4x442xf32>
    %596 = vector.broadcast %593 : vector<4x1xf32> to vector<4x442xf32>
    %597 = arith.mulf %595, %596 : vector<4x442xf32>
    %598 = arith.addf %592, %597 : vector<4x442xf32>
    %c0_166 = arith.constant 0 : index
    %c19_167 = arith.constant 19 : index
    %599 = vector.load %arg2[%c0_166, %c19_167] : memref<4x37xf32, #tpu.memory_space<vmem>>, vector<4x1xf32>
    %600 = vector.extract_strided_slice %580 {offsets = [3, 0], sizes = [1, 442], strides = [1, 1]} : vector<4x442xf32> to vector<1x442xf32>
    %601 = vector.broadcast %600 : vector<1x442xf32> to vector<4x442xf32>
    %602 = vector.broadcast %599 : vector<4x1xf32> to vector<4x442xf32>
    %603 = arith.mulf %601, %602 : vector<4x442xf32>
    %604 = arith.addf %598, %603 : vector<4x442xf32>
    %605 = vector.extract_strided_slice %475 {offsets = [0, 22], sizes = [4, 442], strides = [1, 1]} : vector<4x484xf32> to vector<4x442xf32>
    %c0_168 = arith.constant 0 : index
    %c20_169 = arith.constant 20 : index
    %606 = vector.load %arg2[%c0_168, %c20_169] : memref<4x37xf32, #tpu.memory_space<vmem>>, vector<4x1xf32>
    %607 = vector.extract_strided_slice %605 {offsets = [0, 0], sizes = [1, 442], strides = [1, 1]} : vector<4x442xf32> to vector<1x442xf32>
    %608 = vector.broadcast %607 : vector<1x442xf32> to vector<4x442xf32>
    %609 = vector.broadcast %606 : vector<4x1xf32> to vector<4x442xf32>
    %610 = arith.mulf %608, %609 : vector<4x442xf32>
    %611 = arith.addf %604, %610 : vector<4x442xf32>
    %c0_170 = arith.constant 0 : index
    %c21_171 = arith.constant 21 : index
    %612 = vector.load %arg2[%c0_170, %c21_171] : memref<4x37xf32, #tpu.memory_space<vmem>>, vector<4x1xf32>
    %613 = vector.extract_strided_slice %605 {offsets = [1, 0], sizes = [1, 442], strides = [1, 1]} : vector<4x442xf32> to vector<1x442xf32>
    %614 = vector.broadcast %613 : vector<1x442xf32> to vector<4x442xf32>
    %615 = vector.broadcast %612 : vector<4x1xf32> to vector<4x442xf32>
    %616 = arith.mulf %614, %615 : vector<4x442xf32>
    %617 = arith.addf %611, %616 : vector<4x442xf32>
    %c0_172 = arith.constant 0 : index
    %c22_173 = arith.constant 22 : index
    %618 = vector.load %arg2[%c0_172, %c22_173] : memref<4x37xf32, #tpu.memory_space<vmem>>, vector<4x1xf32>
    %619 = vector.extract_strided_slice %605 {offsets = [2, 0], sizes = [1, 442], strides = [1, 1]} : vector<4x442xf32> to vector<1x442xf32>
    %620 = vector.broadcast %619 : vector<1x442xf32> to vector<4x442xf32>
    %621 = vector.broadcast %618 : vector<4x1xf32> to vector<4x442xf32>
    %622 = arith.mulf %620, %621 : vector<4x442xf32>
    %623 = arith.addf %617, %622 : vector<4x442xf32>
    %c0_174 = arith.constant 0 : index
    %c23_175 = arith.constant 23 : index
    %624 = vector.load %arg2[%c0_174, %c23_175] : memref<4x37xf32, #tpu.memory_space<vmem>>, vector<4x1xf32>
    %625 = vector.extract_strided_slice %605 {offsets = [3, 0], sizes = [1, 442], strides = [1, 1]} : vector<4x442xf32> to vector<1x442xf32>
    %626 = vector.broadcast %625 : vector<1x442xf32> to vector<4x442xf32>
    %627 = vector.broadcast %624 : vector<4x1xf32> to vector<4x442xf32>
    %628 = arith.mulf %626, %627 : vector<4x442xf32>
    %629 = arith.addf %623, %628 : vector<4x442xf32>
    %630 = vector.extract_strided_slice %475 {offsets = [0, 40], sizes = [4, 442], strides = [1, 1]} : vector<4x484xf32> to vector<4x442xf32>
    %c0_176 = arith.constant 0 : index
    %c24_177 = arith.constant 24 : index
    %631 = vector.load %arg2[%c0_176, %c24_177] : memref<4x37xf32, #tpu.memory_space<vmem>>, vector<4x1xf32>
    %632 = vector.extract_strided_slice %630 {offsets = [0, 0], sizes = [1, 442], strides = [1, 1]} : vector<4x442xf32> to vector<1x442xf32>
    %633 = vector.broadcast %632 : vector<1x442xf32> to vector<4x442xf32>
    %634 = vector.broadcast %631 : vector<4x1xf32> to vector<4x442xf32>
    %635 = arith.mulf %633, %634 : vector<4x442xf32>
    %636 = arith.addf %629, %635 : vector<4x442xf32>
    %c0_178 = arith.constant 0 : index
    %c25_179 = arith.constant 25 : index
    %637 = vector.load %arg2[%c0_178, %c25_179] : memref<4x37xf32, #tpu.memory_space<vmem>>, vector<4x1xf32>
    %638 = vector.extract_strided_slice %630 {offsets = [1, 0], sizes = [1, 442], strides = [1, 1]} : vector<4x442xf32> to vector<1x442xf32>
    %639 = vector.broadcast %638 : vector<1x442xf32> to vector<4x442xf32>
    %640 = vector.broadcast %637 : vector<4x1xf32> to vector<4x442xf32>
    %641 = arith.mulf %639, %640 : vector<4x442xf32>
    %642 = arith.addf %636, %641 : vector<4x442xf32>
    %c0_180 = arith.constant 0 : index
    %c26_181 = arith.constant 26 : index
    %643 = vector.load %arg2[%c0_180, %c26_181] : memref<4x37xf32, #tpu.memory_space<vmem>>, vector<4x1xf32>
    %644 = vector.extract_strided_slice %630 {offsets = [2, 0], sizes = [1, 442], strides = [1, 1]} : vector<4x442xf32> to vector<1x442xf32>
    %645 = vector.broadcast %644 : vector<1x442xf32> to vector<4x442xf32>
    %646 = vector.broadcast %643 : vector<4x1xf32> to vector<4x442xf32>
    %647 = arith.mulf %645, %646 : vector<4x442xf32>
    %648 = arith.addf %642, %647 : vector<4x442xf32>
    %c0_182 = arith.constant 0 : index
    %c27_183 = arith.constant 27 : index
    %649 = vector.load %arg2[%c0_182, %c27_183] : memref<4x37xf32, #tpu.memory_space<vmem>>, vector<4x1xf32>
    %650 = vector.extract_strided_slice %630 {offsets = [3, 0], sizes = [1, 442], strides = [1, 1]} : vector<4x442xf32> to vector<1x442xf32>
    %651 = vector.broadcast %650 : vector<1x442xf32> to vector<4x442xf32>
    %652 = vector.broadcast %649 : vector<4x1xf32> to vector<4x442xf32>
    %653 = arith.mulf %651, %652 : vector<4x442xf32>
    %654 = arith.addf %648, %653 : vector<4x442xf32>
    %655 = vector.extract_strided_slice %475 {offsets = [0, 41], sizes = [4, 442], strides = [1, 1]} : vector<4x484xf32> to vector<4x442xf32>
    %c0_184 = arith.constant 0 : index
    %c28_185 = arith.constant 28 : index
    %656 = vector.load %arg2[%c0_184, %c28_185] : memref<4x37xf32, #tpu.memory_space<vmem>>, vector<4x1xf32>
    %657 = vector.extract_strided_slice %655 {offsets = [0, 0], sizes = [1, 442], strides = [1, 1]} : vector<4x442xf32> to vector<1x442xf32>
    %658 = vector.broadcast %657 : vector<1x442xf32> to vector<4x442xf32>
    %659 = vector.broadcast %656 : vector<4x1xf32> to vector<4x442xf32>
    %660 = arith.mulf %658, %659 : vector<4x442xf32>
    %661 = arith.addf %654, %660 : vector<4x442xf32>
    %c0_186 = arith.constant 0 : index
    %c29_187 = arith.constant 29 : index
    %662 = vector.load %arg2[%c0_186, %c29_187] : memref<4x37xf32, #tpu.memory_space<vmem>>, vector<4x1xf32>
    %663 = vector.extract_strided_slice %655 {offsets = [1, 0], sizes = [1, 442], strides = [1, 1]} : vector<4x442xf32> to vector<1x442xf32>
    %664 = vector.broadcast %663 : vector<1x442xf32> to vector<4x442xf32>
    %665 = vector.broadcast %662 : vector<4x1xf32> to vector<4x442xf32>
    %666 = arith.mulf %664, %665 : vector<4x442xf32>
    %667 = arith.addf %661, %666 : vector<4x442xf32>
    %c0_188 = arith.constant 0 : index
    %c30_189 = arith.constant 30 : index
    %668 = vector.load %arg2[%c0_188, %c30_189] : memref<4x37xf32, #tpu.memory_space<vmem>>, vector<4x1xf32>
    %669 = vector.extract_strided_slice %655 {offsets = [2, 0], sizes = [1, 442], strides = [1, 1]} : vector<4x442xf32> to vector<1x442xf32>
    %670 = vector.broadcast %669 : vector<1x442xf32> to vector<4x442xf32>
    %671 = vector.broadcast %668 : vector<4x1xf32> to vector<4x442xf32>
    %672 = arith.mulf %670, %671 : vector<4x442xf32>
    %673 = arith.addf %667, %672 : vector<4x442xf32>
    %c0_190 = arith.constant 0 : index
    %c31_191 = arith.constant 31 : index
    %674 = vector.load %arg2[%c0_190, %c31_191] : memref<4x37xf32, #tpu.memory_space<vmem>>, vector<4x1xf32>
    %675 = vector.extract_strided_slice %655 {offsets = [3, 0], sizes = [1, 442], strides = [1, 1]} : vector<4x442xf32> to vector<1x442xf32>
    %676 = vector.broadcast %675 : vector<1x442xf32> to vector<4x442xf32>
    %677 = vector.broadcast %674 : vector<4x1xf32> to vector<4x442xf32>
    %678 = arith.mulf %676, %677 : vector<4x442xf32>
    %679 = arith.addf %673, %678 : vector<4x442xf32>
    %680 = vector.extract_strided_slice %475 {offsets = [0, 42], sizes = [4, 442], strides = [1, 1]} : vector<4x484xf32> to vector<4x442xf32>
    %c0_192 = arith.constant 0 : index
    %c32_193 = arith.constant 32 : index
    %681 = vector.load %arg2[%c0_192, %c32_193] : memref<4x37xf32, #tpu.memory_space<vmem>>, vector<4x1xf32>
    %682 = vector.extract_strided_slice %680 {offsets = [0, 0], sizes = [1, 442], strides = [1, 1]} : vector<4x442xf32> to vector<1x442xf32>
    %683 = vector.broadcast %682 : vector<1x442xf32> to vector<4x442xf32>
    %684 = vector.broadcast %681 : vector<4x1xf32> to vector<4x442xf32>
    %685 = arith.mulf %683, %684 : vector<4x442xf32>
    %686 = arith.addf %679, %685 : vector<4x442xf32>
    %c0_194 = arith.constant 0 : index
    %c33_195 = arith.constant 33 : index
    %687 = vector.load %arg2[%c0_194, %c33_195] : memref<4x37xf32, #tpu.memory_space<vmem>>, vector<4x1xf32>
    %688 = vector.extract_strided_slice %680 {offsets = [1, 0], sizes = [1, 442], strides = [1, 1]} : vector<4x442xf32> to vector<1x442xf32>
    %689 = vector.broadcast %688 : vector<1x442xf32> to vector<4x442xf32>
    %690 = vector.broadcast %687 : vector<4x1xf32> to vector<4x442xf32>
    %691 = arith.mulf %689, %690 : vector<4x442xf32>
    %692 = arith.addf %686, %691 : vector<4x442xf32>
    %c0_196 = arith.constant 0 : index
    %c34_197 = arith.constant 34 : index
    %693 = vector.load %arg2[%c0_196, %c34_197] : memref<4x37xf32, #tpu.memory_space<vmem>>, vector<4x1xf32>
    %694 = vector.extract_strided_slice %680 {offsets = [2, 0], sizes = [1, 442], strides = [1, 1]} : vector<4x442xf32> to vector<1x442xf32>
    %695 = vector.broadcast %694 : vector<1x442xf32> to vector<4x442xf32>
    %696 = vector.broadcast %693 : vector<4x1xf32> to vector<4x442xf32>
    %697 = arith.mulf %695, %696 : vector<4x442xf32>
    %698 = arith.addf %692, %697 : vector<4x442xf32>
    %c0_198 = arith.constant 0 : index
    %c35_199 = arith.constant 35 : index
    %699 = vector.load %arg2[%c0_198, %c35_199] : memref<4x37xf32, #tpu.memory_space<vmem>>, vector<4x1xf32>
    %700 = vector.extract_strided_slice %680 {offsets = [3, 0], sizes = [1, 442], strides = [1, 1]} : vector<4x442xf32> to vector<1x442xf32>
    %701 = vector.broadcast %700 : vector<1x442xf32> to vector<4x442xf32>
    %702 = vector.broadcast %699 : vector<4x1xf32> to vector<4x442xf32>
    %703 = arith.mulf %701, %702 : vector<4x442xf32>
    %704 = arith.addf %698, %703 : vector<4x442xf32>
    %cst_200 = arith.constant 0.000000e+00 : f32
    %705 = vector.broadcast %cst_200 : f32 to vector<4x442xf32>
    %706 = arith.cmpf oge, %704, %705 : vector<4x442xf32>
    %707 = vector.broadcast %0 : f32 to vector<4x442xf32>
    %708 = arith.mulf %707, %704 : vector<4x442xf32>
    %709 = arith.select %706, %704, %708 : vector<4x442xi1>, vector<4x442xf32>
    %710 = vector.broadcast %1 : vector<1x442xf32> to vector<4x442xf32>
    %711 = arith.mulf %709, %710 : vector<4x442xf32>
    %cst_201 = arith.constant 0.000000e+00 : f32
    %712 = vector.broadcast %cst_201 : f32 to vector<4x400xf32>
    %c0_202 = arith.constant 0 : index
    %c36_203 = arith.constant 36 : index
    %713 = vector.load %arg3[%c0_202, %c36_203] : memref<4x37xf32, #tpu.memory_space<vmem>>, vector<4x1xf32>
    %714 = vector.broadcast %713 : vector<4x1xf32> to vector<4x400xf32>
    %715 = arith.addf %712, %714 : vector<4x400xf32>
    %716 = vector.extract_strided_slice %711 {offsets = [0, 0], sizes = [4, 400], strides = [1, 1]} : vector<4x442xf32> to vector<4x400xf32>
    %c0_204 = arith.constant 0 : index
    %c0_205 = arith.constant 0 : index
    %717 = vector.load %arg3[%c0_204, %c0_205] : memref<4x37xf32, #tpu.memory_space<vmem>>, vector<4x1xf32>
    %718 = vector.extract_strided_slice %716 {offsets = [0, 0], sizes = [1, 400], strides = [1, 1]} : vector<4x400xf32> to vector<1x400xf32>
    %719 = vector.broadcast %718 : vector<1x400xf32> to vector<4x400xf32>
    %720 = vector.broadcast %717 : vector<4x1xf32> to vector<4x400xf32>
    %721 = arith.mulf %719, %720 : vector<4x400xf32>
    %722 = arith.addf %715, %721 : vector<4x400xf32>
    %c0_206 = arith.constant 0 : index
    %c1_207 = arith.constant 1 : index
    %723 = vector.load %arg3[%c0_206, %c1_207] : memref<4x37xf32, #tpu.memory_space<vmem>>, vector<4x1xf32>
    %724 = vector.extract_strided_slice %716 {offsets = [1, 0], sizes = [1, 400], strides = [1, 1]} : vector<4x400xf32> to vector<1x400xf32>
    %725 = vector.broadcast %724 : vector<1x400xf32> to vector<4x400xf32>
    %726 = vector.broadcast %723 : vector<4x1xf32> to vector<4x400xf32>
    %727 = arith.mulf %725, %726 : vector<4x400xf32>
    %728 = arith.addf %722, %727 : vector<4x400xf32>
    %c0_208 = arith.constant 0 : index
    %c2_209 = arith.constant 2 : index
    %729 = vector.load %arg3[%c0_208, %c2_209] : memref<4x37xf32, #tpu.memory_space<vmem>>, vector<4x1xf32>
    %730 = vector.extract_strided_slice %716 {offsets = [2, 0], sizes = [1, 400], strides = [1, 1]} : vector<4x400xf32> to vector<1x400xf32>
    %731 = vector.broadcast %730 : vector<1x400xf32> to vector<4x400xf32>
    %732 = vector.broadcast %729 : vector<4x1xf32> to vector<4x400xf32>
    %733 = arith.mulf %731, %732 : vector<4x400xf32>
    %734 = arith.addf %728, %733 : vector<4x400xf32>
    %c0_210 = arith.constant 0 : index
    %c3_211 = arith.constant 3 : index
    %735 = vector.load %arg3[%c0_210, %c3_211] : memref<4x37xf32, #tpu.memory_space<vmem>>, vector<4x1xf32>
    %736 = vector.extract_strided_slice %716 {offsets = [3, 0], sizes = [1, 400], strides = [1, 1]} : vector<4x400xf32> to vector<1x400xf32>
    %737 = vector.broadcast %736 : vector<1x400xf32> to vector<4x400xf32>
    %738 = vector.broadcast %735 : vector<4x1xf32> to vector<4x400xf32>
    %739 = arith.mulf %737, %738 : vector<4x400xf32>
    %740 = arith.addf %734, %739 : vector<4x400xf32>
    %741 = vector.extract_strided_slice %711 {offsets = [0, 1], sizes = [4, 400], strides = [1, 1]} : vector<4x442xf32> to vector<4x400xf32>
    %c0_212 = arith.constant 0 : index
    %c4_213 = arith.constant 4 : index
    %742 = vector.load %arg3[%c0_212, %c4_213] : memref<4x37xf32, #tpu.memory_space<vmem>>, vector<4x1xf32>
    %743 = vector.extract_strided_slice %741 {offsets = [0, 0], sizes = [1, 400], strides = [1, 1]} : vector<4x400xf32> to vector<1x400xf32>
    %744 = vector.broadcast %743 : vector<1x400xf32> to vector<4x400xf32>
    %745 = vector.broadcast %742 : vector<4x1xf32> to vector<4x400xf32>
    %746 = arith.mulf %744, %745 : vector<4x400xf32>
    %747 = arith.addf %740, %746 : vector<4x400xf32>
    %c0_214 = arith.constant 0 : index
    %c5_215 = arith.constant 5 : index
    %748 = vector.load %arg3[%c0_214, %c5_215] : memref<4x37xf32, #tpu.memory_space<vmem>>, vector<4x1xf32>
    %749 = vector.extract_strided_slice %741 {offsets = [1, 0], sizes = [1, 400], strides = [1, 1]} : vector<4x400xf32> to vector<1x400xf32>
    %750 = vector.broadcast %749 : vector<1x400xf32> to vector<4x400xf32>
    %751 = vector.broadcast %748 : vector<4x1xf32> to vector<4x400xf32>
    %752 = arith.mulf %750, %751 : vector<4x400xf32>
    %753 = arith.addf %747, %752 : vector<4x400xf32>
    %c0_216 = arith.constant 0 : index
    %c6_217 = arith.constant 6 : index
    %754 = vector.load %arg3[%c0_216, %c6_217] : memref<4x37xf32, #tpu.memory_space<vmem>>, vector<4x1xf32>
    %755 = vector.extract_strided_slice %741 {offsets = [2, 0], sizes = [1, 400], strides = [1, 1]} : vector<4x400xf32> to vector<1x400xf32>
    %756 = vector.broadcast %755 : vector<1x400xf32> to vector<4x400xf32>
    %757 = vector.broadcast %754 : vector<4x1xf32> to vector<4x400xf32>
    %758 = arith.mulf %756, %757 : vector<4x400xf32>
    %759 = arith.addf %753, %758 : vector<4x400xf32>
    %c0_218 = arith.constant 0 : index
    %c7_219 = arith.constant 7 : index
    %760 = vector.load %arg3[%c0_218, %c7_219] : memref<4x37xf32, #tpu.memory_space<vmem>>, vector<4x1xf32>
    %761 = vector.extract_strided_slice %741 {offsets = [3, 0], sizes = [1, 400], strides = [1, 1]} : vector<4x400xf32> to vector<1x400xf32>
    %762 = vector.broadcast %761 : vector<1x400xf32> to vector<4x400xf32>
    %763 = vector.broadcast %760 : vector<4x1xf32> to vector<4x400xf32>
    %764 = arith.mulf %762, %763 : vector<4x400xf32>
    %765 = arith.addf %759, %764 : vector<4x400xf32>
    %766 = vector.extract_strided_slice %711 {offsets = [0, 2], sizes = [4, 400], strides = [1, 1]} : vector<4x442xf32> to vector<4x400xf32>
    %c0_220 = arith.constant 0 : index
    %c8_221 = arith.constant 8 : index
    %767 = vector.load %arg3[%c0_220, %c8_221] : memref<4x37xf32, #tpu.memory_space<vmem>>, vector<4x1xf32>
    %768 = vector.extract_strided_slice %766 {offsets = [0, 0], sizes = [1, 400], strides = [1, 1]} : vector<4x400xf32> to vector<1x400xf32>
    %769 = vector.broadcast %768 : vector<1x400xf32> to vector<4x400xf32>
    %770 = vector.broadcast %767 : vector<4x1xf32> to vector<4x400xf32>
    %771 = arith.mulf %769, %770 : vector<4x400xf32>
    %772 = arith.addf %765, %771 : vector<4x400xf32>
    %c0_222 = arith.constant 0 : index
    %c9_223 = arith.constant 9 : index
    %773 = vector.load %arg3[%c0_222, %c9_223] : memref<4x37xf32, #tpu.memory_space<vmem>>, vector<4x1xf32>
    %774 = vector.extract_strided_slice %766 {offsets = [1, 0], sizes = [1, 400], strides = [1, 1]} : vector<4x400xf32> to vector<1x400xf32>
    %775 = vector.broadcast %774 : vector<1x400xf32> to vector<4x400xf32>
    %776 = vector.broadcast %773 : vector<4x1xf32> to vector<4x400xf32>
    %777 = arith.mulf %775, %776 : vector<4x400xf32>
    %778 = arith.addf %772, %777 : vector<4x400xf32>
    %c0_224 = arith.constant 0 : index
    %c10_225 = arith.constant 10 : index
    %779 = vector.load %arg3[%c0_224, %c10_225] : memref<4x37xf32, #tpu.memory_space<vmem>>, vector<4x1xf32>
    %780 = vector.extract_strided_slice %766 {offsets = [2, 0], sizes = [1, 400], strides = [1, 1]} : vector<4x400xf32> to vector<1x400xf32>
    %781 = vector.broadcast %780 : vector<1x400xf32> to vector<4x400xf32>
    %782 = vector.broadcast %779 : vector<4x1xf32> to vector<4x400xf32>
    %783 = arith.mulf %781, %782 : vector<4x400xf32>
    %784 = arith.addf %778, %783 : vector<4x400xf32>
    %c0_226 = arith.constant 0 : index
    %c11_227 = arith.constant 11 : index
    %785 = vector.load %arg3[%c0_226, %c11_227] : memref<4x37xf32, #tpu.memory_space<vmem>>, vector<4x1xf32>
    %786 = vector.extract_strided_slice %766 {offsets = [3, 0], sizes = [1, 400], strides = [1, 1]} : vector<4x400xf32> to vector<1x400xf32>
    %787 = vector.broadcast %786 : vector<1x400xf32> to vector<4x400xf32>
    %788 = vector.broadcast %785 : vector<4x1xf32> to vector<4x400xf32>
    %789 = arith.mulf %787, %788 : vector<4x400xf32>
    %790 = arith.addf %784, %789 : vector<4x400xf32>
    %791 = vector.extract_strided_slice %711 {offsets = [0, 20], sizes = [4, 400], strides = [1, 1]} : vector<4x442xf32> to vector<4x400xf32>
    %c0_228 = arith.constant 0 : index
    %c12_229 = arith.constant 12 : index
    %792 = vector.load %arg3[%c0_228, %c12_229] : memref<4x37xf32, #tpu.memory_space<vmem>>, vector<4x1xf32>
    %793 = vector.extract_strided_slice %791 {offsets = [0, 0], sizes = [1, 400], strides = [1, 1]} : vector<4x400xf32> to vector<1x400xf32>
    %794 = vector.broadcast %793 : vector<1x400xf32> to vector<4x400xf32>
    %795 = vector.broadcast %792 : vector<4x1xf32> to vector<4x400xf32>
    %796 = arith.mulf %794, %795 : vector<4x400xf32>
    %797 = arith.addf %790, %796 : vector<4x400xf32>
    %c0_230 = arith.constant 0 : index
    %c13_231 = arith.constant 13 : index
    %798 = vector.load %arg3[%c0_230, %c13_231] : memref<4x37xf32, #tpu.memory_space<vmem>>, vector<4x1xf32>
    %799 = vector.extract_strided_slice %791 {offsets = [1, 0], sizes = [1, 400], strides = [1, 1]} : vector<4x400xf32> to vector<1x400xf32>
    %800 = vector.broadcast %799 : vector<1x400xf32> to vector<4x400xf32>
    %801 = vector.broadcast %798 : vector<4x1xf32> to vector<4x400xf32>
    %802 = arith.mulf %800, %801 : vector<4x400xf32>
    %803 = arith.addf %797, %802 : vector<4x400xf32>
    %c0_232 = arith.constant 0 : index
    %c14_233 = arith.constant 14 : index
    %804 = vector.load %arg3[%c0_232, %c14_233] : memref<4x37xf32, #tpu.memory_space<vmem>>, vector<4x1xf32>
    %805 = vector.extract_strided_slice %791 {offsets = [2, 0], sizes = [1, 400], strides = [1, 1]} : vector<4x400xf32> to vector<1x400xf32>
    %806 = vector.broadcast %805 : vector<1x400xf32> to vector<4x400xf32>
    %807 = vector.broadcast %804 : vector<4x1xf32> to vector<4x400xf32>
    %808 = arith.mulf %806, %807 : vector<4x400xf32>
    %809 = arith.addf %803, %808 : vector<4x400xf32>
    %c0_234 = arith.constant 0 : index
    %c15_235 = arith.constant 15 : index
    %810 = vector.load %arg3[%c0_234, %c15_235] : memref<4x37xf32, #tpu.memory_space<vmem>>, vector<4x1xf32>
    %811 = vector.extract_strided_slice %791 {offsets = [3, 0], sizes = [1, 400], strides = [1, 1]} : vector<4x400xf32> to vector<1x400xf32>
    %812 = vector.broadcast %811 : vector<1x400xf32> to vector<4x400xf32>
    %813 = vector.broadcast %810 : vector<4x1xf32> to vector<4x400xf32>
    %814 = arith.mulf %812, %813 : vector<4x400xf32>
    %815 = arith.addf %809, %814 : vector<4x400xf32>
    %816 = vector.extract_strided_slice %711 {offsets = [0, 21], sizes = [4, 400], strides = [1, 1]} : vector<4x442xf32> to vector<4x400xf32>
    %c0_236 = arith.constant 0 : index
    %c16_237 = arith.constant 16 : index
    %817 = vector.load %arg3[%c0_236, %c16_237] : memref<4x37xf32, #tpu.memory_space<vmem>>, vector<4x1xf32>
    %818 = vector.extract_strided_slice %816 {offsets = [0, 0], sizes = [1, 400], strides = [1, 1]} : vector<4x400xf32> to vector<1x400xf32>
    %819 = vector.broadcast %818 : vector<1x400xf32> to vector<4x400xf32>
    %820 = vector.broadcast %817 : vector<4x1xf32> to vector<4x400xf32>
    %821 = arith.mulf %819, %820 : vector<4x400xf32>
    %822 = arith.addf %815, %821 : vector<4x400xf32>
    %c0_238 = arith.constant 0 : index
    %c17_239 = arith.constant 17 : index
    %823 = vector.load %arg3[%c0_238, %c17_239] : memref<4x37xf32, #tpu.memory_space<vmem>>, vector<4x1xf32>
    %824 = vector.extract_strided_slice %816 {offsets = [1, 0], sizes = [1, 400], strides = [1, 1]} : vector<4x400xf32> to vector<1x400xf32>
    %825 = vector.broadcast %824 : vector<1x400xf32> to vector<4x400xf32>
    %826 = vector.broadcast %823 : vector<4x1xf32> to vector<4x400xf32>
    %827 = arith.mulf %825, %826 : vector<4x400xf32>
    %828 = arith.addf %822, %827 : vector<4x400xf32>
    %c0_240 = arith.constant 0 : index
    %c18_241 = arith.constant 18 : index
    %829 = vector.load %arg3[%c0_240, %c18_241] : memref<4x37xf32, #tpu.memory_space<vmem>>, vector<4x1xf32>
    %830 = vector.extract_strided_slice %816 {offsets = [2, 0], sizes = [1, 400], strides = [1, 1]} : vector<4x400xf32> to vector<1x400xf32>
    %831 = vector.broadcast %830 : vector<1x400xf32> to vector<4x400xf32>
    %832 = vector.broadcast %829 : vector<4x1xf32> to vector<4x400xf32>
    %833 = arith.mulf %831, %832 : vector<4x400xf32>
    %834 = arith.addf %828, %833 : vector<4x400xf32>
    %c0_242 = arith.constant 0 : index
    %c19_243 = arith.constant 19 : index
    %835 = vector.load %arg3[%c0_242, %c19_243] : memref<4x37xf32, #tpu.memory_space<vmem>>, vector<4x1xf32>
    %836 = vector.extract_strided_slice %816 {offsets = [3, 0], sizes = [1, 400], strides = [1, 1]} : vector<4x400xf32> to vector<1x400xf32>
    %837 = vector.broadcast %836 : vector<1x400xf32> to vector<4x400xf32>
    %838 = vector.broadcast %835 : vector<4x1xf32> to vector<4x400xf32>
    %839 = arith.mulf %837, %838 : vector<4x400xf32>
    %840 = arith.addf %834, %839 : vector<4x400xf32>
    %841 = vector.extract_strided_slice %711 {offsets = [0, 22], sizes = [4, 400], strides = [1, 1]} : vector<4x442xf32> to vector<4x400xf32>
    %c0_244 = arith.constant 0 : index
    %c20_245 = arith.constant 20 : index
    %842 = vector.load %arg3[%c0_244, %c20_245] : memref<4x37xf32, #tpu.memory_space<vmem>>, vector<4x1xf32>
    %843 = vector.extract_strided_slice %841 {offsets = [0, 0], sizes = [1, 400], strides = [1, 1]} : vector<4x400xf32> to vector<1x400xf32>
    %844 = vector.broadcast %843 : vector<1x400xf32> to vector<4x400xf32>
    %845 = vector.broadcast %842 : vector<4x1xf32> to vector<4x400xf32>
    %846 = arith.mulf %844, %845 : vector<4x400xf32>
    %847 = arith.addf %840, %846 : vector<4x400xf32>
    %c0_246 = arith.constant 0 : index
    %c21_247 = arith.constant 21 : index
    %848 = vector.load %arg3[%c0_246, %c21_247] : memref<4x37xf32, #tpu.memory_space<vmem>>, vector<4x1xf32>
    %849 = vector.extract_strided_slice %841 {offsets = [1, 0], sizes = [1, 400], strides = [1, 1]} : vector<4x400xf32> to vector<1x400xf32>
    %850 = vector.broadcast %849 : vector<1x400xf32> to vector<4x400xf32>
    %851 = vector.broadcast %848 : vector<4x1xf32> to vector<4x400xf32>
    %852 = arith.mulf %850, %851 : vector<4x400xf32>
    %853 = arith.addf %847, %852 : vector<4x400xf32>
    %c0_248 = arith.constant 0 : index
    %c22_249 = arith.constant 22 : index
    %854 = vector.load %arg3[%c0_248, %c22_249] : memref<4x37xf32, #tpu.memory_space<vmem>>, vector<4x1xf32>
    %855 = vector.extract_strided_slice %841 {offsets = [2, 0], sizes = [1, 400], strides = [1, 1]} : vector<4x400xf32> to vector<1x400xf32>
    %856 = vector.broadcast %855 : vector<1x400xf32> to vector<4x400xf32>
    %857 = vector.broadcast %854 : vector<4x1xf32> to vector<4x400xf32>
    %858 = arith.mulf %856, %857 : vector<4x400xf32>
    %859 = arith.addf %853, %858 : vector<4x400xf32>
    %c0_250 = arith.constant 0 : index
    %c23_251 = arith.constant 23 : index
    %860 = vector.load %arg3[%c0_250, %c23_251] : memref<4x37xf32, #tpu.memory_space<vmem>>, vector<4x1xf32>
    %861 = vector.extract_strided_slice %841 {offsets = [3, 0], sizes = [1, 400], strides = [1, 1]} : vector<4x400xf32> to vector<1x400xf32>
    %862 = vector.broadcast %861 : vector<1x400xf32> to vector<4x400xf32>
    %863 = vector.broadcast %860 : vector<4x1xf32> to vector<4x400xf32>
    %864 = arith.mulf %862, %863 : vector<4x400xf32>
    %865 = arith.addf %859, %864 : vector<4x400xf32>
    %866 = vector.extract_strided_slice %711 {offsets = [0, 40], sizes = [4, 400], strides = [1, 1]} : vector<4x442xf32> to vector<4x400xf32>
    %c0_252 = arith.constant 0 : index
    %c24_253 = arith.constant 24 : index
    %867 = vector.load %arg3[%c0_252, %c24_253] : memref<4x37xf32, #tpu.memory_space<vmem>>, vector<4x1xf32>
    %868 = vector.extract_strided_slice %866 {offsets = [0, 0], sizes = [1, 400], strides = [1, 1]} : vector<4x400xf32> to vector<1x400xf32>
    %869 = vector.broadcast %868 : vector<1x400xf32> to vector<4x400xf32>
    %870 = vector.broadcast %867 : vector<4x1xf32> to vector<4x400xf32>
    %871 = arith.mulf %869, %870 : vector<4x400xf32>
    %872 = arith.addf %865, %871 : vector<4x400xf32>
    %c0_254 = arith.constant 0 : index
    %c25_255 = arith.constant 25 : index
    %873 = vector.load %arg3[%c0_254, %c25_255] : memref<4x37xf32, #tpu.memory_space<vmem>>, vector<4x1xf32>
    %874 = vector.extract_strided_slice %866 {offsets = [1, 0], sizes = [1, 400], strides = [1, 1]} : vector<4x400xf32> to vector<1x400xf32>
    %875 = vector.broadcast %874 : vector<1x400xf32> to vector<4x400xf32>
    %876 = vector.broadcast %873 : vector<4x1xf32> to vector<4x400xf32>
    %877 = arith.mulf %875, %876 : vector<4x400xf32>
    %878 = arith.addf %872, %877 : vector<4x400xf32>
    %c0_256 = arith.constant 0 : index
    %c26_257 = arith.constant 26 : index
    %879 = vector.load %arg3[%c0_256, %c26_257] : memref<4x37xf32, #tpu.memory_space<vmem>>, vector<4x1xf32>
    %880 = vector.extract_strided_slice %866 {offsets = [2, 0], sizes = [1, 400], strides = [1, 1]} : vector<4x400xf32> to vector<1x400xf32>
    %881 = vector.broadcast %880 : vector<1x400xf32> to vector<4x400xf32>
    %882 = vector.broadcast %879 : vector<4x1xf32> to vector<4x400xf32>
    %883 = arith.mulf %881, %882 : vector<4x400xf32>
    %884 = arith.addf %878, %883 : vector<4x400xf32>
    %c0_258 = arith.constant 0 : index
    %c27_259 = arith.constant 27 : index
    %885 = vector.load %arg3[%c0_258, %c27_259] : memref<4x37xf32, #tpu.memory_space<vmem>>, vector<4x1xf32>
    %886 = vector.extract_strided_slice %866 {offsets = [3, 0], sizes = [1, 400], strides = [1, 1]} : vector<4x400xf32> to vector<1x400xf32>
    %887 = vector.broadcast %886 : vector<1x400xf32> to vector<4x400xf32>
    %888 = vector.broadcast %885 : vector<4x1xf32> to vector<4x400xf32>
    %889 = arith.mulf %887, %888 : vector<4x400xf32>
    %890 = arith.addf %884, %889 : vector<4x400xf32>
    %891 = vector.extract_strided_slice %711 {offsets = [0, 41], sizes = [4, 400], strides = [1, 1]} : vector<4x442xf32> to vector<4x400xf32>
    %c0_260 = arith.constant 0 : index
    %c28_261 = arith.constant 28 : index
    %892 = vector.load %arg3[%c0_260, %c28_261] : memref<4x37xf32, #tpu.memory_space<vmem>>, vector<4x1xf32>
    %893 = vector.extract_strided_slice %891 {offsets = [0, 0], sizes = [1, 400], strides = [1, 1]} : vector<4x400xf32> to vector<1x400xf32>
    %894 = vector.broadcast %893 : vector<1x400xf32> to vector<4x400xf32>
    %895 = vector.broadcast %892 : vector<4x1xf32> to vector<4x400xf32>
    %896 = arith.mulf %894, %895 : vector<4x400xf32>
    %897 = arith.addf %890, %896 : vector<4x400xf32>
    %c0_262 = arith.constant 0 : index
    %c29_263 = arith.constant 29 : index
    %898 = vector.load %arg3[%c0_262, %c29_263] : memref<4x37xf32, #tpu.memory_space<vmem>>, vector<4x1xf32>
    %899 = vector.extract_strided_slice %891 {offsets = [1, 0], sizes = [1, 400], strides = [1, 1]} : vector<4x400xf32> to vector<1x400xf32>
    %900 = vector.broadcast %899 : vector<1x400xf32> to vector<4x400xf32>
    %901 = vector.broadcast %898 : vector<4x1xf32> to vector<4x400xf32>
    %902 = arith.mulf %900, %901 : vector<4x400xf32>
    %903 = arith.addf %897, %902 : vector<4x400xf32>
    %c0_264 = arith.constant 0 : index
    %c30_265 = arith.constant 30 : index
    %904 = vector.load %arg3[%c0_264, %c30_265] : memref<4x37xf32, #tpu.memory_space<vmem>>, vector<4x1xf32>
    %905 = vector.extract_strided_slice %891 {offsets = [2, 0], sizes = [1, 400], strides = [1, 1]} : vector<4x400xf32> to vector<1x400xf32>
    %906 = vector.broadcast %905 : vector<1x400xf32> to vector<4x400xf32>
    %907 = vector.broadcast %904 : vector<4x1xf32> to vector<4x400xf32>
    %908 = arith.mulf %906, %907 : vector<4x400xf32>
    %909 = arith.addf %903, %908 : vector<4x400xf32>
    %c0_266 = arith.constant 0 : index
    %c31_267 = arith.constant 31 : index
    %910 = vector.load %arg3[%c0_266, %c31_267] : memref<4x37xf32, #tpu.memory_space<vmem>>, vector<4x1xf32>
    %911 = vector.extract_strided_slice %891 {offsets = [3, 0], sizes = [1, 400], strides = [1, 1]} : vector<4x400xf32> to vector<1x400xf32>
    %912 = vector.broadcast %911 : vector<1x400xf32> to vector<4x400xf32>
    %913 = vector.broadcast %910 : vector<4x1xf32> to vector<4x400xf32>
    %914 = arith.mulf %912, %913 : vector<4x400xf32>
    %915 = arith.addf %909, %914 : vector<4x400xf32>
    %916 = vector.extract_strided_slice %711 {offsets = [0, 42], sizes = [4, 400], strides = [1, 1]} : vector<4x442xf32> to vector<4x400xf32>
    %c0_268 = arith.constant 0 : index
    %c32_269 = arith.constant 32 : index
    %917 = vector.load %arg3[%c0_268, %c32_269] : memref<4x37xf32, #tpu.memory_space<vmem>>, vector<4x1xf32>
    %918 = vector.extract_strided_slice %916 {offsets = [0, 0], sizes = [1, 400], strides = [1, 1]} : vector<4x400xf32> to vector<1x400xf32>
    %919 = vector.broadcast %918 : vector<1x400xf32> to vector<4x400xf32>
    %920 = vector.broadcast %917 : vector<4x1xf32> to vector<4x400xf32>
    %921 = arith.mulf %919, %920 : vector<4x400xf32>
    %922 = arith.addf %915, %921 : vector<4x400xf32>
    %c0_270 = arith.constant 0 : index
    %c33_271 = arith.constant 33 : index
    %923 = vector.load %arg3[%c0_270, %c33_271] : memref<4x37xf32, #tpu.memory_space<vmem>>, vector<4x1xf32>
    %924 = vector.extract_strided_slice %916 {offsets = [1, 0], sizes = [1, 400], strides = [1, 1]} : vector<4x400xf32> to vector<1x400xf32>
    %925 = vector.broadcast %924 : vector<1x400xf32> to vector<4x400xf32>
    %926 = vector.broadcast %923 : vector<4x1xf32> to vector<4x400xf32>
    %927 = arith.mulf %925, %926 : vector<4x400xf32>
    %928 = arith.addf %922, %927 : vector<4x400xf32>
    %c0_272 = arith.constant 0 : index
    %c34_273 = arith.constant 34 : index
    %929 = vector.load %arg3[%c0_272, %c34_273] : memref<4x37xf32, #tpu.memory_space<vmem>>, vector<4x1xf32>
    %930 = vector.extract_strided_slice %916 {offsets = [2, 0], sizes = [1, 400], strides = [1, 1]} : vector<4x400xf32> to vector<1x400xf32>
    %931 = vector.broadcast %930 : vector<1x400xf32> to vector<4x400xf32>
    %932 = vector.broadcast %929 : vector<4x1xf32> to vector<4x400xf32>
    %933 = arith.mulf %931, %932 : vector<4x400xf32>
    %934 = arith.addf %928, %933 : vector<4x400xf32>
    %c0_274 = arith.constant 0 : index
    %c35_275 = arith.constant 35 : index
    %935 = vector.load %arg3[%c0_274, %c35_275] : memref<4x37xf32, #tpu.memory_space<vmem>>, vector<4x1xf32>
    %936 = vector.extract_strided_slice %916 {offsets = [3, 0], sizes = [1, 400], strides = [1, 1]} : vector<4x400xf32> to vector<1x400xf32>
    %937 = vector.broadcast %936 : vector<1x400xf32> to vector<4x400xf32>
    %938 = vector.broadcast %935 : vector<4x1xf32> to vector<4x400xf32>
    %939 = arith.mulf %937, %938 : vector<4x400xf32>
    %940 = arith.addf %934, %939 : vector<4x400xf32>
    %941 = vector.extract_strided_slice %475 {offsets = [0, 42], sizes = [4, 400], strides = [1, 1]} : vector<4x484xf32> to vector<4x400xf32>
    %942 = arith.addf %941, %940 : vector<4x400xf32>
    %c1_276 = arith.constant 1 : index
    %c0_277 = arith.constant 0 : index
    %c0_278 = arith.constant 0 : index
    %943 = vector.load %arg5[%c1_276, %c0_277, %c0_278] : memref<2x4x400xf32, #tpu.memory_space<vmem>>, vector<1x4x400xf32>
    %944 = vector.shape_cast %943 : vector<1x4x400xf32> to vector<4x400xf32>
    %945 = vector.shape_cast %942 : vector<4x400xf32> to vector<1x4x400xf32>
    tpu.vector_store %arg5[%c1_276, %c0_277, %c0_278], %945 {strides = array<i32>} : memref<2x4x400xf32, #tpu.memory_space<vmem>>, vector<1x4x400xf32>,
    return
  }
}

</mosaic_0001>

<bundles_post_ra>
// kernel: residual_block.1
= control target key start
LH: loop header
LB: loop body
LE: loop exit
PB: predicated region body
PF: predicated region fallthrough
CT: control target
= control target key end

     0   :  { %v8989_v0 = vmov 0   ;;  %v8997_v2 = vmov 1   ;;  %v8991_v3 = vmov 4   ;;  %v9001_v4 = vmov 2   ;;  %s4992_s24 = smov 127   ;;  %s4993_s25 = smov 126   ;;  %s8949_s2 = inlined_call_operand.vmem [shape: f32[4,37], index: 2, kind: input, shape index: {}]   ;;  %s8950_s0 = inlined_call_operand.vmem [shape: f32[2,4,484], index: 0, kind: input, shape index: {}]   ;;  %s8951_s3 = inlined_call_operand.vmem [shape: f32[4,37], index: 3, kind: input, shape index: {}]   ;;  %s8952_s4 = inlined_call_operand.<no memory space> [shape: f32[1], index: 4, kind: input, shape index: {}]   ;;  %s8953_s1 = inlined_call_operand.vmem [shape: f32[1,442], index: 1, kind: input, shape index: {}]   ;;  %s8954_s5 = inlined_call_operand.vmem [shape: f32[2,4,400], index: 5, kind: output, shape index: {}]  }
   0x1   :  { %4825 = vset.pattern.permute.xlu0 %v8989_v0  ;;  %v5057_v1 = vld [vmem:[%s8949_s2] sm:$0xf]  ;;  %4826 = vset.pattern.permute.xlu1 %v8997_v2  ;;  %v8999_v5 = vmov 5   ;;  %v8995_v6 = vmov 3   ;;  %v8987_v7 = vmov 6   ;;  %v8985_v8 = vmov 7  }
   0x2   :  { %71 = vperm.xlu0 %4825, %v5057_v1   ;;  %119 = vperm.xlu1 %4826, %v5057_v1   ;;  %v8981_v9 = vmov 8   ;;  %v8979_v10 = vmov 9   ;;  %v8977_v11 = vmov 10   ;;  %v8975_v12 = vmov 11   ;;  %v5096_v19 = vld [vmem:[%s8950_s0] sm:$0xff]  ;;  %v5101_v20 = vld [vmem:[%s8950_s0 + $0x8] sm:$0xff] }
   0x3   :  { %v8971_v13 = vmov 12   ;;  %v8969_v14 = vmov 13   ;;  %v8967_v15 = vmov 14   ;;  %v34_v16 = vlaneseq  ;;  %s4994_s26 = smov 108   ;;  %s4998_s27 = smov 107  }
   0x4   :  { %s5003_s28 = smov 106   ;;  %s5008_s29 = smov 88   ;;  %vm246_vm0 = vcmask 1039360   ;;  %vm371_vm1 = vcmask 1031168   ;;  %vm496_vm2 = vcmask 883712   ;;  %vm621_vm3 = vcmask 875520  }
   0x5   :  { %v5088_v17 = vshrl.u32 %v34_v16, 7  ;;  %s5013_s30 = smov 87   ;;  %s5018_s6 = smov 86   ;;  %vm746_vm4 = vcmask 867328   ;;  %vm871_vm5 = vcmask 719872   ;;  %vm996_vm6 = vcmask 711680  }
   0x6   :  { %4829 = vset.pattern.permute.xlu0 %v8991_v3  ;;  %4827 = vset.pattern.permute.xlu1 %v9001_v4  ;;  %vm1121_vm7 = vcmask 703488   ;;  %s5022_s15 = smov 42   ;;  %vm2387_vm12 = vcmask 343040   ;;  %vm2389_vm13 = vcmask 1043456   ;;  %vm2410_vm14 = vcmask 130052  }
   0x7   :  { %227 = vperm.xlu0 %4829, %v5057_v1   ;;  %167 = vperm.xlu1 %4827, %v5057_v1   ;;  %v5091_v18 = vsub.s32 0, %v5088_v17  ;;  %v5104_v21 = vsub.s32 1, %v5088_v17  ;;  %v5107_v22 = vsub.s32 4, %v5088_v17  ;;  %v5118_v27 = vsub.s32 2, %v5088_v17  ;;  %vm7144_vm15 = vmor %vm2410_vm14, %vm2389_vm13 }
   0x8   :  { %v5143_v38 = vsub.s32 3, %v5088_v17  ;;  %v5149_v42 = vsub.s32 5, %v5088_v17  ;;  %v5189_v61 = vsub.s32 6, %v5088_v17 }
   0x9   :  { %9261 = vst [vmem:[#allocation3_spill] sm:$0xff] %v5091_v18  ;;  %9262 = vst [vmem:[#allocation4_spill] sm:$0xff] %v5104_v21  ;;  %v37_v24 = vrot.slane %v5096_v19, %v5091_v18  ;;  %v45_v25 = vrot.slane %v5101_v20, %v5091_v18  ;;  %v93_v26 = vrot.slane %v5101_v20, %v5104_v21 }
   0xa   :  { %9263 = vst [vmem:[#allocation5_spill] sm:$0xff] %v5107_v22  ;;  %9264 = vst [vmem:[#allocation6_spill] sm:$0xff] %v5118_v27  ;;  %v41_v28 = vrot.slane %v5096_v19, %v5107_v22  ;;  %v49_v35 = vrot.slane %v5101_v20, %v5107_v22  ;;  %v141_v37 = vrot.slane %v5101_v20, %v5118_v27 }
   0xb   :  { %4830 = vset.pattern.permute.xlu0 %v8999_v5  ;;  %4828 = vset.pattern.permute.xlu1 %v8995_v6  ;;  %v5123_v29 = vrot.slane %v37_v24, %v5091_v18  ;;  %v5126_v30 = vrot.slane %v45_v25, %v5091_v18  ;;  %v5131_v34 = vrot.slane %v93_v26, %v5104_v21  ;;  %v9003_v6 = vmov 24  }
   0xc   :  { %259 = vperm.xlu0 %4830, %v5057_v1   ;;  %215 = vperm.xlu1 %4828, %v5057_v1   ;;  %v5136_v36 = vrot.slane %v41_v28, %v5091_v18  ;;  %9265 = vst [vmem:[#allocation7_spill] sm:$0xff] %v5143_v38  ;;  %v85_v41 = vrot.slane %v5096_v19, %v5104_v21  ;;  %9266 = vst [vmem:[#allocation8_spill] sm:$0xff] %v5149_v42 }
   0xd   :  { %v5153_v44 = vrot.slane %v49_v35, %v5091_v18  ;;  %v5157_v45 = vrot.slane %v141_v37, %v5118_v27  ;;  %v189_v46 = vrot.slane %v5101_v20, %v5143_v38  ;;  %v89_v49 = vrot.slane %v5096_v19, %v5149_v42  ;;  %9267 = vst [vmem:[#allocation9_spill] sm:$0xff] %v5189_v61 }
   0xe   :  { %v5164_v48 = vrot.slane %v85_v41, %v5104_v21  ;;  %v97_v55 = vrot.slane %v5101_v20, %v5149_v42  ;;  %v133_v60 = vrot.slane %v5096_v19, %v5118_v27  ;;  %v137_v25 = vrot.slane %v5096_v19, %v5189_v61 }
   0xf   :  { %v5171_v52 = vrot.slane %v189_v46, %v5143_v38  ;;  %v5176_v54 = vrot.slane %v89_v49, %v5104_v21 }
  0x10   :  { %4831 = vset.pattern.permute.xlu0 %v8987_v7  ;;  %4862 = vset.pattern.permute.xlu1 %v8989_v0  ;;  %v5184_v59 = vrot.slane %v97_v55, %v5104_v21  ;;  %v5196_v24 = vrot.slane %v133_v60, %v5118_v27 }
  0x11   :  { %290 = vperm.xlu0 %4831, %v5057_v1  }
  0x15   :  { %4832 = vset.pattern.permute.xlu0 %v8985_v8  ;;  %v8993_v8 = vmov 23  }
  0x16   :  { %321 = vperm.xlu0 %4832, %v5057_v1  }
  0x1a   :  { %4833 = vset.pattern.permute.xlu0 %v8981_v9 }
  0x1b   :  { %352 = vperm.xlu0 %4833, %v5057_v1  }
  0x1f   :  { %4834 = vset.pattern.permute.xlu0 %v8979_v10 }
  0x20   :  { %384 = vperm.xlu0 %4834, %v5057_v1  }
  0x24   :  { %4835 = vset.pattern.permute.xlu0 %v8977_v11 }
  0x25   :  { %415 = vperm.xlu0 %4835, %v5057_v1  }
  0x29   :  { %4836 = vset.pattern.permute.xlu0 %v8975_v12  ;;  %v8983_v12 = vmov 22  }
  0x2a   :  { %446 = vperm.xlu0 %4836, %v5057_v1  }
  0x2e   :  { %4837 = vset.pattern.permute.xlu0 %v8971_v13 }
  0x2f   :  { %477 = vperm.xlu0 %4837, %v5057_v1  }
  0x33   :  { %4838 = vset.pattern.permute.xlu0 %v8969_v14 }
  0x34   :  { %509 = vperm.xlu0 %4838, %v5057_v1  }
  0x38   :  { %4839 = vset.pattern.permute.xlu0 %v8967_v15 }
  0x7d   :  { %v5109_v23 = vpop.permute.xlu0 %71 }
  0x82   :  { %v228_v31 = vpop.permute.xlu0 %227 }
  0x83   :  { %v232_v32 = vmul.f32 %v228_v31, %v5126_v30  ;;  %v230_v33 = vmul.f32 %v228_v31, %v5123_v29  ;;  %v231_v40 = vmul.f32 %v228_v31, %v5136_v36  ;;  %v233_v47 = vmul.f32 %v228_v31, %v5153_v44 }
  0x84   :  { %v5204_v31 = vrot.slane %v137_v25, %v5118_v27 }
  0x85   :  { %242 = vrot.lane.b32.xlu0 %v232_v32, %s4992_s24  ;;  %238 = vrot.lane.b32.xlu1 %v230_v33, %s4992_s24  ;;  %v145_v32 = vrot.slane %v5101_v20, %v5189_v61 }
  0x87   :  { %v260_v39 = vpop.permute.xlu0 %259  ;;  %v5213_v37 = vrot.slane %v145_v32, %v5118_v27  ;;  %v8963_v32 = vmov 15  }
  0x88   :  { %v264_v43 = vmul.f32 %v260_v39, %v5131_v34  ;;  %v262_v53 = vmul.f32 %v260_v39, %v5164_v48  ;;  %v263_v58 = vmul.f32 %v260_v39, %v5176_v54  ;;  %v265_v16 = vmul.f32 %v260_v39, %v5184_v59 }
  0x89   :  { %240 = vrot.lane.b32.xlu1 %v231_v40, %s4992_s24  ;;  %v181_v39 = vrot.slane %v5096_v19, %v5143_v38  ;;  %v5218_v40 = vsub.s32 7, %v5088_v17 }
  0x8a   :  { %274 = vrot.lane.b32.xlu0 %v264_v43, %s4992_s24 }
  0x8b   :  { %9268 = vst [vmem:[#allocation10_spill] sm:$0xff] %v5218_v40  ;;  %v185_v49 = vrot.slane %v5096_v19, %v5218_v40 }
  0x8c   :  { %v291_v50 = vpop.permute.xlu0 %290 }
  0x8d   :  { %244 = vrot.lane.b32.xlu1 %v233_v47, %s4992_s24  ;;  %v295_v51 = vmul.f32 %v291_v50, %v5157_v45  ;;  %v293_v28 = vmul.f32 %v291_v50, %v5196_v24  ;;  %v294_v35 = vmul.f32 %v291_v50, %v5204_v31  ;;  %v296_v46 = vmul.f32 %v291_v50, %v5213_v37 }
  0x8e   :  { %v5225_v47 = vrot.slane %v181_v39, %v5143_v38  ;;  %v5233_v55 = vrot.slane %v185_v49, %v5143_v38 }
  0x8f   :  { %305 = vrot.lane.b32.xlu0 %v295_v51, %s4992_s24 }
  0x91   :  { %v322_v56 = vpop.permute.xlu0 %321  ;;  %270 = vrot.lane.b32.xlu1 %v262_v53, %s4992_s24 }
  0x92   :  { %v326_v57 = vmul.f32 %v322_v56, %v5171_v52  ;;  %v324_v53 = vmul.f32 %v322_v56, %v5225_v47 }
  0x94   :  { %336 = vrot.lane.b32.xlu0 %v326_v57, %s4992_s24  ;;  %v193_v57 = vrot.slane %v5101_v20, %v5218_v40  ;;  %v9013_v40 = vmov 25  }
  0x95   :  { %272 = vrot.lane.b32.xlu1 %v263_v58, %s4992_s24  ;;  %v325_v58 = vmul.f32 %v322_v56, %v5233_v55 }
  0x96   :  { %v353_v62 = vpop.permute.xlu0 %352  ;;  %v5242_v60 = vrot.slane %v193_v57, %v5143_v38  ;;  %v9023_v38 = vmov 26  }
  0x97   :  { %v357_v63 = vmul.f32 %v353_v62, %v5126_v30  ;;  %v355_v25 = vmul.f32 %v353_v62, %v5123_v29 }
  0x98   :  { %v327_v20 = vmul.f32 %v322_v56, %v5242_v60  ;;  %v358_v56 = vmul.f32 %v353_v62, %v5153_v44 }
  0x99   :  { %367 = vrot.lane.b32.xlu0 %v357_v63, %s4993_s25  ;;  %276 = vrot.lane.b32.xlu1 %v265_v16, %s4992_s24 }
  0x9b   :  { %v385_v26 = vpop.permute.xlu0 %384 }
  0x9c   :  { %v389_v33 = vmul.f32 %v385_v26, %v5131_v34  ;;  %v390_v39 = vmul.f32 %v385_v26, %v5184_v59 }
  0x9d   :  { %301 = vrot.lane.b32.xlu1 %v293_v28, %s4992_s24  ;;  %v356_v28 = vmul.f32 %v353_v62, %v5136_v36 }
  0x9e   :  { %399 = vrot.lane.b32.xlu0 %v389_v33, %s4993_s25  ;;  %v387_v33 = vmul.f32 %v385_v26, %v5164_v48 }
  0xa0   :  { %v416_v41 = vpop.permute.xlu0 %415 }
  0xa1   :  { %303 = vrot.lane.b32.xlu1 %v294_v35, %s4992_s24  ;;  %v420_v43 = vmul.f32 %v416_v41, %v5157_v45  ;;  %v388_v35 = vmul.f32 %v385_v26, %v5176_v54  ;;  %v419_v62 = vmul.f32 %v416_v41, %v5204_v31 }
  0xa3   :  { %430 = vrot.lane.b32.xlu0 %v420_v43, %s4993_s25  ;;  %v418_v43 = vmul.f32 %v416_v41, %v5196_v24 }
  0xa5   :  { %v447_v51 = vpop.permute.xlu0 %446  ;;  %307 = vrot.lane.b32.xlu1 %v296_v46, %s4992_s24  ;;  %v421_v46 = vmul.f32 %v416_v41, %v5213_v37 }
  0xa6   :  { %v451_v17 = vmul.f32 %v447_v51, %v5171_v52  ;;  %v449_v49 = vmul.f32 %v447_v51, %v5225_v47  ;;  %v450_v26 = vmul.f32 %v447_v51, %v5233_v55 }
  0xa8   :  { %461 = vrot.lane.b32.xlu0 %v451_v17, %s4993_s25  ;;  %v452_v17 = vmul.f32 %v447_v51, %v5242_v60 }
  0xa9   :  { %332 = vrot.lane.b32.xlu1 %v324_v53, %s4992_s24 }
  0xaa   :  { %v478_v50 = vpop.permute.xlu0 %477 }
  0xab   :  { %v482_v19 = vmul.f32 %v478_v50, %v5126_v30  ;;  %v480_v53 = vmul.f32 %v478_v50, %v5123_v29  ;;  %v481_v41 = vmul.f32 %v478_v50, %v5136_v36  ;;  %v483_v57 = vmul.f32 %v478_v50, %v5153_v44 }
  0xad   :  { %492 = vrot.lane.b32.xlu0 %v482_v19, %s4994_s26  ;;  %334 = vrot.lane.b32.xlu1 %v325_v58, %s4992_s24 }
  0xaf   :  { %v510_v63 = vpop.permute.xlu0 %509 }
  0xb0   :  { %v514_v16 = vmul.f32 %v510_v63, %v5131_v34  ;;  %v512_v19 = vmul.f32 %v510_v63, %v5164_v48  ;;  %v513_v51 = vmul.f32 %v510_v63, %v5176_v54 }
  0xb1   :  { %338 = vrot.lane.b32.xlu1 %v327_v20, %s4992_s24  ;;  %v515_v20 = vmul.f32 %v510_v63, %v5184_v59 }
  0xb2   :  { %524 = vrot.lane.b32.xlu0 %v514_v16, %s4994_s26 }
  0xb5   :  { %363 = vrot.lane.b32.xlu1 %v355_v25, %s4993_s25 }
  0xb6   :  { %540 = vperm.xlu0 %4839, %v5057_v1  }
  0xb9   :  { %365 = vrot.lane.b32.xlu1 %v356_v28, %s4993_s25 }
  0xba   :  { %4840 = vset.pattern.permute.xlu0 %v8963_v32  ;;  %v5372_v32 = vpop.permute.xlu1 %119 }
  0xbd   :  { %369 = vrot.lane.b32.xlu1 %v358_v56, %s4993_s25 }
  0xc1   :  { %395 = vrot.lane.b32.xlu1 %v387_v33, %s4993_s25 }
  0xc5   :  { %397 = vrot.lane.b32.xlu1 %v388_v35, %s4993_s25 }
  0xc9   :  { %401 = vrot.lane.b32.xlu1 %v390_v39, %s4993_s25 }
  0xcd   :  { %426 = vrot.lane.b32.xlu1 %v418_v43, %s4993_s25 }
  0xd1   :  { %428 = vrot.lane.b32.xlu1 %v419_v62, %s4993_s25 }
  0xd5   :  { %432 = vrot.lane.b32.xlu1 %v421_v46, %s4993_s25 }
  0xd9   :  { %457 = vrot.lane.b32.xlu1 %v449_v49, %s4993_s25 }
  0xdd   :  { %459 = vrot.lane.b32.xlu1 %v450_v26, %s4993_s25 }
  0xe1   :  { %463 = vrot.lane.b32.xlu1 %v452_v17, %s4993_s25  ;;  %v8961_v17 = vmov 16  }
  0xe5   :  { %488 = vrot.lane.b32.xlu1 %v480_v53, %s4994_s26 }
  0xe9   :  { %490 = vrot.lane.b32.xlu1 %v481_v41, %s4994_s26 }
  0xed   :  { %494 = vrot.lane.b32.xlu1 %v483_v57, %s4994_s26 }
  0xf1   :  { %520 = vrot.lane.b32.xlu1 %v512_v19, %s4994_s26 }
  0xf5   :  { %522 = vrot.lane.b32.xlu1 %v513_v51, %s4994_s26 }
  0xf7   :  { %v5286_v58 = vpop.permute.xlu0 %242 }
  0xf9   :  { %526 = vrot.lane.b32.xlu1 %v515_v20, %s4994_s26 }
  0xfc   :  { %v5290_v16 = vpop.permute.xlu0 %274 }
 0x101   :  { %v5292_v25 = vpop.permute.xlu0 %305 }
 0x106   :  { %v5294_v50 = vpop.permute.xlu0 %336 }
 0x10b   :  { %v5296_v28 = vpop.permute.xlu0 %367 }
 0x110   :  { %v5298_v56 = vpop.permute.xlu0 %399 }
 0x115   :  { %v5300_v33 = vpop.permute.xlu0 %430 }
 0x11a   :  { %v5302_v35 = vpop.permute.xlu0 %461 }
 0x11f   :  { %v5304_v39 = vpop.permute.xlu0 %492 }
 0x120   :  { %9269 = vst [vmem:[#allocation11_spill] sm:$0xff] %v5304_v39 }
 0x124   :  { %v5306_v43 = vpop.permute.xlu0 %524 }
 0x125   :  { %9270 = vst [vmem:[#allocation12_spill] sm:$0xff] %v5306_v43 }
 0x131   :  { %v541_v63 = vpop.permute.xlu0 %540 }
 0x132   :  { %v545_v62 = vmul.f32 %v541_v63, %v5157_v45  ;;  %v543_v46 = vmul.f32 %v541_v63, %v5196_v24  ;;  %v544_v49 = vmul.f32 %v541_v63, %v5204_v31  ;;  %v546_v26 = vmul.f32 %v541_v63, %v5213_v37 }
 0x133   :  { %v8957_v63 = vmov 17  }
 0x134   :  { %555 = vrot.lane.b32.xlu0 %v545_v62, %s4994_s26  ;;  %551 = vrot.lane.b32.xlu1 %v543_v46, %s4994_s26 }
 0x138   :  { %571 = vperm.xlu0 %4840, %v5057_v1   ;;  %553 = vrot.lane.b32.xlu1 %v544_v49, %s4994_s26 }
 0x13c   :  { %557 = vrot.lane.b32.xlu1 %v546_v26, %s4994_s26  ;;  %4841 = vset.pattern.permute.xlu0 %v8961_v17 }
 0x1a6   :  { %v5318_v53 = vpop.permute.xlu0 %555 }
 0x1a7   :  { %9271 = vst [vmem:[#allocation13_spill] sm:$0xff] %v5318_v53 }
 0x1b3   :  { %v572_v41 = vpop.permute.xlu0 %571 }
 0x1b4   :  { %v576_v57 = vmul.f32 %v572_v41, %v5171_v52  ;;  %v574_v19 = vmul.f32 %v572_v41, %v5225_v47  ;;  %v575_v51 = vmul.f32 %v572_v41, %v5233_v55  ;;  %v577_v20 = vmul.f32 %v572_v41, %v5242_v60 }
 0x1b6   :  { %586 = vrot.lane.b32.xlu0 %v576_v57, %s4994_s26  ;;  %582 = vrot.lane.b32.xlu1 %v574_v19, %s4994_s26  ;;  %v8955_v19 = vmov 18  }
 0x1ba   :  { %602 = vperm.xlu0 %4841, %v5057_v1   ;;  %584 = vrot.lane.b32.xlu1 %v575_v51, %s4994_s26 }
 0x1be   :  { %588 = vrot.lane.b32.xlu1 %v577_v20, %s4994_s26  ;;  %4842 = vset.pattern.permute.xlu0 %v8957_v63 }
 0x228   :  { %v5330_v62 = vpop.permute.xlu0 %586 }
 0x229   :  { %9272 = vst [vmem:[#allocation14_spill] sm:$0xff] %v5330_v62 }
 0x235   :  { %v603_v46 = vpop.permute.xlu0 %602 }
 0x236   :  { %v607_v49 = vmul.f32 %v603_v46, %v5126_v30  ;;  %v605_v26 = vmul.f32 %v603_v46, %v5123_v29  ;;  %v606_v57 = vmul.f32 %v603_v46, %v5136_v36  ;;  %v608_v41 = vmul.f32 %v603_v46, %v5153_v44 }
 0x238   :  { %617 = vrot.lane.b32.xlu0 %v607_v49, %s4998_s27  ;;  %613 = vrot.lane.b32.xlu1 %v605_v26, %s4998_s27 }
 0x23c   :  { %634 = vperm.xlu0 %4842, %v5057_v1   ;;  %615 = vrot.lane.b32.xlu1 %v606_v57, %s4998_s27 }
 0x240   :  { %619 = vrot.lane.b32.xlu1 %v608_v41, %s4998_s27  ;;  %4843 = vset.pattern.permute.xlu0 %v8955_v19  ;;  %v8959_v41 = vmov 19  }
 0x2aa   :  { %v5342_v51 = vpop.permute.xlu0 %617 }
 0x2ab   :  { %9273 = vst [vmem:[#allocation15_spill] sm:$0xff] %v5342_v51 }
 0x2b7   :  { %v635_v20 = vpop.permute.xlu0 %634 }
 0x2b8   :  { %v639_v49 = vmul.f32 %v635_v20, %v5131_v34  ;;  %v637_v26 = vmul.f32 %v635_v20, %v5164_v48  ;;  %v638_v57 = vmul.f32 %v635_v20, %v5176_v54  ;;  %v640_v46 = vmul.f32 %v635_v20, %v5184_v59 }
 0x2ba   :  { %649 = vrot.lane.b32.xlu0 %v639_v49, %s4998_s27  ;;  %645 = vrot.lane.b32.xlu1 %v637_v26, %s4998_s27 }
 0x2be   :  { %665 = vperm.xlu0 %4843, %v5057_v1   ;;  %647 = vrot.lane.b32.xlu1 %v638_v57, %s4998_s27 }
 0x2c2   :  { %651 = vrot.lane.b32.xlu1 %v640_v46, %s4998_s27  ;;  %4844 = vset.pattern.permute.xlu0 %v8959_v41  ;;  %v8965_v46 = vmov 20  }
 0x32c   :  { %v5354_v19 = vpop.permute.xlu0 %649 }
 0x32d   :  { %9274 = vst [vmem:[#allocation16_spill] sm:$0xff] %v5354_v19 }
 0x339   :  { %v666_v63 = vpop.permute.xlu0 %665 }
 0x33a   :  { %v670_v49 = vmul.f32 %v666_v63, %v5157_v45  ;;  %v668_v26 = vmul.f32 %v666_v63, %v5196_v24  ;;  %v669_v57 = vmul.f32 %v666_v63, %v5204_v31  ;;  %v671_v20 = vmul.f32 %v666_v63, %v5213_v37 }
 0x33c   :  { %680 = vrot.lane.b32.xlu0 %v670_v49, %s4998_s27  ;;  %676 = vrot.lane.b32.xlu1 %v668_v26, %s4998_s27 }
 0x340   :  { %696 = vperm.xlu0 %4844, %v5057_v1   ;;  %678 = vrot.lane.b32.xlu1 %v669_v57, %s4998_s27 }
 0x344   :  { %682 = vrot.lane.b32.xlu1 %v671_v20, %s4998_s27  ;;  %4845 = vset.pattern.permute.xlu0 %v8965_v46  ;;  %v5378_v20 = vpop.permute.xlu1 %167  ;;  %v8973_v46 = vmov 21  }
 0x3ae   :  { %v5366_v41 = vpop.permute.xlu0 %680 }
 0x3af   :  { %9275 = vst [vmem:[#allocation17_spill] sm:$0xff] %v5366_v41 }
 0x3bb   :  { %v697_v17 = vpop.permute.xlu0 %696 }
 0x3bc   :  { %v701_v49 = vmul.f32 %v697_v17, %v5171_v52  ;;  %v699_v26 = vmul.f32 %v697_v17, %v5225_v47  ;;  %v700_v63 = vmul.f32 %v697_v17, %v5233_v55  ;;  %v702_v57 = vmul.f32 %v697_v17, %v5242_v60 }
 0x3be   :  { %711 = vrot.lane.b32.xlu0 %v701_v49, %s4998_s27  ;;  %707 = vrot.lane.b32.xlu1 %v699_v26, %s4998_s27  ;;  %v5384_v26 = vpop.permute.xlu1 %215 }
 0x3c2   :  { %727 = vperm.xlu0 %4845, %v5057_v1   ;;  %709 = vrot.lane.b32.xlu1 %v700_v63, %s4998_s27  ;;  %v5390_v17 = vpop.permute.xlu1 %238 }
 0x3c6   :  { %713 = vrot.lane.b32.xlu1 %v702_v57, %s4998_s27  ;;  %4846 = vset.pattern.permute.xlu0 %v8973_v46  ;;  %v5396_v46 = vpop.permute.xlu1 %240 }
 0x430   :  { %v5382_v49 = vpop.permute.xlu0 %711 }
 0x431   :  { %9276 = vst [vmem:[#allocation18_spill] sm:$0xff] %v5382_v49 }
 0x43d   :  { %v728_v15 = vpop.permute.xlu0 %727 }
 0x43e   :  { %v732_v14 = vmul.f32 %v728_v15, %v5126_v30  ;;  %v730_v13 = vmul.f32 %v728_v15, %v5123_v29  ;;  %v731_v63 = vmul.f32 %v728_v15, %v5136_v36  ;;  %v733_v57 = vmul.f32 %v728_v15, %v5153_v44 }
 0x440   :  { %742 = vrot.lane.b32.xlu0 %v732_v14, %s5003_s28  ;;  %738 = vrot.lane.b32.xlu1 %v730_v13, %s5003_s28  ;;  %v5402_v13 = vpop.permute.xlu1 %244 }
 0x444   :  { %759 = vperm.xlu0 %4846, %v5057_v1   ;;  %740 = vrot.lane.b32.xlu1 %v731_v63, %s5003_s28  ;;  %v5408_v15 = vpop.permute.xlu1 %270 }
 0x448   :  { %744 = vrot.lane.b32.xlu1 %v733_v57, %s5003_s28  ;;  %4847 = vset.pattern.permute.xlu0 %v8983_v12  ;;  %v5414_v12 = vpop.permute.xlu1 %272 }
 0x4b2   :  { %v5400_v14 = vpop.permute.xlu0 %742 }
 0x4b3   :  { %9277 = vst [vmem:[#allocation19_spill] sm:$0xff] %v5400_v14 }
 0x4bf   :  { %v760_v11 = vpop.permute.xlu0 %759 }
 0x4c0   :  { %v764_v10 = vmul.f32 %v760_v11, %v5131_v34  ;;  %v762_v9 = vmul.f32 %v760_v11, %v5164_v48  ;;  %v763_v63 = vmul.f32 %v760_v11, %v5176_v54  ;;  %v765_v57 = vmul.f32 %v760_v11, %v5184_v59 }
 0x4c2   :  { %774 = vrot.lane.b32.xlu0 %v764_v10, %s5003_s28  ;;  %770 = vrot.lane.b32.xlu1 %v762_v9, %s5003_s28  ;;  %v5420_v9 = vpop.permute.xlu1 %276 }
 0x4c6   :  { %790 = vperm.xlu0 %4847, %v5057_v1   ;;  %772 = vrot.lane.b32.xlu1 %v763_v63, %s5003_s28  ;;  %v5426_v11 = vpop.permute.xlu1 %301 }
 0x4ca   :  { %776 = vrot.lane.b32.xlu1 %v765_v57, %s5003_s28  ;;  %4848 = vset.pattern.permute.xlu0 %v8993_v8  ;;  %v5432_v8 = vpop.permute.xlu1 %303 }
 0x534   :  { %v5418_v10 = vpop.permute.xlu0 %774 }
 0x535   :  { %9278 = vst [vmem:[#allocation20_spill] sm:$0xff] %v5418_v10 }
 0x541   :  { %v791_v7 = vpop.permute.xlu0 %790 }
 0x542   :  { %v795_v0 = vmul.f32 %v791_v7, %v5157_v45  ;;  %v793_v3 = vmul.f32 %v791_v7, %v5196_v24  ;;  %v794_v63 = vmul.f32 %v791_v7, %v5204_v31  ;;  %v796_v57 = vmul.f32 %v791_v7, %v5213_v37 }
 0x544   :  { %805 = vrot.lane.b32.xlu0 %v795_v0, %s5003_s28  ;;  %801 = vrot.lane.b32.xlu1 %v793_v3, %s5003_s28  ;;  %v5438_v3 = vpop.permute.xlu1 %307 }
 0x548   :  { %821 = vperm.xlu0 %4848, %v5057_v1   ;;  %803 = vrot.lane.b32.xlu1 %v794_v63, %s5003_s28  ;;  %v5444_v7 = vpop.permute.xlu1 %332 }
 0x54c   :  { %807 = vrot.lane.b32.xlu1 %v796_v57, %s5003_s28  ;;  %4849 = vset.pattern.permute.xlu0 %v9003_v6  ;;  %v5450_v6 = vpop.permute.xlu1 %334 }
 0x5b6   :  { %v5436_v0 = vpop.permute.xlu0 %805 }
 0x5b7   :  { %9279 = vst [vmem:[#allocation21_spill] sm:$0xff] %v5436_v0 }
 0x5c3   :  { %v822_v2 = vpop.permute.xlu0 %821 }
 0x5c4   :  { %v826_v5 = vmul.f32 %v822_v2, %v5171_v52  ;;  %v824_v4 = vmul.f32 %v822_v2, %v5225_v47  ;;  %v825_v63 = vmul.f32 %v822_v2, %v5233_v55  ;;  %v827_v57 = vmul.f32 %v822_v2, %v5242_v60 }
 0x5c6   :  { %836 = vrot.lane.b32.xlu0 %v826_v5, %s5003_s28  ;;  %832 = vrot.lane.b32.xlu1 %v824_v4, %s5003_s28  ;;  %v5456_v4 = vpop.permute.xlu1 %338 }
 0x5ca   :  { %852 = vperm.xlu0 %4849, %v5057_v1   ;;  %834 = vrot.lane.b32.xlu1 %v825_v63, %s5003_s28  ;;  %v5462_v2 = vpop.permute.xlu1 %363 }
 0x5ce   :  { %838 = vrot.lane.b32.xlu1 %v827_v57, %s5003_s28  ;;  %4850 = vset.pattern.permute.xlu0 %v9013_v40  ;;  %v5468_v40 = vpop.permute.xlu1 %365 }
 0x638   :  { %v5454_v5 = vpop.permute.xlu0 %836 }
 0x639   :  { %9280 = vst [vmem:[#allocation22_spill] sm:$0xff] %v5454_v5 }
 0x645   :  { %v853_v61 = vpop.permute.xlu0 %852 }
 0x646   :  { %v857_v42 = vmul.f32 %v853_v61, %v5126_v30  ;;  %v855_v22 = vmul.f32 %v853_v61, %v5123_v29  ;;  %v856_v63 = vmul.f32 %v853_v61, %v5136_v36  ;;  %v858_v57 = vmul.f32 %v853_v61, %v5153_v44 }
 0x648   :  { %867 = vrot.lane.b32.xlu0 %v857_v42, %s5008_s29  ;;  %863 = vrot.lane.b32.xlu1 %v855_v22, %s5008_s29  ;;  %v5474_v22 = vpop.permute.xlu1 %369 }
 0x64c   :  { %884 = vperm.xlu0 %4850, %v5057_v1   ;;  %865 = vrot.lane.b32.xlu1 %v856_v63, %s5008_s29  ;;  %v5480_v61 = vpop.permute.xlu1 %395 }
 0x650   :  { %869 = vrot.lane.b32.xlu1 %v858_v57, %s5008_s29  ;;  %4851 = vset.pattern.permute.xlu0 %v9023_v38  ;;  %v5486_v38 = vpop.permute.xlu1 %397 }
 0x6ba   :  { %v5472_v42 = vpop.permute.xlu0 %867 }
 0x6bb   :  { %9281 = vst [vmem:[#allocation23_spill] sm:$0xff] %v5472_v42  ;;  %v9029_v42 = vmov 27  }
 0x6c7   :  { %v885_v27 = vpop.permute.xlu0 %884 }
 0x6c8   :  { %v889_v21 = vmul.f32 %v885_v27, %v5131_v34  ;;  %v887_v18 = vmul.f32 %v885_v27, %v5164_v48  ;;  %v888_v63 = vmul.f32 %v885_v27, %v5176_v54  ;;  %v890_v57 = vmul.f32 %v885_v27, %v5184_v59 }
 0x6ca   :  { %899 = vrot.lane.b32.xlu0 %v889_v21, %s5008_s29  ;;  %895 = vrot.lane.b32.xlu1 %v887_v18, %s5008_s29  ;;  %v5492_v18 = vpop.permute.xlu1 %401 }
 0x6ce   :  { %915 = vperm.xlu0 %4851, %v5057_v1   ;;  %897 = vrot.lane.b32.xlu1 %v888_v63, %s5008_s29  ;;  %v5498_v27 = vpop.permute.xlu1 %426 }
 0x6d2   :  { %901 = vrot.lane.b32.xlu1 %v890_v57, %s5008_s29  ;;  %4852 = vset.pattern.permute.xlu0 %v9029_v42  ;;  %v5504_v42 = vpop.permute.xlu1 %428 }
 0x73c   :  { %v5490_v21 = vpop.permute.xlu0 %899 }
 0x73d   :  { %9282 = vst [vmem:[#allocation24_spill] sm:$0xff] %v5490_v21  ;;  %v9035_v21 = vmov 28  }
 0x749   :  { %v916_v5 = vpop.permute.xlu0 %915 }
 0x74a   :  { %v920_v0 = vmul.f32 %v916_v5, %v5157_v45  ;;  %v918_v10 = vmul.f32 %v916_v5, %v5196_v24  ;;  %v919_v63 = vmul.f32 %v916_v5, %v5204_v31  ;;  %v921_v57 = vmul.f32 %v916_v5, %v5213_v37 }
 0x74c   :  { %930 = vrot.lane.b32.xlu0 %v920_v0, %s5008_s29  ;;  %926 = vrot.lane.b32.xlu1 %v918_v10, %s5008_s29  ;;  %v5510_v10 = vpop.permute.xlu1 %432 }
 0x750   :  { %946 = vperm.xlu0 %4852, %v5057_v1   ;;  %928 = vrot.lane.b32.xlu1 %v919_v63, %s5008_s29  ;;  %v5516_v5 = vpop.permute.xlu1 %457 }
 0x754   :  { %932 = vrot.lane.b32.xlu1 %v921_v57, %s5008_s29  ;;  %4853 = vset.pattern.permute.xlu0 %v9035_v21  ;;  %v5522_v21 = vpop.permute.xlu1 %459 }
 0x7be   :  { %v5508_v0 = vpop.permute.xlu0 %930 }
 0x7bf   :  { %9283 = vst [vmem:[#allocation25_spill] sm:$0xff] %v5508_v0  ;;  %v9041_v0 = vmov 29  }
 0x7cb   :  { %v947_v14 = vpop.permute.xlu0 %946 }
 0x7cc   :  { %v951_v49 = vmul.f32 %v947_v14, %v5171_v52  ;;  %v949_v41 = vmul.f32 %v947_v14, %v5225_v47  ;;  %v950_v63 = vmul.f32 %v947_v14, %v5233_v55  ;;  %v952_v57 = vmul.f32 %v947_v14, %v5242_v60 }
 0x7ce   :  { %961 = vrot.lane.b32.xlu0 %v951_v49, %s5008_s29  ;;  %957 = vrot.lane.b32.xlu1 %v949_v41, %s5008_s29  ;;  %v5528_v41 = vpop.permute.xlu1 %463 }
 0x7cf   :  { %9285 = vst [vmem:[#allocation27_spill] sm:$0xff] %v5528_v41 }
 0x7d2   :  { %977 = vperm.xlu0 %4853, %v5057_v1   ;;  %959 = vrot.lane.b32.xlu1 %v950_v63, %s5008_s29  ;;  %v5534_v14 = vpop.permute.xlu1 %488 }
 0x7d3   :  { %9286 = vst [vmem:[#allocation28_spill] sm:$0xff] %v5534_v14 }
 0x7d6   :  { %963 = vrot.lane.b32.xlu1 %v952_v57, %s5008_s29  ;;  %4854 = vset.pattern.permute.xlu0 %v9041_v0  ;;  %v5540_v0 = vpop.permute.xlu1 %490 }
 0x7d7   :  { %9287 = vst [vmem:[#allocation29_spill] sm:$0xff] %v5540_v0  ;;  %v170_v0 = vmul.f32 %v5378_v20, %v5196_v24 }
 0x840   :  { %v5526_v49 = vpop.permute.xlu0 %961 }
 0x841   :  { %9284 = vst [vmem:[#allocation26_spill] sm:$0xff] %v5526_v49  ;;  %v9047_v49 = vmov 30  }
 0x84d   :  { %v978_v19 = vpop.permute.xlu0 %977 }
 0x84e   :  { %v982_v51 = vmul.f32 %v978_v19, %v5126_v30  ;;  %v980_v62 = vmul.f32 %v978_v19, %v5123_v29  ;;  %v981_v63 = vmul.f32 %v978_v19, %v5136_v36  ;;  %v983_v57 = vmul.f32 %v978_v19, %v5153_v44 }
 0x850   :  { %992 = vrot.lane.b32.xlu0 %v982_v51, %s5013_s30  ;;  %988 = vrot.lane.b32.xlu1 %v980_v62, %s5013_s30  ;;  %v5546_v62 = vpop.permute.xlu1 %494 }
 0x851   :  { %9289 = vst [vmem:[#allocation31_spill] sm:$0xff] %v5546_v62 }
 0x854   :  { %1009 = vperm.xlu0 %4854, %v5057_v1   ;;  %990 = vrot.lane.b32.xlu1 %v981_v63, %s5013_s30  ;;  %v5552_v19 = vpop.permute.xlu1 %520 }
 0x855   :  { %9290 = vst [vmem:[#allocation32_spill] sm:$0xff] %v5552_v19 }
 0x858   :  { %994 = vrot.lane.b32.xlu1 %v983_v57, %s5013_s30  ;;  %4855 = vset.pattern.permute.xlu0 %v9047_v49  ;;  %v5558_v49 = vpop.permute.xlu1 %522 }
 0x859   :  { %9291 = vst [vmem:[#allocation33_spill] sm:$0xff] %v5558_v49 }
 0x85c   :  { %v5564_v62 = vpop.permute.xlu1 %526 }
 0x85d   :  { %9293 = vst [vmem:[#allocation35_spill] sm:$0xff] %v5564_v62 }
 0x8c2   :  { %v5544_v51 = vpop.permute.xlu0 %992 }
 0x8c3   :  { %9288 = vst [vmem:[#allocation30_spill] sm:$0xff] %v5544_v51  ;;  %v9051_v51 = vmov 31  }
 0x8cf   :  { %v1010_v53 = vpop.permute.xlu0 %1009 }
 0x8d0   :  { %v1014_v43 = vmul.f32 %v1010_v53, %v5131_v34  ;;  %v1012_v39 = vmul.f32 %v1010_v53, %v5164_v48  ;;  %v1013_v63 = vmul.f32 %v1010_v53, %v5176_v54  ;;  %v1015_v57 = vmul.f32 %v1010_v53, %v5184_v59  ;;  %v5570_v53 = vpop.permute.xlu1 %551 }
 0x8d1   :  { %9294 = vst [vmem:[#allocation36_spill] sm:$0xff] %v5570_v53 }
 0x8d2   :  { %1024 = vrot.lane.b32.xlu0 %v1014_v43, %s5013_s30  ;;  %1020 = vrot.lane.b32.xlu1 %v1012_v39, %s5013_s30 }
 0x8d6   :  { %1040 = vperm.xlu0 %4855, %v5057_v1   ;;  %1022 = vrot.lane.b32.xlu1 %v1013_v63, %s5013_s30 }
 0x8da   :  { %1026 = vrot.lane.b32.xlu1 %v1015_v57, %s5013_s30  ;;  %4856 = vset.pattern.permute.xlu0 %v9051_v51  ;;  %v5576_v51 = vpop.permute.xlu1 %553 }
 0x8db   :  { %9295 = vst [vmem:[#allocation37_spill] sm:$0xff] %v5576_v51 }
 0x8de   :  { %v5582_v62 = vpop.permute.xlu1 %557 }
 0x8df   :  { %9297 = vst [vmem:[#allocation39_spill] sm:$0xff] %v5582_v62 }
 0x944   :  { %v5562_v43 = vpop.permute.xlu0 %1024 }
 0x945   :  { %9292 = vst [vmem:[#allocation34_spill] sm:$0xff] %v5562_v43  ;;  %v9056_v43 = vmov 32  }
 0x951   :  { %v1041_v39 = vpop.permute.xlu0 %1040 }
 0x952   :  { %v1045_v19 = vmul.f32 %v1041_v39, %v5157_v45  ;;  %v1043_v14 = vmul.f32 %v1041_v39, %v5196_v24  ;;  %v1044_v63 = vmul.f32 %v1041_v39, %v5204_v31  ;;  %v1046_v57 = vmul.f32 %v1041_v39, %v5213_v37  ;;  %v5588_v39 = vpop.permute.xlu1 %582 }
 0x953   :  { %9298 = vst [vmem:[#allocation40_spill] sm:$0xff] %v5588_v39 }
 0x954   :  { %1055 = vrot.lane.b32.xlu0 %v1045_v19, %s5013_s30  ;;  %1051 = vrot.lane.b32.xlu1 %v1043_v14, %s5013_s30 }
 0x958   :  { %1071 = vperm.xlu0 %4856, %v5057_v1   ;;  %1053 = vrot.lane.b32.xlu1 %v1044_v63, %s5013_s30 }
 0x95c   :  { %1057 = vrot.lane.b32.xlu1 %v1046_v57, %s5013_s30  ;;  %4857 = vset.pattern.permute.xlu0 %v9056_v43  ;;  %v5594_v43 = vpop.permute.xlu1 %584 }
 0x95d   :  { %9299 = vst [vmem:[#allocation41_spill] sm:$0xff] %v5594_v43 }
 0x960   :  { %v5600_v62 = vpop.permute.xlu1 %588 }
 0x961   :  { %9301 = vst [vmem:[#allocation43_spill] sm:$0xff] %v5600_v62 }
 0x9c6   :  { %v5580_v19 = vpop.permute.xlu0 %1055 }
 0x9c7   :  { %9296 = vst [vmem:[#allocation38_spill] sm:$0xff] %v5580_v19  ;;  %v9061_v19 = vmov 33  }
 0x9d3   :  { %v1072_v14 = vpop.permute.xlu0 %1071 }
 0x9d4   :  { %v1076_v53 = vmul.f32 %v1072_v14, %v5171_v52  ;;  %v1074_v49 = vmul.f32 %v1072_v14, %v5225_v47  ;;  %v1075_v63 = vmul.f32 %v1072_v14, %v5233_v55  ;;  %v1077_v57 = vmul.f32 %v1072_v14, %v5242_v60  ;;  %v5606_v14 = vpop.permute.xlu1 %613 }
 0x9d5   :  { %9302 = vst [vmem:[#allocation44_spill] sm:$0xff] %v5606_v14 }
 0x9d6   :  { %1086 = vrot.lane.b32.xlu0 %v1076_v53, %s5013_s30  ;;  %1082 = vrot.lane.b32.xlu1 %v1074_v49, %s5013_s30 }
 0x9da   :  { %1102 = vperm.xlu0 %4857, %v5057_v1   ;;  %1084 = vrot.lane.b32.xlu1 %v1075_v63, %s5013_s30 }
 0x9de   :  { %1088 = vrot.lane.b32.xlu1 %v1077_v57, %s5013_s30  ;;  %4858 = vset.pattern.permute.xlu0 %v9061_v19  ;;  %v5612_v19 = vpop.permute.xlu1 %615 }
 0x9df   :  { %9303 = vst [vmem:[#allocation45_spill] sm:$0xff] %v5612_v19 }
 0x9e2   :  { %v5618_v62 = vpop.permute.xlu1 %619 }
 0x9e3   :  { %9305 = vst [vmem:[#allocation47_spill] sm:$0xff] %v5618_v62 }
 0xa48   :  { %v5598_v53 = vpop.permute.xlu0 %1086 }
 0xa49   :  { %9300 = vst [vmem:[#allocation42_spill] sm:$0xff] %v5598_v53  ;;  %v9066_v53 = vmov 34  }
 0xa55   :  { %v1103_v49 = vpop.permute.xlu0 %1102 }
 0xa56   :  { %v1107_v39 = vmul.f32 %v1103_v49, %v5126_v30  ;;  %v1105_v51 = vmul.f32 %v1103_v49, %v5123_v29  ;;  %v1106_v63 = vmul.f32 %v1103_v49, %v5136_v36  ;;  %v1108_v57 = vmul.f32 %v1103_v49, %v5153_v44  ;;  %v5624_v49 = vpop.permute.xlu1 %645 }
 0xa57   :  { %9306 = vst [vmem:[#allocation48_spill] sm:$0xff] %v5624_v49 }
 0xa58   :  { %1117 = vrot.lane.b32.xlu0 %v1107_v39, %s5018_s6  ;;  %1113 = vrot.lane.b32.xlu1 %v1105_v51, %s5018_s6 }
 0xa5c   :  { %1134 = vperm.xlu0 %4858, %v5057_v1   ;;  %1115 = vrot.lane.b32.xlu1 %v1106_v63, %s5018_s6 }
 0xa60   :  { %1119 = vrot.lane.b32.xlu1 %v1108_v57, %s5018_s6  ;;  %4859 = vset.pattern.permute.xlu0 %v9066_v53  ;;  %v5630_v53 = vpop.permute.xlu1 %647 }
 0xa61   :  { %9307 = vst [vmem:[#allocation49_spill] sm:$0xff] %v5630_v53 }
 0xaca   :  { %v5616_v39 = vpop.permute.xlu0 %1117 }
 0xacb   :  { %9304 = vst [vmem:[#allocation46_spill] sm:$0xff] %v5616_v39  ;;  %v9072_v39 = vmov 35  }
 0xad7   :  { %v1135_v51 = vpop.permute.xlu0 %1134 }
 0xad8   :  { %v1139_v14 = vmul.f32 %v1135_v51, %v5131_v34  ;;  %v1137_v43 = vmul.f32 %v1135_v51, %v5164_v48  ;;  %v1138_v63 = vmul.f32 %v1135_v51, %v5176_v54  ;;  %v1140_v57 = vmul.f32 %v1135_v51, %v5184_v59 }
 0xada   :  { %1149 = vrot.lane.b32.xlu0 %v1139_v14, %s5018_s6  ;;  %1145 = vrot.lane.b32.xlu1 %v1137_v43, %s5018_s6  ;;  %v5634_v14 = vpop.permute.xlu1 %651 }
 0xadb   :  { %9308 = vst [vmem:[#allocation50_spill] sm:$0xff] %v5634_v14 }
 0xade   :  { %1165 = vperm.xlu0 %4859, %v5057_v1   ;;  %1147 = vrot.lane.b32.xlu1 %v1138_v63, %s5018_s6  ;;  %v5636_v43 = vpop.permute.xlu1 %676 }
 0xadf   :  { %9309 = vst [vmem:[#allocation51_spill] sm:$0xff] %v5636_v43  ;;  %v9080_v43 = vmov 36  }
 0xae2   :  { %1151 = vrot.lane.b32.xlu1 %v1140_v57, %s5018_s6  ;;  %4860 = vset.pattern.permute.xlu0 %v9072_v39  ;;  %v5638_v49 = vpop.permute.xlu1 %678 }
 0xae3   :  { %9310 = vst [vmem:[#allocation52_spill] sm:$0xff] %v5638_v49 }
 0xae6   :  { %v5640_v62 = vpop.permute.xlu1 %682 }
 0xae7   :  { %9311 = vst [vmem:[#allocation53_spill] sm:$0xff] %v5640_v62  ;;  %v4971_v62 = vld [vmem:[%s8949_s2] sm:$0xf] }
 0xaea   :  { %v5642_v1 = vpop.permute.xlu1 %707 }
 0xaeb   :  { %9312 = vst [vmem:[#allocation54_spill] sm:$0xff] %v5642_v1 }
 0xaee   :  { %v5648_v19 = vpop.permute.xlu1 %709 }
 0xaef   :  { %9314 = vst [vmem:[#allocation56_spill] sm:$0xff] %v5648_v19 }
 0xb4c   :  { %v5644_v63 = vpop.permute.xlu0 %1149 }
 0xb4d   :  { %9313 = vst [vmem:[#allocation55_spill] sm:$0xff] %v5644_v63  ;;  %v5657_v63 = vpop.permute.xlu1 %713 }
 0xb4e   :  { %9315 = vst [vmem:[#allocation57_spill] sm:$0xff] %v5657_v63 }
 0xb59   :  { %v1166_v51 = vpop.permute.xlu0 %1165 }
 0xb5a   :  { %v1170_v53 = vmul.f32 %v1166_v51, %v5157_v45  ;;  %v1168_v57 = vmul.f32 %v1166_v51, %v5196_v24  ;;  %v1169_v39 = vmul.f32 %v1166_v51, %v5204_v31  ;;  %v1171_v1 = vmul.f32 %v1166_v51, %v5213_v37 }
 0xb5b   :  { %v218_v24 = vmul.f32 %v5384_v26, %v5225_v47 }
 0xb5c   :  { %1180 = vrot.lane.b32.xlu0 %v1170_v53, %s5018_s6  ;;  %1176 = vrot.lane.b32.xlu1 %v1168_v57, %s5018_s6  ;;  %v5662_v53 = vpop.permute.xlu1 %738 }
 0xb5d   :  { %9316 = vst [vmem:[#allocation58_spill] sm:$0xff] %v5662_v53 }
 0xb60   :  { %1196 = vperm.xlu0 %4860, %v4971_v62   ;;  %1178 = vrot.lane.b32.xlu1 %v1169_v39, %s5018_s6  ;;  %v5664_v57 = vpop.permute.xlu1 %740 }
 0xb61   :  { %9317 = vst [vmem:[#allocation59_spill] sm:$0xff] %v5664_v57 }
 0xb64   :  { %4861 = vset.pattern.permute.xlu0 %v9080_v43  ;;  %1182 = vrot.lane.b32.xlu1 %v1171_v1, %s5018_s6  ;;  %v5666_v19 = vpop.permute.xlu1 %744 }
 0xb65   :  { %28 = vperm.xlu0 %4861, %v4971_v62   ;;  %9318 = vst [vmem:[#allocation60_spill] sm:$0xff] %v5666_v19 }
 0xb68   :  { %v5668_v49 = vpop.permute.xlu1 %770 }
 0xb69   :  { %9319 = vst [vmem:[#allocation61_spill] sm:$0xff] %v5668_v49 }
 0xb6c   :  { %v5670_v14 = vpop.permute.xlu1 %772 }
 0xb6d   :  { %9320 = vst [vmem:[#allocation62_spill] sm:$0xff] %v5670_v14 }
 0xb70   :  { %v5672_v39 = vpop.permute.xlu1 %776 }
 0xb71   :  { %9321 = vst [vmem:[#allocation63_spill] sm:$0xff] %v5672_v39 }
 0xb74   :  { %v5674_v63 = vpop.permute.xlu1 %801 }
 0xb75   :  { %9322 = vst [vmem:[#allocation64_spill] sm:$0xff] %v5674_v63 }
 0xb78   :  { %v5676_v51 = vpop.permute.xlu1 %803 }
 0xb79   :  { %9323 = vst [vmem:[#allocation65_spill] sm:$0xff] %v5676_v51 }
 0xb7c   :  { %v5678_v43 = vpop.permute.xlu1 %807 }
 0xb7d   :  { %9324 = vst [vmem:[#allocation66_spill] sm:$0xff] %v5678_v43 }
 0xb80   :  { %v5680_v1 = vpop.permute.xlu1 %832 }
 0xb81   :  { %9325 = vst [vmem:[#allocation67_spill] sm:$0xff] %v5680_v1 }
 0xb84   :  { %v5682_v53 = vpop.permute.xlu1 %834 }
 0xb85   :  { %9326 = vst [vmem:[#allocation68_spill] sm:$0xff] %v5682_v53 }
 0xb88   :  { %v5684_v62 = vpop.permute.xlu1 %838 }
 0xb89   :  { %9327 = vst [vmem:[#allocation69_spill] sm:$0xff] %v5684_v62 }
 0xb8c   :  { %v5686_v57 = vpop.permute.xlu1 %863 }
 0xb8d   :  { %9328 = vst [vmem:[#allocation70_spill] sm:$0xff] %v5686_v57 }
 0xb90   :  { %v5688_v19 = vpop.permute.xlu1 %865 }
 0xb91   :  { %9329 = vst [vmem:[#allocation71_spill] sm:$0xff] %v5688_v19 }
 0xb94   :  { %v5690_v49 = vpop.permute.xlu1 %869 }
 0xb95   :  { %9330 = vst [vmem:[#allocation72_spill] sm:$0xff] %v5690_v49 }
 0xb98   :  { %v5692_v14 = vpop.permute.xlu1 %895 }
 0xb99   :  { %9331 = vst [vmem:[#allocation73_spill] sm:$0xff] %v5692_v14 }
 0xb9c   :  { %v5694_v39 = vpop.permute.xlu1 %897 }
 0xb9d   :  { %9332 = vst [vmem:[#allocation74_spill] sm:$0xff] %v5694_v39 }
 0xba0   :  { %v5696_v63 = vpop.permute.xlu1 %901 }
 0xba1   :  { %9333 = vst [vmem:[#allocation75_spill] sm:$0xff] %v5696_v63  ;;  %v74_v63 = vmul.f32 %v5109_v23, %v5123_v29  ;;  %v5727_v29 = vld [vmem:[%s8951_s3] sm:$0xf] }
 0xba4   :  { %v5698_v51 = vpop.permute.xlu1 %926 }
 0xba5   :  { %9334 = vst [vmem:[#allocation76_spill] sm:$0xff] %v5698_v51 }
 0xba8   :  { %v5700_v43 = vpop.permute.xlu1 %928 }
 0xba9   :  { %9335 = vst [vmem:[#allocation77_spill] sm:$0xff] %v5700_v43 }
 0xbac   :  { %v5702_v1 = vpop.permute.xlu1 %932 }
 0xbad   :  { %9336 = vst [vmem:[#allocation78_spill] sm:$0xff] %v5702_v1  ;;  %v75_v1 = vmul.f32 %v5109_v23, %v5136_v36  ;;  %v124_v36 = vmul.f32 %v5372_v32, %v5131_v34 }
 0xbb0   :  { %v5704_v53 = vpop.permute.xlu1 %957 }
 0xbb1   :  { %9337 = vst [vmem:[#allocation79_spill] sm:$0xff] %v5704_v53  ;;  %v77_v53 = vmul.f32 %v5109_v23, %v5153_v44 }
 0xbb4   :  { %v5708_v57 = vpop.permute.xlu1 %959 }
 0xbb5   :  { %9339 = vst [vmem:[#allocation81_spill] sm:$0xff] %v5708_v57  ;;  %v122_v57 = vmul.f32 %v5372_v32, %v5164_v48 }
 0xbb8   :  { %v5736_v44 = vpop.permute.xlu1 %963 }
 0xbce   :  { %v5706_v62 = vpop.permute.xlu0 %1180 }
 0xbcf   :  { %9338 = vst [vmem:[#allocation80_spill] sm:$0xff] %v5706_v62  ;;  %v76_v62 = vmul.f32 %v5109_v23, %v5126_v30  ;;  %v125_v30 = vmul.f32 %v5372_v32, %v5184_v59 }
 0xbdb   :  { %v1197_v19 = vpop.permute.xlu0 %1196 }
 0xbdc   :  { %v1201_v49 = vmul.f32 %v1197_v19, %v5171_v52  ;;  %v1199_v14 = vmul.f32 %v1197_v19, %v5225_v47  ;;  %v1200_v23 = vmul.f32 %v1197_v19, %v5233_v55  ;;  %v220_v47 = vmul.f32 %v5384_v26, %v5171_v52 }
 0xbdd   :  { %v9341_v52 = vmov 5  }
 0xbde   :  { %1211 = vrot.lane.b32.xlu0 %v1201_v49, %s5018_s6  ;;  %1207 = vrot.lane.b32.xlu1 %v1199_v14, %s5018_s6  ;;  %v123_v49 = vmul.f32 %v5372_v32, %v5176_v54  ;;  %v171_v54 = vmul.f32 %v5378_v20, %v5204_v31  ;;  %v219_v31 = vmul.f32 %v5384_v26, %v5233_v55 }
 0xbdf   :  { %v221_v55 = vmul.f32 %v5384_v26, %v5242_v60  ;;  %v278_v26 = vsel %vm246_vm0, %v5408_v15, %v5414_v12  ;;  %v309_v15 = vsel %vm246_vm0, %v5426_v11, %v5432_v8  ;;  %v340_v11 = vsel %vm246_vm0, %v5444_v7, %v5450_v6 }
 0xbe0   :  { %v29_v14 = vpop.permute.xlu0 %28  ;;  %v372_v7 = vsel %vm371_vm1, %v5462_v2, %v5468_v40  ;;  %v403_v2 = vsel %vm371_vm1, %v5480_v61, %v5486_v38  ;;  %v435_v61 = vsel %vm371_vm1, %v5504_v42, %v5300_v33 }
 0xbe1   :  { %v78_v48 = vadd.f32 %v74_v63, %v29_v14  ;;  %v79_v51 = vadd.f32 %v75_v1, %v29_v14  ;;  %v80_v43 = vadd.f32 %v76_v62, %v29_v14  ;;  %v81_v39 = vadd.f32 %v77_v53, %v29_v14  ;;  %v5753_v62 = vpop.permute.xlu1 %988 }
 0xbe2   :  { %1267 = vperm.xlu0 %4861, %v5727_v29   ;;  %1209 = vrot.lane.b32.xlu1 %v1200_v23, %s5018_s6  ;;  %v172_v63 = vmul.f32 %v5378_v20, %v5157_v45  ;;  %v173_v53 = vmul.f32 %v5378_v20, %v5213_v37  ;;  %v1202_v1 = vmul.f32 %v1197_v19, %v5242_v60 }
 0xbe3   :  { %v126_v34 = vadd.f32 %v122_v57, %v78_v48  ;;  %v127_v59 = vadd.f32 %v123_v49, %v79_v51  ;;  %v128_v32 = vadd.f32 %v124_v36, %v80_v43  ;;  %v129_v41 = vadd.f32 %v125_v30, %v81_v39 }
 0xbe4   :  { %v9340_v49 = vmov 2   ;;  %v247_v20 = vsel %vm246_vm0, %v5390_v17, %v5396_v46  ;;  %v249_v60 = vsel %vm246_vm0, %v5286_v58, %v5402_v13 }
 0xbe5   :  { %v174_v57 = vadd.f32 %v170_v0, %v126_v34  ;;  %v175_v51 = vadd.f32 %v171_v54, %v127_v59  ;;  %v176_v43 = vadd.f32 %v172_v63, %v128_v32  ;;  %v177_v39 = vadd.f32 %v173_v53, %v129_v41  ;;  %v5769_v14 = vpop.permute.xlu1 %990 }
 0xbe6   :  { %4864 = vset.pattern.permute.xlu0 %v9340_v49  ;;  %1213 = vrot.lane.b32.xlu1 %v1202_v1, %s5018_s6  ;;  %v248_v0 = vsel %vm246_vm0, %v5396_v46, %v5286_v58  ;;  %v279_v46 = vsel %vm246_vm0, %v5414_v12, %v5290_v16  ;;  %v9342_v34 = vmov 1   ;;  %v280_v58 = vsel %vm246_vm0, %v5290_v16, %v5420_v9 }
 0xbe7   :  { %v222_v45 = vadd.f32 %v218_v24, %v174_v57  ;;  %v223_v37 = vadd.f32 %v219_v31, %v175_v51  ;;  %1344 = vperm.xlu0 %4864, %v5727_v29   ;;  %v224_v41 = vadd.f32 %v220_v47, %v176_v43  ;;  %v225_v19 = vadd.f32 %v221_v55, %v177_v39 }
 0xbe8   :  { %v310_v12 = vsel %vm246_vm0, %v5432_v8, %v5292_v25  ;;  %v9343_v1 = vmov 3   ;;  %v311_v16 = vsel %vm246_vm0, %v5292_v25, %v5438_v3  ;;  %v341_v8 = vsel %vm246_vm0, %v5450_v6, %v5294_v50 }
 0xbe9   :  { %v254_v36 = vadd.f32 %v247_v20, %v222_v45  ;;  %v255_v30 = vadd.f32 %v248_v0, %v223_v37  ;;  %v256_v17 = vadd.f32 %v249_v60, %v224_v41  ;;  %v257_v23 = vadd.f32 %v5402_v13, %v225_v19  ;;  %v5793_v59 = vpop.permute.xlu1 %994 }
 0xbea   :  { %1288 = vperm.xlu1 %4862, %v5727_v29   ;;  %v9344_v43 = vmov 4   ;;  %v342_v25 = vsel %vm246_vm0, %v5294_v50, %v5456_v4  ;;  %v373_v6 = vsel %vm371_vm1, %v5468_v40, %v5296_v28  ;;  %v374_v50 = vsel %vm371_vm1, %v5296_v28, %v5474_v22 }
 0xbeb   :  { %4867 = vset.pattern.permute.xlu0 %v9341_v52  ;;  %v285_v48 = vadd.f32 %v278_v26, %v254_v36  ;;  %v286_v54 = vadd.f32 %v279_v46, %v255_v30  ;;  %v287_v13 = vadd.f32 %v280_v58, %v256_v17  ;;  %v288_v32 = vadd.f32 %v5420_v9, %v257_v23  ;;  %v9348_v58 = vld [vmem:[#allocation28_spill] sm:$0xff] }
 0xbec   :  { %v404_v40 = vsel %vm371_vm1, %v5486_v38, %v5298_v56  ;;  %v9345_v55 = vmov 0   ;;  %v405_v19 = vsel %vm371_vm1, %v5298_v56, %v5492_v18  ;;  %v434_v28 = vsel %vm371_vm1, %v5498_v27, %v5504_v42 }
 0xbed   :  { %v316_v63 = vadd.f32 %v309_v15, %v285_v48  ;;  %v317_v53 = vadd.f32 %v310_v12, %v286_v54  ;;  %v5807_v9 = vpop.permute.xlu1 %1020  ;;  %v318_v24 = vadd.f32 %v311_v16, %v287_v13  ;;  %v319_v31 = vadd.f32 %v5438_v3, %v288_v32  ;;  %v9346_v48 = vld [vmem:[#allocation27_spill] sm:$0xff]  ;;  %v9347_v54 = vld [vmem:[#allocation29_spill] sm:$0xff] }
 0xbee   :  { %4863 = vset.pattern.permute.xlu1 %v9342_v34  ;;  %v436_v26 = vsel %vm371_vm1, %v5300_v33, %v5510_v10  ;;  %v465_v56 = vsel %vm371_vm1, %v5516_v5, %v5522_v21  ;;  %v466_v27 = vsel %vm371_vm1, %v5522_v21, %v5302_v35  ;;  %v467_v33 = vsel %vm371_vm1, %v5302_v35, %v9346_v48  ;;  %v9349_v15 = vld [vmem:[#allocation11_spill] sm:$0xff]  ;;  %v9351_v35 = vld [vmem:[#allocation33_spill] sm:$0xff] }
 0xbef   :  { %1316 = vperm.xlu1 %4863, %v5727_v29   ;;  %v347_v57 = vadd.f32 %v340_v11, %v316_v63  ;;  %v348_v51 = vadd.f32 %v341_v8, %v317_v53  ;;  %v349_v39 = vadd.f32 %v342_v25, %v318_v24  ;;  %v350_v3 = vadd.f32 %v5456_v4, %v319_v31  ;;  %v9350_v53 = vld [vmem:[#allocation31_spill] sm:$0xff]  ;;  %v9352_v11 = vld [vmem:[#allocation32_spill] sm:$0xff] }
 0xbf0   :  { %v497_v5 = vsel %vm496_vm2, %v9348_v58, %v9347_v54  ;;  %v498_v21 = vsel %vm496_vm2, %v9347_v54, %v9349_v15  ;;  %v499_v16 = vsel %vm496_vm2, %v9349_v15, %v9350_v53  ;;  %v528_v8 = vsel %vm496_vm2, %v9352_v11, %v9351_v35  ;;  %v9353_v24 = vld [vmem:[#allocation12_spill] sm:$0xff]  ;;  %v9365_v58 = vld [vmem:[#allocation15_spill] sm:$0xff] }
 0xbf1   :  { %v379_v45 = vadd.f32 %v372_v7, %v347_v57  ;;  %v380_v37 = vadd.f32 %v373_v6, %v348_v51  ;;  %v5822_v47 = vpop.permute.xlu1 %1022  ;;  %v381_v20 = vadd.f32 %v374_v50, %v349_v39  ;;  %v382_v4 = vadd.f32 %v5474_v22, %v350_v3  ;;  %v9354_v6 = vld [vmem:[#allocation35_spill] sm:$0xff]  ;;  %v9355_v3 = vld [vmem:[#allocation37_spill] sm:$0xff] }
 0xbf2   :  { %v529_v31 = vsel %vm496_vm2, %v9351_v35, %v9353_v24  ;;  %v530_v39 = vsel %vm496_vm2, %v9353_v24, %v9354_v6  ;;  %v9357_v50 = vld [vmem:[#allocation13_spill] sm:$0xff]  ;;  %v9368_v35 = vld [vmem:[#allocation48_spill] sm:$0xff] }
 0xbf3   :  { %4865 = vset.pattern.permute.xlu1 %v9343_v1  ;;  %v410_v0 = vadd.f32 %v403_v2, %v379_v45  ;;  %v411_v41 = vadd.f32 %v404_v40, %v380_v37  ;;  %v412_v36 = vadd.f32 %v405_v19, %v381_v20  ;;  %v413_v30 = vadd.f32 %v5492_v18, %v382_v4  ;;  %v9356_v45 = vld [vmem:[#allocation36_spill] sm:$0xff]  ;;  %v9358_v19 = vld [vmem:[#allocation39_spill] sm:$0xff] }
 0xbf4   :  { %1372 = vperm.xlu1 %4865, %v5727_v29   ;;  %v559_v37 = vsel %vm496_vm2, %v9356_v45, %v9355_v3  ;;  %v560_v2 = vsel %vm496_vm2, %v9355_v3, %v9357_v50  ;;  %v9372_v3 = vld [vmem:[#allocation51_spill] sm:$0xff]  ;;  %v9458_v1 = vmov 26  }
 0xbf5   :  { %v5844_v38 = vpop.permute.xlu1 %1026  ;;  %v441_v22 = vadd.f32 %v434_v28, %v410_v0  ;;  %v442_v60 = vadd.f32 %v435_v61, %v411_v41  ;;  %v443_v46 = vadd.f32 %v436_v26, %v412_v36  ;;  %v444_v18 = vadd.f32 %v5510_v10, %v413_v30  ;;  %v9359_v61 = vld [vmem:[#allocation41_spill] sm:$0xff]  ;;  %v9360_v36 = vld [vmem:[#allocation40_spill] sm:$0xff] }
 0xbf6   :  { %v561_v28 = vsel %vm496_vm2, %v9357_v50, %v9358_v19  ;;  %v590_v30 = vsel %vm496_vm2, %v9360_v36, %v9359_v61  ;;  %v9376_v36 = vld [vmem:[#allocation54_spill] sm:$0xff] }
 0xbf7   :  { %v472_v17 = vadd.f32 %v465_v56, %v441_v22  ;;  %v473_v23 = vadd.f32 %v466_v27, %v442_v60  ;;  %v474_v12 = vadd.f32 %v467_v33, %v443_v46  ;;  %v475_v13 = vadd.f32 %v9346_v48, %v444_v18  ;;  %v9361_v22 = vld [vmem:[#allocation14_spill] sm:$0xff]  ;;  %v9363_v48 = vld [vmem:[#allocation45_spill] sm:$0xff]  ;;  %v9364_v33 = vld [vmem:[#allocation44_spill] sm:$0xff] }
 0xbf8   :  { %4866 = vset.pattern.permute.xlu1 %v9344_v43  ;;  %v591_v60 = vsel %vm496_vm2, %v9359_v61, %v9361_v22  ;;  %v622_v54 = vsel %vm621_vm3, %v9364_v33, %v9363_v48  ;;  %v9375_v61 = vld [vmem:[#allocation56_spill] sm:$0xff]  ;;  %v9379_v33 = vld [vmem:[#allocation59_spill] sm:$0xff] }
 0xbf9   :  { %1384 = vperm.xlu1 %4866, %v5727_v29   ;;  %v5856_v42 = vpop.permute.xlu1 %1051  ;;  %v504_v32 = vadd.f32 %v497_v5, %v472_v17  ;;  %v505_v63 = vadd.f32 %v498_v21, %v473_v23  ;;  %v506_v57 = vadd.f32 %v499_v16, %v474_v12  ;;  %v507_v51 = vadd.f32 %v9350_v53, %v475_v13  ;;  %v9362_v17 = vld [vmem:[#allocation43_spill] sm:$0xff]  ;;  %v9367_v16 = vld [vmem:[#allocation49_spill] sm:$0xff] }
 0xbfa   :  { %v592_v23 = vsel %vm496_vm2, %v9361_v22, %v9362_v17  ;;  %v623_v5 = vsel %vm621_vm3, %v9363_v48, %v9365_v58  ;;  %v653_v11 = vsel %vm621_vm3, %v9368_v35, %v9367_v16  ;;  %v9377_v22 = vld [vmem:[#allocation18_spill] sm:$0xff] }
 0xbfb   :  { %v535_v25 = vadd.f32 %v528_v8, %v504_v32  ;;  %v536_v7 = vadd.f32 %v529_v31, %v505_v63  ;;  %v537_v20 = vadd.f32 %v530_v39, %v506_v57  ;;  %v538_v4 = vadd.f32 %v9354_v6, %v507_v51  ;;  %v9366_v63 = vld [vmem:[#allocation47_spill] sm:$0xff]  ;;  %v9369_v8 = vld [vmem:[#allocation16_spill] sm:$0xff] }
 0xbfc   :  { %v624_v53 = vsel %vm621_vm3, %v9365_v58, %v9366_v63  ;;  %v654_v24 = vsel %vm621_vm3, %v9367_v16, %v9369_v8  ;;  %v9371_v39 = vld [vmem:[#allocation52_spill] sm:$0xff] }
 0xbfd   :  { %4898 = vset.pattern.permute.xlu1 %v9345_v55  ;;  %v5869_v10 = vpop.permute.xlu1 %1053  ;;  %v566_v0 = vadd.f32 %v559_v37, %v535_v25  ;;  %v567_v41 = vadd.f32 %v560_v2, %v536_v7  ;;  %v568_v56 = vadd.f32 %v561_v28, %v537_v20  ;;  %v569_v27 = vadd.f32 %v9358_v19, %v538_v4  ;;  %v9370_v7 = vld [vmem:[#allocation50_spill] sm:$0xff]  ;;  %v9373_v37 = vld [vmem:[#allocation17_spill] sm:$0xff]  ;;  %v9382_v16 = vld [vmem:[#allocation60_spill] sm:$0xff] }
 0xbfe   :  { %v655_v6 = vsel %vm621_vm3, %v9369_v8, %v9370_v7  ;;  %v684_v45 = vsel %vm621_vm3, %v9372_v3, %v9371_v39  ;;  %v685_v50 = vsel %vm621_vm3, %v9371_v39, %v9373_v37  ;;  %v9374_v19 = vld [vmem:[#allocation53_spill] sm:$0xff]  ;;  %v9386_v39 = vld [vmem:[#allocation63_spill] sm:$0xff] }
 0xbff   :  { %v597_v46 = vadd.f32 %v590_v30, %v566_v0  ;;  %v598_v18 = vadd.f32 %v591_v60, %v567_v41  ;;  %v599_v15 = vadd.f32 %v592_v23, %v568_v56  ;;  %v600_v21 = vadd.f32 %v9362_v17, %v569_v27  ;;  %v9378_v23 = vld [vmem:[#allocation57_spill] sm:$0xff] }
 0xc00   :  { %v686_v28 = vsel %vm621_vm3, %v9373_v37, %v9374_v19  ;;  %v715_v30 = vsel %vm621_vm3, %v9376_v36, %v9375_v61  ;;  %v716_v60 = vsel %vm621_vm3, %v9375_v61, %v9377_v22  ;;  %v717_v48 = vsel %vm621_vm3, %v9377_v22, %v9378_v23  ;;  %v9384_v8 = vld [vmem:[#allocation61_spill] sm:$0xff]  ;;  %v9388_v37 = vld [vmem:[#allocation64_spill] sm:$0xff]  ;;  %v9390_v36 = vld [vmem:[#allocation66_spill] sm:$0xff] }
 0xc01   :  { %v5890_v40 = vpop.permute.xlu1 %1057  ;;  %v629_v12 = vadd.f32 %v622_v54, %v597_v46  ;;  %v630_v13 = vadd.f32 %v623_v5, %v598_v18  ;;  %v631_v31 = vadd.f32 %v624_v53, %v599_v15  ;;  %v632_v57 = vadd.f32 %v9366_v63, %v600_v21  ;;  %v9380_v54 = vld [vmem:[#allocation58_spill] sm:$0xff]  ;;  %v9381_v5 = vld [vmem:[#allocation19_spill] sm:$0xff]  ;;  %v9391_v22 = vld [vmem:[#allocation68_spill] sm:$0xff] }
 0xc02   :  { %v747_v58 = vsel %vm746_vm4, %v9380_v54, %v9379_v33  ;;  %v748_v15 = vsel %vm746_vm4, %v9379_v33, %v9381_v5  ;;  %v749_v35 = vsel %vm746_vm4, %v9381_v5, %v9382_v16 }
 0xc03   :  { %v661_v51 = vadd.f32 %v654_v24, %v630_v13  ;;  %v660_v25 = vadd.f32 %v653_v11, %v629_v12  ;;  %v662_v0 = vadd.f32 %v655_v6, %v631_v31  ;;  %v663_v41 = vadd.f32 %v9370_v7, %v632_v57  ;;  %v9383_v11 = vld [vmem:[#allocation62_spill] sm:$0xff]  ;;  %v9385_v31 = vld [vmem:[#allocation20_spill] sm:$0xff] }
 0xc04   :  { %v778_v24 = vsel %vm746_vm4, %v9384_v8, %v9383_v11  ;;  %v779_v57 = vsel %vm746_vm4, %v9383_v11, %v9385_v31  ;;  %v780_v3 = vsel %vm746_vm4, %v9385_v31, %v9386_v39  ;;  %v9398_v31 = vld [vmem:[#allocation72_spill] sm:$0xff] }
 0xc05   :  { %v5902_v26 = vpop.permute.xlu1 %1082  ;;  %v692_v20 = vadd.f32 %v685_v50, %v661_v51  ;;  %v691_v4 = vadd.f32 %v684_v45, %v660_v25  ;;  %v693_v18 = vadd.f32 %v686_v28, %v662_v0  ;;  %v694_v17 = vadd.f32 %v9374_v19, %v663_v41  ;;  %v9387_v45 = vld [vmem:[#allocation65_spill] sm:$0xff] }
 0xc06   :  { %v809_v50 = vsel %vm746_vm4, %v9388_v37, %v9387_v45 }
 0xc07   :  { %v723_v27 = vadd.f32 %v716_v60, %v692_v20  ;;  %v722_v46 = vadd.f32 %v715_v30, %v691_v4  ;;  %v724_v13 = vadd.f32 %v717_v48, %v693_v18  ;;  %v725_v63 = vadd.f32 %v9378_v23, %v694_v17  ;;  %v9389_v20 = vld [vmem:[#allocation21_spill] sm:$0xff]  ;;  %v9392_v60 = vld [vmem:[#allocation67_spill] sm:$0xff] }
 0xc08   :  { %v810_v4 = vsel %vm746_vm4, %v9387_v45, %v9389_v20  ;;  %v811_v30 = vsel %vm746_vm4, %v9389_v20, %v9390_v36  ;;  %v9402_v20 = vld [vmem:[#allocation75_spill] sm:$0xff] }
 0xc09   :  { %v5915_v32 = vpop.permute.xlu1 %1084  ;;  %v755_v21 = vadd.f32 %v748_v15, %v723_v27  ;;  %v754_v12 = vadd.f32 %v747_v58, %v722_v46  ;;  %v756_v7 = vadd.f32 %v749_v35, %v724_v13  ;;  %v757_v6 = vadd.f32 %v9382_v16, %v725_v63  ;;  %v9393_v46 = vld [vmem:[#allocation22_spill] sm:$0xff]  ;;  %v9394_v58 = vld [vmem:[#allocation69_spill] sm:$0xff]  ;;  %v9395_v15 = vld [vmem:[#allocation71_spill] sm:$0xff] }
 0xc0a   :  { %v840_v27 = vsel %vm746_vm4, %v9392_v60, %v9391_v22  ;;  %v841_v18 = vsel %vm746_vm4, %v9391_v22, %v9393_v46  ;;  %v842_v5 = vsel %vm746_vm4, %v9393_v46, %v9394_v58  ;;  %v9397_v13 = vld [vmem:[#allocation23_spill] sm:$0xff] }
 0xc0b   :  { %v786_v51 = vadd.f32 %v779_v57, %v755_v21  ;;  %v785_v25 = vadd.f32 %v778_v24, %v754_v12  ;;  %v787_v28 = vadd.f32 %v780_v3, %v756_v7  ;;  %v788_v61 = vadd.f32 %v9386_v39, %v757_v6  ;;  %v9396_v21 = vld [vmem:[#allocation70_spill] sm:$0xff]  ;;  %v9401_v6 = vld [vmem:[#allocation24_spill] sm:$0xff] }
 0xc0c   :  { %v872_v12 = vsel %vm871_vm5, %v9396_v21, %v9395_v15  ;;  %v873_v63 = vsel %vm871_vm5, %v9395_v15, %v9397_v13  ;;  %v874_v57 = vsel %vm871_vm5, %v9397_v13, %v9398_v31 }
 0xc0d   :  { %v5936_v2 = vpop.permute.xlu1 %1088  ;;  %v817_v41 = vadd.f32 %v810_v4, %v786_v51  ;;  %v816_v19 = vadd.f32 %v809_v50, %v785_v25  ;;  %v818_v33 = vadd.f32 %v811_v30, %v787_v28  ;;  %v819_v54 = vadd.f32 %v9390_v36, %v788_v61  ;;  %v9399_v51 = vld [vmem:[#allocation74_spill] sm:$0xff]  ;;  %v9400_v25 = vld [vmem:[#allocation73_spill] sm:$0xff] }
 0xc0e   :  { %v903_v7 = vsel %vm871_vm5, %v9400_v25, %v9399_v51  ;;  %v904_v39 = vsel %vm871_vm5, %v9399_v51, %v9401_v6  ;;  %v905_v4 = vsel %vm871_vm5, %v9401_v6, %v9402_v20  ;;  %v9405_v61 = vld [vmem:[#allocation25_spill] sm:$0xff] }
 0xc0f   :  { %v848_v23 = vadd.f32 %v841_v18, %v817_v41  ;;  %v847_v48 = vadd.f32 %v840_v27, %v816_v19  ;;  %v849_v11 = vadd.f32 %v842_v5, %v818_v33  ;;  %v850_v8 = vadd.f32 %v9394_v58, %v819_v54  ;;  %v9403_v41 = vld [vmem:[#allocation77_spill] sm:$0xff]  ;;  %v9404_v19 = vld [vmem:[#allocation76_spill] sm:$0xff]  ;;  %v9406_v18 = vld [vmem:[#allocation78_spill] sm:$0xff] }
 0xc10   :  { %v934_v28 = vsel %vm871_vm5, %v9404_v19, %v9403_v41  ;;  %v935_v36 = vsel %vm871_vm5, %v9403_v41, %v9405_v61  ;;  %v9408_v33 = vld [vmem:[#allocation79_spill] sm:$0xff]  ;;  %v9409_v58 = vld [vmem:[#allocation26_spill] sm:$0xff] }
 0xc11   :  { %v5948_v56 = vpop.permute.xlu1 %1113  ;;  %v880_v16 = vadd.f32 %v873_v63, %v848_v23  ;;  %v879_v35 = vadd.f32 %v872_v12, %v847_v48  ;;  %v881_v37 = vadd.f32 %v874_v57, %v849_v11  ;;  %v882_v50 = vadd.f32 %v9398_v31, %v850_v8  ;;  %v9407_v48 = vld [vmem:[#allocation81_spill] sm:$0xff]  ;;  %v9410_v11 = vld [vmem:[#allocation30_spill] sm:$0xff] }
 0xc12   :  { %v936_v23 = vsel %vm871_vm5, %v9405_v61, %v9406_v18  ;;  %v965_v54 = vsel %vm871_vm5, %v9408_v33, %v9407_v48  ;;  %v966_v5 = vsel %vm871_vm5, %v9407_v48, %v9409_v58  ;;  %v998_v8 = vsel %vm996_vm6, %v5769_v14, %v9410_v11 }
 0xc13   :  { %v911_v3 = vadd.f32 %v904_v39, %v880_v16  ;;  %v910_v45 = vadd.f32 %v903_v7, %v879_v35  ;;  %v912_v27 = vadd.f32 %v905_v4, %v881_v37  ;;  %v913_v46 = vadd.f32 %v9402_v20, %v882_v50  ;;  %v9412_v4 = vld [vmem:[#allocation38_spill] sm:$0xff] }
 0xc14   :  { %v967_v16 = vsel %vm871_vm5, %v9409_v58, %v5736_v44  ;;  %v997_v35 = vsel %vm996_vm6, %v5753_v62, %v5769_v14  ;;  %v999_v6 = vsel %vm996_vm6, %v9410_v11, %v5793_v59  ;;  %v1028_v39 = vsel %vm996_vm6, %v5807_v9, %v5822_v47 }
 0xc15   :  { %v5961_v53 = vpop.permute.xlu1 %1115  ;;  %v942_v22 = vadd.f32 %v935_v36, %v911_v3  ;;  %v941_v60 = vadd.f32 %v934_v28, %v910_v45  ;;  %v943_v13 = vadd.f32 %v936_v23, %v912_v27  ;;  %v944_v63 = vadd.f32 %v9406_v18, %v913_v46  ;;  %v9411_v3 = vld [vmem:[#allocation34_spill] sm:$0xff] }
 0xc16   :  { %v1029_v62 = vsel %vm996_vm6, %v5822_v47, %v9411_v3  ;;  %v1059_v20 = vsel %vm996_vm6, %v5856_v42, %v5869_v10  ;;  %v1060_v9 = vsel %vm996_vm6, %v5869_v10, %v9412_v4  ;;  %v1090_v36 = vsel %vm996_vm6, %v5902_v26, %v5915_v32  ;;  %v9414_v26 = vld [vmem:[#allocation46_spill] sm:$0xff] }
 0xc17   :  { %v973_v21 = vadd.f32 %v966_v5, %v942_v22  ;;  %v972_v12 = vadd.f32 %v965_v54, %v941_v60  ;;  %v974_v51 = vadd.f32 %v967_v16, %v943_v13  ;;  %v975_v25 = vadd.f32 %v5736_v44, %v944_v63  ;;  %v9413_v22 = vld [vmem:[#allocation42_spill] sm:$0xff] }
 0xc18   :  { %v1030_v44 = vsel %vm996_vm6, %v9411_v3, %v5844_v38  ;;  %v1091_v42 = vsel %vm996_vm6, %v5915_v32, %v9413_v22  ;;  %v1122_v23 = vsel %vm1121_vm7, %v5948_v56, %v5961_v53  ;;  %v1123_v48 = vsel %vm1121_vm7, %v5961_v53, %v9414_v26 }
 0xc19   :  { %v5982_v0 = vpop.permute.xlu1 %1119  ;;  %v1005_v31 = vadd.f32 %v998_v8, %v973_v21  ;;  %v1004_v57 = vadd.f32 %v997_v35, %v972_v12  ;;  %v1006_v37 = vadd.f32 %v999_v6, %v974_v51  ;;  %v1007_v50 = vadd.f32 %v5793_v59, %v975_v25  ;;  %v9415_v12 = vld [vmem:[#allocation55_spill] sm:$0xff]  ;;  %v9416_v8 = vld [vmem:[#allocation80_spill] sm:$0xff] }
 0xc1a   :  { %v1061_v59 = vsel %vm996_vm6, %v9412_v4, %v5890_v40 }
 0xc1b   :  { %v1036_v45 = vadd.f32 %v1029_v62, %v1005_v31  ;;  %v1035_v14 = vadd.f32 %v1028_v39, %v1004_v57  ;;  %v1037_v28 = vadd.f32 %v1030_v44, %v1006_v37  ;;  %v1038_v61 = vadd.f32 %v5844_v38, %v1007_v50 }
 0xc1c   :  { %v1092_v38 = vsel %vm996_vm6, %v9413_v22, %v5936_v2 }
 0xc1d   :  { %v5994_v17 = vpop.permute.xlu1 %1145  ;;  %v1067_v19 = vadd.f32 %v1060_v9, %v1036_v45  ;;  %v1066_v47 = vadd.f32 %v1059_v20, %v1035_v14  ;;  %v1068_v46 = vadd.f32 %v1061_v59, %v1037_v28  ;;  %v1069_v18 = vadd.f32 %v5890_v40, %v1038_v61  ;;  %v9420_v28 = vld [vmem:[#allocation4_spill] sm:$0xff] }
 0xc1e   :  { %v1124_v40 = vsel %vm1121_vm7, %v9414_v26, %v5982_v0 }
 0xc1f   :  { %v1098_v60 = vadd.f32 %v1091_v42, %v1067_v19  ;;  %v1097_v27 = vadd.f32 %v1090_v36, %v1066_v47  ;;  %v1099_v54 = vadd.f32 %v1092_v38, %v1068_v46  ;;  %v1100_v58 = vadd.f32 %v5936_v2, %v1069_v18  ;;  %v9418_v19 = vld [vmem:[#allocation3_spill] sm:$0xff] }
 0xc20   :  { %v9424_v46 = vld [vmem:[#allocation7_spill] sm:$0xff] }
 0xc21   :  { %v6007_v24 = vpop.permute.xlu1 %1147  ;;  %v1130_v32 = vadd.f32 %v1123_v48, %v1098_v60  ;;  %v1129_v33 = vadd.f32 %v1122_v23, %v1097_v27  ;;  %v1131_v63 = vadd.f32 %v1124_v40, %v1099_v54  ;;  %v1132_v16 = vadd.f32 %v5982_v0, %v1100_v58  ;;  %v9422_v60 = vld [vmem:[#allocation6_spill] sm:$0xff] }
 0xc22   :  { %v1153_v21 = vsel %vm1121_vm7, %v5994_v17, %v6007_v24  ;;  %v1154_v56 = vsel %vm1121_vm7, %v6007_v24, %v9415_v12 }
 0xc23   :  { %v1161_v13 = vadd.f32 %v1154_v56, %v1130_v32  ;;  %v1160_v53 = vadd.f32 %v1153_v21, %v1129_v33 }
 0xc25   :  { %v6028_v30 = vpop.permute.xlu1 %1151 }
 0xc26   :  { %v1155_v2 = vsel %vm1121_vm7, %v9415_v12, %v6028_v30  ;;  %v1163_v0 = vadd.f32 %v6028_v30, %v1132_v16  ;;  %v22_v30 = vld [vmem:[%s8953_s1] sm:$0xf] }
 0xc27   :  { %v1162_v6 = vadd.f32 %v1155_v2, %v1131_v63  ;;  %v6128_v47 = vrot.slane %v22_v30, %v9418_v19  ;;  %v6131_v61 = vrot.slane %v22_v30, %v9420_v28  ;;  %v6140_v27 = vrot.slane %v22_v30, %v9422_v60 }
 0xc28   :  { %v6143_v18 = vrot.slane %v22_v30, %v9424_v46 }
 0xc29   :  { %v1177_v15 = vpop.permute.xlu1 %1176  ;;  %9419 = vst [vmem:[#allocation29_spill] sm:$0xff] %v6128_v47  ;;  %9421 = vst [vmem:[#allocation28_spill] sm:$0xff] %v6131_v61 }
 0xc2a   :  { %9423 = vst [vmem:[#allocation11_spill] sm:$0xff] %v6140_v27  ;;  %9425 = vst [vmem:[#allocation31_spill] sm:$0xff] %v6143_v18 }
 0xc2d   :  { %v1179_v7 = vpop.permute.xlu1 %1178 }
 0xc2e   :  { %v1184_v11 = vsel %vm1121_vm7, %v1177_v15, %v1179_v7  ;;  %v1185_v31 = vsel %vm1121_vm7, %v1179_v7, %v9416_v8  ;;  %v6115_v15 = vstv %s8952_s4 }
 0xc2f   :  { %v1192_v51 = vadd.f32 %v1185_v31, %v1161_v13  ;;  %v1191_v25 = vadd.f32 %v1184_v11, %v1160_v53  ;;  %9417 = vst [vmem:[#allocation27_spill] sm:$0xff] %v6115_v15  ;;  %v9426_v53 = vmov 6  }
 0xc31   :  { %v1183_v41 = vpop.permute.xlu1 %1182 }
 0xc32   :  { %v1186_v62 = vsel %vm1121_vm7, %v9416_v8, %v1183_v41  ;;  %v1194_v37 = vadd.f32 %v1183_v41, %v1163_v0  ;;  %v9427_v0 = vmov 7  }
 0xc33   :  { %v1193_v14 = vadd.f32 %v1186_v62, %v1162_v6 }
 0xc50   :  { %v1208_v10 = vpop.permute.xlu1 %1207  ;;  %v1212_v35 = vpop.permute.xlu0 %1211 }
 0xc54   :  { %v1210_v5 = vpop.permute.xlu1 %1209 }
 0xc55   :  { %v1215_v17 = vsel %vm1121_vm7, %v1208_v10, %v1210_v5  ;;  %v1216_v57 = vsel %vm1121_vm7, %v1210_v5, %v1212_v35 }
 0xc56   :  { %v1222_v39 = vadd.f32 %v1215_v17, %v1191_v25  ;;  %v1223_v3 = vadd.f32 %v1216_v57, %v1192_v51 }
 0xc58   :  { %v1214_v24 = vpop.permute.xlu1 %1213  ;;  %v1231_v50 = vmul.f32 %v6115_v15, %v1222_v39  ;;  %v1232_v44 = vmul.f32 %v6115_v15, %v1223_v3  ;;  %vm1226_vm8 = vcmp.ge.f32.partialorder %v1222_v39, 0.0  ;;  %vm1227_vm9 = vcmp.ge.f32.partialorder %v1223_v3, 0.0 }
 0xc59   :  { %v1217_v7 = vsel %vm1121_vm7, %v1212_v35, %v1214_v24  ;;  %v1225_v4 = vadd.f32 %v1214_v24, %v1194_v37 }
 0xc5a   :  { %v1224_v20 = vadd.f32 %v1217_v7, %v1193_v14  ;;  %v1235_v41 = vsel %vm1226_vm8, %v1222_v39, %v1231_v50  ;;  %v1236_v59 = vsel %vm1227_vm9, %v1223_v3, %v1232_v44 }
 0xc5b   :  { %v1234_v22 = vmul.f32 %v6115_v15, %v1225_v4  ;;  %vm1229_vm11 = vcmp.ge.f32.partialorder %v1225_v4, 0.0  ;;  %v1260_v42 = vmul.f32 %v6128_v47, %v1235_v41  ;;  %v6137_v10 = vmul.f32 %v6131_v61, %v1236_v59 }
 0xc5c   :  { %v1233_v36 = vmul.f32 %v6115_v15, %v1224_v20  ;;  %vm1228_vm10 = vcmp.ge.f32.partialorder %v1224_v20, 0.0 }
 0xc5d   :  { %v1238_v26 = vsel %vm1229_vm11, %v1225_v4, %v1234_v22  ;;  %v6148_v48 = vrot.slane %v1260_v42, %v9418_v19  ;;  %v6152_v32 = vrot.slane %v6137_v10, %v9418_v19  ;;  %v6172_v63 = vpop.permute.xlu0 %1267  ;;  %v6181_v11 = vrot.slane %v1260_v42, %v9420_v28 }
 0xc5e   :  { %v1237_v23 = vsel %vm1228_vm10, %v1224_v20, %v1233_v36  ;;  %v1263_v54 = vmul.f32 %v6143_v18, %v1238_v26  ;;  %v6190_v24 = vrot.slane %v6137_v10, %v9420_v28  ;;  %v6206_v3 = vrot.slane %v1260_v42, %v9422_v60 }
 0xc5f   :  { %v1262_v33 = vmul.f32 %v6140_v27, %v1237_v23  ;;  %v6215_v30 = vrot.slane %v6137_v10, %v9422_v60  ;;  %v9428_v4 = vmov 8   ;;  %v6231_v59 = vrot.slane %v1260_v42, %v9424_v46 }
 0xc60   :  { %v6162_v12 = vrot.slane %v1263_v54, %v9418_v19  ;;  %v6196_v25 = vrot.slane %v1263_v54, %v9420_v28  ;;  %v6221_v44 = vrot.slane %v1263_v54, %v9422_v60  ;;  %v6246_v42 = vrot.slane %v1263_v54, %v9424_v46 }
 0xc61   :  { %v6159_v21 = vrot.slane %v1262_v33, %v9418_v19  ;;  %v6184_v8 = vrot.slane %v1262_v33, %v9420_v28  ;;  %v6209_v62 = vrot.slane %v1262_v33, %v9422_v60  ;;  %v6234_v36 = vrot.slane %v1262_v33, %v9424_v46 }
 0xc62   :  { %v6174_v16 = vpop.permute.xlu0 %1344 }
 0xc65   :  { %v6118_v45 = vpop.permute.xlu1 %1288 }
 0xc6a   :  { %v6125_v9 = vpop.permute.xlu1 %1316 }
 0xc6f   :  { %v6145_v38 = vpop.permute.xlu1 %1372 }
 0xc74   :  { %v1385_v58 = vpop.permute.xlu1 %1384 }
 0xc75   :  { %v1388_v5 = vmul.f32 %v1385_v58, %v6152_v32  ;;  %v1387_v40 = vmul.f32 %v1385_v58, %v6148_v48  ;;  %v1390_v56 = vmul.f32 %v1385_v58, %v6162_v12  ;;  %v1389_v13 = vmul.f32 %v1385_v58, %v6159_v21 }
 0xc76   :  { %v6240_v58 = vrot.slane %v6137_v10, %v9424_v46 }
 0xc77   :  { %1397 = vrot.lane.b32.xlu1 %v1388_v5, %s4992_s24  ;;  %1395 = vrot.lane.b32.xlu0 %v1387_v40, %s4992_s24  ;;  %v9429_v40 = vmov 9  }
 0xc7b   :  { %1401 = vrot.lane.b32.xlu1 %v1390_v56, %s4992_s24  ;;  %1399 = vrot.lane.b32.xlu0 %v1389_v13, %s4992_s24 }
 0xc7f   :  { %1415 = vperm.xlu0 %4867, %v5727_v29  }
 0xc83   :  { %4868 = vset.pattern.permute.xlu0 %v9426_v53  ;;  %v9456_v53 = vmov 25  }
 0xce9   :  { %v6176_v2 = vpop.permute.xlu0 %1395 }
 0xced   :  { %v6178_v35 = vpop.permute.xlu0 %1399 }
 0xcfa   :  { %v1416_v31 = vpop.permute.xlu0 %1415 }
 0xcfb   :  { %v1420_v17 = vmul.f32 %v1416_v31, %v6184_v8  ;;  %v1418_v57 = vmul.f32 %v1416_v31, %v6181_v11  ;;  %v1419_v51 = vmul.f32 %v1416_v31, %v6190_v24  ;;  %v1421_v6 = vmul.f32 %v1416_v31, %v6196_v25 }
 0xcfd   :  { %1430 = vrot.lane.b32.xlu0 %v1420_v17, %s4992_s24  ;;  %1426 = vrot.lane.b32.xlu1 %v1418_v57, %s4992_s24  ;;  %v9430_v57 = vmov 10  }
 0xd01   :  { %1446 = vperm.xlu0 %4868, %v5727_v29   ;;  %1428 = vrot.lane.b32.xlu1 %v1419_v51, %s4992_s24 }
 0xd05   :  { %1432 = vrot.lane.b32.xlu1 %v1421_v6, %s4992_s24  ;;  %4869 = vset.pattern.permute.xlu0 %v9427_v0 }
 0xd6f   :  { %v6203_v39 = vpop.permute.xlu0 %1430 }
 0xd7c   :  { %v1447_v7 = vpop.permute.xlu0 %1446 }
 0xd7d   :  { %v1451_v14 = vmul.f32 %v1447_v7, %v6209_v62  ;;  %v1449_v37 = vmul.f32 %v1447_v7, %v6206_v3  ;;  %v1450_v50 = vmul.f32 %v1447_v7, %v6215_v30  ;;  %v1452_v20 = vmul.f32 %v1447_v7, %v6221_v44 }
 0xd7f   :  { %1461 = vrot.lane.b32.xlu0 %v1451_v14, %s4992_s24  ;;  %1457 = vrot.lane.b32.xlu1 %v1449_v37, %s4992_s24 }
 0xd83   :  { %1477 = vperm.xlu0 %4869, %v5727_v29   ;;  %1459 = vrot.lane.b32.xlu1 %v1450_v50, %s4992_s24 }
 0xd87   :  { %1463 = vrot.lane.b32.xlu1 %v1452_v20, %s4992_s24  ;;  %4870 = vset.pattern.permute.xlu0 %v9428_v4  ;;  %v9431_v20 = vmov 11   ;;  %v9454_v4 = vmov 24  }
 0xdf1   :  { %v6228_v41 = vpop.permute.xlu0 %1461 }
 0xdfe   :  { %v1478_v22 = vpop.permute.xlu0 %1477 }
 0xdff   :  { %v1482_v23 = vmul.f32 %v1478_v22, %v6234_v36  ;;  %v1480_v26 = vmul.f32 %v1478_v22, %v6231_v59  ;;  %v1481_v5 = vmul.f32 %v1478_v22, %v6240_v58  ;;  %v1483_v33 = vmul.f32 %v1478_v22, %v6246_v42 }
 0xe01   :  { %1492 = vrot.lane.b32.xlu0 %v1482_v23, %s4992_s24  ;;  %1488 = vrot.lane.b32.xlu1 %v1480_v26, %s4992_s24 }
 0xe05   :  { %1508 = vperm.xlu0 %4870, %v5727_v29   ;;  %1490 = vrot.lane.b32.xlu1 %v1481_v5, %s4992_s24 }
 0xe09   :  { %1494 = vrot.lane.b32.xlu1 %v1483_v33, %s4992_s24  ;;  %4871 = vset.pattern.permute.xlu0 %v9429_v40 }
 0xe73   :  { %v6253_v10 = vpop.permute.xlu0 %1492 }
 0xe80   :  { %v1509_v56 = vpop.permute.xlu0 %1508 }
 0xe81   :  { %v1513_v13 = vmul.f32 %v1509_v56, %v6159_v21  ;;  %v1511_v31 = vmul.f32 %v1509_v56, %v6148_v48  ;;  %v1512_v54 = vmul.f32 %v1509_v56, %v6152_v32  ;;  %v1514_v17 = vmul.f32 %v1509_v56, %v6162_v12 }
 0xe83   :  { %1523 = vrot.lane.b32.xlu0 %v1513_v13, %s4993_s25  ;;  %1519 = vrot.lane.b32.xlu1 %v1511_v31, %s4993_s25  ;;  %v9432_v13 = vmov 12  }
 0xe87   :  { %1539 = vperm.xlu0 %4871, %v5727_v29   ;;  %1521 = vrot.lane.b32.xlu1 %v1512_v54, %s4993_s25 }
 0xe8b   :  { %1525 = vrot.lane.b32.xlu1 %v1514_v17, %s4993_s25  ;;  %4872 = vset.pattern.permute.xlu0 %v9430_v57 }
 0xef5   :  { %v6265_v51 = vpop.permute.xlu0 %1523 }
 0xf02   :  { %v1540_v6 = vpop.permute.xlu0 %1539 }
 0xf03   :  { %v1544_v7 = vmul.f32 %v1540_v6, %v6184_v8  ;;  %v1542_v14 = vmul.f32 %v1540_v6, %v6181_v11  ;;  %v1543_v37 = vmul.f32 %v1540_v6, %v6190_v24  ;;  %v1545_v50 = vmul.f32 %v1540_v6, %v6196_v25 }
 0xf05   :  { %1554 = vrot.lane.b32.xlu0 %v1544_v7, %s4993_s25  ;;  %1550 = vrot.lane.b32.xlu1 %v1542_v14, %s4993_s25 }
 0xf09   :  { %1570 = vperm.xlu0 %4872, %v5727_v29   ;;  %1552 = vrot.lane.b32.xlu1 %v1543_v37, %s4993_s25  ;;  %v9433_v37 = vmov 13  }
 0xf0d   :  { %1556 = vrot.lane.b32.xlu1 %v1545_v50, %s4993_s25  ;;  %4873 = vset.pattern.permute.xlu0 %v9431_v20  ;;  %v9452_v20 = vmov 23  }
 0xf77   :  { %v6277_v22 = vpop.permute.xlu0 %1554 }
 0xf84   :  { %v1571_v23 = vpop.permute.xlu0 %1570 }
 0xf85   :  { %v1575_v26 = vmul.f32 %v1571_v23, %v6209_v62  ;;  %v1573_v5 = vmul.f32 %v1571_v23, %v6206_v3  ;;  %v1574_v33 = vmul.f32 %v1571_v23, %v6215_v30  ;;  %v1576_v56 = vmul.f32 %v1571_v23, %v6221_v44 }
 0xf87   :  { %1585 = vrot.lane.b32.xlu0 %v1575_v26, %s4993_s25  ;;  %1581 = vrot.lane.b32.xlu1 %v1573_v5, %s4993_s25 }
 0xf8b   :  { %1601 = vperm.xlu0 %4873, %v5727_v29   ;;  %1583 = vrot.lane.b32.xlu1 %v1574_v33, %s4993_s25 }
 0xf8f   :  { %1587 = vrot.lane.b32.xlu1 %v1576_v56, %s4993_s25  ;;  %4874 = vset.pattern.permute.xlu0 %v9432_v13 }
 0xff9   :  { %v6289_v31 = vpop.permute.xlu0 %1585 }
0x1006   :  { %v1602_v54 = vpop.permute.xlu0 %1601 }
0x1007   :  { %v1606_v17 = vmul.f32 %v1602_v54, %v6234_v36  ;;  %v1604_v6 = vmul.f32 %v1602_v54, %v6231_v59  ;;  %v1605_v7 = vmul.f32 %v1602_v54, %v6240_v58  ;;  %v1607_v14 = vmul.f32 %v1602_v54, %v6246_v42 }
0x1008   :  { %v9434_v54 = vmov 14  }
0x1009   :  { %1616 = vrot.lane.b32.xlu0 %v1606_v17, %s4993_s25  ;;  %1612 = vrot.lane.b32.xlu1 %v1604_v6, %s4993_s25 }
0x100d   :  { %1632 = vperm.xlu0 %4874, %v5727_v29   ;;  %1614 = vrot.lane.b32.xlu1 %v1605_v7, %s4993_s25 }
0x1011   :  { %1618 = vrot.lane.b32.xlu1 %v1607_v14, %s4993_s25  ;;  %4875 = vset.pattern.permute.xlu0 %v9433_v37 }
0x107b   :  { %v6301_v50 = vpop.permute.xlu0 %1616 }
0x1088   :  { %v1633_v23 = vpop.permute.xlu0 %1632 }
0x1089   :  { %v1637_v26 = vmul.f32 %v1633_v23, %v6159_v21  ;;  %v1635_v5 = vmul.f32 %v1633_v23, %v6148_v48  ;;  %v1636_v33 = vmul.f32 %v1633_v23, %v6152_v32  ;;  %v1638_v56 = vmul.f32 %v1633_v23, %v6162_v12 }
0x108b   :  { %1647 = vrot.lane.b32.xlu0 %v1637_v26, %s4994_s26  ;;  %1643 = vrot.lane.b32.xlu1 %v1635_v5, %s4994_s26  ;;  %v9436_v5 = vmov 15  }
0x108f   :  { %1663 = vperm.xlu0 %4875, %v5727_v29   ;;  %1645 = vrot.lane.b32.xlu1 %v1636_v33, %s4994_s26 }
0x1093   :  { %1649 = vrot.lane.b32.xlu1 %v1638_v56, %s4994_s26  ;;  %4876 = vset.pattern.permute.xlu0 %v9434_v54 }
0x10fd   :  { %v6313_v17 = vpop.permute.xlu0 %1647 }
0x10fe   :  { %9435 = vst [vmem:[#allocation33_spill] sm:$0xff] %v6313_v17 }
0x110a   :  { %v1664_v6 = vpop.permute.xlu0 %1663 }
0x110b   :  { %v1668_v7 = vmul.f32 %v1664_v6, %v6184_v8  ;;  %v1666_v14 = vmul.f32 %v1664_v6, %v6181_v11  ;;  %v1667_v26 = vmul.f32 %v1664_v6, %v6190_v24  ;;  %v1669_v23 = vmul.f32 %v1664_v6, %v6196_v25 }
0x110d   :  { %1678 = vrot.lane.b32.xlu0 %v1668_v7, %s4994_s26  ;;  %1674 = vrot.lane.b32.xlu1 %v1666_v14, %s4994_s26 }
0x1111   :  { %1694 = vperm.xlu0 %4876, %v5727_v29   ;;  %1676 = vrot.lane.b32.xlu1 %v1667_v26, %s4994_s26  ;;  %v9438_v26 = vmov 16  }
0x1115   :  { %1680 = vrot.lane.b32.xlu1 %v1669_v23, %s4994_s26  ;;  %4877 = vset.pattern.permute.xlu0 %v9436_v5 }
0x117f   :  { %v6325_v33 = vpop.permute.xlu0 %1678 }
0x1180   :  { %9437 = vst [vmem:[#allocation32_spill] sm:$0xff] %v6325_v33 }
0x118c   :  { %v1695_v56 = vpop.permute.xlu0 %1694 }
0x118d   :  { %v1699_v27 = vmul.f32 %v1695_v56, %v6209_v62  ;;  %v1697_v7 = vmul.f32 %v1695_v56, %v6206_v3  ;;  %v1698_v14 = vmul.f32 %v1695_v56, %v6215_v30  ;;  %v1700_v6 = vmul.f32 %v1695_v56, %v6221_v44 }
0x118f   :  { %1709 = vrot.lane.b32.xlu0 %v1699_v27, %s4994_s26  ;;  %1705 = vrot.lane.b32.xlu1 %v1697_v7, %s4994_s26 }
0x1193   :  { %1725 = vperm.xlu0 %4877, %v5727_v29   ;;  %1707 = vrot.lane.b32.xlu1 %v1698_v14, %s4994_s26  ;;  %v9440_v14 = vmov 17  }
0x1197   :  { %1711 = vrot.lane.b32.xlu1 %v1700_v6, %s4994_s26  ;;  %4878 = vset.pattern.permute.xlu0 %v9438_v26 }
0x1201   :  { %v6337_v23 = vpop.permute.xlu0 %1709 }
0x1202   :  { %9439 = vst [vmem:[#allocation12_spill] sm:$0xff] %v6337_v23 }
0x120e   :  { %v1726_v18 = vpop.permute.xlu0 %1725 }
0x120f   :  { %v1730_v47 = vmul.f32 %v1726_v18, %v6234_v36  ;;  %v1728_v27 = vmul.f32 %v1726_v18, %v6231_v59  ;;  %v1729_v7 = vmul.f32 %v1726_v18, %v6240_v58  ;;  %v1731_v56 = vmul.f32 %v1726_v18, %v6246_v42 }
0x1211   :  { %1740 = vrot.lane.b32.xlu0 %v1730_v47, %s4994_s26  ;;  %1736 = vrot.lane.b32.xlu1 %v1728_v27, %s4994_s26 }
0x1215   :  { %1756 = vperm.xlu0 %4878, %v5727_v29   ;;  %1738 = vrot.lane.b32.xlu1 %v1729_v7, %s4994_s26  ;;  %v9442_v7 = vmov 18  }
0x1219   :  { %1742 = vrot.lane.b32.xlu1 %v1731_v56, %s4994_s26  ;;  %4879 = vset.pattern.permute.xlu0 %v9440_v14 }
0x1283   :  { %v6349_v6 = vpop.permute.xlu0 %1740 }
0x1284   :  { %9441 = vst [vmem:[#allocation35_spill] sm:$0xff] %v6349_v6 }
0x1290   :  { %v1757_v61 = vpop.permute.xlu0 %1756 }
0x1291   :  { %v1761_v15 = vmul.f32 %v1757_v61, %v6159_v21  ;;  %v1759_v47 = vmul.f32 %v1757_v61, %v6148_v48  ;;  %v1760_v27 = vmul.f32 %v1757_v61, %v6152_v32  ;;  %v1762_v18 = vmul.f32 %v1757_v61, %v6162_v12 }
0x1293   :  { %1771 = vrot.lane.b32.xlu0 %v1761_v15, %s4998_s27  ;;  %1767 = vrot.lane.b32.xlu1 %v1759_v47, %s4998_s27 }
0x1297   :  { %1787 = vperm.xlu0 %4879, %v5727_v29   ;;  %1769 = vrot.lane.b32.xlu1 %v1760_v27, %s4998_s27  ;;  %v9444_v27 = vmov 19  }
0x129b   :  { %1773 = vrot.lane.b32.xlu1 %v1762_v18, %s4998_s27  ;;  %4880 = vset.pattern.permute.xlu0 %v9442_v7 }
0x1305   :  { %v6361_v56 = vpop.permute.xlu0 %1771 }
0x1306   :  { %9443 = vst [vmem:[#allocation37_spill] sm:$0xff] %v6361_v56 }
0x1312   :  { %v1788_v49 = vpop.permute.xlu0 %1787 }
0x1313   :  { %v1792_v14 = vmul.f32 %v1788_v49, %v6184_v8  ;;  %v1790_v15 = vmul.f32 %v1788_v49, %v6181_v11  ;;  %v1791_v47 = vmul.f32 %v1788_v49, %v6190_v24  ;;  %v1793_v61 = vmul.f32 %v1788_v49, %v6196_v25  ;;  %v6383_v49 = vld [vmem:[%s8951_s3] sm:$0xf] }
0x1315   :  { %1802 = vrot.lane.b32.xlu0 %v1792_v14, %s4998_s27  ;;  %1798 = vrot.lane.b32.xlu1 %v1790_v15, %s4998_s27 }
0x1319   :  { %1818 = vperm.xlu0 %4880, %v5727_v29   ;;  %1800 = vrot.lane.b32.xlu1 %v1791_v47, %s4998_s27  ;;  %v9446_v47 = vmov 20  }
0x131d   :  { %1804 = vrot.lane.b32.xlu1 %v1793_v61, %s4998_s27  ;;  %4881 = vset.pattern.permute.xlu0 %v9444_v27 }
0x1387   :  { %v6373_v18 = vpop.permute.xlu0 %1802 }
0x1388   :  { %9445 = vst [vmem:[#allocation36_spill] sm:$0xff] %v6373_v18 }
0x1394   :  { %v1819_v7 = vpop.permute.xlu0 %1818 }
0x1395   :  { %v1823_v26 = vmul.f32 %v1819_v7, %v6209_v62  ;;  %v1821_v14 = vmul.f32 %v1819_v7, %v6206_v3  ;;  %v1822_v29 = vmul.f32 %v1819_v7, %v6215_v30  ;;  %v1824_v15 = vmul.f32 %v1819_v7, %v6221_v44 }
0x1397   :  { %1833 = vrot.lane.b32.xlu0 %v1823_v26, %s4998_s27  ;;  %1829 = vrot.lane.b32.xlu1 %v1821_v14, %s4998_s27 }
0x139b   :  { %1849 = vperm.xlu0 %4881, %v6383_v49   ;;  %1831 = vrot.lane.b32.xlu1 %v1822_v29, %s4998_s27  ;;  %v9448_v29 = vmov 21  }
0x139f   :  { %1835 = vrot.lane.b32.xlu1 %v1824_v15, %s4998_s27  ;;  %4882 = vset.pattern.permute.xlu0 %v9446_v47 }
0x1409   :  { %v6390_v26 = vpop.permute.xlu0 %1833 }
0x140a   :  { %9447 = vst [vmem:[#allocation13_spill] sm:$0xff] %v6390_v26 }
0x1416   :  { %v1850_v61 = vpop.permute.xlu0 %1849 }
0x1417   :  { %v1854_v14 = vmul.f32 %v1850_v61, %v6234_v36  ;;  %v1852_v27 = vmul.f32 %v1850_v61, %v6231_v59  ;;  %v1853_v5 = vmul.f32 %v1850_v61, %v6240_v58  ;;  %v1855_v7 = vmul.f32 %v1850_v61, %v6246_v42  ;;  %v6412_v61 = vpop.permute.xlu1 %1397 }
0x1419   :  { %1864 = vrot.lane.b32.xlu0 %v1854_v14, %s4998_s27  ;;  %1860 = vrot.lane.b32.xlu1 %v1852_v27, %s4998_s27 }
0x141d   :  { %1880 = vperm.xlu0 %4882, %v6383_v49   ;;  %1862 = vrot.lane.b32.xlu1 %v1853_v5, %s4998_s27 }
0x1421   :  { %1866 = vrot.lane.b32.xlu1 %v1855_v7, %s4998_s27  ;;  %4883 = vset.pattern.permute.xlu0 %v9448_v29  ;;  %v9450_v7 = vmov 22  }
0x148b   :  { %v6402_v15 = vpop.permute.xlu0 %1864 }
0x148c   :  { %9449 = vst [vmem:[#allocation39_spill] sm:$0xff] %v6402_v15 }
0x1498   :  { %v1881_v47 = vpop.permute.xlu0 %1880 }
0x1499   :  { %v1885_v54 = vmul.f32 %v1881_v47, %v6159_v21  ;;  %v1883_v14 = vmul.f32 %v1881_v47, %v6148_v48  ;;  %v1884_v27 = vmul.f32 %v1881_v47, %v6152_v32  ;;  %v1886_v5 = vmul.f32 %v1881_v47, %v6162_v12 }
0x149b   :  { %1895 = vrot.lane.b32.xlu0 %v1885_v54, %s5003_s28  ;;  %1891 = vrot.lane.b32.xlu1 %v1883_v14, %s5003_s28  ;;  %v6418_v54 = vpop.permute.xlu1 %1401 }
0x149f   :  { %1911 = vperm.xlu0 %4883, %v6383_v49   ;;  %1893 = vrot.lane.b32.xlu1 %v1884_v27, %s5003_s28  ;;  %v6424_v47 = vpop.permute.xlu1 %1426 }
0x14a3   :  { %1897 = vrot.lane.b32.xlu1 %v1886_v5, %s5003_s28  ;;  %4884 = vset.pattern.permute.xlu0 %v9450_v7  ;;  %v6430_v7 = vpop.permute.xlu1 %1428 }
0x150d   :  { %v6416_v29 = vpop.permute.xlu0 %1895 }
0x150e   :  { %9451 = vst [vmem:[#allocation41_spill] sm:$0xff] %v6416_v29 }
0x151a   :  { %v1912_v37 = vpop.permute.xlu0 %1911 }
0x151b   :  { %v1916_v14 = vmul.f32 %v1912_v37, %v6184_v8  ;;  %v1914_v13 = vmul.f32 %v1912_v37, %v6181_v11  ;;  %v1915_v27 = vmul.f32 %v1912_v37, %v6190_v24  ;;  %v1917_v5 = vmul.f32 %v1912_v37, %v6196_v25 }
0x151d   :  { %1926 = vrot.lane.b32.xlu0 %v1916_v14, %s5003_s28  ;;  %1922 = vrot.lane.b32.xlu1 %v1914_v13, %s5003_s28  ;;  %v6436_v13 = vpop.permute.xlu1 %1432 }
0x1521   :  { %1942 = vperm.xlu0 %4884, %v6383_v49   ;;  %1924 = vrot.lane.b32.xlu1 %v1915_v27, %s5003_s28  ;;  %v6442_v37 = vpop.permute.xlu1 %1457 }
0x1525   :  { %1928 = vrot.lane.b32.xlu1 %v1917_v5, %s5003_s28  ;;  %4885 = vset.pattern.permute.xlu0 %v9452_v20  ;;  %v6448_v20 = vpop.permute.xlu1 %1459 }
0x158f   :  { %v6434_v57 = vpop.permute.xlu0 %1926 }
0x1590   :  { %9453 = vst [vmem:[#allocation40_spill] sm:$0xff] %v6434_v57 }
0x159c   :  { %v1943_v14 = vpop.permute.xlu0 %1942 }
0x159d   :  { %v1947_v40 = vmul.f32 %v1943_v14, %v6209_v62  ;;  %v1945_v46 = vmul.f32 %v1943_v14, %v6206_v3  ;;  %v1946_v27 = vmul.f32 %v1943_v14, %v6215_v30  ;;  %v1948_v5 = vmul.f32 %v1943_v14, %v6221_v44 }
0x159f   :  { %1957 = vrot.lane.b32.xlu0 %v1947_v40, %s5003_s28  ;;  %1953 = vrot.lane.b32.xlu1 %v1945_v46, %s5003_s28  ;;  %v6454_v46 = vpop.permute.xlu1 %1463 }
0x15a3   :  { %1973 = vperm.xlu0 %4885, %v6383_v49   ;;  %1955 = vrot.lane.b32.xlu1 %v1946_v27, %s5003_s28  ;;  %v6460_v14 = vpop.permute.xlu1 %1488 }
0x15a7   :  { %1959 = vrot.lane.b32.xlu1 %v1948_v5, %s5003_s28  ;;  %4886 = vset.pattern.permute.xlu0 %v9454_v4  ;;  %v6466_v4 = vpop.permute.xlu1 %1490 }
0x1611   :  { %v6452_v60 = vpop.permute.xlu0 %1957 }
0x1612   :  { %9455 = vst [vmem:[#allocation14_spill] sm:$0xff] %v6452_v60 }
0x161e   :  { %v1974_v40 = vpop.permute.xlu0 %1973 }
0x161f   :  { %v1978_v0 = vmul.f32 %v1974_v40, %v6234_v36  ;;  %v1976_v28 = vmul.f32 %v1974_v40, %v6231_v59  ;;  %v1977_v27 = vmul.f32 %v1974_v40, %v6240_v58  ;;  %v1979_v5 = vmul.f32 %v1974_v40, %v6246_v42 }
0x1621   :  { %1988 = vrot.lane.b32.xlu0 %v1978_v0, %s5003_s28  ;;  %1984 = vrot.lane.b32.xlu1 %v1976_v28, %s5003_s28  ;;  %v6472_v28 = vpop.permute.xlu1 %1494 }
0x1625   :  { %2004 = vperm.xlu0 %4886, %v6383_v49   ;;  %1986 = vrot.lane.b32.xlu1 %v1977_v27, %s5003_s28  ;;  %v6478_v40 = vpop.permute.xlu1 %1519 }
0x1629   :  { %1990 = vrot.lane.b32.xlu1 %v1979_v5, %s5003_s28  ;;  %4887 = vset.pattern.permute.xlu0 %v9456_v53  ;;  %v6484_v53 = vpop.permute.xlu1 %1521 }
0x1693   :  { %v6470_v19 = vpop.permute.xlu0 %1988 }
0x1694   :  { %9457 = vst [vmem:[#allocation43_spill] sm:$0xff] %v6470_v19 }
0x16a0   :  { %v2005_v0 = vpop.permute.xlu0 %2004 }
0x16a1   :  { %v2009_v55 = vmul.f32 %v2005_v0, %v6159_v21  ;;  %v2007_v43 = vmul.f32 %v2005_v0, %v6148_v48  ;;  %v2008_v27 = vmul.f32 %v2005_v0, %v6152_v32  ;;  %v2010_v5 = vmul.f32 %v2005_v0, %v6162_v12 }
0x16a3   :  { %2019 = vrot.lane.b32.xlu0 %v2009_v55, %s5008_s29  ;;  %2015 = vrot.lane.b32.xlu1 %v2007_v43, %s5008_s29  ;;  %v6490_v43 = vpop.permute.xlu1 %1525 }
0x16a7   :  { %2035 = vperm.xlu0 %4887, %v6383_v49   ;;  %2017 = vrot.lane.b32.xlu1 %v2008_v27, %s5008_s29  ;;  %v6496_v0 = vpop.permute.xlu1 %1550 }
0x16ab   :  { %2021 = vrot.lane.b32.xlu1 %v2010_v5, %s5008_s29  ;;  %4888 = vset.pattern.permute.xlu0 %v9458_v1  ;;  %v6502_v1 = vpop.permute.xlu1 %1552 }
0x1715   :  { %v6488_v34 = vpop.permute.xlu0 %2019 }
0x1716   :  { %9459 = vst [vmem:[#allocation45_spill] sm:$0xff] %v6488_v34  ;;  %v9460_v34 = vmov 27  }
0x1722   :  { %v2036_v55 = vpop.permute.xlu0 %2035 }
0x1723   :  { %v2040_v19 = vmul.f32 %v2036_v55, %v6184_v8  ;;  %v2038_v60 = vmul.f32 %v2036_v55, %v6181_v11  ;;  %v2039_v27 = vmul.f32 %v2036_v55, %v6190_v24  ;;  %v2041_v5 = vmul.f32 %v2036_v55, %v6196_v25 }
0x1725   :  { %2050 = vrot.lane.b32.xlu0 %v2040_v19, %s5008_s29  ;;  %2046 = vrot.lane.b32.xlu1 %v2038_v60, %s5008_s29  ;;  %v6508_v60 = vpop.permute.xlu1 %1556 }
0x1729   :  { %2066 = vperm.xlu0 %4888, %v6383_v49   ;;  %2048 = vrot.lane.b32.xlu1 %v2039_v27, %s5008_s29  ;;  %v6514_v55 = vpop.permute.xlu1 %1581 }
0x172d   :  { %2052 = vrot.lane.b32.xlu1 %v2041_v5, %s5008_s29  ;;  %4889 = vset.pattern.permute.xlu0 %v9460_v34  ;;  %v6520_v34 = vpop.permute.xlu1 %1583 }
0x1797   :  { %v6506_v57 = vpop.permute.xlu0 %2050 }
0x1798   :  { %9461 = vst [vmem:[#allocation44_spill] sm:$0xff] %v6506_v57  ;;  %v9462_v57 = vmov 28  }
0x17a4   :  { %v2067_v19 = vpop.permute.xlu0 %2066 }
0x17a5   :  { %v2071_v29 = vmul.f32 %v2067_v19, %v6209_v62  ;;  %v2069_v15 = vmul.f32 %v2067_v19, %v6206_v3  ;;  %v2070_v27 = vmul.f32 %v2067_v19, %v6215_v30  ;;  %v2072_v5 = vmul.f32 %v2067_v19, %v6221_v44 }
0x17a7   :  { %2081 = vrot.lane.b32.xlu0 %v2071_v29, %s5008_s29  ;;  %2077 = vrot.lane.b32.xlu1 %v2069_v15, %s5008_s29  ;;  %v6526_v15 = vpop.permute.xlu1 %1587 }
0x17a8   :  { %9464 = vst [vmem:[#allocation47_spill] sm:$0xff] %v6526_v15 }
0x17ab   :  { %2097 = vperm.xlu0 %4889, %v6383_v49   ;;  %2079 = vrot.lane.b32.xlu1 %v2070_v27, %s5008_s29  ;;  %v6532_v19 = vpop.permute.xlu1 %1612 }
0x17af   :  { %2083 = vrot.lane.b32.xlu1 %v2072_v5, %s5008_s29  ;;  %4890 = vset.pattern.permute.xlu0 %v9462_v57  ;;  %v6538_v57 = vpop.permute.xlu1 %1614 }
0x1819   :  { %v6524_v26 = vpop.permute.xlu0 %2081 }
0x181a   :  { %9463 = vst [vmem:[#allocation15_spill] sm:$0xff] %v6524_v26  ;;  %v9465_v26 = vmov 29  }
0x1826   :  { %v2098_v29 = vpop.permute.xlu0 %2097 }
0x1827   :  { %v2102_v18 = vmul.f32 %v2098_v29, %v6234_v36  ;;  %v2100_v56 = vmul.f32 %v2098_v29, %v6231_v59  ;;  %v2101_v27 = vmul.f32 %v2098_v29, %v6240_v58  ;;  %v2103_v5 = vmul.f32 %v2098_v29, %v6246_v42 }
0x1829   :  { %2112 = vrot.lane.b32.xlu0 %v2102_v18, %s5008_s29  ;;  %2108 = vrot.lane.b32.xlu1 %v2100_v56, %s5008_s29  ;;  %v6544_v56 = vpop.permute.xlu1 %1618 }
0x182a   :  { %9467 = vst [vmem:[#allocation48_spill] sm:$0xff] %v6544_v56 }
0x182d   :  { %2128 = vperm.xlu0 %4890, %v6383_v49   ;;  %2110 = vrot.lane.b32.xlu1 %v2101_v27, %s5008_s29  ;;  %v6550_v29 = vpop.permute.xlu1 %1643 }
0x182e   :  { %9468 = vst [vmem:[#allocation16_spill] sm:$0xff] %v6550_v29 }
0x1831   :  { %2114 = vrot.lane.b32.xlu1 %v2103_v5, %s5008_s29  ;;  %4891 = vset.pattern.permute.xlu0 %v9465_v26  ;;  %v6556_v26 = vpop.permute.xlu1 %1645 }
0x1832   :  { %9469 = vst [vmem:[#allocation50_spill] sm:$0xff] %v6556_v26 }
0x189b   :  { %v6542_v6 = vpop.permute.xlu0 %2112 }
0x189c   :  { %9466 = vst [vmem:[#allocation49_spill] sm:$0xff] %v6542_v6  ;;  %v9470_v6 = vmov 30  }
0x18a8   :  { %v2129_v18 = vpop.permute.xlu0 %2128 }
0x18a9   :  { %v2133_v23 = vmul.f32 %v2129_v18, %v6159_v21  ;;  %v2131_v33 = vmul.f32 %v2129_v18, %v6148_v48  ;;  %v2132_v27 = vmul.f32 %v2129_v18, %v6152_v32  ;;  %v2134_v5 = vmul.f32 %v2129_v18, %v6162_v12 }
0x18ab   :  { %2143 = vrot.lane.b32.xlu0 %v2133_v23, %s5013_s30  ;;  %2139 = vrot.lane.b32.xlu1 %v2131_v33, %s5013_s30  ;;  %v6562_v33 = vpop.permute.xlu1 %1649 }
0x18ac   :  { %9472 = vst [vmem:[#allocation51_spill] sm:$0xff] %v6562_v33 }
0x18af   :  { %2159 = vperm.xlu0 %4891, %v6383_v49   ;;  %2141 = vrot.lane.b32.xlu1 %v2132_v27, %s5013_s30  ;;  %v6568_v18 = vpop.permute.xlu1 %1674 }
0x18b0   :  { %9473 = vst [vmem:[#allocation17_spill] sm:$0xff] %v6568_v18 }
0x18b3   :  { %2145 = vrot.lane.b32.xlu1 %v2134_v5, %s5013_s30  ;;  %4892 = vset.pattern.permute.xlu0 %v9470_v6  ;;  %v6574_v6 = vpop.permute.xlu1 %1676 }
0x18b4   :  { %9474 = vst [vmem:[#allocation53_spill] sm:$0xff] %v6574_v6 }
0x191d   :  { %v6560_v56 = vpop.permute.xlu0 %2143 }
0x191e   :  { %9471 = vst [vmem:[#allocation52_spill] sm:$0xff] %v6560_v56  ;;  %v9475_v56 = vmov 31  }
0x192a   :  { %v2160_v23 = vpop.permute.xlu0 %2159 }
0x192b   :  { %v2164_v17 = vmul.f32 %v2160_v23, %v6184_v8  ;;  %v2162_v29 = vmul.f32 %v2160_v23, %v6181_v11  ;;  %v2163_v27 = vmul.f32 %v2160_v23, %v6190_v24  ;;  %v2165_v5 = vmul.f32 %v2160_v23, %v6196_v25 }
0x192d   :  { %2174 = vrot.lane.b32.xlu0 %v2164_v17, %s5013_s30  ;;  %2170 = vrot.lane.b32.xlu1 %v2162_v29, %s5013_s30  ;;  %v6580_v29 = vpop.permute.xlu1 %1680 }
0x192e   :  { %9477 = vst [vmem:[#allocation54_spill] sm:$0xff] %v6580_v29 }
0x1931   :  { %2190 = vperm.xlu0 %4892, %v6383_v49   ;;  %2172 = vrot.lane.b32.xlu1 %v2163_v27, %s5013_s30  ;;  %v6586_v23 = vpop.permute.xlu1 %1705 }
0x1932   :  { %9478 = vst [vmem:[#allocation18_spill] sm:$0xff] %v6586_v23 }
0x1935   :  { %2176 = vrot.lane.b32.xlu1 %v2165_v5, %s5013_s30  ;;  %4893 = vset.pattern.permute.xlu0 %v9475_v56  ;;  %v6592_v56 = vpop.permute.xlu1 %1707 }
0x1936   :  { %9479 = vst [vmem:[#allocation57_spill] sm:$0xff] %v6592_v56 }
0x199f   :  { %v6578_v33 = vpop.permute.xlu0 %2174 }
0x19a0   :  { %9476 = vst [vmem:[#allocation56_spill] sm:$0xff] %v6578_v33  ;;  %v9480_v33 = vmov 32  }
0x19ac   :  { %v2191_v17 = vpop.permute.xlu0 %2190 }
0x19ad   :  { %v2195_v18 = vmul.f32 %v2191_v17, %v6209_v62  ;;  %v2193_v26 = vmul.f32 %v2191_v17, %v6206_v3  ;;  %v2194_v27 = vmul.f32 %v2191_v17, %v6215_v30  ;;  %v2196_v5 = vmul.f32 %v2191_v17, %v6221_v44 }
0x19af   :  { %2205 = vrot.lane.b32.xlu0 %v2195_v18, %s5013_s30  ;;  %2201 = vrot.lane.b32.xlu1 %v2193_v26, %s5013_s30  ;;  %v6598_v26 = vpop.permute.xlu1 %1711 }
0x19b0   :  { %9482 = vst [vmem:[#allocation58_spill] sm:$0xff] %v6598_v26 }
0x19b3   :  { %2221 = vperm.xlu0 %4893, %v6383_v49   ;;  %2203 = vrot.lane.b32.xlu1 %v2194_v27, %s5013_s30  ;;  %v6604_v17 = vpop.permute.xlu1 %1736 }
0x19b4   :  { %9483 = vst [vmem:[#allocation19_spill] sm:$0xff] %v6604_v17 }
0x19b7   :  { %2207 = vrot.lane.b32.xlu1 %v2196_v5, %s5013_s30  ;;  %4894 = vset.pattern.permute.xlu0 %v9480_v33  ;;  %v6610_v33 = vpop.permute.xlu1 %1738 }
0x19b8   :  { %9484 = vst [vmem:[#allocation60_spill] sm:$0xff] %v6610_v33 }
0x1a21   :  { %v6596_v29 = vpop.permute.xlu0 %2205 }
0x1a22   :  { %9481 = vst [vmem:[#allocation59_spill] sm:$0xff] %v6596_v29  ;;  %v9485_v29 = vmov 33  }
0x1a2e   :  { %v2222_v18 = vpop.permute.xlu0 %2221 }
0x1a2f   :  { %v2226_v23 = vmul.f32 %v2222_v18, %v6234_v36  ;;  %v2224_v6 = vmul.f32 %v2222_v18, %v6231_v59  ;;  %v2225_v27 = vmul.f32 %v2222_v18, %v6240_v58  ;;  %v2227_v5 = vmul.f32 %v2222_v18, %v6246_v42 }
0x1a31   :  { %2236 = vrot.lane.b32.xlu0 %v2226_v23, %s5013_s30  ;;  %2232 = vrot.lane.b32.xlu1 %v2224_v6, %s5013_s30  ;;  %v6616_v6 = vpop.permute.xlu1 %1742 }
0x1a32   :  { %9487 = vst [vmem:[#allocation61_spill] sm:$0xff] %v6616_v6 }
0x1a35   :  { %2252 = vperm.xlu0 %4894, %v6383_v49   ;;  %2234 = vrot.lane.b32.xlu1 %v2225_v27, %s5013_s30  ;;  %v6622_v18 = vpop.permute.xlu1 %1767 }
0x1a36   :  { %9488 = vst [vmem:[#allocation20_spill] sm:$0xff] %v6622_v18 }
0x1a39   :  { %2238 = vrot.lane.b32.xlu1 %v2227_v5, %s5013_s30  ;;  %4895 = vset.pattern.permute.xlu0 %v9485_v29  ;;  %v6628_v29 = vpop.permute.xlu1 %1769 }
0x1a3a   :  { %9489 = vst [vmem:[#allocation63_spill] sm:$0xff] %v6628_v29 }
0x1aa3   :  { %v6614_v26 = vpop.permute.xlu0 %2236 }
0x1aa4   :  { %9486 = vst [vmem:[#allocation62_spill] sm:$0xff] %v6614_v26  ;;  %v9490_v26 = vmov 34  }
0x1ab0   :  { %v2253_v23 = vpop.permute.xlu0 %2252 }
0x1ab1   :  { %v2257_v17 = vmul.f32 %v2253_v23, %v6159_v21  ;;  %v2255_v56 = vmul.f32 %v2253_v23, %v6148_v48  ;;  %v2256_v27 = vmul.f32 %v2253_v23, %v6152_v32  ;;  %v2258_v5 = vmul.f32 %v2253_v23, %v6162_v12 }
0x1ab3   :  { %2267 = vrot.lane.b32.xlu0 %v2257_v17, %s5018_s6  ;;  %2263 = vrot.lane.b32.xlu1 %v2255_v56, %s5018_s6  ;;  %v6634_v56 = vpop.permute.xlu1 %1773 }
0x1ab4   :  { %9492 = vst [vmem:[#allocation64_spill] sm:$0xff] %v6634_v56 }
0x1ab7   :  { %2283 = vperm.xlu0 %4895, %v6383_v49   ;;  %2265 = vrot.lane.b32.xlu1 %v2256_v27, %s5018_s6  ;;  %v6640_v23 = vpop.permute.xlu1 %1798 }
0x1ab8   :  { %9493 = vst [vmem:[#allocation21_spill] sm:$0xff] %v6640_v23 }
0x1abb   :  { %2269 = vrot.lane.b32.xlu1 %v2258_v5, %s5018_s6  ;;  %4896 = vset.pattern.permute.xlu0 %v9490_v26  ;;  %v6646_v26 = vpop.permute.xlu1 %1800 }
0x1abc   :  { %9494 = vst [vmem:[#allocation66_spill] sm:$0xff] %v6646_v26 }
0x1abf   :  { %v6650_v56 = vpop.permute.xlu1 %1804 }
0x1ac0   :  { %9496 = vst [vmem:[#allocation68_spill] sm:$0xff] %v6650_v56 }
0x1b25   :  { %v6632_v6 = vpop.permute.xlu0 %2267 }
0x1b26   :  { %9491 = vst [vmem:[#allocation65_spill] sm:$0xff] %v6632_v6  ;;  %v9495_v6 = vmov 35  }
0x1b32   :  { %v2284_v17 = vpop.permute.xlu0 %2283 }
0x1b33   :  { %v2288_v18 = vmul.f32 %v2284_v17, %v6184_v8  ;;  %v2286_v33 = vmul.f32 %v2284_v17, %v6181_v11  ;;  %v2287_v27 = vmul.f32 %v2284_v17, %v6190_v24  ;;  %v2289_v5 = vmul.f32 %v2284_v17, %v6196_v25 }
0x1b35   :  { %2298 = vrot.lane.b32.xlu0 %v2288_v18, %s5018_s6  ;;  %2294 = vrot.lane.b32.xlu1 %v2286_v33, %s5018_s6  ;;  %v6652_v18 = vpop.permute.xlu1 %1829 }
0x1b39   :  { %2314 = vperm.xlu0 %4896, %v6383_v49   ;;  %2296 = vrot.lane.b32.xlu1 %v2287_v27, %s5018_s6  ;;  %v6654_v33 = vpop.permute.xlu1 %1831 }
0x1b3d   :  { %2300 = vrot.lane.b32.xlu1 %v2289_v5, %s5018_s6  ;;  %4897 = vset.pattern.permute.xlu0 %v9495_v6  ;;  %v6656_v23 = vpop.permute.xlu1 %1835 }
0x1b3e   :  { %9497 = vst [vmem:[#allocation67_spill] sm:$0xff] %v6656_v23 }
0x1b41   :  { %v6658_v29 = vpop.permute.xlu1 %1860 }
0x1b42   :  { %9498 = vst [vmem:[#allocation22_spill] sm:$0xff] %v6658_v29 }
0x1b45   :  { %v6662_v27 = vpop.permute.xlu1 %1862 }
0x1b46   :  { %9500 = vst [vmem:[#allocation71_spill] sm:$0xff] %v6662_v27 }
0x1b49   :  { %v6666_v6 = vpop.permute.xlu1 %1866 }
0x1b4a   :  { %9501 = vst [vmem:[#allocation70_spill] sm:$0xff] %v6666_v6 }
0x1b4d   :  { %v6671_v23 = vpop.permute.xlu1 %1891 }
0x1b4e   :  { %9502 = vst [vmem:[#allocation23_spill] sm:$0xff] %v6671_v23 }
0x1b51   :  { %v6678_v29 = vpop.permute.xlu1 %1893 }
0x1b52   :  { %9503 = vst [vmem:[#allocation72_spill] sm:$0xff] %v6678_v29 }
0x1b55   :  { %v6680_v6 = vpop.permute.xlu1 %1897 }
0x1b56   :  { %9504 = vst [vmem:[#allocation74_spill] sm:$0xff] %v6680_v6 }
0x1ba7   :  { %v6660_v15 = vpop.permute.xlu0 %2298 }
0x1ba8   :  { %9499 = vst [vmem:[#allocation69_spill] sm:$0xff] %v6660_v15 }
0x1bb4   :  { %v2315_v17 = vpop.permute.xlu0 %2314 }
0x1bb5   :  { %v2319_v26 = vmul.f32 %v2315_v17, %v6209_v62  ;;  %v2317_v5 = vmul.f32 %v2315_v17, %v6206_v3  ;;  %v2318_v56 = vmul.f32 %v2315_v17, %v6215_v30  ;;  %v2320_v15 = vmul.f32 %v2315_v17, %v6221_v44 }
0x1bb7   :  { %2329 = vrot.lane.b32.xlu0 %v2319_v26, %s5018_s6  ;;  %2325 = vrot.lane.b32.xlu1 %v2317_v5, %s5018_s6  ;;  %v6682_v26 = vpop.permute.xlu1 %1922 }
0x1bb8   :  { %9505 = vst [vmem:[#allocation73_spill] sm:$0xff] %v6682_v26 }
0x1bbb   :  { %2345 = vperm.xlu0 %4897, %v6383_v49   ;;  %2327 = vrot.lane.b32.xlu1 %v2318_v56, %s5018_s6  ;;  %v6684_v5 = vpop.permute.xlu1 %1924 }
0x1bbc   :  { %9506 = vst [vmem:[#allocation24_spill] sm:$0xff] %v6684_v5 }
0x1bbf   :  { %2331 = vrot.lane.b32.xlu1 %v2320_v15, %s5018_s6  ;;  %4902 = vset.pattern.permute.xlu0 %v9341_v52  ;;  %v6686_v27 = vpop.permute.xlu1 %1928 }
0x1bc0   :  { %9507 = vst [vmem:[#allocation75_spill] sm:$0xff] %v6686_v27 }
0x1bc3   :  { %v6688_v23 = vpop.permute.xlu1 %1953 }
0x1bc4   :  { %9508 = vst [vmem:[#allocation77_spill] sm:$0xff] %v6688_v23 }
0x1bc7   :  { %v6690_v49 = vpop.permute.xlu1 %1955 }
0x1bc8   :  { %9509 = vst [vmem:[#allocation76_spill] sm:$0xff] %v6690_v49 }
0x1bcb   :  { %v6692_v56 = vpop.permute.xlu1 %1959 }
0x1bcc   :  { %9510 = vst [vmem:[#allocation25_spill] sm:$0xff] %v6692_v56 }
0x1bcf   :  { %v6694_v17 = vpop.permute.xlu1 %1984 }
0x1bd0   :  { %9511 = vst [vmem:[#allocation78_spill] sm:$0xff] %v6694_v17 }
0x1bd3   :  { %v6696_v15 = vpop.permute.xlu1 %1986 }
0x1bd4   :  { %9512 = vst [vmem:[#allocation81_spill] sm:$0xff] %v6696_v15 }
0x1bd7   :  { %v6698_v52 = vpop.permute.xlu1 %1990 }
0x1bd8   :  { %9513 = vst [vmem:[#allocation79_spill] sm:$0xff] %v6698_v52 }
0x1bdb   :  { %v6700_v29 = vpop.permute.xlu1 %2015 }
0x1bdc   :  { %9514 = vst [vmem:[#allocation26_spill] sm:$0xff] %v6700_v29 }
0x1bdf   :  { %v6702_v6 = vpop.permute.xlu1 %2017 }
0x1be0   :  { %9515 = vst [vmem:[#allocation30_spill] sm:$0xff] %v6702_v6 }
0x1be3   :  { %v6704_v26 = vpop.permute.xlu1 %2021 }
0x1be4   :  { %9516 = vst [vmem:[#allocation34_spill] sm:$0xff] %v6704_v26 }
0x1be7   :  { %v6706_v5 = vpop.permute.xlu1 %2046 }
0x1be8   :  { %9517 = vst [vmem:[#allocation38_spill] sm:$0xff] %v6706_v5 }
0x1beb   :  { %v6708_v27 = vpop.permute.xlu1 %2048 }
0x1bec   :  { %9518 = vst [vmem:[#allocation42_spill] sm:$0xff] %v6708_v27 }
0x1bef   :  { %v6710_v23 = vpop.permute.xlu1 %2052 }
0x1bf0   :  { %9519 = vst [vmem:[#allocation46_spill] sm:$0xff] %v6710_v23 }
0x1bf3   :  { %v6712_v49 = vpop.permute.xlu1 %2077 }
0x1bf4   :  { %9520 = vst [vmem:[#allocation55_spill] sm:$0xff] %v6712_v49 }
0x1bf7   :  { %v6714_v56 = vpop.permute.xlu1 %2079 }
0x1bfb   :  { %v6716_v17 = vpop.permute.xlu1 %2083 }
0x1bfc   :  { %9521 = vst [vmem:[#allocation80_spill] sm:$0xff] %v6716_v17 }
0x1bff   :  { %v6718_v15 = vpop.permute.xlu1 %2108 }
0x1c00   :  { %9522 = vst [vmem:[#allocation82_spill] sm:$0xff] %v6718_v15 }
0x1c03   :  { %v6720_v52 = vpop.permute.xlu1 %2110 }
0x1c04   :  { %9523 = vst [vmem:[#allocation83_spill] sm:$0xff] %v6720_v52 }
0x1c07   :  { %v6724_v26 = vpop.permute.xlu1 %2114 }
0x1c08   :  { %9525 = vst [vmem:[#allocation85_spill] sm:$0xff] %v6724_v26 }
0x1c0b   :  { %v6730_v23 = vpop.permute.xlu1 %2139 }
0x1c0c   :  { %9526 = vst [vmem:[#allocation86_spill] sm:$0xff] %v6730_v23 }
0x1c29   :  { %v6722_v29 = vpop.permute.xlu0 %2329 }
0x1c2a   :  { %9524 = vst [vmem:[#allocation84_spill] sm:$0xff] %v6722_v29  ;;  %v6735_v29 = vpop.permute.xlu1 %2141 }
0x1c2b   :  { %9527 = vst [vmem:[#allocation87_spill] sm:$0xff] %v6735_v29 }
0x1c2e   :  { %v6738_v26 = vpop.permute.xlu1 %2145 }
0x1c2f   :  { %9528 = vst [vmem:[#allocation88_spill] sm:$0xff] %v6738_v26  ;;  %v1320_v26 = vmul.f32 %v6125_v9, %v6190_v24 }
0x1c32   :  { %v6740_v52 = vpop.permute.xlu1 %2170 }
0x1c33   :  { %9529 = vst [vmem:[#allocation89_spill] sm:$0xff] %v6740_v52  ;;  %v1293_v52 = vmul.f32 %v6118_v45, %v6159_v21 }
0x1c35   :  { %v1297_v29 = vadd.f32 %v1293_v52, %v6172_v63 }
0x1c36   :  { %v2346_v6 = vpop.permute.xlu0 %2345  ;;  %v6742_v49 = vpop.permute.xlu1 %2172 }
0x1c37   :  { %v2350_v5 = vmul.f32 %v2346_v6, %v6234_v36  ;;  %v2348_v27 = vmul.f32 %v2346_v6, %v6231_v59  ;;  %v2349_v17 = vmul.f32 %v2346_v6, %v6240_v58  ;;  %v2351_v15 = vmul.f32 %v2346_v6, %v6246_v42  ;;  %9530 = vst [vmem:[#allocation90_spill] sm:$0xff] %v6742_v49 }
0x1c38   :  { %v1292_v6 = vmul.f32 %v6118_v45, %v6152_v32  ;;  %v1321_v32 = vmul.f32 %v6125_v9, %v6184_v8 }
0x1c39   :  { %2360 = vrot.lane.b32.xlu0 %v2350_v5, %s5018_s6  ;;  %2356 = vrot.lane.b32.xlu1 %v2348_v27, %s5018_s6 }
0x1c3a   :  { %v6744_v5 = vpop.permute.xlu1 %2176 }
0x1c3b   :  { %9531 = vst [vmem:[#allocation91_spill] sm:$0xff] %v6744_v5  ;;  %v1294_v5 = vmul.f32 %v6118_v45, %v6162_v12  ;;  %v1348_v12 = vmul.f32 %v6174_v16, %v6215_v30  ;;  %v1378_v30 = vmul.f32 %v6145_v38, %v6246_v42 }
0x1c3d   :  { %2358 = vrot.lane.b32.xlu1 %v2349_v17, %s5018_s6  ;;  %v1291_v17 = vmul.f32 %v6118_v45, %v6148_v48  ;;  %v1298_v21 = vadd.f32 %v1294_v5, %v6172_v63  ;;  %v1347_v45 = vmul.f32 %v6174_v16, %v6206_v3  ;;  %v1349_v3 = vmul.f32 %v6174_v16, %v6209_v62 }
0x1c3e   :  { %v6746_v27 = vpop.permute.xlu1 %2201 }
0x1c3f   :  { %9532 = vst [vmem:[#allocation92_spill] sm:$0xff] %v6746_v27  ;;  %v1295_v27 = vadd.f32 %v1291_v17, %v6172_v63 }
0x1c41   :  { %2362 = vrot.lane.b32.xlu1 %v2351_v15, %s5018_s6  ;;  %v1319_v15 = vmul.f32 %v6125_v9, %v6181_v11  ;;  %v1322_v11 = vmul.f32 %v6125_v9, %v6196_v25  ;;  %v1376_v9 = vmul.f32 %v6145_v38, %v6240_v58  ;;  %v1375_v25 = vmul.f32 %v6145_v38, %v6231_v59 }
0x1c42   :  { %v6748_v23 = vpop.permute.xlu1 %2203  ;;  %v1404_v58 = vsel %vm246_vm0, %v6412_v61, %v6178_v35 }
0x1c43   :  { %9533 = vst [vmem:[#allocation93_spill] sm:$0xff] %v6748_v23  ;;  %v1296_v23 = vadd.f32 %v1292_v6, %v6172_v63  ;;  %v1323_v24 = vadd.f32 %v1319_v15, %v1295_v27  ;;  %v1325_v6 = vadd.f32 %v1321_v32, %v1297_v29  ;;  %v1350_v63 = vmul.f32 %v6174_v16, %v6221_v44 }
0x1c44   :  { %v1403_v29 = vsel %vm246_vm0, %v6176_v2, %v6412_v61  ;;  %v1434_v16 = vsel %vm246_vm0, %v6424_v47, %v6430_v7  ;;  %v1435_v2 = vsel %vm246_vm0, %v6430_v7, %v6203_v39  ;;  %v1405_v61 = vsel %vm246_vm0, %v6178_v35, %v6418_v54 }
0x1c45   :  { %v1324_v49 = vadd.f32 %v1320_v26, %v1296_v23  ;;  %v1351_v52 = vadd.f32 %v1347_v45, %v1323_v24  ;;  %v1353_v59 = vadd.f32 %v1349_v3, %v1325_v6  ;;  %v1377_v26 = vmul.f32 %v6145_v38, %v6234_v36 }
0x1c46   :  { %v6764_v48 = vpop.permute.xlu1 %2207  ;;  %v1465_v38 = vsel %vm246_vm0, %v6442_v37, %v6448_v20  ;;  %v1466_v36 = vsel %vm246_vm0, %v6448_v20, %v6228_v41  ;;  %v1436_v32 = vsel %vm246_vm0, %v6203_v39, %v6436_v13  ;;  %v1496_v35 = vsel %vm246_vm0, %v6460_v14, %v6466_v4 }
0x1c47   :  { %9534 = vst [vmem:[#allocation94_spill] sm:$0xff] %v6764_v48  ;;  %v1326_v48 = vadd.f32 %v1322_v11, %v1298_v21  ;;  %v1352_v8 = vadd.f32 %v1348_v12, %v1324_v49  ;;  %v1379_v49 = vadd.f32 %v1375_v25, %v1351_v52  ;;  %v1381_v47 = vadd.f32 %v1377_v26, %v1353_v59  ;;  %v9535_v26 = vld [vmem:[#allocation47_spill] sm:$0xff] }
0x1c48   :  { %v1497_v37 = vsel %vm246_vm0, %v6466_v4, %v6253_v10  ;;  %v1527_v39 = vsel %vm371_vm1, %v6478_v40, %v6484_v53  ;;  %v1528_v14 = vsel %vm371_vm1, %v6484_v53, %v6265_v51  ;;  %v1559_v40 = vsel %vm371_vm1, %v6502_v1, %v6277_v22 }
0x1c49   :  { %v1354_v23 = vadd.f32 %v1350_v63, %v1326_v48  ;;  %v1380_v44 = vadd.f32 %v1376_v9, %v1352_v8  ;;  %v1410_v62 = vadd.f32 %v1403_v29, %v1379_v49  ;;  %v1412_v11 = vadd.f32 %v1405_v61, %v1381_v47  ;;  %v9537_v49 = vld [vmem:[#allocation16_spill] sm:$0xff] }
0x1c4a   :  { %v6776_v17 = vpop.permute.xlu1 %2232  ;;  %v9542_v47 = vld [vmem:[#allocation32_spill] sm:$0xff] }
0x1c4b   :  { %v1411_v42 = vadd.f32 %v1404_v58, %v1380_v44  ;;  %v1382_v27 = vadd.f32 %v1378_v30, %v1354_v23  ;;  %v1441_v15 = vadd.f32 %v1434_v16, %v1410_v62  ;;  %v1443_v4 = vadd.f32 %v1436_v32, %v1412_v11  ;;  %v9536_v44 = vld [vmem:[#allocation50_spill] sm:$0xff]  ;;  %v9538_v16 = vld [vmem:[#allocation33_spill] sm:$0xff] }
0x1c4d   :  { %v1442_v48 = vadd.f32 %v1435_v2, %v1411_v42  ;;  %v1413_v7 = vadd.f32 %v6418_v54, %v1382_v27  ;;  %v1472_v24 = vadd.f32 %v1465_v38, %v1441_v15  ;;  %v1467_v54 = vsel %vm246_vm0, %v6228_v41, %v6454_v46  ;;  %v9541_v38 = vld [vmem:[#allocation17_spill] sm:$0xff] }
0x1c4e   :  { %v6796_v5 = vpop.permute.xlu1 %2234  ;;  %v1558_v41 = vsel %vm371_vm1, %v6496_v0, %v6502_v1  ;;  %v1474_v9 = vadd.f32 %v1467_v54, %v1443_v4  ;;  %v1590_v0 = vsel %vm371_vm1, %v6520_v34, %v6289_v31 }
0x1c4f   :  { %v1473_v20 = vadd.f32 %v1466_v36, %v1442_v48  ;;  %v1444_v45 = vadd.f32 %v6436_v13, %v1413_v7  ;;  %v1503_v12 = vadd.f32 %v1496_v35, %v1472_v24  ;;  %v1498_v13 = vsel %vm246_vm0, %v6253_v10, %v6472_v28  ;;  %v9544_v24 = vld [vmem:[#allocation57_spill] sm:$0xff] }
0x1c50   :  { %v1589_v10 = vsel %vm371_vm1, %v6514_v55, %v6520_v34  ;;  %v1505_v1 = vadd.f32 %v1498_v13, %v1474_v9  ;;  %v1621_v55 = vsel %vm371_vm1, %v6538_v57, %v6301_v50  ;;  %v9548_v13 = vld [vmem:[#allocation60_spill] sm:$0xff]  ;;  %v9550_v9 = vld [vmem:[#allocation35_spill] sm:$0xff] }
0x1c51   :  { %v1504_v6 = vadd.f32 %v1497_v37, %v1473_v20  ;;  %v1475_v8 = vadd.f32 %v6454_v46, %v1444_v45  ;;  %v1534_v25 = vadd.f32 %v1527_v39, %v1503_v12  ;;  %v1529_v46 = vsel %vm371_vm1, %v6265_v51, %v6490_v43  ;;  %v9543_v37 = vld [vmem:[#allocation51_spill] sm:$0xff]  ;;  %v9545_v20 = vld [vmem:[#allocation18_spill] sm:$0xff]  ;;  %v9546_v45 = vld [vmem:[#allocation12_spill] sm:$0xff] }
0x1c52   :  { %v6823_v21 = vpop.permute.xlu1 %2238  ;;  %v1620_v51 = vsel %vm371_vm1, %v6532_v19, %v6538_v57  ;;  %v1536_v29 = vadd.f32 %v1529_v46, %v1505_v1  ;;  %v1652_v19 = vsel %vm496_vm2, %v9536_v44, %v9538_v16  ;;  %v1653_v11 = vsel %vm496_vm2, %v9538_v16, %v9543_v37  ;;  %v9551_v1 = vld [vmem:[#allocation58_spill] sm:$0xff]  ;;  %v9558_v16 = vld [vmem:[#allocation36_spill] sm:$0xff] }
0x1c53   :  { %v1535_v53 = vadd.f32 %v1528_v14, %v1504_v6  ;;  %v1506_v63 = vadd.f32 %v6472_v28, %v1475_v8  ;;  %v1565_v3 = vadd.f32 %v1558_v41, %v1534_v25  ;;  %v1560_v28 = vsel %vm371_vm1, %v6277_v22, %v6508_v60  ;;  %v9547_v6 = vld [vmem:[#allocation54_spill] sm:$0xff]  ;;  %v9549_v41 = vld [vmem:[#allocation19_spill] sm:$0xff] }
0x1c54   :  { %v1651_v22 = vsel %vm496_vm2, %v9537_v49, %v9536_v44  ;;  %v1567_v2 = vadd.f32 %v1560_v28, %v1536_v29  ;;  %v1714_v54 = vsel %vm496_vm2, %v9544_v24, %v9546_v45  ;;  %v1684_v8 = vsel %vm496_vm2, %v9542_v47, %v9547_v6  ;;  %v9556_v44 = vld [vmem:[#allocation66_spill] sm:$0xff]  ;;  %v9557_v49 = vld [vmem:[#allocation21_spill] sm:$0xff] }
0x1c55   :  { %v1566_v23 = vadd.f32 %v1559_v40, %v1535_v53  ;;  %v1537_v30 = vadd.f32 %v6490_v43, %v1506_v63  ;;  %v1596_v58 = vadd.f32 %v1589_v10, %v1565_v3  ;;  %v1591_v43 = vsel %vm371_vm1, %v6289_v31, %v9535_v26  ;;  %v9540_v31 = vld [vmem:[#allocation53_spill] sm:$0xff] }
0x1c56   :  { %v6845_v52 = vpop.permute.xlu1 %2263  ;;  %v1682_v36 = vsel %vm496_vm2, %v9541_v38, %v9540_v31  ;;  %v1683_v15 = vsel %vm496_vm2, %v9540_v31, %v9542_v47  ;;  %v1598_v48 = vadd.f32 %v1591_v43, %v1567_v2  ;;  %v1744_v40 = vsel %vm496_vm2, %v9549_v41, %v9548_v13 }
0x1c57   :  { %v1597_v34 = vadd.f32 %v1590_v0, %v1566_v23  ;;  %v1568_v59 = vadd.f32 %v6508_v60, %v1537_v30  ;;  %v1627_v62 = vadd.f32 %v1620_v51, %v1596_v58  ;;  %v9539_v60 = vld [vmem:[#allocation48_spill] sm:$0xff]  ;;  %v1745_v25 = vsel %vm496_vm2, %v9548_v13, %v9550_v9  ;;  %v9552_v23 = vld [vmem:[#allocation63_spill] sm:$0xff]  ;;  %v9554_v51 = vld [vmem:[#allocation37_spill] sm:$0xff] }
0x1c58   :  { %v1622_v61 = vsel %vm371_vm1, %v6301_v50, %v9539_v60  ;;  %v1713_v50 = vsel %vm496_vm2, %v9545_v20, %v9544_v24  ;;  %v1715_v3 = vsel %vm496_vm2, %v9546_v45, %v9551_v1  ;;  %v9553_v30 = vld [vmem:[#allocation20_spill] sm:$0xff]  ;;  %v1837_v38 = vsel %vm621_vm3, %v6652_v18, %v6654_v33  ;;  %v9563_v24 = vld [vmem:[#allocation22_spill] sm:$0xff]  ;;  %v9568_v13 = vld [vmem:[#allocation41_spill] sm:$0xff] }
0x1c59   :  { %v1628_v57 = vadd.f32 %v1621_v55, %v1597_v34  ;;  %v1599_v27 = vadd.f32 %v9535_v26, %v1568_v59  ;;  %v1658_v7 = vadd.f32 %v1651_v22, %v1627_v62  ;;  %v1629_v39 = vadd.f32 %v1622_v61, %v1598_v48  ;;  %v9555_v26 = vld [vmem:[#allocation61_spill] sm:$0xff]  ;;  %v9559_v61 = vld [vmem:[#allocation64_spill] sm:$0xff] }
0x1c5a   :  { %v6877_v42 = vpop.permute.xlu1 %2265  ;;  %v1775_v28 = vsel %vm621_vm3, %v9553_v30, %v9552_v23  ;;  %v1776_v55 = vsel %vm621_vm3, %v9552_v23, %v9554_v51  ;;  %v1746_v43 = vsel %vm496_vm2, %v9550_v9, %v9555_v26  ;;  %v1806_v22 = vsel %vm621_vm3, %v9557_v49, %v9556_v44  ;;  %v9572_v30 = vld [vmem:[#allocation40_spill] sm:$0xff]  ;;  %v9576_v49 = vld [vmem:[#allocation14_spill] sm:$0xff] }
0x1c5b   :  { %v1659_v32 = vadd.f32 %v1652_v19, %v1628_v57  ;;  %v1630_v35 = vadd.f32 %v9539_v60, %v1599_v27  ;;  %v1689_v14 = vadd.f32 %v1682_v36, %v1658_v7  ;;  %v1660_v53 = vadd.f32 %v1653_v11, %v1629_v39  ;;  %v9560_v36 = vld [vmem:[#allocation13_spill] sm:$0xff]  ;;  %v9562_v11 = vld [vmem:[#allocation71_spill] sm:$0xff] }
0x1c5c   :  { %v1807_v19 = vsel %vm621_vm3, %v9556_v44, %v9558_v16  ;;  %v1777_v31 = vsel %vm621_vm3, %v9554_v51, %v9559_v61  ;;  %v1838_v47 = vsel %vm621_vm3, %v6654_v33, %v9560_v36  ;;  %v1868_v20 = vsel %vm621_vm3, %v9563_v24, %v9562_v11  ;;  %v9582_v24 = vld [vmem:[#allocation30_spill] sm:$0xff] }
0x1c5d   :  { %v1690_v4 = vadd.f32 %v1683_v15, %v1659_v32  ;;  %v1661_v12 = vadd.f32 %v9543_v37, %v1630_v35  ;;  %v1720_v63 = vadd.f32 %v1713_v50, %v1689_v14  ;;  %v1691_v29 = vadd.f32 %v1684_v8, %v1660_v53  ;;  %v9561_v35 = vld [vmem:[#allocation68_spill] sm:$0xff]  ;;  %v9564_v50 = vld [vmem:[#allocation39_spill] sm:$0xff] }
0x1c5e   :  { %v6909_v10 = vpop.permute.xlu1 %2269  ;;  %v1808_v37 = vsel %vm621_vm3, %v9558_v16, %v9561_v35  ;;  %v1869_v18 = vsel %vm621_vm3, %v9562_v11, %v9564_v50  ;;  %v9565_v14 = vld [vmem:[#allocation67_spill] sm:$0xff] }
0x1c5f   :  { %v1721_v46 = vadd.f32 %v1714_v54, %v1690_v4  ;;  %v1692_v0 = vadd.f32 %v9547_v6, %v1661_v12  ;;  %v1751_v58 = vadd.f32 %v1744_v40, %v1720_v63  ;;  %v1722_v2 = vadd.f32 %v1715_v3, %v1691_v29  ;;  %v9566_v12 = vld [vmem:[#allocation72_spill] sm:$0xff]  ;;  %v9567_v6 = vld [vmem:[#allocation23_spill] sm:$0xff]  ;;  %v9571_v3 = vld [vmem:[#allocation73_spill] sm:$0xff] }
0x1c60   :  { %v1839_v4 = vsel %vm621_vm3, %v9560_v36, %v9565_v14  ;;  %v1899_v8 = vsel %vm746_vm4, %v9567_v6, %v9566_v12  ;;  %v1900_v41 = vsel %vm746_vm4, %v9566_v12, %v9568_v13  ;;  %v9580_v36 = vld [vmem:[#allocation43_spill] sm:$0xff]  ;;  %v9586_v6 = vld [vmem:[#allocation42_spill] sm:$0xff] }
0x1c61   :  { %v1752_v34 = vadd.f32 %v1745_v25, %v1721_v46  ;;  %v1723_v59 = vadd.f32 %v9551_v1, %v1692_v0  ;;  %v1782_v62 = vadd.f32 %v1775_v28, %v1751_v58  ;;  %v1753_v15 = vadd.f32 %v1746_v43, %v1722_v2  ;;  %v9569_v46 = vld [vmem:[#allocation70_spill] sm:$0xff]  ;;  %v9570_v1 = vld [vmem:[#allocation24_spill] sm:$0xff]  ;;  %v9575_v43 = vld [vmem:[#allocation77_spill] sm:$0xff] }
0x1c62   :  { %v6931_v27 = vpop.permute.xlu1 %2294  ;;  %v1870_v0 = vsel %vm621_vm3, %v9564_v50, %v9569_v46  ;;  %v1930_v23 = vsel %vm746_vm4, %v9571_v3, %v9570_v1  ;;  %v1931_v28 = vsel %vm746_vm4, %v9570_v1, %v9572_v30  ;;  %v9589_v1 = vld [vmem:[#allocation34_spill] sm:$0xff] }
0x1c63   :  { %v1783_v57 = vadd.f32 %v1776_v55, %v1752_v34  ;;  %v1754_v60 = vadd.f32 %v9555_v26, %v1723_v59  ;;  %v1813_v48 = vadd.f32 %v1806_v22, %v1782_v62  ;;  %v1784_v45 = vadd.f32 %v1777_v31, %v1753_v15  ;;  %v9573_v34 = vld [vmem:[#allocation74_spill] sm:$0xff]  ;;  %v9574_v26 = vld [vmem:[#allocation76_spill] sm:$0xff] }
0x1c64   :  { %v1901_v59 = vsel %vm746_vm4, %v9568_v13, %v9573_v34  ;;  %v1961_v44 = vsel %vm746_vm4, %v9575_v43, %v9574_v26  ;;  %v1962_v22 = vsel %vm746_vm4, %v9574_v26, %v9576_v49  ;;  %v9579_v31 = vld [vmem:[#allocation78_spill] sm:$0xff]  ;;  %v9593_v43 = vld [vmem:[#allocation83_spill] sm:$0xff] }
0x1c65   :  { %v1814_v7 = vadd.f32 %v1807_v19, %v1783_v57  ;;  %v1785_v32 = vadd.f32 %v9559_v61, %v1754_v60  ;;  %v1844_v54 = vadd.f32 %v1837_v38, %v1813_v48  ;;  %v1815_v40 = vadd.f32 %v1808_v37, %v1784_v45  ;;  %v9577_v57 = vld [vmem:[#allocation75_spill] sm:$0xff]  ;;  %v9578_v61 = vld [vmem:[#allocation81_spill] sm:$0xff] }
0x1c66   :  { %v6963_v53 = vpop.permute.xlu1 %2296  ;;  %v1932_v60 = vsel %vm746_vm4, %v9572_v30, %v9577_v57  ;;  %v1992_v38 = vsel %vm746_vm4, %v9579_v31, %v9578_v61  ;;  %v9581_v37 = vld [vmem:[#allocation25_spill] sm:$0xff]  ;;  %v9598_v31 = vld [vmem:[#allocation86_spill] sm:$0xff] }
0x1c67   :  { %v1845_v33 = vadd.f32 %v1838_v47, %v1814_v7  ;;  %v1816_v39 = vadd.f32 %v9561_v35, %v1785_v32  ;;  %v1875_v9 = vadd.f32 %v1868_v20, %v1844_v54  ;;  %v1846_v51 = vadd.f32 %v1839_v4, %v1815_v40  ;;  %v9583_v20 = vld [vmem:[#allocation26_spill] sm:$0xff]  ;;  %v9585_v4 = vld [vmem:[#allocation79_spill] sm:$0xff] }
0x1c68   :  { %v1993_v47 = vsel %vm746_vm4, %v9578_v61, %v9580_v36  ;;  %v1963_v11 = vsel %vm746_vm4, %v9576_v49, %v9581_v37  ;;  %v2023_v50 = vsel %vm871_vm5, %v9583_v20, %v9582_v24  ;;  %v1994_v12 = vsel %vm746_vm4, %v9580_v36, %v9585_v4  ;;  %v9597_v61 = vld [vmem:[#allocation87_spill] sm:$0xff]  ;;  %v9599_v36 = vld [vmem:[#allocation52_spill] sm:$0xff]  ;;  %v9601_v20 = vld [vmem:[#allocation90_spill] sm:$0xff] }
0x1c69   :  { %v1876_v25 = vadd.f32 %v1869_v18, %v1845_v33  ;;  %v1847_v63 = vadd.f32 %v9565_v14, %v1816_v39  ;;  %v1906_v55 = vadd.f32 %v1899_v8, %v1875_v9  ;;  %v1877_v16 = vadd.f32 %v1870_v0, %v1846_v51  ;;  %v9584_v18 = vld [vmem:[#allocation45_spill] sm:$0xff]  ;;  %v9587_v8 = vld [vmem:[#allocation38_spill] sm:$0xff] }
0x1c6a   :  { %v6995_v32 = vpop.permute.xlu1 %2300  ;;  %v2024_v45 = vsel %vm871_vm5, %v9582_v24, %v9584_v18  ;;  %v2054_v13 = vsel %vm871_vm5, %v9587_v8, %v9586_v6  ;;  %v2025_v3 = vsel %vm871_vm5, %v9584_v18, %v9589_v1  ;;  %v9605_v8 = vld [vmem:[#allocation93_spill] sm:$0xff] }
0x1c6b   :  { %v1907_v29 = vadd.f32 %v1900_v41, %v1876_v25  ;;  %v1878_v58 = vadd.f32 %v9569_v46, %v1847_v63  ;;  %v1937_v19 = vadd.f32 %v1930_v23, %v1906_v55  ;;  %v1908_v15 = vadd.f32 %v1901_v59, %v1877_v16  ;;  %v9588_v41 = vld [vmem:[#allocation44_spill] sm:$0xff]  ;;  %v9590_v23 = vld [vmem:[#allocation55_spill] sm:$0xff]  ;;  %v9592_v59 = vld [vmem:[#allocation46_spill] sm:$0xff] }
0x1c6c   :  { %v2055_v40 = vsel %vm871_vm5, %v9586_v6, %v9588_v41  ;;  %v2085_v30 = vsel %vm871_vm5, %v9590_v23, %v6714_v56  ;;  %v2056_v26 = vsel %vm871_vm5, %v9588_v41, %v9592_v59 }
0x1c6d   :  { %v1938_v2 = vadd.f32 %v1931_v28, %v1907_v29  ;;  %v1909_v62 = vadd.f32 %v9573_v34, %v1878_v58  ;;  %v1968_v48 = vadd.f32 %v1961_v44, %v1937_v19  ;;  %v1939_v54 = vadd.f32 %v1932_v60, %v1908_v15  ;;  %v9591_v28 = vld [vmem:[#allocation15_spill] sm:$0xff]  ;;  %v9594_v44 = vld [vmem:[#allocation82_spill] sm:$0xff] }
0x1c6e   :  { %v7017_v46 = vpop.permute.xlu1 %2325  ;;  %v2086_v51 = vsel %vm871_vm5, %v6714_v56, %v9591_v28  ;;  %v2116_v49 = vsel %vm871_vm5, %v9594_v44, %v9593_v43  ;;  %v2271_v44 = vsel %vm1121_vm7, %v6845_v52, %v6877_v42 }
0x1c6f   :  { %v1969_v7 = vadd.f32 %v1962_v22, %v1938_v2  ;;  %v1940_v35 = vadd.f32 %v9577_v57, %v1909_v62  ;;  %v1999_v33 = vadd.f32 %v1992_v38, %v1968_v48  ;;  %v1970_v9 = vadd.f32 %v1963_v11, %v1939_v54  ;;  %v9595_v22 = vld [vmem:[#allocation49_spill] sm:$0xff]  ;;  %v9596_v57 = vld [vmem:[#allocation80_spill] sm:$0xff] }
0x1c70   :  { %v2117_v16 = vsel %vm871_vm5, %v9593_v43, %v9595_v22  ;;  %v2087_v60 = vsel %vm871_vm5, %v9591_v28, %v9596_v57  ;;  %v2147_v38 = vsel %vm996_vm6, %v9598_v31, %v9597_v61  ;;  %v9600_v11 = vld [vmem:[#allocation85_spill] sm:$0xff]  ;;  %v9609_v28 = vld [vmem:[#allocation62_spill] sm:$0xff] }
0x1c71   :  { %v2000_v39 = vadd.f32 %v1993_v47, %v1969_v7  ;;  %v1971_v14 = vadd.f32 %v9581_v37, %v1940_v35  ;;  %v2030_v25 = vadd.f32 %v2023_v50, %v1999_v33  ;;  %v2001_v55 = vadd.f32 %v1994_v12, %v1970_v9  ;;  %v9602_v50 = vld [vmem:[#allocation89_spill] sm:$0xff]  ;;  %v9604_v12 = vld [vmem:[#allocation88_spill] sm:$0xff] }
0x1c72   :  { %v2148_v47 = vsel %vm996_vm6, %v9597_v61, %v9599_v36  ;;  %v2328_v35 = vpop.permute.xlu1 %2327  ;;  %v2118_v24 = vsel %vm871_vm5, %v9595_v22, %v9600_v11  ;;  %v2178_v18 = vsel %vm996_vm6, %v9602_v50, %v9601_v20  ;;  %v2149_v6 = vsel %vm996_vm6, %v9599_v36, %v9604_v12 }
0x1c73   :  { %v2031_v63 = vadd.f32 %v2024_v45, %v2000_v39  ;;  %v2002_v0 = vadd.f32 %v9585_v4, %v1971_v14  ;;  %v2061_v29 = vadd.f32 %v2054_v13, %v2030_v25  ;;  %v2032_v19 = vadd.f32 %v2025_v3, %v2001_v55  ;;  %v9603_v45 = vld [vmem:[#allocation56_spill] sm:$0xff]  ;;  %v9608_v3 = vld [vmem:[#allocation91_spill] sm:$0xff] }
0x1c74   :  { %v2179_v54 = vsel %vm996_vm6, %v9601_v20, %v9603_v45  ;;  %v9606_v13 = vld [vmem:[#allocation92_spill] sm:$0xff]  ;;  %v2180_v23 = vsel %vm996_vm6, %v9603_v45, %v9608_v3  ;;  %v2333_v36 = vsel %vm1121_vm7, %v7017_v46, %v2328_v35 }
0x1c75   :  { %v2062_v58 = vadd.f32 %v2055_v40, %v2031_v63  ;;  %v2033_v34 = vadd.f32 %v9589_v1, %v2002_v0  ;;  %v2092_v2 = vadd.f32 %v2085_v30, %v2061_v29  ;;  %v2063_v15 = vadd.f32 %v2056_v26, %v2032_v19  ;;  %v9607_v40 = vld [vmem:[#allocation59_spill] sm:$0xff]  ;;  %v9610_v26 = vld [vmem:[#allocation94_spill] sm:$0xff] }
0x1c76   :  { %v2209_v41 = vsel %vm996_vm6, %v9606_v13, %v9605_v8  ;;  %v2210_v9 = vsel %vm996_vm6, %v9605_v8, %v9607_v40  ;;  %v2240_v30 = vsel %vm996_vm6, %v6776_v17, %v6796_v5  ;;  %v2211_v43 = vsel %vm996_vm6, %v9607_v40, %v9610_v26 }
0x1c77   :  { %v2093_v56 = vadd.f32 %v2086_v51, %v2062_v58  ;;  %v2064_v62 = vadd.f32 %v9592_v59, %v2033_v34  ;;  %v2123_v48 = vadd.f32 %v2116_v49, %v2092_v2  ;;  %v2094_v33 = vadd.f32 %v2087_v60, %v2063_v15  ;;  %v2332_v34 = vpop.permute.xlu1 %2331  ;;  %v9611_v49 = vld [vmem:[#allocation65_spill] sm:$0xff] }
0x1c78   :  { %v2241_v51 = vsel %vm996_vm6, %v6796_v5, %v9609_v28  ;;  %v2272_v17 = vsel %vm1121_vm7, %v6877_v42, %v9611_v49  ;;  %v2242_v2 = vsel %vm996_vm6, %v9609_v28, %v6823_v21 }
0x1c79   :  { %v2124_v7 = vadd.f32 %v2117_v16, %v2093_v56  ;;  %v2095_v37 = vadd.f32 %v9596_v57, %v2064_v62  ;;  %v2154_v39 = vadd.f32 %v2147_v38, %v2123_v48  ;;  %v2125_v25 = vadd.f32 %v2118_v24, %v2094_v33  ;;  %v9612_v62 = vld [vmem:[#allocation69_spill] sm:$0xff] }
0x1c7a   :  { %v2302_v56 = vsel %vm1121_vm7, %v6931_v27, %v6963_v53  ;;  %v2303_v52 = vsel %vm1121_vm7, %v6963_v53, %v9612_v62  ;;  %v2273_v38 = vsel %vm1121_vm7, %v9611_v49, %v6909_v10 }
0x1c7b   :  { %v2155_v14 = vadd.f32 %v2148_v47, %v2124_v7  ;;  %v2126_v4 = vadd.f32 %v9600_v11, %v2095_v37  ;;  %v2185_v63 = vadd.f32 %v2178_v18, %v2154_v39  ;;  %v2156_v55 = vadd.f32 %v2149_v6, %v2125_v25  ;;  %v9613_v47 = vld [vmem:[#allocation84_spill] sm:$0xff]  ;;  %v4973_v25 = vld [vmem:[%s8950_s0] sm:$0xff] }
0x1c7c   :  { %v2334_v27 = vsel %vm1121_vm7, %v2328_v35, %v9613_v47  ;;  %v2304_v37 = vsel %vm1121_vm7, %v9612_v62, %v6995_v32  ;;  %v2335_v46 = vsel %vm1121_vm7, %v9613_v47, %v2332_v34 }
0x1c7d   :  { %v2186_v0 = vadd.f32 %v2179_v54, %v2155_v14  ;;  %v2157_v1 = vadd.f32 %v9604_v12, %v2126_v4  ;;  %v2216_v29 = vadd.f32 %v2209_v41, %v2185_v63  ;;  %v2187_v22 = vadd.f32 %v2180_v23, %v2156_v55 }
0x1c7e   :  { %v9614_v55 = vmov 1  }
0x1c7f   :  { %v2217_v58 = vadd.f32 %v2210_v9, %v2186_v0  ;;  %v2188_v59 = vadd.f32 %v9608_v3, %v2157_v1  ;;  %v2247_v5 = vadd.f32 %v2240_v30, %v2216_v29  ;;  %v2218_v57 = vadd.f32 %v2211_v43, %v2187_v22  ;;  %v4974_v30 = vld [vmem:[%s8950_s0 + $0x8] sm:$0xff] }
0x1c80   :  { %v9615_v29 = vmov 3  }
0x1c81   :  { %v2248_v16 = vadd.f32 %v2241_v51, %v2217_v58  ;;  %v2219_v19 = vadd.f32 %v9610_v26, %v2188_v59  ;;  %v2278_v60 = vadd.f32 %v2271_v44, %v2247_v5  ;;  %v2249_v15 = vadd.f32 %v2242_v2, %v2218_v57  ;;  %v7133_v51 = vld [vmem:[%s8949_s2] sm:$0xf]  ;;  %v7166_v2 = vld [vmem:[%s8950_s0 + $0x10] sm:$0xff] }
0x1c82   :  { %v9616_v58 = vmov 4   ;;  %v9618_v44 = vmov 0 }
0x1c83   :  { %v2279_v42 = vadd.f32 %v2272_v17, %v2248_v16  ;;  %v2250_v31 = vadd.f32 %v6823_v21, %v2219_v19  ;;  %v2309_v48 = vadd.f32 %v2302_v56, %v2278_v60  ;;  %v2280_v21 = vadd.f32 %v2273_v38, %v2249_v15  ;;  %v9621_v56 = vld [vmem:[#allocation3_spill] sm:$0xff] }
0x1c84   :  { %v9619_v44 = vsel %vm7144_vm15, 4294967295, %v9618_v44  ;;  %v2428_v62 = vrot.slane %v7166_v2, %v9621_v56 }
0x1c85   :  { %v2310_v7 = vadd.f32 %v2303_v52, %v2279_v42  ;;  %v2281_v53 = vadd.f32 %v6909_v10, %v2250_v31  ;;  %v2340_v11 = vadd.f32 %v2333_v36, %v2309_v48  ;;  %v2311_v54 = vadd.f32 %v2304_v37, %v2280_v21  ;;  %9620 = vst [vmem:[#allocation47_spill] sm:$0xff] %v9619_v44  ;;  %v9622_v52 = vld [vmem:[#allocation5_spill] sm:$0xff]  ;;  %v7177_v42 = vld [vmem:[%s8950_s0 + $0x18] sm:$0xff] }
0x1c86   :  { %v2432_v57 = vrot.slane %v7166_v2, %v9622_v52  ;;  %v2440_v31 = vrot.slane %v7177_v42, %v9622_v52  ;;  %v7184_v38 = vrot.slane %v2428_v62, %v9621_v56  ;;  %v9623_v21 = vmov 6   ;;  %v9631_v52 = vld [vmem:[#allocation10_spill] sm:$0xff] }
0x1c87   :  { %v2341_v24 = vadd.f32 %v2334_v27, %v2310_v7  ;;  %v2312_v18 = vadd.f32 %v6995_v32, %v2281_v53  ;;  %v2342_v14 = vadd.f32 %v2335_v46, %v2311_v54  ;;  %v9625_v46 = vld [vmem:[#allocation8_spill] sm:$0xff] }
0x1c88   :  { %v7187_v36 = vrot.slane %v2432_v57, %v9621_v56  ;;  %v7195_v7 = vrot.slane %v2440_v31, %v9621_v56  ;;  %v2576_v57 = vrot.slane %v7166_v2, %v9631_v52 }
0x1c89   :  { %v2343_v39 = vadd.f32 %v2332_v34, %v2312_v18  ;;  %v9617_v34 = vmov 0  }
0x1cab   :  { %v2357_v61 = vpop.permute.xlu1 %2356  ;;  %v2361_v20 = vpop.permute.xlu0 %2360 }
0x1caf   :  { %v2359_v50 = vpop.permute.xlu1 %2358 }
0x1cb0   :  { %v2364_v35 = vsel %vm1121_vm7, %v2357_v61, %v2359_v50  ;;  %v2365_v45 = vsel %vm1121_vm7, %v2359_v50, %v2361_v20  ;;  %v2436_v61 = vrot.slane %v7177_v42, %v9621_v56 }
0x1cb1   :  { %v2371_v10 = vadd.f32 %v2364_v35, %v2340_v11  ;;  %v2372_v33 = vadd.f32 %v2365_v45, %v2341_v24  ;;  %v9624_v24 = vld [vmem:[#allocation4_spill] sm:$0xff]  ;;  %v2480_v35 = vrot.slane %v7166_v2, %v9625_v46 }
0x1cb2   :  { %v7192_v48 = vrot.slane %v2436_v61, %v9621_v56  ;;  %v2484_v50 = vrot.slane %v7177_v42, %v9624_v24  ;;  %v9662_v56 = vmov 26  }
0x1cb3   :  { %v2379_v4 = vcombine.low %v2371_v10, %v2372_v33  ;;  %v2363_v12 = vpop.permute.xlu1 %2362 }
0x1cb4   :  { %v2366_v6 = vsel %vm1121_vm7, %v2361_v20, %v2363_v12  ;;  %v2374_v8 = vadd.f32 %v2363_v12, %v2343_v39  ;;  %v2476_v20 = vrot.slane %v7166_v2, %v9624_v24  ;;  %v7219_v54 = vrot.slane %v2484_v50, %v9624_v24 }
0x1cb5   :  { %v2373_v13 = vadd.f32 %v2366_v6, %v2342_v14  ;;  %2381 = vrot.lane.b32.xlu0 %v2379_v4, %s5022_s15  ;;  %v2488_v14 = vrot.slane %v7177_v42, %v9625_v46  ;;  %v7226_v4 = vrot.slane %v2480_v35, %v9624_v24 }
0x1cb6   :  { %v7216_v45 = vrot.slane %v2476_v20, %v9624_v24 }
0x1cb7   :  { %v2380_v32 = vcombine.low %v2373_v13, %v2374_v8  ;;  %v7232_v6 = vrot.slane %v2488_v14, %v9624_v24  ;;  %v9626_v13 = vmov 7  }
0x1cb9   :  { %2383 = vrot.lane.b32.xlu1 %v2380_v32, %s5022_s15  ;;  %v9627_v32 = vld [vmem:[#allocation6_spill] sm:$0xff] }
0x1d27   :  { %v2382_v41 = vpop.permute.xlu0 %2381 }
0x1d28   :  { %v2385_v40 = vrot.slane %v2382_v41, 4 }
0x1d2a   :  { %v2388_v9 = vsel %vm2387_vm12, %v2385_v40, %v2382_v41  ;;  %v2532_v41 = vrot.slane %v7177_v42, %v9627_v32 }
0x1d2b   :  { %v2394_v63 = vadd.f32 %v4973_v25, %v2388_v9  ;;  %v2384_v0 = vpop.permute.xlu1 %2383 }
0x1d2c   :  { %v2386_v1 = vrot.slane %v2384_v0, 4  ;;  %v7246_v25 = vrot.slane %v2532_v41, %v9627_v32 }
0x1d2d   :  { %2398 = vrot.lane.b32.xlu0 %v2394_v63, %s5018_s6 }
0x1d2e   :  { %v2390_v3 = vsel %vm2389_vm13, %v2385_v40, %v2386_v1  ;;  %v2524_v40 = vrot.slane %v7166_v2, %v9627_v32 }
0x1d2f   :  { %v2391_v23 = vsel %vm2387_vm12, %v2390_v3, %v2384_v0  ;;  %v9628_v0 = vld [vmem:[#allocation9_spill] sm:$0xff] }
0x1d30   :  { %v2395_v28 = vadd.f32 %v4974_v30, %v2391_v23  ;;  %v7249_v63 = vrot.slane %v2524_v40, %v9627_v32  ;;  %v2528_v1 = vrot.slane %v7166_v2, %v9628_v0 }
0x1d32   :  { %2400 = vrot.lane.b32.xlu1 %v2395_v28, %s5018_s6  ;;  %v7256_v28 = vrot.slane %v2528_v1, %v9627_v32 }
0x1d36   :  { %2462 = vperm.xlu1 %4898, %v7133_v51  }
0x1d3a   :  { %4899 = vset.pattern.permute.xlu1 %v9614_v55 }
0x1d3b   :  { %2510 = vperm.xlu1 %4899, %v7133_v51  }
0x1d3f   :  { %4900 = vset.pattern.permute.xlu1 %v9615_v29 }
0x1d40   :  { %2606 = vperm.xlu1 %4900, %v7133_v51  }
0x1d44   :  { %4901 = vset.pattern.permute.xlu1 %v9616_v58 }
0x1d45   :  { %2618 = vperm.xlu1 %4901, %v7133_v51  }
0x1d49   :  { %4935 = vset.pattern.permute.xlu1 %v9617_v34  ;;  %v2536_v34 = vrot.slane %v7177_v42, %v9628_v0 }
0x1d9f   :  { %v2399_v59 = vpop.permute.xlu0 %2398 }
0x1da0   :  { %v2402_v43 = vrot.slane %v2399_v59, 4 }
0x1da4   :  { %v2401_v26 = vpop.permute.xlu1 %2400 }
0x1da5   :  { %v2403_v49 = vrot.slane %v2401_v26, 4 }
0x1da7   :  { %v2404_v17 = vsel %vm2389_vm13, %v2402_v43, %v2403_v49  ;;  %v2406_v22 = vsel %vm1121_vm7, %v2401_v26, %v2403_v49  ;;  %v7264_v26 = vrot.slane %v2536_v34, %v9627_v32  ;;  %v9629_v49 = vmov 8  }
0x1da8   :  { %v2405_v5 = vsel %vm1121_vm7, %v2399_v59, %v2404_v17  ;;  %2412 = vst.msk [vmem:[%s8954_s5 + $0x8] sm:$0xff] %vm7144_vm15, %v2406_v22  ;;  %v9630_v17 = vld [vmem:[#allocation7_spill] sm:$0xff]  ;;  %v9660_v32 = vmov 25  }
0x1da9   :  { %2409 = vst [vmem:[%s8954_s5] sm:$0xff] %v2405_v5  ;;  %v2572_v22 = vrot.slane %v7166_v2, %v9630_v17  ;;  %v2580_v5 = vrot.slane %v7177_v42, %v9630_v17 }
0x1dab   :  { %v7280_v61 = vrot.slane %v2572_v22, %v9630_v17  ;;  %v7283_v31 = vrot.slane %v2580_v5, %v9630_v17 }
0x1db1   :  { %v7159_v16 = vpop.permute.xlu1 %2462 }
0x1db6   :  { %v7161_v19 = vpop.permute.xlu1 %2510 }
0x1dbb   :  { %v7172_v60 = vpop.permute.xlu1 %2606 }
0x1dc0   :  { %v2619_v47 = vpop.permute.xlu1 %2618 }
0x1dc1   :  { %v2622_v27 = vmul.f32 %v2619_v47, %v7187_v36  ;;  %v2621_v15 = vmul.f32 %v2619_v47, %v7184_v38  ;;  %v2624_v53 = vmul.f32 %v2619_v47, %v7195_v7  ;;  %v2623_v37 = vmul.f32 %v2619_v47, %v7192_v48 }
0x1dc3   :  { %2631 = vrot.lane.b32.xlu1 %v2622_v27, %s4992_s24  ;;  %2629 = vrot.lane.b32.xlu0 %v2621_v15, %s4992_s24 }
0x1dc7   :  { %2635 = vrot.lane.b32.xlu1 %v2624_v53, %s4992_s24  ;;  %2633 = vrot.lane.b32.xlu0 %v2623_v37, %s4992_s24  ;;  %v2584_v53 = vrot.slane %v7177_v42, %v9631_v52  ;;  %v7290_v37 = vrot.slane %v2576_v57, %v9630_v17  ;;  %v9632_v42 = vmov 9   ;;  %v9635_v52 = vmov 12  }
0x1dc9   :  { %v7296_v20 = vrot.slane %v2584_v53, %v9630_v17 }
0x1dcb   :  { %2649 = vperm.xlu0 %4902, %v7133_v51  }
0x1dcf   :  { %4903 = vset.pattern.permute.xlu0 %v9623_v21 }
0x1e35   :  { %v7205_v11 = vpop.permute.xlu0 %2629 }
0x1e39   :  { %v7211_v18 = vpop.permute.xlu0 %2633 }
0x1e46   :  { %v2650_v10 = vpop.permute.xlu0 %2649 }
0x1e47   :  { %v2654_v33 = vmul.f32 %v2650_v10, %v7219_v54  ;;  %v2652_v39 = vmul.f32 %v2650_v10, %v7216_v45  ;;  %v2653_v12 = vmul.f32 %v2650_v10, %v7226_v4  ;;  %v2655_v8 = vmul.f32 %v2650_v10, %v7232_v6 }
0x1e49   :  { %2664 = vrot.lane.b32.xlu0 %v2654_v33, %s4992_s24  ;;  %2660 = vrot.lane.b32.xlu1 %v2652_v39, %s4992_s24 }
0x1e4d   :  { %2680 = vperm.xlu0 %4903, %v7133_v51   ;;  %2662 = vrot.lane.b32.xlu1 %v2653_v12, %s4992_s24  ;;  %v9633_v12 = vmov 10  }
0x1e51   :  { %2666 = vrot.lane.b32.xlu1 %v2655_v8, %s4992_s24  ;;  %4904 = vset.pattern.permute.xlu0 %v9626_v13 }
0x1ebb   :  { %v7243_v9 = vpop.permute.xlu0 %2664 }
0x1ec8   :  { %v2681_v3 = vpop.permute.xlu0 %2680 }
0x1ec9   :  { %v2685_v23 = vmul.f32 %v2681_v3, %v7246_v25  ;;  %v2683_v30 = vmul.f32 %v2681_v3, %v7249_v63  ;;  %v2684_v59 = vmul.f32 %v2681_v3, %v7256_v28  ;;  %v2686_v43 = vmul.f32 %v2681_v3, %v7264_v26 }
0x1ecb   :  { %2695 = vrot.lane.b32.xlu0 %v2685_v23, %s4992_s24  ;;  %2691 = vrot.lane.b32.xlu1 %v2683_v30, %s4992_s24  ;;  %v9634_v23 = vmov 11  }
0x1ecf   :  { %2711 = vperm.xlu0 %4904, %v7133_v51   ;;  %2693 = vrot.lane.b32.xlu1 %v2684_v59, %s4992_s24 }
0x1ed3   :  { %2697 = vrot.lane.b32.xlu1 %v2686_v43, %s4992_s24  ;;  %4905 = vset.pattern.permute.xlu0 %v9629_v49 }
0x1f3d   :  { %v7275_v62 = vpop.permute.xlu0 %2695 }
0x1f4a   :  { %v2712_v47 = vpop.permute.xlu0 %2711 }
0x1f4b   :  { %v2716_v27 = vmul.f32 %v2712_v47, %v7283_v31  ;;  %v2714_v15 = vmul.f32 %v2712_v47, %v7280_v61  ;;  %v2715_v2 = vmul.f32 %v2712_v47, %v7290_v37  ;;  %v2717_v50 = vmul.f32 %v2712_v47, %v7296_v20 }
0x1f4d   :  { %2726 = vrot.lane.b32.xlu0 %v2716_v27, %s4992_s24  ;;  %2722 = vrot.lane.b32.xlu1 %v2714_v15, %s4992_s24 }
0x1f51   :  { %2742 = vperm.xlu0 %4905, %v7133_v51   ;;  %2724 = vrot.lane.b32.xlu1 %v2715_v2, %s4992_s24 }
0x1f55   :  { %2728 = vrot.lane.b32.xlu1 %v2717_v50, %s4992_s24  ;;  %4906 = vset.pattern.permute.xlu0 %v9632_v42  ;;  %v9636_v50 = vmov 13  }
0x1fbf   :  { %v7303_v46 = vpop.permute.xlu0 %2726 }
0x1fcc   :  { %v2743_v35 = vpop.permute.xlu0 %2742 }
0x1fcd   :  { %v2747_v10 = vmul.f32 %v2743_v35, %v7192_v48  ;;  %v2745_v33 = vmul.f32 %v2743_v35, %v7184_v38  ;;  %v2746_v39 = vmul.f32 %v2743_v35, %v7187_v36  ;;  %v2748_v14 = vmul.f32 %v2743_v35, %v7195_v7 }
0x1fcf   :  { %2757 = vrot.lane.b32.xlu0 %v2747_v10, %s4993_s25  ;;  %2753 = vrot.lane.b32.xlu1 %v2745_v33, %s4993_s25 }
0x1fd3   :  { %2773 = vperm.xlu0 %4906, %v7133_v51   ;;  %2755 = vrot.lane.b32.xlu1 %v2746_v39, %s4993_s25 }
0x1fd7   :  { %2759 = vrot.lane.b32.xlu1 %v2748_v14, %s4993_s25  ;;  %4907 = vset.pattern.permute.xlu0 %v9633_v12  ;;  %v9658_v12 = vmov 24  }
0x2041   :  { %v7315_v8 = vpop.permute.xlu0 %2757 }
0x204e   :  { %v2774_v41 = vpop.permute.xlu0 %2773 }
0x204f   :  { %v2778_v40 = vmul.f32 %v2774_v41, %v7219_v54  ;;  %v2776_v0 = vmul.f32 %v2774_v41, %v7216_v45  ;;  %v2777_v1 = vmul.f32 %v2774_v41, %v7226_v4  ;;  %v2779_v3 = vmul.f32 %v2774_v41, %v7232_v6 }
0x2051   :  { %2788 = vrot.lane.b32.xlu0 %v2778_v40, %s4993_s25  ;;  %2784 = vrot.lane.b32.xlu1 %v2776_v0, %s4993_s25  ;;  %v9638_v40 = vmov 14  }
0x2055   :  { %2804 = vperm.xlu0 %4907, %v7133_v51   ;;  %2786 = vrot.lane.b32.xlu1 %v2777_v1, %s4993_s25 }
0x2059   :  { %2790 = vrot.lane.b32.xlu1 %v2779_v3, %s4993_s25  ;;  %4908 = vset.pattern.permute.xlu0 %v9634_v23 }
0x20c3   :  { %v7327_v30 = vpop.permute.xlu0 %2788 }
0x20d0   :  { %v2805_v34 = vpop.permute.xlu0 %2804 }
0x20d1   :  { %v2809_v59 = vmul.f32 %v2805_v34, %v7246_v25  ;;  %v2807_v43 = vmul.f32 %v2805_v34, %v7249_v63  ;;  %v2808_v22 = vmul.f32 %v2805_v34, %v7256_v28  ;;  %v2810_v5 = vmul.f32 %v2805_v34, %v7264_v26 }
0x20d3   :  { %2819 = vrot.lane.b32.xlu0 %v2809_v59, %s4993_s25  ;;  %2815 = vrot.lane.b32.xlu1 %v2807_v43, %s4993_s25 }
0x20d7   :  { %2835 = vperm.xlu0 %4908, %v7133_v51   ;;  %2817 = vrot.lane.b32.xlu1 %v2808_v22, %s4993_s25  ;;  %v9640_v22 = vmov 15  }
0x20db   :  { %2821 = vrot.lane.b32.xlu1 %v2810_v5, %s4993_s25  ;;  %4909 = vset.pattern.permute.xlu0 %v9635_v52 }
0x2145   :  { %v7339_v57 = vpop.permute.xlu0 %2819 }
0x2152   :  { %v2836_v47 = vpop.permute.xlu0 %2835 }
0x2153   :  { %v2840_v27 = vmul.f32 %v2836_v47, %v7283_v31  ;;  %v2838_v15 = vmul.f32 %v2836_v47, %v7280_v61  ;;  %v2839_v53 = vmul.f32 %v2836_v47, %v7290_v37  ;;  %v2841_v2 = vmul.f32 %v2836_v47, %v7296_v20 }
0x2155   :  { %2850 = vrot.lane.b32.xlu0 %v2840_v27, %s4993_s25  ;;  %2846 = vrot.lane.b32.xlu1 %v2838_v15, %s4993_s25 }
0x2159   :  { %2866 = vperm.xlu0 %4909, %v7133_v51   ;;  %2848 = vrot.lane.b32.xlu1 %v2839_v53, %s4993_s25 }
0x215d   :  { %2852 = vrot.lane.b32.xlu1 %v2841_v2, %s4993_s25  ;;  %4910 = vset.pattern.permute.xlu0 %v9636_v50 }
0x21c7   :  { %v7351_v35 = vpop.permute.xlu0 %2850 }
0x21c8   :  { %9637 = vst [vmem:[#allocation50_spill] sm:$0xff] %v7351_v35 }
0x21d4   :  { %v2867_v10 = vpop.permute.xlu0 %2866 }
0x21d5   :  { %v2871_v33 = vmul.f32 %v2867_v10, %v7192_v48  ;;  %v2869_v39 = vmul.f32 %v2867_v10, %v7184_v38  ;;  %v2870_v14 = vmul.f32 %v2867_v10, %v7187_v36  ;;  %v2872_v41 = vmul.f32 %v2867_v10, %v7195_v7 }
0x21d6   :  { %v9642_v10 = vmov 16  }
0x21d7   :  { %2881 = vrot.lane.b32.xlu0 %v2871_v33, %s4994_s26  ;;  %2877 = vrot.lane.b32.xlu1 %v2869_v39, %s4994_s26 }
0x21db   :  { %2897 = vperm.xlu0 %4910, %v7133_v51   ;;  %2879 = vrot.lane.b32.xlu1 %v2870_v14, %s4994_s26 }
0x21df   :  { %2883 = vrot.lane.b32.xlu1 %v2872_v41, %s4994_s26  ;;  %4911 = vset.pattern.permute.xlu0 %v9638_v40 }
0x2249   :  { %v7363_v0 = vpop.permute.xlu0 %2881 }
0x224a   :  { %9639 = vst [vmem:[#allocation16_spill] sm:$0xff] %v7363_v0 }
0x2256   :  { %v2898_v1 = vpop.permute.xlu0 %2897 }
0x2257   :  { %v2902_v3 = vmul.f32 %v2898_v1, %v7219_v54  ;;  %v2900_v34 = vmul.f32 %v2898_v1, %v7216_v45  ;;  %v2901_v59 = vmul.f32 %v2898_v1, %v7226_v4  ;;  %v2903_v43 = vmul.f32 %v2898_v1, %v7232_v6 }
0x2259   :  { %2912 = vrot.lane.b32.xlu0 %v2902_v3, %s4994_s26  ;;  %2908 = vrot.lane.b32.xlu1 %v2900_v34, %s4994_s26  ;;  %v9644_v34 = vmov 17  }
0x225d   :  { %2928 = vperm.xlu0 %4911, %v7133_v51   ;;  %2910 = vrot.lane.b32.xlu1 %v2901_v59, %s4994_s26 }
0x2261   :  { %2914 = vrot.lane.b32.xlu1 %v2903_v43, %s4994_s26  ;;  %4912 = vset.pattern.permute.xlu0 %v9640_v22 }
0x22cb   :  { %v7375_v5 = vpop.permute.xlu0 %2912 }
0x22cc   :  { %9641 = vst [vmem:[#allocation33_spill] sm:$0xff] %v7375_v5 }
0x22d8   :  { %v2929_v47 = vpop.permute.xlu0 %2928 }
0x22d9   :  { %v2933_v27 = vmul.f32 %v2929_v47, %v7246_v25  ;;  %v2931_v15 = vmul.f32 %v2929_v47, %v7249_v63  ;;  %v2932_v53 = vmul.f32 %v2929_v47, %v7256_v28  ;;  %v2934_v2 = vmul.f32 %v2929_v47, %v7264_v26 }
0x22db   :  { %2943 = vrot.lane.b32.xlu0 %v2933_v27, %s4994_s26  ;;  %2939 = vrot.lane.b32.xlu1 %v2931_v15, %s4994_s26 }
0x22df   :  { %2959 = vperm.xlu0 %4912, %v7133_v51   ;;  %2941 = vrot.lane.b32.xlu1 %v2932_v53, %s4994_s26 }
0x22e3   :  { %2945 = vrot.lane.b32.xlu1 %v2934_v2, %s4994_s26  ;;  %4913 = vset.pattern.permute.xlu0 %v9642_v10  ;;  %v9646_v2 = vmov 18  }
0x234d   :  { %v7387_v33 = vpop.permute.xlu0 %2943 }
0x234e   :  { %9643 = vst [vmem:[#allocation48_spill] sm:$0xff] %v7387_v33 }
0x235a   :  { %v2960_v39 = vpop.permute.xlu0 %2959 }
0x235b   :  { %v2964_v14 = vmul.f32 %v2960_v39, %v7283_v31  ;;  %v2962_v41 = vmul.f32 %v2960_v39, %v7280_v61  ;;  %v2963_v1 = vmul.f32 %v2960_v39, %v7290_v37  ;;  %v2965_v3 = vmul.f32 %v2960_v39, %v7296_v20 }
0x235d   :  { %2974 = vrot.lane.b32.xlu0 %v2964_v14, %s4994_s26  ;;  %2970 = vrot.lane.b32.xlu1 %v2962_v41, %s4994_s26 }
0x2361   :  { %2990 = vperm.xlu0 %4913, %v7133_v51   ;;  %2972 = vrot.lane.b32.xlu1 %v2963_v1, %s4994_s26 }
0x2365   :  { %2976 = vrot.lane.b32.xlu1 %v2965_v3, %s4994_s26  ;;  %4914 = vset.pattern.permute.xlu0 %v9644_v34 }
0x23cf   :  { %v7399_v59 = vpop.permute.xlu0 %2974 }
0x23d0   :  { %9645 = vst [vmem:[#allocation53_spill] sm:$0xff] %v7399_v59 }
0x23dc   :  { %v2991_v43 = vpop.permute.xlu0 %2990 }
0x23dd   :  { %v2995_v47 = vmul.f32 %v2991_v43, %v7192_v48  ;;  %v2993_v27 = vmul.f32 %v2991_v43, %v7184_v38  ;;  %v2994_v15 = vmul.f32 %v2991_v43, %v7187_v36  ;;  %v2996_v53 = vmul.f32 %v2991_v43, %v7195_v7 }
0x23df   :  { %3005 = vrot.lane.b32.xlu0 %v2995_v47, %s4998_s27  ;;  %3001 = vrot.lane.b32.xlu1 %v2993_v27, %s4998_s27  ;;  %v9648_v47 = vmov 19  }
0x23e3   :  { %3021 = vperm.xlu0 %4914, %v7133_v51   ;;  %3003 = vrot.lane.b32.xlu1 %v2994_v15, %s4998_s27 }
0x23e7   :  { %3007 = vrot.lane.b32.xlu1 %v2996_v53, %s4998_s27  ;;  %4915 = vset.pattern.permute.xlu0 %v9646_v2  ;;  %v9656_v2 = vmov 23  }
0x2451   :  { %v7411_v39 = vpop.permute.xlu0 %3005 }
0x2452   :  { %9647 = vst [vmem:[#allocation17_spill] sm:$0xff] %v7411_v39 }
0x245e   :  { %v3022_v14 = vpop.permute.xlu0 %3021 }
0x245f   :  { %v3026_v41 = vmul.f32 %v3022_v14, %v7219_v54  ;;  %v3024_v1 = vmul.f32 %v3022_v14, %v7216_v45  ;;  %v3025_v3 = vmul.f32 %v3022_v14, %v7226_v4  ;;  %v3027_v43 = vmul.f32 %v3022_v14, %v7232_v6 }
0x2461   :  { %3036 = vrot.lane.b32.xlu0 %v3026_v41, %s4998_s27  ;;  %3032 = vrot.lane.b32.xlu1 %v3024_v1, %s4998_s27 }
0x2465   :  { %3052 = vperm.xlu0 %4915, %v7133_v51   ;;  %3034 = vrot.lane.b32.xlu1 %v3025_v3, %s4998_s27  ;;  %v9650_v3 = vmov 20  }
0x2469   :  { %3038 = vrot.lane.b32.xlu1 %v3027_v43, %s4998_s27  ;;  %4916 = vset.pattern.permute.xlu0 %v9648_v47 }
0x24d3   :  { %v7423_v27 = vpop.permute.xlu0 %3036 }
0x24d4   :  { %9649 = vst [vmem:[#allocation32_spill] sm:$0xff] %v7423_v27 }
0x24e0   :  { %v3053_v15 = vpop.permute.xlu0 %3052 }
0x24e1   :  { %v3057_v53 = vmul.f32 %v3053_v15, %v7246_v25  ;;  %v3055_v41 = vmul.f32 %v3053_v15, %v7249_v63  ;;  %v3056_v1 = vmul.f32 %v3053_v15, %v7256_v28  ;;  %v3058_v14 = vmul.f32 %v3053_v15, %v7264_v26 }
0x24e3   :  { %3067 = vrot.lane.b32.xlu0 %v3057_v53, %s4998_s27  ;;  %3063 = vrot.lane.b32.xlu1 %v3055_v41, %s4998_s27 }
0x24e7   :  { %3083 = vperm.xlu0 %4916, %v7133_v51   ;;  %3065 = vrot.lane.b32.xlu1 %v3056_v1, %s4998_s27  ;;  %v9652_v1 = vmov 21  }
0x24eb   :  { %3069 = vrot.lane.b32.xlu1 %v3058_v14, %s4998_s27  ;;  %4917 = vset.pattern.permute.xlu0 %v9650_v3 }
0x2555   :  { %v7435_v43 = vpop.permute.xlu0 %3067 }
0x2556   :  { %9651 = vst [vmem:[#allocation51_spill] sm:$0xff] %v7435_v43 }
0x2562   :  { %v3084_v44 = vpop.permute.xlu0 %3083 }
0x2563   :  { %v3088_v47 = vmul.f32 %v3084_v44, %v7283_v31  ;;  %v3086_v53 = vmul.f32 %v3084_v44, %v7280_v61  ;;  %v3087_v41 = vmul.f32 %v3084_v44, %v7290_v37  ;;  %v3089_v15 = vmul.f32 %v3084_v44, %v7296_v20 }
0x2565   :  { %3098 = vrot.lane.b32.xlu0 %v3088_v47, %s4998_s27  ;;  %3094 = vrot.lane.b32.xlu1 %v3086_v53, %s4998_s27 }
0x2569   :  { %3114 = vperm.xlu0 %4917, %v7133_v51   ;;  %3096 = vrot.lane.b32.xlu1 %v3087_v41, %s4998_s27  ;;  %v7457_v41 = vpop.permute.xlu1 %2631 }
0x256d   :  { %3100 = vrot.lane.b32.xlu1 %v3089_v15, %s4998_s27  ;;  %4918 = vset.pattern.permute.xlu0 %v9652_v1  ;;  %v9654_v15 = vmov 22  }
0x25d7   :  { %v7447_v14 = vpop.permute.xlu0 %3098 }
0x25d8   :  { %9653 = vst [vmem:[#allocation57_spill] sm:$0xff] %v7447_v14 }
0x25e4   :  { %v3115_v3 = vpop.permute.xlu0 %3114 }
0x25e5   :  { %v3119_v34 = vmul.f32 %v3115_v3, %v7192_v48  ;;  %v3117_v47 = vmul.f32 %v3115_v3, %v7184_v38  ;;  %v3118_v53 = vmul.f32 %v3115_v3, %v7187_v36  ;;  %v3120_v44 = vmul.f32 %v3115_v3, %v7195_v7 }
0x25e7   :  { %3129 = vrot.lane.b32.xlu0 %v3119_v34, %s5003_s28  ;;  %3125 = vrot.lane.b32.xlu1 %v3117_v47, %s5003_s28  ;;  %v7463_v34 = vpop.permute.xlu1 %2635 }
0x25eb   :  { %3145 = vperm.xlu0 %4918, %v7133_v51   ;;  %3127 = vrot.lane.b32.xlu1 %v3118_v53, %s5003_s28  ;;  %v7469_v3 = vpop.permute.xlu1 %2660 }
0x25ef   :  { %3131 = vrot.lane.b32.xlu1 %v3120_v44, %s5003_s28  ;;  %4919 = vset.pattern.permute.xlu0 %v9654_v15  ;;  %v7475_v15 = vpop.permute.xlu1 %2662 }
0x2659   :  { %v7461_v10 = vpop.permute.xlu0 %3129 }
0x265a   :  { %9655 = vst [vmem:[#allocation18_spill] sm:$0xff] %v7461_v10 }
0x2666   :  { %v3146_v40 = vpop.permute.xlu0 %3145 }
0x2667   :  { %v3150_v47 = vmul.f32 %v3146_v40, %v7219_v54  ;;  %v3148_v1 = vmul.f32 %v3146_v40, %v7216_v45  ;;  %v3149_v53 = vmul.f32 %v3146_v40, %v7226_v4  ;;  %v3151_v44 = vmul.f32 %v3146_v40, %v7232_v6 }
0x2669   :  { %3160 = vrot.lane.b32.xlu0 %v3150_v47, %s5003_s28  ;;  %3156 = vrot.lane.b32.xlu1 %v3148_v1, %s5003_s28  ;;  %v7481_v1 = vpop.permute.xlu1 %2666 }
0x266d   :  { %3176 = vperm.xlu0 %4919, %v7133_v51   ;;  %3158 = vrot.lane.b32.xlu1 %v3149_v53, %s5003_s28  ;;  %v7487_v40 = vpop.permute.xlu1 %2691 }
0x2671   :  { %3162 = vrot.lane.b32.xlu1 %v3151_v44, %s5003_s28  ;;  %4920 = vset.pattern.permute.xlu0 %v9656_v2  ;;  %v7493_v2 = vpop.permute.xlu1 %2693 }
0x26db   :  { %v7479_v22 = vpop.permute.xlu0 %3160 }
0x26dc   :  { %9657 = vst [vmem:[#allocation12_spill] sm:$0xff] %v7479_v22 }
0x26e8   :  { %v3177_v47 = vpop.permute.xlu0 %3176 }
0x26e9   :  { %v3181_v52 = vmul.f32 %v3177_v47, %v7246_v25  ;;  %v3179_v23 = vmul.f32 %v3177_v47, %v7249_v63  ;;  %v3180_v53 = vmul.f32 %v3177_v47, %v7256_v28  ;;  %v3182_v44 = vmul.f32 %v3177_v47, %v7264_v26 }
0x26eb   :  { %3191 = vrot.lane.b32.xlu0 %v3181_v52, %s5003_s28  ;;  %3187 = vrot.lane.b32.xlu1 %v3179_v23, %s5003_s28  ;;  %v7499_v23 = vpop.permute.xlu1 %2697 }
0x26ef   :  { %3207 = vperm.xlu0 %4920, %v7133_v51   ;;  %3189 = vrot.lane.b32.xlu1 %v3180_v53, %s5003_s28  ;;  %v7505_v47 = vpop.permute.xlu1 %2722 }
0x26f3   :  { %3193 = vrot.lane.b32.xlu1 %v3182_v44, %s5003_s28  ;;  %4921 = vset.pattern.permute.xlu0 %v9658_v12  ;;  %v7511_v12 = vpop.permute.xlu1 %2724 }
0x275d   :  { %v7497_v42 = vpop.permute.xlu0 %3191 }
0x275e   :  { %9659 = vst [vmem:[#allocation54_spill] sm:$0xff] %v7497_v42 }
0x276a   :  { %v3208_v52 = vpop.permute.xlu0 %3207 }
0x276b   :  { %v3212_v17 = vmul.f32 %v3208_v52, %v7283_v31  ;;  %v3210_v49 = vmul.f32 %v3208_v52, %v7280_v61  ;;  %v3211_v53 = vmul.f32 %v3208_v52, %v7290_v37  ;;  %v3213_v44 = vmul.f32 %v3208_v52, %v7296_v20 }
0x276d   :  { %3222 = vrot.lane.b32.xlu0 %v3212_v17, %s5003_s28  ;;  %3218 = vrot.lane.b32.xlu1 %v3210_v49, %s5003_s28  ;;  %v7517_v49 = vpop.permute.xlu1 %2728 }
0x2771   :  { %3238 = vperm.xlu0 %4921, %v7133_v51   ;;  %3220 = vrot.lane.b32.xlu1 %v3211_v53, %s5003_s28  ;;  %v7523_v52 = vpop.permute.xlu1 %2753 }
0x2775   :  { %3224 = vrot.lane.b32.xlu1 %v3213_v44, %s5003_s28  ;;  %4922 = vset.pattern.permute.xlu0 %v9660_v32  ;;  %v7529_v32 = vpop.permute.xlu1 %2755 }
0x27df   :  { %v7515_v13 = vpop.permute.xlu0 %3222 }
0x27e0   :  { %9661 = vst [vmem:[#allocation60_spill] sm:$0xff] %v7515_v13 }
0x27ec   :  { %v3239_v17 = vpop.permute.xlu0 %3238 }
0x27ed   :  { %v3243_v24 = vmul.f32 %v3239_v17, %v7192_v48  ;;  %v3241_v21 = vmul.f32 %v3239_v17, %v7184_v38  ;;  %v3242_v53 = vmul.f32 %v3239_v17, %v7187_v36  ;;  %v3244_v44 = vmul.f32 %v3239_v17, %v7195_v7 }
0x27ef   :  { %3253 = vrot.lane.b32.xlu0 %v3243_v24, %s5008_s29  ;;  %3249 = vrot.lane.b32.xlu1 %v3241_v21, %s5008_s29  ;;  %v7535_v21 = vpop.permute.xlu1 %2759 }
0x27f3   :  { %3269 = vperm.xlu0 %4922, %v7133_v51   ;;  %3251 = vrot.lane.b32.xlu1 %v3242_v53, %s5008_s29  ;;  %v7541_v17 = vpop.permute.xlu1 %2784 }
0x27f7   :  { %3255 = vrot.lane.b32.xlu1 %v3244_v44, %s5008_s29  ;;  %4923 = vset.pattern.permute.xlu0 %v9662_v56  ;;  %v7547_v56 = vpop.permute.xlu1 %2786 }
0x2861   :  { %v7533_v13 = vpop.permute.xlu0 %3253 }
0x2862   :  { %9663 = vst [vmem:[#allocation19_spill] sm:$0xff] %v7533_v13  ;;  %v9664_v13 = vmov 27  }
0x286e   :  { %v3270_v24 = vpop.permute.xlu0 %3269 }
0x286f   :  { %v3274_v42 = vmul.f32 %v3270_v24, %v7219_v54  ;;  %v3272_v22 = vmul.f32 %v3270_v24, %v7216_v45  ;;  %v3273_v53 = vmul.f32 %v3270_v24, %v7226_v4  ;;  %v3275_v44 = vmul.f32 %v3270_v24, %v7232_v6 }
0x2871   :  { %3284 = vrot.lane.b32.xlu0 %v3274_v42, %s5008_s29  ;;  %3280 = vrot.lane.b32.xlu1 %v3272_v22, %s5008_s29  ;;  %v7553_v22 = vpop.permute.xlu1 %2790 }
0x2875   :  { %3300 = vperm.xlu0 %4923, %v7133_v51   ;;  %3282 = vrot.lane.b32.xlu1 %v3273_v53, %s5008_s29  ;;  %v7559_v24 = vpop.permute.xlu1 %2815 }
0x2879   :  { %3286 = vrot.lane.b32.xlu1 %v3275_v44, %s5008_s29  ;;  %4924 = vset.pattern.permute.xlu0 %v9664_v13  ;;  %v7565_v13 = vpop.permute.xlu1 %2817 }
0x28e3   :  { %v7551_v10 = vpop.permute.xlu0 %3284 }
0x28e4   :  { %9665 = vst [vmem:[#allocation35_spill] sm:$0xff] %v7551_v10  ;;  %v9666_v10 = vmov 28  }
0x28f0   :  { %v3301_v42 = vpop.permute.xlu0 %3300 }
0x28f1   :  { %v3305_v14 = vmul.f32 %v3301_v42, %v7246_v25  ;;  %v3303_v43 = vmul.f32 %v3301_v42, %v7249_v63  ;;  %v3304_v53 = vmul.f32 %v3301_v42, %v7256_v28  ;;  %v3306_v44 = vmul.f32 %v3301_v42, %v7264_v26 }
0x28f3   :  { %3315 = vrot.lane.b32.xlu0 %v3305_v14, %s5008_s29  ;;  %3311 = vrot.lane.b32.xlu1 %v3303_v43, %s5008_s29  ;;  %v7571_v43 = vpop.permute.xlu1 %2821 }
0x28f7   :  { %3331 = vperm.xlu0 %4924, %v7133_v51   ;;  %3313 = vrot.lane.b32.xlu1 %v3304_v53, %s5008_s29  ;;  %v7577_v42 = vpop.permute.xlu1 %2846 }
0x28f8   :  { %9668 = vst [vmem:[#allocation63_spill] sm:$0xff] %v7577_v42 }
0x28fb   :  { %3317 = vrot.lane.b32.xlu1 %v3306_v44, %s5008_s29  ;;  %4925 = vset.pattern.permute.xlu0 %v9666_v10  ;;  %v7583_v10 = vpop.permute.xlu1 %2848 }
0x2965   :  { %v7569_v27 = vpop.permute.xlu0 %3315 }
0x2966   :  { %9667 = vst [vmem:[#allocation58_spill] sm:$0xff] %v7569_v27  ;;  %v9669_v27 = vmov 29  }
0x2972   :  { %v3332_v14 = vpop.permute.xlu0 %3331 }
0x2973   :  { %v3336_v39 = vmul.f32 %v3332_v14, %v7283_v31  ;;  %v3334_v59 = vmul.f32 %v3332_v14, %v7280_v61  ;;  %v3335_v53 = vmul.f32 %v3332_v14, %v7290_v37  ;;  %v3337_v44 = vmul.f32 %v3332_v14, %v7296_v20 }
0x2975   :  { %3346 = vrot.lane.b32.xlu0 %v3336_v39, %s5008_s29  ;;  %3342 = vrot.lane.b32.xlu1 %v3334_v59, %s5008_s29  ;;  %v7589_v59 = vpop.permute.xlu1 %2852 }
0x2976   :  { %9671 = vst [vmem:[#allocation37_spill] sm:$0xff] %v7589_v59 }
0x2979   :  { %3362 = vperm.xlu0 %4925, %v7133_v51   ;;  %3344 = vrot.lane.b32.xlu1 %v3335_v53, %s5008_s29  ;;  %v7595_v14 = vpop.permute.xlu1 %2877 }
0x297a   :  { %9672 = vst [vmem:[#allocation61_spill] sm:$0xff] %v7595_v14 }
0x297d   :  { %3348 = vrot.lane.b32.xlu1 %v3337_v44, %s5008_s29  ;;  %4926 = vset.pattern.permute.xlu0 %v9669_v27  ;;  %v7601_v27 = vpop.permute.xlu1 %2879 }
0x297e   :  { %9673 = vst [vmem:[#allocation66_spill] sm:$0xff] %v7601_v27 }
0x29e7   :  { %v7587_v33 = vpop.permute.xlu0 %3346 }
0x29e8   :  { %9670 = vst [vmem:[#allocation20_spill] sm:$0xff] %v7587_v33  ;;  %v9674_v33 = vmov 30  }
0x29f4   :  { %v3363_v39 = vpop.permute.xlu0 %3362 }
0x29f5   :  { %v3367_v5 = vmul.f32 %v3363_v39, %v7192_v48  ;;  %v3365_v0 = vmul.f32 %v3363_v39, %v7184_v38  ;;  %v3366_v53 = vmul.f32 %v3363_v39, %v7187_v36  ;;  %v3368_v44 = vmul.f32 %v3363_v39, %v7195_v7 }
0x29f7   :  { %3377 = vrot.lane.b32.xlu0 %v3367_v5, %s5013_s30  ;;  %3373 = vrot.lane.b32.xlu1 %v3365_v0, %s5013_s30  ;;  %v7607_v0 = vpop.permute.xlu1 %2883 }
0x29f8   :  { %9676 = vst [vmem:[#allocation36_spill] sm:$0xff] %v7607_v0 }
0x29fb   :  { %3393 = vperm.xlu0 %4926, %v7133_v51   ;;  %3375 = vrot.lane.b32.xlu1 %v3366_v53, %s5013_s30  ;;  %v7613_v39 = vpop.permute.xlu1 %2908 }
0x29fc   :  { %9677 = vst [vmem:[#allocation64_spill] sm:$0xff] %v7613_v39 }
0x29ff   :  { %3379 = vrot.lane.b32.xlu1 %v3368_v44, %s5013_s30  ;;  %4927 = vset.pattern.permute.xlu0 %v9674_v33  ;;  %v7619_v33 = vpop.permute.xlu1 %2910 }
0x2a00   :  { %9678 = vst [vmem:[#allocation13_spill] sm:$0xff] %v7619_v33 }
0x2a69   :  { %v7605_v59 = vpop.permute.xlu0 %3377 }
0x2a6a   :  { %9675 = vst [vmem:[#allocation21_spill] sm:$0xff] %v7605_v59  ;;  %v9679_v59 = vmov 31  }
0x2a76   :  { %v3394_v5 = vpop.permute.xlu0 %3393 }
0x2a77   :  { %v3398_v14 = vmul.f32 %v3394_v5, %v7219_v54  ;;  %v3396_v35 = vmul.f32 %v3394_v5, %v7216_v45  ;;  %v3397_v53 = vmul.f32 %v3394_v5, %v7226_v4  ;;  %v3399_v44 = vmul.f32 %v3394_v5, %v7232_v6 }
0x2a79   :  { %3408 = vrot.lane.b32.xlu0 %v3398_v14, %s5013_s30  ;;  %3404 = vrot.lane.b32.xlu1 %v3396_v35, %s5013_s30  ;;  %v7625_v35 = vpop.permute.xlu1 %2914 }
0x2a7a   :  { %9681 = vst [vmem:[#allocation71_spill] sm:$0xff] %v7625_v35 }
0x2a7d   :  { %3424 = vperm.xlu0 %4927, %v7133_v51   ;;  %3406 = vrot.lane.b32.xlu1 %v3397_v53, %s5013_s30  ;;  %v7631_v5 = vpop.permute.xlu1 %2939 }
0x2a7e   :  { %9682 = vst [vmem:[#allocation22_spill] sm:$0xff] %v7631_v5 }
0x2a81   :  { %3410 = vrot.lane.b32.xlu1 %v3399_v44, %s5013_s30  ;;  %4928 = vset.pattern.permute.xlu0 %v9679_v59  ;;  %v7637_v59 = vpop.permute.xlu1 %2941 }
0x2a82   :  { %9683 = vst [vmem:[#allocation39_spill] sm:$0xff] %v7637_v59 }
0x2aeb   :  { %v7623_v0 = vpop.permute.xlu0 %3408 }
0x2aec   :  { %9680 = vst [vmem:[#allocation68_spill] sm:$0xff] %v7623_v0  ;;  %v9684_v0 = vmov 32  }
0x2af8   :  { %v3425_v14 = vpop.permute.xlu0 %3424 }
0x2af9   :  { %v3429_v39 = vmul.f32 %v3425_v14, %v7246_v25  ;;  %v3427_v27 = vmul.f32 %v3425_v14, %v7249_v63  ;;  %v3428_v53 = vmul.f32 %v3425_v14, %v7256_v28  ;;  %v3430_v44 = vmul.f32 %v3425_v14, %v7264_v26 }
0x2afb   :  { %3439 = vrot.lane.b32.xlu0 %v3429_v39, %s5013_s30  ;;  %3435 = vrot.lane.b32.xlu1 %v3427_v27, %s5013_s30  ;;  %v7643_v27 = vpop.permute.xlu1 %2945 }
0x2afc   :  { %9686 = vst [vmem:[#allocation72_spill] sm:$0xff] %v7643_v27 }
0x2aff   :  { %3455 = vperm.xlu0 %4928, %v7133_v51   ;;  %3437 = vrot.lane.b32.xlu1 %v3428_v53, %s5013_s30  ;;  %v7649_v14 = vpop.permute.xlu1 %2970 }
0x2b00   :  { %9687 = vst [vmem:[#allocation23_spill] sm:$0xff] %v7649_v14 }
0x2b03   :  { %3441 = vrot.lane.b32.xlu1 %v3430_v44, %s5013_s30  ;;  %4929 = vset.pattern.permute.xlu0 %v9684_v0  ;;  %v7655_v0 = vpop.permute.xlu1 %2972 }
0x2b04   :  { %9688 = vst [vmem:[#allocation41_spill] sm:$0xff] %v7655_v0 }
0x2b6d   :  { %v7641_v35 = vpop.permute.xlu0 %3439 }
0x2b6e   :  { %9685 = vst [vmem:[#allocation67_spill] sm:$0xff] %v7641_v35  ;;  %v9689_v35 = vmov 33  }
0x2b7a   :  { %v3456_v39 = vpop.permute.xlu0 %3455 }
0x2b7b   :  { %v3460_v5 = vmul.f32 %v3456_v39, %v7283_v31  ;;  %v3458_v33 = vmul.f32 %v3456_v39, %v7280_v61  ;;  %v3459_v53 = vmul.f32 %v3456_v39, %v7290_v37  ;;  %v3461_v44 = vmul.f32 %v3456_v39, %v7296_v20 }
0x2b7d   :  { %3470 = vrot.lane.b32.xlu0 %v3460_v5, %s5013_s30  ;;  %3466 = vrot.lane.b32.xlu1 %v3458_v33, %s5013_s30  ;;  %v7661_v33 = vpop.permute.xlu1 %2976 }
0x2b7e   :  { %9691 = vst [vmem:[#allocation24_spill] sm:$0xff] %v7661_v33 }
0x2b81   :  { %3486 = vperm.xlu0 %4929, %v7133_v51   ;;  %3468 = vrot.lane.b32.xlu1 %v3459_v53, %s5013_s30  ;;  %v7667_v39 = vpop.permute.xlu1 %3001 }
0x2b82   :  { %9692 = vst [vmem:[#allocation73_spill] sm:$0xff] %v7667_v39 }
0x2b85   :  { %3472 = vrot.lane.b32.xlu1 %v3461_v44, %s5013_s30  ;;  %4930 = vset.pattern.permute.xlu0 %v9689_v35  ;;  %v7673_v35 = vpop.permute.xlu1 %3003 }
0x2b86   :  { %9693 = vst [vmem:[#allocation40_spill] sm:$0xff] %v7673_v35 }
0x2bef   :  { %v7659_v27 = vpop.permute.xlu0 %3470 }
0x2bf0   :  { %9690 = vst [vmem:[#allocation70_spill] sm:$0xff] %v7659_v27  ;;  %v9694_v27 = vmov 34  }
0x2bfc   :  { %v3487_v5 = vpop.permute.xlu0 %3486 }
0x2bfd   :  { %v3491_v14 = vmul.f32 %v3487_v5, %v7192_v48  ;;  %v3489_v59 = vmul.f32 %v3487_v5, %v7184_v38  ;;  %v3490_v53 = vmul.f32 %v3487_v5, %v7187_v36  ;;  %v3492_v44 = vmul.f32 %v3487_v5, %v7195_v7 }
0x2bff   :  { %3501 = vrot.lane.b32.xlu0 %v3491_v14, %s5018_s6  ;;  %3497 = vrot.lane.b32.xlu1 %v3489_v59, %s5018_s6  ;;  %v7679_v59 = vpop.permute.xlu1 %3007 }
0x2c00   :  { %9696 = vst [vmem:[#allocation76_spill] sm:$0xff] %v7679_v59 }
0x2c03   :  { %3517 = vperm.xlu0 %4930, %v7133_v51   ;;  %3499 = vrot.lane.b32.xlu1 %v3490_v53, %s5018_s6  ;;  %v7685_v5 = vpop.permute.xlu1 %3032 }
0x2c04   :  { %9697 = vst [vmem:[#allocation77_spill] sm:$0xff] %v7685_v5 }
0x2c07   :  { %3503 = vrot.lane.b32.xlu1 %v3492_v44, %s5018_s6  ;;  %4931 = vset.pattern.permute.xlu0 %v9694_v27  ;;  %v7691_v27 = vpop.permute.xlu1 %3034 }
0x2c08   :  { %9698 = vst [vmem:[#allocation14_spill] sm:$0xff] %v7691_v27 }
0x2c71   :  { %v7677_v33 = vpop.permute.xlu0 %3501 }
0x2c72   :  { %9695 = vst [vmem:[#allocation74_spill] sm:$0xff] %v7677_v33  ;;  %v9699_v33 = vmov 35  }
0x2c7e   :  { %v3518_v14 = vpop.permute.xlu0 %3517 }
0x2c7f   :  { %v3522_v39 = vmul.f32 %v3518_v14, %v7219_v54  ;;  %v3520_v0 = vmul.f32 %v3518_v14, %v7216_v45  ;;  %v3521_v53 = vmul.f32 %v3518_v14, %v7226_v4  ;;  %v3523_v44 = vmul.f32 %v3518_v14, %v7232_v6 }
0x2c81   :  { %3532 = vrot.lane.b32.xlu0 %v3522_v39, %s5018_s6  ;;  %3528 = vrot.lane.b32.xlu1 %v3520_v0, %s5018_s6  ;;  %v7697_v0 = vpop.permute.xlu1 %3038 }
0x2c82   :  { %9701 = vst [vmem:[#allocation81_spill] sm:$0xff] %v7697_v0 }
0x2c85   :  { %3548 = vperm.xlu0 %4931, %v7133_v51   ;;  %3530 = vrot.lane.b32.xlu1 %v3521_v53, %s5018_s6  ;;  %v7703_v14 = vpop.permute.xlu1 %3063 }
0x2c86   :  { %9702 = vst [vmem:[#allocation78_spill] sm:$0xff] %v7703_v14 }
0x2c89   :  { %3534 = vrot.lane.b32.xlu1 %v3523_v44, %s5018_s6  ;;  %4932 = vset.pattern.permute.xlu0 %v9699_v33  ;;  %v7709_v33 = vpop.permute.xlu1 %3065 }
0x2c8a   :  { %9703 = vst [vmem:[#allocation43_spill] sm:$0xff] %v7709_v33 }
0x2cf3   :  { %v7695_v59 = vpop.permute.xlu0 %3532 }
0x2cf4   :  { %9700 = vst [vmem:[#allocation75_spill] sm:$0xff] %v7695_v59  ;;  %v9704_v59 = vmov 36  }
0x2d00   :  { %v3549_v39 = vpop.permute.xlu0 %3548 }
0x2d01   :  { %v3553_v5 = vmul.f32 %v3549_v39, %v7246_v25  ;;  %v3551_v35 = vmul.f32 %v3549_v39, %v7249_v63  ;;  %v3552_v53 = vmul.f32 %v3549_v39, %v7256_v28  ;;  %v3554_v44 = vmul.f32 %v3549_v39, %v7264_v26 }
0x2d03   :  { %3563 = vrot.lane.b32.xlu0 %v3553_v5, %s5018_s6  ;;  %3559 = vrot.lane.b32.xlu1 %v3551_v35, %s5018_s6  ;;  %v7714_v5 = vpop.permute.xlu1 %3069 }
0x2d04   :  { %9705 = vst [vmem:[#allocation25_spill] sm:$0xff] %v7714_v5 }
0x2d07   :  { %3579 = vperm.xlu0 %4932, %v7133_v51   ;;  %3561 = vrot.lane.b32.xlu1 %v3552_v53, %s5018_s6  ;;  %v7716_v35 = vpop.permute.xlu1 %3094 }
0x2d08   :  { %9706 = vst [vmem:[#allocation30_spill] sm:$0xff] %v7716_v35 }
0x2d0b   :  { %4933 = vset.pattern.permute.xlu0 %v9704_v59  ;;  %3565 = vrot.lane.b32.xlu1 %v3554_v44, %s5018_s6  ;;  %v7718_v14 = vpop.permute.xlu1 %3096 }
0x2d0c   :  { %2419 = vperm.xlu0 %4933, %v7133_v51   ;;  %9707 = vst [vmem:[#allocation26_spill] sm:$0xff] %v7718_v14 }
0x2d0f   :  { %v7720_v0 = vpop.permute.xlu1 %3100 }
0x2d10   :  { %9708 = vst [vmem:[#allocation45_spill] sm:$0xff] %v7720_v0 }
0x2d13   :  { %v7722_v27 = vpop.permute.xlu1 %3125 }
0x2d14   :  { %9709 = vst [vmem:[#allocation79_spill] sm:$0xff] %v7722_v27 }
0x2d17   :  { %v7724_v53 = vpop.permute.xlu1 %3127 }
0x2d18   :  { %9710 = vst [vmem:[#allocation42_spill] sm:$0xff] %v7724_v53 }
0x2d1b   :  { %v7726_v39 = vpop.permute.xlu1 %3131 }
0x2d1c   :  { %9711 = vst [vmem:[#allocation38_spill] sm:$0xff] %v7726_v39 }
0x2d1f   :  { %v7728_v33 = vpop.permute.xlu1 %3156 }
0x2d20   :  { %9712 = vst [vmem:[#allocation44_spill] sm:$0xff] %v7728_v33 }
0x2d23   :  { %v7730_v59 = vpop.permute.xlu1 %3158 }
0x2d24   :  { %9713 = vst [vmem:[#allocation34_spill] sm:$0xff] %v7730_v59 }
0x2d27   :  { %v7732_v44 = vpop.permute.xlu1 %3162 }
0x2d2b   :  { %v7734_v42 = vpop.permute.xlu1 %3187 }
0x2d2f   :  { %v7736_v5 = vpop.permute.xlu1 %3189 }
0x2d33   :  { %v7738_v35 = vpop.permute.xlu1 %3193 }
0x2d34   :  { %9714 = vst [vmem:[#allocation55_spill] sm:$0xff] %v7738_v35  ;;  %v7755_v35 = vld [vmem:[%s8951_s3] sm:$0xf] }
0x2d35   :  { %9719 = vst [vmem:[#allocation49_spill] sm:$0xff] %v7755_v35 }
0x2d37   :  { %v7740_v14 = vpop.permute.xlu1 %3218 }
0x2d38   :  { %9715 = vst [vmem:[#allocation15_spill] sm:$0xff] %v7740_v14 }
0x2d3b   :  { %v7742_v0 = vpop.permute.xlu1 %3220 }
0x2d3c   :  { %9716 = vst [vmem:[#allocation46_spill] sm:$0xff] %v7742_v0 }
0x2d3f   :  { %v7748_v59 = vpop.permute.xlu1 %3224 }
0x2d40   :  { %9718 = vst [vmem:[#allocation82_spill] sm:$0xff] %v7748_v59  ;;  %v9720_v59 = vmov 2  }
0x2d43   :  { %v7758_v0 = vpop.permute.xlu1 %3249 }
0x2d75   :  { %v7744_v27 = vpop.permute.xlu0 %3563 }
0x2d76   :  { %9717 = vst [vmem:[#allocation83_spill] sm:$0xff] %v7744_v27 }
0x2d82   :  { %v3580_v53 = vpop.permute.xlu0 %3579 }
0x2d83   :  { %v3584_v39 = vmul.f32 %v3580_v53, %v7283_v31  ;;  %v3582_v33 = vmul.f32 %v3580_v53, %v7280_v61  ;;  %v3583_v14 = vmul.f32 %v3580_v53, %v7290_v37  ;;  %v3585_v27 = vmul.f32 %v3580_v53, %v7296_v20 }
0x2d85   :  { %3594 = vrot.lane.b32.xlu0 %v3584_v39, %s5018_s6  ;;  %3590 = vrot.lane.b32.xlu1 %v3582_v33, %s5018_s6  ;;  %v7765_v33 = vpop.permute.xlu1 %3251 }
0x2d89   :  { %3628 = vperm.xlu0 %4933, %v7755_v35   ;;  %3592 = vrot.lane.b32.xlu1 %v3583_v14, %s5018_s6  ;;  %v7770_v39 = vpop.permute.xlu1 %3255  ;;  %v9722_v14 = vmov 5  }
0x2d8a   :  { %9721 = vst [vmem:[#allocation80_spill] sm:$0xff] %v7770_v39 }
0x2d8d   :  { %4934 = vset.pattern.permute.xlu0 %v9720_v59  ;;  %3596 = vrot.lane.b32.xlu1 %v3585_v27, %s5018_s6  ;;  %v7775_v53 = vpop.permute.xlu1 %3280 }
0x2d8e   :  { %2558 = vperm.xlu0 %4934, %v7133_v51   ;;  %9723 = vst [vmem:[#allocation87_spill] sm:$0xff] %v7775_v53 }
0x2d91   :  { %3649 = vperm.xlu1 %4935, %v7755_v35   ;;  %v7779_v27 = vpop.permute.xlu1 %3282 }
0x2d92   :  { %3705 = vperm.xlu0 %4934, %v7755_v35   ;;  %9724 = vst [vmem:[#allocation86_spill] sm:$0xff] %v7779_v27 }
0x2d95   :  { %4936 = vset.pattern.permute.xlu1 %v9614_v55  ;;  %v7783_v51 = vpop.permute.xlu1 %3286 }
0x2d96   :  { %3677 = vperm.xlu1 %4936, %v7755_v35   ;;  %4939 = vset.pattern.permute.xlu0 %v9722_v14  ;;  %9725 = vst [vmem:[#allocation52_spill] sm:$0xff] %v7783_v51 }
0x2d99   :  { %v7786_v55 = vpop.permute.xlu1 %3311 }
0x2d9a   :  { %4937 = vset.pattern.permute.xlu1 %v9615_v29  ;;  %9726 = vst [vmem:[#allocation85_spill] sm:$0xff] %v7786_v55 }
0x2d9b   :  { %3733 = vperm.xlu1 %4937, %v7755_v35  }
0x2d9d   :  { %v7788_v59 = vpop.permute.xlu1 %3313 }
0x2d9e   :  { %9727 = vst [vmem:[#allocation90_spill] sm:$0xff] %v7788_v59 }
0x2d9f   :  { %4938 = vset.pattern.permute.xlu1 %v9616_v58 }
0x2da0   :  { %3745 = vperm.xlu1 %4938, %v7755_v35  }
0x2da1   :  { %v7790_v14 = vpop.permute.xlu1 %3317 }
0x2da2   :  { %9728 = vst [vmem:[#allocation89_spill] sm:$0xff] %v7790_v14 }
0x2da4   :  { %4947 = vset.pattern.permute.xlu1 %v9636_v50 }
0x2da5   :  { %v7792_v53 = vpop.permute.xlu1 %3342 }
0x2da6   :  { %9729 = vst [vmem:[#allocation56_spill] sm:$0xff] %v7792_v53 }
0x2da9   :  { %v7794_v29 = vpop.permute.xlu1 %3344 }
0x2daa   :  { %9730 = vst [vmem:[#allocation88_spill] sm:$0xff] %v7794_v29 }
0x2dad   :  { %v7796_v39 = vpop.permute.xlu1 %3348 }
0x2dae   :  { %9731 = vst [vmem:[#allocation93_spill] sm:$0xff] %v7796_v39  ;;  %v2420_v39 = vpop.permute.xlu0 %2419 }
0x2db1   :  { %v7798_v27 = vpop.permute.xlu1 %3373 }
0x2db2   :  { %9732 = vst [vmem:[#allocation92_spill] sm:$0xff] %v7798_v27 }
0x2db5   :  { %v7800_v58 = vpop.permute.xlu1 %3375 }
0x2db6   :  { %9733 = vst [vmem:[#allocation59_spill] sm:$0xff] %v7800_v58 }
0x2db9   :  { %v7802_v35 = vpop.permute.xlu1 %3379 }
0x2dba   :  { %9734 = vst [vmem:[#allocation91_spill] sm:$0xff] %v7802_v35 }
0x2dbd   :  { %v7804_v51 = vpop.permute.xlu1 %3404 }
0x2dbe   :  { %9735 = vst [vmem:[#allocation62_spill] sm:$0xff] %v7804_v51  ;;  %v2465_v51 = vmul.f32 %v7159_v16, %v7184_v38  ;;  %v2513_v38 = vmul.f32 %v7161_v19, %v7216_v45 }
0x2dc1   :  { %v7806_v50 = vpop.permute.xlu1 %3406 }
0x2dc2   :  { %9736 = vst [vmem:[#allocation94_spill] sm:$0xff] %v7806_v50  ;;  %v2466_v50 = vmul.f32 %v7159_v16, %v7187_v36  ;;  %v2514_v36 = vmul.f32 %v7161_v19, %v7226_v4 }
0x2dc5   :  { %v7808_v55 = vpop.permute.xlu1 %3410 }
0x2dc6   :  { %9737 = vst [vmem:[#allocation65_spill] sm:$0xff] %v7808_v55  ;;  %v2469_v55 = vadd.f32 %v2465_v51, %v2420_v39 }
0x2dc9   :  { %v7810_v59 = vpop.permute.xlu1 %3435 }
0x2dca   :  { %9738 = vst [vmem:[#allocation69_spill] sm:$0xff] %v7810_v59  ;;  %v2467_v59 = vmul.f32 %v7159_v16, %v7192_v48  ;;  %v2515_v48 = vmul.f32 %v7161_v19, %v7219_v54  ;;  %v2609_v54 = vmul.f32 %v7172_v60, %v7280_v61  ;;  %v2637_v61 = vsel %vm246_vm0, %v7205_v11, %v7457_v41 }
0x2dcb   :  { %v2669_v11 = vsel %vm246_vm0, %v7475_v15, %v7243_v9 }
0x2dcc   :  { %v2471_v35 = vadd.f32 %v2467_v59, %v2420_v39 }
0x2dcd   :  { %v7812_v14 = vpop.permute.xlu1 %3437 }
0x2dce   :  { %9739 = vst [vmem:[#allocation84_spill] sm:$0xff] %v7812_v14  ;;  %v2468_v14 = vmul.f32 %v7159_v16, %v7195_v7  ;;  %v2516_v16 = vmul.f32 %v7161_v19, %v7232_v6  ;;  %v2519_v51 = vadd.f32 %v2515_v48, %v2471_v35  ;;  %v2610_v19 = vmul.f32 %v7172_v60, %v7290_v37 }
0x2dcf   :  { %v2611_v6 = vmul.f32 %v7172_v60, %v7283_v31  ;;  %v2612_v35 = vmul.f32 %v7172_v60, %v7296_v20  ;;  %v2638_v31 = vsel %vm246_vm0, %v7457_v41, %v7211_v18  ;;  %v2639_v60 = vsel %vm246_vm0, %v7211_v18, %v7463_v34 }
0x2dd0   :  { %v2668_v48 = vsel %vm246_vm0, %v7469_v3, %v7475_v15  ;;  %v2670_v41 = vsel %vm246_vm0, %v7243_v9, %v7481_v1  ;;  %v2700_v3 = vsel %vm246_vm0, %v7493_v2, %v7275_v62  ;;  %v2701_v15 = vsel %vm246_vm0, %v7275_v62, %v7499_v23 }
0x2dd1   :  { %v7814_v53 = vpop.permute.xlu1 %3441 }
0x2dd2   :  { %9740 = vst [vmem:[#allocation5_spill] sm:$0xff] %v7814_v53 }
0x2dd5   :  { %v7816_v29 = vpop.permute.xlu1 %3466 }
0x2dd6   :  { %9741 = vst [vmem:[#allocation8_spill] sm:$0xff] %v7816_v29 }
0x2dd9   :  { %v7818_v27 = vpop.permute.xlu1 %3468 }
0x2dda   :  { %9742 = vst [vmem:[#allocation9_spill] sm:$0xff] %v7818_v27  ;;  %v2470_v27 = vadd.f32 %v2466_v50, %v2420_v39 }
0x2ddd   :  { %v7830_v53 = vpop.permute.xlu1 %3472 }
0x2dde   :  { %9744 = vst [vmem:[#allocation95_spill] sm:$0xff] %v7830_v53  ;;  %v2517_v53 = vadd.f32 %v2513_v38, %v2469_v55 }
0x2de1   :  { %v7842_v7 = vpop.permute.xlu1 %3497 }
0x2df7   :  { %v7820_v58 = vpop.permute.xlu0 %3594 }
0x2df8   :  { %9743 = vst [vmem:[#allocation10_spill] sm:$0xff] %v7820_v58  ;;  %v2472_v58 = vadd.f32 %v2468_v14, %v2420_v39 }
0x2dfa   :  { %v2520_v50 = vadd.f32 %v2516_v16, %v2472_v58  ;;  %v7856_v58 = vpop.permute.xlu1 %3499 }
0x2e04   :  { %v7832_v29 = vpop.permute.xlu0 %3628 }
0x2e05   :  { %9745 = vst [vmem:[#allocation96_spill] sm:$0xff] %v7832_v29  ;;  %v2518_v29 = vadd.f32 %v2514_v36, %v2470_v27 }
0x2e09   :  { %v2559_v59 = vpop.permute.xlu0 %2558 }
0x2e0a   :  { %v2561_v39 = vmul.f32 %v2559_v59, %v7249_v63  ;;  %v2562_v45 = vmul.f32 %v2559_v59, %v7256_v28  ;;  %v2563_v14 = vmul.f32 %v2559_v59, %v7246_v25  ;;  %v2564_v4 = vmul.f32 %v2559_v59, %v7264_v26  ;;  %v7887_v59 = vpop.permute.xlu1 %3503 }
0x2e0c   :  { %v2565_v27 = vadd.f32 %v2561_v39, %v2517_v53  ;;  %v2566_v63 = vadd.f32 %v2562_v45, %v2518_v29  ;;  %v2567_v55 = vadd.f32 %v2563_v14, %v2519_v51  ;;  %v2568_v28 = vadd.f32 %v2564_v4, %v2520_v50 }
0x2e0e   :  { %v2613_v25 = vadd.f32 %v2609_v54, %v2565_v27  ;;  %v2614_v26 = vadd.f32 %v2610_v19, %v2566_v63  ;;  %v2615_v38 = vadd.f32 %v2611_v6, %v2567_v55  ;;  %v2616_v36 = vadd.f32 %v2612_v35, %v2568_v28  ;;  %v7909_v6 = vpop.permute.xlu1 %3528 }
0x2e10   :  { %v2644_v37 = vadd.f32 %v2637_v61, %v2613_v25  ;;  %v2645_v20 = vadd.f32 %v2638_v31, %v2614_v26  ;;  %v2646_v53 = vadd.f32 %v2639_v60, %v2615_v38  ;;  %v2647_v29 = vadd.f32 %v7463_v34, %v2616_v36  ;;  %v9746_v61 = vld [vmem:[#allocation63_spill] sm:$0xff]  ;;  %v9747_v31 = vld [vmem:[#allocation50_spill] sm:$0xff]  ;;  %v9748_v60 = vld [vmem:[#allocation37_spill] sm:$0xff] }
0x2e11   :  { %v2699_v34 = vsel %vm246_vm0, %v7487_v40, %v7493_v2  ;;  %v2731_v40 = vsel %vm246_vm0, %v7511_v12, %v7303_v46  ;;  %v2732_v2 = vsel %vm246_vm0, %v7303_v46, %v7517_v49 }
0x2e12   :  { %v2675_v16 = vadd.f32 %v2668_v48, %v2644_v37  ;;  %v2676_v51 = vadd.f32 %v2669_v11, %v2645_v20  ;;  %v2677_v18 = vadd.f32 %v2670_v41, %v2646_v53  ;;  %v2678_v50 = vadd.f32 %v7481_v1, %v2647_v29  ;;  %v7941_v37 = vpop.permute.xlu1 %3530  ;;  %v9750_v48 = vld [vmem:[#allocation61_spill] sm:$0xff]  ;;  %v9751_v41 = vld [vmem:[#allocation16_spill] sm:$0xff] }
0x2e13   :  { %v2730_v1 = vsel %vm246_vm0, %v7505_v47, %v7511_v12  ;;  %v2762_v47 = vsel %vm371_vm1, %v7529_v32, %v7315_v8  ;;  %v2763_v12 = vsel %vm371_vm1, %v7315_v8, %v7535_v21 }
0x2e14   :  { %v2706_v9 = vadd.f32 %v2699_v34, %v2675_v16  ;;  %v2707_v39 = vadd.f32 %v2700_v3, %v2676_v51  ;;  %v2708_v45 = vadd.f32 %v2701_v15, %v2677_v18  ;;  %v2709_v14 = vadd.f32 %v7499_v23, %v2678_v50  ;;  %v9753_v15 = vld [vmem:[#allocation13_spill] sm:$0xff] }
0x2e15   :  { %v2761_v23 = vsel %vm371_vm1, %v7523_v52, %v7529_v32  ;;  %v2793_v52 = vsel %vm371_vm1, %v7547_v56, %v7327_v30  ;;  %v2794_v32 = vsel %vm371_vm1, %v7327_v30, %v7553_v22 }
0x2e16   :  { %v2737_v62 = vadd.f32 %v2730_v1, %v2706_v9  ;;  %v2738_v4 = vadd.f32 %v2731_v40, %v2707_v39  ;;  %v2739_v54 = vadd.f32 %v2732_v2, %v2708_v45  ;;  %v2740_v19 = vadd.f32 %v7517_v49, %v2709_v14  ;;  %v9754_v9 = vld [vmem:[#allocation64_spill] sm:$0xff]  ;;  %v9755_v45 = vld [vmem:[#allocation33_spill] sm:$0xff]  ;;  %v9756_v1 = vld [vmem:[#allocation71_spill] sm:$0xff] }
0x2e17   :  { %v2792_v49 = vsel %vm371_vm1, %v7541_v17, %v7547_v56  ;;  %v2824_v17 = vsel %vm371_vm1, %v7565_v13, %v7339_v57  ;;  %v2825_v56 = vsel %vm371_vm1, %v7339_v57, %v7571_v43  ;;  %v2916_v39 = vsel %vm496_vm2, %v9754_v9, %v9753_v15 }
0x2e18   :  { %v2768_v46 = vadd.f32 %v2761_v23, %v2737_v62  ;;  %v2769_v35 = vadd.f32 %v2762_v47, %v2738_v4  ;;  %v2770_v27 = vadd.f32 %v2763_v12, %v2739_v54  ;;  %v2771_v63 = vadd.f32 %v7535_v21, %v2740_v19  ;;  %v9757_v19 = vld [vmem:[#allocation39_spill] sm:$0xff]  ;;  %v9758_v23 = vld [vmem:[#allocation22_spill] sm:$0xff]  ;;  %v9759_v12 = vld [vmem:[#allocation48_spill] sm:$0xff] }
0x2e19   :  { %v2823_v21 = vsel %vm371_vm1, %v7559_v24, %v7565_v13  ;;  %v2855_v24 = vsel %vm371_vm1, %v7583_v10, %v9747_v31  ;;  %v2856_v13 = vsel %vm371_vm1, %v9747_v31, %v9748_v60  ;;  %v2917_v14 = vsel %vm496_vm2, %v9753_v15, %v9755_v45  ;;  %v9766_v31 = vld [vmem:[#allocation73_spill] sm:$0xff] }
0x2e1a   :  { %v2799_v8 = vadd.f32 %v2792_v49, %v2768_v46  ;;  %v2800_v55 = vadd.f32 %v2793_v52, %v2769_v35  ;;  %v2801_v28 = vadd.f32 %v2794_v32, %v2770_v27  ;;  %v2802_v25 = vadd.f32 %v7553_v22, %v2771_v63  ;;  %v9760_v35 = vld [vmem:[#allocation72_spill] sm:$0xff]  ;;  %v7973_v63 = vpop.permute.xlu1 %3534 }
0x2e1b   :  { %v2854_v22 = vsel %vm371_vm1, %v9746_v61, %v7583_v10  ;;  %v9752_v10 = vld [vmem:[#allocation36_spill] sm:$0xff]  ;;  %v2918_v40 = vsel %vm496_vm2, %v9755_v45, %v9756_v1  ;;  %v2947_v47 = vsel %vm496_vm2, %v9758_v23, %v9757_v19  ;;  %v2948_v46 = vsel %vm496_vm2, %v9757_v19, %v9759_v12  ;;  %v9773_v45 = vld [vmem:[#allocation43_spill] sm:$0xff] }
0x2e1c   :  { %v2830_v26 = vadd.f32 %v2823_v21, %v2799_v8  ;;  %v2831_v38 = vadd.f32 %v2824_v17, %v2800_v55  ;;  %v2832_v30 = vadd.f32 %v2825_v56, %v2801_v28  ;;  %v2833_v36 = vadd.f32 %v7571_v43, %v2802_v25  ;;  %v9749_v43 = vld [vmem:[#allocation66_spill] sm:$0xff]  ;;  %v9761_v55 = vld [vmem:[#allocation41_spill] sm:$0xff]  ;;  %v9762_v28 = vld [vmem:[#allocation23_spill] sm:$0xff] }
0x2e1d   :  { %v2885_v11 = vsel %vm496_vm2, %v9750_v48, %v9749_v43  ;;  %v2886_v16 = vsel %vm496_vm2, %v9749_v43, %v9751_v41  ;;  %v2887_v51 = vsel %vm496_vm2, %v9751_v41, %v9752_v10  ;;  %v2949_v27 = vsel %vm496_vm2, %v9759_v12, %v9760_v35  ;;  %v9763_v21 = vld [vmem:[#allocation53_spill] sm:$0xff]  ;;  %v9764_v56 = vld [vmem:[#allocation24_spill] sm:$0xff]  ;;  %v9769_v41 = vld [vmem:[#allocation14_spill] sm:$0xff] }
0x2e1e   :  { %v2861_v57 = vadd.f32 %v2854_v22, %v2830_v26  ;;  %v2862_v20 = vadd.f32 %v2855_v24, %v2831_v38  ;;  %v2863_v53 = vadd.f32 %v2856_v13, %v2832_v30  ;;  %v2864_v29 = vadd.f32 %v9748_v60, %v2833_v36  ;;  %v9765_v22 = vld [vmem:[#allocation40_spill] sm:$0xff]  ;;  %v9767_v60 = vld [vmem:[#allocation17_spill] sm:$0xff]  ;;  %v9777_v12 = vld [vmem:[#allocation26_spill] sm:$0xff] }
0x2e1f   :  { %v2978_v25 = vsel %vm496_vm2, %v9762_v28, %v9761_v55  ;;  %v2979_v17 = vsel %vm496_vm2, %v9761_v55, %v9763_v21  ;;  %v2980_v26 = vsel %vm496_vm2, %v9763_v21, %v9764_v56  ;;  %v3009_v24 = vsel %vm621_vm3, %v9766_v31, %v9765_v22 }
0x2e20   :  { %v2892_v18 = vadd.f32 %v2885_v11, %v2861_v57  ;;  %v2893_v50 = vadd.f32 %v2886_v16, %v2862_v20  ;;  %v2894_v34 = vadd.f32 %v2887_v51, %v2863_v53  ;;  %v2895_v3 = vadd.f32 %v9752_v10, %v2864_v29  ;;  %v9768_v57 = vld [vmem:[#allocation76_spill] sm:$0xff]  ;;  %v7995_v53 = vpop.permute.xlu1 %3559  ;;  %v9770_v16 = vld [vmem:[#allocation77_spill] sm:$0xff] }
0x2e21   :  { %v3010_v13 = vsel %vm621_vm3, %v9765_v22, %v9767_v60  ;;  %v3011_v20 = vsel %vm621_vm3, %v9767_v60, %v9768_v57  ;;  %v3040_v10 = vsel %vm621_vm3, %v9770_v16, %v9769_v41  ;;  %v9771_v51 = vld [vmem:[#allocation32_spill] sm:$0xff] }
0x2e22   :  { %v2923_v2 = vadd.f32 %v2916_v39, %v2892_v18  ;;  %v2924_v62 = vadd.f32 %v2917_v14, %v2893_v50  ;;  %v2925_v4 = vadd.f32 %v2918_v40, %v2894_v34  ;;  %v2926_v54 = vadd.f32 %v9756_v1, %v2895_v3  ;;  %v9772_v50 = vld [vmem:[#allocation81_spill] sm:$0xff]  ;;  %v9774_v14 = vld [vmem:[#allocation78_spill] sm:$0xff]  ;;  %v9775_v40 = vld [vmem:[#allocation51_spill] sm:$0xff] }
0x2e23   :  { %v3041_v18 = vsel %vm621_vm3, %v9769_v41, %v9771_v51  ;;  %v3042_v34 = vsel %vm621_vm3, %v9771_v51, %v9772_v50  ;;  %v3071_v1 = vsel %vm621_vm3, %v9774_v14, %v9773_v45  ;;  %v3195_v51 = vsel %vm746_vm4, %v7734_v42, %v7736_v5  ;;  %v9792_v42 = vld [vmem:[#allocation60_spill] sm:$0xff] }
0x2e24   :  { %v2954_v49 = vadd.f32 %v2947_v47, %v2923_v2  ;;  %v2955_v52 = vadd.f32 %v2948_v46, %v2924_v62  ;;  %v2956_v32 = vadd.f32 %v2949_v27, %v2925_v4  ;;  %v2957_v8 = vadd.f32 %v9760_v35, %v2926_v54  ;;  %v9776_v62 = vld [vmem:[#allocation25_spill] sm:$0xff]  ;;  %v9778_v46 = vld [vmem:[#allocation30_spill] sm:$0xff] }
0x2e25   :  { %v3072_v2 = vsel %vm621_vm3, %v9773_v45, %v9775_v40  ;;  %v3073_v4 = vsel %vm621_vm3, %v9775_v40, %v9776_v62  ;;  %v3102_v35 = vsel %vm621_vm3, %v9778_v46, %v9777_v12  ;;  %v9779_v27 = vld [vmem:[#allocation57_spill] sm:$0xff] }
0x2e26   :  { %v2985_v38 = vadd.f32 %v2978_v25, %v2954_v49  ;;  %v2986_v30 = vadd.f32 %v2979_v17, %v2955_v52  ;;  %v2987_v36 = vadd.f32 %v2980_v26, %v2956_v32  ;;  %v2988_v61 = vadd.f32 %v9764_v56, %v2957_v8  ;;  %v9780_v52 = vld [vmem:[#allocation45_spill] sm:$0xff]  ;;  %v8027_v8 = vpop.permute.xlu1 %3561  ;;  %v9781_v17 = vld [vmem:[#allocation42_spill] sm:$0xff]  ;;  %v9782_v56 = vld [vmem:[#allocation79_spill] sm:$0xff] }
0x2e27   :  { %v3103_v49 = vsel %vm621_vm3, %v9777_v12, %v9779_v27  ;;  %v3104_v32 = vsel %vm621_vm3, %v9779_v27, %v9780_v52  ;;  %v3133_v26 = vsel %vm746_vm4, %v9782_v56, %v9781_v17  ;;  %v9794_v12 = vld [vmem:[#allocation19_spill] sm:$0xff] }
0x2e28   :  { %v3016_v29 = vadd.f32 %v3009_v24, %v2985_v38  ;;  %v3017_v43 = vadd.f32 %v3010_v13, %v2986_v30  ;;  %v3018_v48 = vadd.f32 %v3011_v20, %v2987_v36  ;;  %v3019_v11 = vadd.f32 %v9768_v57, %v2988_v61  ;;  %v9783_v38 = vld [vmem:[#allocation18_spill] sm:$0xff]  ;;  %v9786_v57 = vld [vmem:[#allocation44_spill] sm:$0xff] }
0x2e29   :  { %v3134_v30 = vsel %vm746_vm4, %v9781_v17, %v9783_v38  ;;  %v9784_v36 = vld [vmem:[#allocation38_spill] sm:$0xff]  ;;  %v3258_v46 = vsel %vm871_vm5, %v7765_v33, %v9794_v12 }
0x2e2a   :  { %v3047_v3 = vadd.f32 %v3040_v10, %v3016_v29  ;;  %v3048_v15 = vadd.f32 %v3041_v18, %v3017_v43  ;;  %v3049_v9 = vadd.f32 %v3042_v34, %v3018_v48  ;;  %v3050_v39 = vadd.f32 %v9772_v50, %v3019_v11  ;;  %v9785_v13 = vld [vmem:[#allocation34_spill] sm:$0xff]  ;;  %v9787_v29 = vld [vmem:[#allocation12_spill] sm:$0xff]  ;;  %v9789_v34 = vld [vmem:[#allocation55_spill] sm:$0xff] }
0x2e2b   :  { %v3135_v61 = vsel %vm746_vm4, %v9783_v38, %v9784_v36  ;;  %v3164_v20 = vsel %vm746_vm4, %v9786_v57, %v9785_v13  ;;  %v3165_v43 = vsel %vm746_vm4, %v9785_v13, %v9787_v29  ;;  %v3166_v48 = vsel %vm746_vm4, %v9787_v29, %v7732_v44  ;;  %v9788_v18 = vld [vmem:[#allocation54_spill] sm:$0xff]  ;;  %v9803_v57 = vld [vmem:[#allocation89_spill] sm:$0xff] }
0x2e2c   :  { %v3078_v54 = vadd.f32 %v3071_v1, %v3047_v3  ;;  %v3079_v19 = vadd.f32 %v3072_v2, %v3048_v15  ;;  %v3080_v23 = vadd.f32 %v3073_v4, %v3049_v9  ;;  %v3081_v47 = vadd.f32 %v9776_v62, %v3050_v39  ;;  %v8059_v15 = vpop.permute.xlu1 %3565  ;;  %v9791_v1 = vld [vmem:[#allocation15_spill] sm:$0xff] }
0x2e2d   :  { %v3196_v50 = vsel %vm746_vm4, %v7736_v5, %v9788_v18  ;;  %v3197_v3 = vsel %vm746_vm4, %v9788_v18, %v9789_v34  ;;  %v9793_v5 = vld [vmem:[#allocation82_spill] sm:$0xff] }
0x2e2e   :  { %v3109_v55 = vadd.f32 %v3102_v35, %v3078_v54  ;;  %v3110_v28 = vadd.f32 %v3103_v49, %v3079_v19  ;;  %v3111_v25 = vadd.f32 %v3104_v32, %v3080_v23  ;;  %v3112_v21 = vadd.f32 %v9780_v52, %v3081_v47  ;;  %v9795_v35 = vld [vmem:[#allocation80_spill] sm:$0xff] }
0x2e2f   :  { %v3228_v62 = vsel %vm746_vm4, %v9792_v42, %v9793_v5  ;;  %v3257_v47 = vsel %vm871_vm5, %v7758_v0, %v7765_v33  ;;  %v3259_v27 = vsel %vm871_vm5, %v9794_v12, %v9795_v35  ;;  %v9798_v0 = vld [vmem:[#allocation35_spill] sm:$0xff]  ;;  %v9799_v33 = vld [vmem:[#allocation52_spill] sm:$0xff]  ;;  %v9813_v12 = vld [vmem:[#allocation62_spill] sm:$0xff] }
0x2e30   :  { %v3140_v22 = vadd.f32 %v3133_v26, %v3109_v55  ;;  %v3141_v31 = vadd.f32 %v3134_v30, %v3110_v28  ;;  %v3142_v24 = vadd.f32 %v3135_v61, %v3111_v25  ;;  %v3143_v60 = vadd.f32 %v9784_v36, %v3112_v21  ;;  %v8081_v49 = vpop.permute.xlu1 %3590  ;;  %v9796_v25 = vld [vmem:[#allocation86_spill] sm:$0xff]  ;;  %v9797_v21 = vld [vmem:[#allocation87_spill] sm:$0xff] }
0x2e31   :  { %v3288_v17 = vsel %vm871_vm5, %v9797_v21, %v9796_v25  ;;  %v3289_v56 = vsel %vm871_vm5, %v9796_v25, %v9798_v0  ;;  %v3290_v26 = vsel %vm871_vm5, %v9798_v0, %v9799_v33  ;;  %v9817_v0 = vld [vmem:[#allocation69_spill] sm:$0xff] }
0x2e32   :  { %v3171_v11 = vadd.f32 %v3164_v20, %v3140_v22  ;;  %v3172_v41 = vadd.f32 %v3165_v43, %v3141_v31  ;;  %v3173_v16 = vadd.f32 %v3166_v48, %v3142_v24  ;;  %v3174_v10 = vadd.f32 %v7732_v44, %v3143_v60  ;;  %v9790_v44 = vld [vmem:[#allocation46_spill] sm:$0xff]  ;;  %v9801_v31 = vld [vmem:[#allocation85_spill] sm:$0xff] }
0x2e33   :  { %v3226_v40 = vsel %vm746_vm4, %v9791_v1, %v9790_v44  ;;  %v3227_v2 = vsel %vm746_vm4, %v9790_v44, %v9792_v42  ;;  %v9800_v22 = vld [vmem:[#allocation90_spill] sm:$0xff]  ;;  %v9808_v44 = vld [vmem:[#allocation59_spill] sm:$0xff]  ;;  %v9809_v1 = vld [vmem:[#allocation92_spill] sm:$0xff] }
0x2e34   :  { %v3202_v9 = vadd.f32 %v3195_v51, %v3171_v11  ;;  %v3203_v39 = vadd.f32 %v3196_v50, %v3172_v41  ;;  %v3204_v45 = vadd.f32 %v3197_v3, %v3173_v16  ;;  %v3205_v14 = vadd.f32 %v9789_v34, %v3174_v10  ;;  %v9802_v60 = vld [vmem:[#allocation58_spill] sm:$0xff]  ;;  %v9804_v41 = vld [vmem:[#allocation88_spill] sm:$0xff]  ;;  %v9807_v50 = vld [vmem:[#allocation93_spill] sm:$0xff]  ;;  %v3593_v3 = vpop.permute.xlu1 %3592 }
0x2e35   :  { %v3319_v24 = vsel %vm871_vm5, %v9801_v31, %v9800_v22  ;;  %v3320_v13 = vsel %vm871_vm5, %v9800_v22, %v9802_v60  ;;  %v3321_v20 = vsel %vm871_vm5, %v9802_v60, %v9803_v57  ;;  %v9805_v16 = vld [vmem:[#allocation56_spill] sm:$0xff]  ;;  %v9810_v42 = vld [vmem:[#allocation21_spill] sm:$0xff] }
0x2e36   :  { %v3233_v4 = vadd.f32 %v3226_v40, %v3202_v9  ;;  %v3234_v54 = vadd.f32 %v3227_v2, %v3203_v39  ;;  %v3235_v19 = vadd.f32 %v3228_v62, %v3204_v45  ;;  %v3236_v23 = vadd.f32 %v9793_v5, %v3205_v14  ;;  %v9806_v51 = vld [vmem:[#allocation20_spill] sm:$0xff]  ;;  %v9811_v5 = vld [vmem:[#allocation91_spill] sm:$0xff]  ;;  %v9820_v60 = vld [vmem:[#allocation9_spill] sm:$0xff] }
0x2e37   :  { %v3350_v10 = vsel %vm871_vm5, %v9805_v16, %v9804_v41  ;;  %v3351_v18 = vsel %vm871_vm5, %v9804_v41, %v9806_v51  ;;  %v3352_v34 = vsel %vm871_vm5, %v9806_v51, %v9807_v50  ;;  %v3381_v40 = vsel %vm996_vm6, %v9809_v1, %v9808_v44 }
0x2e38   :  { %v3264_v52 = vadd.f32 %v3257_v47, %v3233_v4  ;;  %v3265_v32 = vadd.f32 %v3258_v46, %v3234_v54  ;;  %v3266_v55 = vadd.f32 %v3259_v27, %v3235_v19  ;;  %v3267_v28 = vadd.f32 %v9795_v35, %v3236_v23  ;;  %v9812_v47 = vld [vmem:[#allocation94_spill] sm:$0xff]  ;;  %v9814_v35 = vld [vmem:[#allocation68_spill] sm:$0xff] }
0x2e39   :  { %v3382_v2 = vsel %vm996_vm6, %v9808_v44, %v9810_v42  ;;  %v3383_v62 = vsel %vm996_vm6, %v9810_v42, %v9811_v5  ;;  %v3412_v46 = vsel %vm996_vm6, %v9813_v12, %v9812_v47  ;;  %v3413_v27 = vsel %vm996_vm6, %v9812_v47, %v9814_v35  ;;  %v9827_v12 = vld [vmem:[#allocation10_spill] sm:$0xff] }
0x2e3a   :  { %v3295_v38 = vadd.f32 %v3288_v17, %v3264_v52  ;;  %v3296_v30 = vadd.f32 %v3289_v56, %v3265_v32  ;;  %v3297_v36 = vadd.f32 %v3290_v26, %v3266_v55  ;;  %v3298_v61 = vadd.f32 %v9799_v33, %v3267_v28  ;;  %v9815_v52 = vld [vmem:[#allocation65_spill] sm:$0xff]  ;;  %v9816_v17 = vld [vmem:[#allocation84_spill] sm:$0xff]  ;;  %v9818_v33 = vld [vmem:[#allocation67_spill] sm:$0xff] }
0x2e3b   :  { %v3414_v32 = vsel %vm996_vm6, %v9814_v35, %v9815_v52  ;;  %v3443_v56 = vsel %vm996_vm6, %v9817_v0, %v9816_v17  ;;  %v3444_v26 = vsel %vm996_vm6, %v9816_v17, %v9818_v33  ;;  %v3505_v51 = vsel %vm1121_vm7, %v7842_v7, %v7856_v58  ;;  %v9825_v7 = vld [vmem:[#allocation75_spill] sm:$0xff]  ;;  %v9829_v0 = vld [vmem:[#allocation28_spill] sm:$0xff] }
0x2e3c   :  { %v3326_v29 = vadd.f32 %v3319_v24, %v3295_v38  ;;  %v3327_v43 = vadd.f32 %v3320_v13, %v3296_v30  ;;  %v3328_v48 = vadd.f32 %v3321_v20, %v3297_v36  ;;  %v3329_v11 = vadd.f32 %v9803_v57, %v3298_v61  ;;  %v9819_v38 = vld [vmem:[#allocation5_spill] sm:$0xff]  ;;  %v3597_v36 = vpop.permute.xlu1 %3596  ;;  %v9821_v13 = vld [vmem:[#allocation8_spill] sm:$0xff]  ;;  %v9822_v20 = vld [vmem:[#allocation70_spill] sm:$0xff] }
0x2e3d   :  { %v3445_v30 = vsel %vm996_vm6, %v9818_v33, %v9819_v38  ;;  %v3474_v57 = vsel %vm996_vm6, %v9821_v13, %v9820_v60  ;;  %v3536_v1 = vsel %vm1121_vm7, %v7909_v6, %v7941_v37 }
0x2e3e   :  { %v3357_v9 = vadd.f32 %v3350_v10, %v3326_v29  ;;  %v3358_v39 = vadd.f32 %v3351_v18, %v3327_v43  ;;  %v3359_v45 = vadd.f32 %v3352_v34, %v3328_v48  ;;  %v3360_v14 = vadd.f32 %v9807_v50, %v3329_v11  ;;  %v9823_v43 = vld [vmem:[#allocation95_spill] sm:$0xff]  ;;  %v9824_v18 = vld [vmem:[#allocation74_spill] sm:$0xff] }
0x2e3f   :  { %v3475_v29 = vsel %vm996_vm6, %v9820_v60, %v9822_v20  ;;  %v3476_v48 = vsel %vm996_vm6, %v9822_v20, %v9823_v43  ;;  %v3506_v50 = vsel %vm1121_vm7, %v7856_v58, %v9824_v18  ;;  %v3507_v34 = vsel %vm1121_vm7, %v9824_v18, %v7887_v59 }
0x2e40   :  { %v3388_v4 = vadd.f32 %v3381_v40, %v3357_v9  ;;  %v3389_v54 = vadd.f32 %v3382_v2, %v3358_v39  ;;  %v3390_v19 = vadd.f32 %v3383_v62, %v3359_v45  ;;  %v3391_v23 = vadd.f32 %v9811_v5, %v3360_v14  ;;  %v8164_v44 = vpop.permute.xlu1 %3649 }
0x2e41   :  { %v3537_v40 = vsel %vm1121_vm7, %v7941_v37, %v9825_v7  ;;  %v3538_v58 = vsel %vm1121_vm7, %v9825_v7, %v7973_v63 }
0x2e42   :  { %v3419_v55 = vadd.f32 %v3412_v46, %v3388_v4  ;;  %v3420_v28 = vadd.f32 %v3413_v27, %v3389_v54  ;;  %v3421_v25 = vadd.f32 %v3414_v32, %v3390_v19  ;;  %v3422_v21 = vadd.f32 %v9815_v52, %v3391_v23  ;;  %v9826_v4 = vld [vmem:[#allocation83_spill] sm:$0xff] }
0x2e43   :  { %v3568_v6 = vsel %vm1121_vm7, %v8027_v8, %v9826_v4  ;;  %v3569_v37 = vsel %vm1121_vm7, %v9826_v4, %v8059_v15  ;;  %v3599_v46 = vsel %vm1121_vm7, %v3593_v3, %v9827_v12 }
0x2e44   :  { %v3450_v61 = vadd.f32 %v3443_v56, %v3419_v55  ;;  %v3451_v22 = vadd.f32 %v3444_v26, %v3420_v28  ;;  %v3452_v31 = vadd.f32 %v3445_v30, %v3421_v25  ;;  %v3453_v24 = vadd.f32 %v9819_v38, %v3422_v21  ;;  %v8192_v52 = vpop.permute.xlu1 %3677  ;;  %v9828_v55 = vld [vmem:[#allocation27_spill] sm:$0xff]  ;;  %v9830_v26 = vld [vmem:[#allocation29_spill] sm:$0xff] }
0x2e46   :  { %v3481_v11 = vadd.f32 %v3474_v57, %v3450_v61  ;;  %v3482_v41 = vadd.f32 %v3475_v29, %v3451_v22  ;;  %v3483_v16 = vadd.f32 %v3476_v48, %v3452_v31  ;;  %v3484_v10 = vadd.f32 %v9823_v43, %v3453_v24  ;;  %v9832_v22 = vld [vmem:[#allocation3_spill] sm:$0xff] }
0x2e47   :  { %v9834_v24 = vld [vmem:[#allocation11_spill] sm:$0xff] }
0x2e48   :  { %v3512_v9 = vadd.f32 %v3505_v51, %v3481_v11  ;;  %v3513_v39 = vadd.f32 %v3506_v50, %v3482_v41  ;;  %v3514_v45 = vadd.f32 %v3507_v34, %v3483_v16  ;;  %v3515_v14 = vadd.f32 %v7887_v59, %v3484_v10  ;;  %v8198_v17 = vpop.permute.xlu1 %3733  ;;  %v9836_v16 = vld [vmem:[#allocation49_spill] sm:$0xff]  ;;  %v8226_v51 = vpop.permute.xlu0 %3705  ;;  %v9838_v34 = vld [vmem:[#allocation4_spill] sm:$0xff] }
0x2e49   :  { %v3567_v59 = vsel %vm1121_vm7, %v7995_v53, %v8027_v8  ;;  %v3600_v53 = vsel %vm1121_vm7, %v9827_v12, %v3597_v36  ;;  %v9837_v10 = vmov 6   ;;  %v9841_v12 = vmov 8  }
0x2e4a   :  { %v3543_v42 = vadd.f32 %v3536_v1, %v3512_v9  ;;  %v3544_v2 = vadd.f32 %v3537_v40, %v3513_v39  ;;  %v3545_v5 = vadd.f32 %v3538_v58, %v3514_v45  ;;  %v3546_v62 = vadd.f32 %v7973_v63, %v3515_v14 }
0x2e4b   :  { %v3598_v63 = vsel %vm1121_vm7, %v8081_v49, %v3593_v3 }
0x2e4c   :  { %v3574_v54 = vadd.f32 %v3567_v59, %v3543_v42  ;;  %v3575_v19 = vadd.f32 %v3568_v6, %v3544_v2  ;;  %v3576_v23 = vadd.f32 %v3569_v37, %v3545_v5  ;;  %v3577_v47 = vadd.f32 %v8059_v15, %v3546_v62  ;;  %v3746_v57 = vpop.permute.xlu1 %3745  ;;  %v9840_v62 = vld [vmem:[#allocation6_spill] sm:$0xff] }
0x2e4d   :  { %v9839_v2 = vmov 7  }
0x2e4e   :  { %v3605_v35 = vadd.f32 %v3598_v63, %v3574_v54  ;;  %v3606_v8 = vadd.f32 %v3599_v46, %v3575_v19  ;;  %v3608_v27 = vadd.f32 %v3597_v36, %v3577_v47  ;;  %v3607_v32 = vadd.f32 %v3600_v53, %v3576_v23  ;;  %v9831_v36 = vld [vmem:[#allocation31_spill] sm:$0xff] }
0x2e4f   :  { %v9842_v53 = vld [vmem:[#allocation7_spill] sm:$0xff] }
0x2e50   :  { %vm3609_vm8 = vcmp.ge.f32.partialorder %v3605_v35, 0.0  ;;  %vm3610_vm9 = vcmp.ge.f32.partialorder %v3606_v8, 0.0  ;;  %v3613_v28 = vmul.f32 %v3605_v35, %v9828_v55  ;;  %v3614_v15 = vmul.f32 %v3606_v8, %v9828_v55 }
0x2e51   :  { %v3616_v49 = vmul.f32 %v3608_v27, %v9828_v55  ;;  %vm3612_vm10 = vcmp.ge.f32.partialorder %v3608_v27, 0.0  ;;  %v3615_v3 = vmul.f32 %v3607_v32, %v9828_v55  ;;  %vm3611_vm11 = vcmp.ge.f32.partialorder %v3607_v32, 0.0 }
0x2e52   :  { %v3617_v25 = vsel %vm3609_vm8, %v3605_v35, %v3613_v28  ;;  %v3618_v21 = vsel %vm3610_vm9, %v3606_v8, %v3614_v15 }
0x2e53   :  { %v3622_v56 = vmul.f32 %v3618_v21, %v9829_v0  ;;  %v3620_v33 = vsel %vm3612_vm10, %v3608_v27, %v3616_v49  ;;  %v3621_v38 = vmul.f32 %v3617_v25, %v9830_v26  ;;  %v3619_v30 = vsel %vm3611_vm11, %v3607_v32, %v3615_v3 }
0x2e54   :  { %v3624_v61 = vmul.f32 %v3620_v33, %v9831_v36  ;;  %v3623_v60 = vmul.f32 %v3619_v30, %v9834_v24  ;;  %v9843_v25 = vmov 9   ;;  %v9844_v30 = vmov 10  }
0x2e55   :  { %v8204_v31 = vrot.slane %v3622_v56, %v9832_v22  ;;  %v8208_v13 = vrot.slane %v3621_v38, %v9832_v22  ;;  %v8233_v9 = vrot.slane %v3621_v38, %v9838_v34  ;;  %v8241_v7 = vrot.slane %v3622_v56, %v9838_v34 }
0x2e56   :  { %v8211_v20 = vrot.slane %v3624_v61, %v9832_v22  ;;  %v8215_v43 = vrot.slane %v3623_v60, %v9832_v22  ;;  %v8236_v39 = vrot.slane %v3623_v60, %v9838_v34  ;;  %v8247_v58 = vrot.slane %v3624_v61, %v9838_v34 }
0x2e57   :  { %9833 = vst [vmem:[#allocation63_spill] sm:$0xff] %v8204_v31  ;;  %9835 = vst [vmem:[#allocation50_spill] sm:$0xff] %v8208_v13  ;;  %v3749_v29 = vmul.f32 %v3746_v57, %v8204_v31  ;;  %v3748_v48 = vmul.f32 %v3746_v57, %v8208_v13  ;;  %v8257_v59 = vrot.slane %v3621_v38, %v9840_v62 }
0x2e58   :  { %v3751_v11 = vmul.f32 %v3746_v57, %v8211_v20  ;;  %v3750_v41 = vmul.f32 %v3746_v57, %v8215_v43  ;;  %v8260_v4 = vrot.slane %v3623_v60, %v9840_v62  ;;  %v8265_v19 = vrot.slane %v3622_v56, %v9840_v62 }
0x2e59   :  { %3758 = vrot.lane.b32.xlu1 %v3749_v29, %s4992_s24  ;;  %3756 = vrot.lane.b32.xlu0 %v3748_v48, %s4992_s24  ;;  %v8271_v47 = vrot.slane %v3624_v61, %v9840_v62  ;;  %v8281_v35 = vrot.slane %v3623_v60, %v9842_v53  ;;  %v8284_v8 = vrot.slane %v3621_v38, %v9842_v53  ;;  %v9845_v29 = vmov 11  }
0x2e5a   :  { %v8289_v28 = vrot.slane %v3622_v56, %v9842_v53  ;;  %v8295_v49 = vrot.slane %v3624_v61, %v9842_v53  ;;  %v9851_v62 = vmov 27  }
0x2e5d   :  { %3762 = vrot.lane.b32.xlu1 %v3751_v11, %s4992_s24  ;;  %3760 = vrot.lane.b32.xlu0 %v3750_v41, %s4992_s24 }
0x2e61   :  { %3776 = vperm.xlu0 %4939, %v9836_v16  }
0x2e65   :  { %4940 = vset.pattern.permute.xlu0 %v9837_v10 }
0x2ecb   :  { %v8228_v18 = vpop.permute.xlu0 %3756 }
0x2ecf   :  { %v8230_v50 = vpop.permute.xlu0 %3760 }
0x2edc   :  { %v3777_v45 = vpop.permute.xlu0 %3776 }
0x2edd   :  { %v3781_v14 = vmul.f32 %v3777_v45, %v8236_v39  ;;  %v3779_v1 = vmul.f32 %v3777_v45, %v8233_v9  ;;  %v3780_v40 = vmul.f32 %v3777_v45, %v8241_v7  ;;  %v3782_v42 = vmul.f32 %v3777_v45, %v8247_v58 }
0x2edf   :  { %3791 = vrot.lane.b32.xlu0 %v3781_v14, %s4992_s24  ;;  %3787 = vrot.lane.b32.xlu1 %v3779_v1, %s4992_s24  ;;  %v9846_v14 = vmov 12   ;;  %v9847_v1 = vmov 15  }
0x2ee3   :  { %3807 = vperm.xlu0 %4940, %v9836_v16   ;;  %3789 = vrot.lane.b32.xlu1 %v3780_v40, %s4992_s24  ;;  %v9848_v40 = vmov 18  }
0x2ee7   :  { %3793 = vrot.lane.b32.xlu1 %v3782_v42, %s4992_s24  ;;  %4941 = vset.pattern.permute.xlu0 %v9839_v2  ;;  %v9849_v42 = vmov 21   ;;  %v9850_v2 = vmov 24  }
0x2f51   :  { %v8254_v5 = vpop.permute.xlu0 %3791 }
0x2f5e   :  { %v3808_v6 = vpop.permute.xlu0 %3807 }
0x2f5f   :  { %v3812_v37 = vmul.f32 %v3808_v6, %v8260_v4  ;;  %v3810_v54 = vmul.f32 %v3808_v6, %v8257_v59  ;;  %v3811_v23 = vmul.f32 %v3808_v6, %v8265_v19  ;;  %v3813_v63 = vmul.f32 %v3808_v6, %v8271_v47 }
0x2f60   :  { %v9852_v6 = vmov 30  }
0x2f61   :  { %3822 = vrot.lane.b32.xlu0 %v3812_v37, %s4992_s24  ;;  %3818 = vrot.lane.b32.xlu1 %v3810_v54, %s4992_s24  ;;  %v9853_v37 = vmov 33   ;;  %v9854_v54 = vmov 35  }
0x2f65   :  { %3838 = vperm.xlu0 %4941, %v9836_v16   ;;  %3820 = vrot.lane.b32.xlu1 %v3811_v23, %s4992_s24 }
0x2f69   :  { %3824 = vrot.lane.b32.xlu1 %v3813_v63, %s4992_s24  ;;  %4942 = vset.pattern.permute.xlu0 %v9841_v12 }
0x2fd3   :  { %v8278_v46 = vpop.permute.xlu0 %3822 }
0x2fe0   :  { %v3839_v27 = vpop.permute.xlu0 %3838 }
0x2fe1   :  { %v3843_v32 = vmul.f32 %v3839_v27, %v8281_v35  ;;  %v3841_v55 = vmul.f32 %v3839_v27, %v8284_v8  ;;  %v3842_v15 = vmul.f32 %v3839_v27, %v8289_v28  ;;  %v3844_v3 = vmul.f32 %v3839_v27, %v8295_v49 }
0x2fe3   :  { %3853 = vrot.lane.b32.xlu0 %v3843_v32, %s4992_s24  ;;  %3849 = vrot.lane.b32.xlu1 %v3841_v55, %s4992_s24 }
0x2fe7   :  { %3869 = vperm.xlu0 %4942, %v9836_v16   ;;  %3851 = vrot.lane.b32.xlu1 %v3842_v15, %s4992_s24 }
0x2feb   :  { %3855 = vrot.lane.b32.xlu1 %v3844_v3, %s4992_s24  ;;  %4943 = vset.pattern.permute.xlu0 %v9843_v25  ;;  %v9855_v3 = vmov 14   ;;  %v8369_v25 = vpop.permute.xlu1 %3758 }
0x3055   :  { %v8302_v21 = vpop.permute.xlu0 %3853 }
0x3062   :  { %v3870_v0 = vpop.permute.xlu0 %3869 }
0x3063   :  { %v3874_v56 = vmul.f32 %v3870_v0, %v8215_v43  ;;  %v3872_v33 = vmul.f32 %v3870_v0, %v8208_v13  ;;  %v3873_v26 = vmul.f32 %v3870_v0, %v8204_v31  ;;  %v3875_v38 = vmul.f32 %v3870_v0, %v8211_v20 }
0x3064   :  { %v9856_v0 = vmov 16  }
0x3065   :  { %3884 = vrot.lane.b32.xlu0 %v3874_v56, %s4993_s25  ;;  %3880 = vrot.lane.b32.xlu1 %v3872_v33, %s4993_s25  ;;  %v8373_v56 = vpop.permute.xlu1 %3762  ;;  %v9857_v33 = vmov 17  }
0x3069   :  { %3900 = vperm.xlu0 %4943, %v9836_v16   ;;  %3882 = vrot.lane.b32.xlu1 %v3873_v26, %s4993_s25  ;;  %v8377_v26 = vpop.permute.xlu1 %3787 }
0x306d   :  { %3886 = vrot.lane.b32.xlu1 %v3875_v38, %s4993_s25  ;;  %4944 = vset.pattern.permute.xlu0 %v9844_v30  ;;  %v9858_v38 = vmov 19   ;;  %v8381_v30 = vpop.permute.xlu1 %3789 }
0x30d7   :  { %v8314_v36 = vpop.permute.xlu0 %3884 }
0x30e4   :  { %v3901_v61 = vpop.permute.xlu0 %3900 }
0x30e5   :  { %v3905_v22 = vmul.f32 %v3901_v61, %v8236_v39  ;;  %v3903_v24 = vmul.f32 %v3901_v61, %v8233_v9  ;;  %v3904_v60 = vmul.f32 %v3901_v61, %v8241_v7  ;;  %v3906_v57 = vmul.f32 %v3901_v61, %v8247_v58 }
0x30e6   :  { %v9859_v61 = vmov 20  }
0x30e7   :  { %3915 = vrot.lane.b32.xlu0 %v3905_v22, %s4993_s25  ;;  %3911 = vrot.lane.b32.xlu1 %v3903_v24, %s4993_s25  ;;  %v8385_v22 = vpop.permute.xlu1 %3793  ;;  %v9860_v24 = vmov 22  }
0x30eb   :  { %3931 = vperm.xlu0 %4944, %v9836_v16   ;;  %3913 = vrot.lane.b32.xlu1 %v3904_v60, %s4993_s25  ;;  %v8389_v60 = vpop.permute.xlu1 %3818 }
0x30ef   :  { %3917 = vrot.lane.b32.xlu1 %v3906_v57, %s4993_s25  ;;  %4945 = vset.pattern.permute.xlu0 %v9845_v29  ;;  %v9861_v57 = vmov 23   ;;  %v8393_v29 = vpop.permute.xlu1 %3820 }
0x3159   :  { %v8326_v48 = vpop.permute.xlu0 %3915 }
0x3166   :  { %v3932_v11 = vpop.permute.xlu0 %3931 }
0x3167   :  { %v3936_v41 = vmul.f32 %v3932_v11, %v8260_v4  ;;  %v3934_v10 = vmul.f32 %v3932_v11, %v8257_v59  ;;  %v3935_v34 = vmul.f32 %v3932_v11, %v8265_v19  ;;  %v3937_v45 = vmul.f32 %v3932_v11, %v8271_v47 }
0x3168   :  { %v9862_v11 = vmov 25  }
0x3169   :  { %3946 = vrot.lane.b32.xlu0 %v3936_v41, %s4993_s25  ;;  %3942 = vrot.lane.b32.xlu1 %v3934_v10, %s4993_s25  ;;  %v9863_v41 = vmov 26   ;;  %v8398_v10 = vpop.permute.xlu1 %3824 }
0x316d   :  { %3962 = vperm.xlu0 %4945, %v9836_v16   ;;  %3944 = vrot.lane.b32.xlu1 %v3935_v34, %s4993_s25  ;;  %v8401_v34 = vpop.permute.xlu1 %3849 }
0x3171   :  { %4946 = vset.pattern.permute.xlu0 %v9846_v14  ;;  %3948 = vrot.lane.b32.xlu1 %v3937_v45, %s4993_s25  ;;  %v9864_v45 = vmov 28   ;;  %v9865_v14 = vmov 29  }
0x3172   :  { %3993 = vperm.xlu0 %4946, %v9836_v16  }
0x3176   :  { %4949 = vset.pattern.permute.xlu0 %v9847_v1  ;;  %v8406_v1 = vpop.permute.xlu1 %3851 }
0x3177   :  { %4086 = vperm.xlu0 %4949, %v9836_v16  }
0x317b   :  { %4952 = vset.pattern.permute.xlu0 %v9848_v40  ;;  %v9866_v40 = vmov 31  }
0x317c   :  { %4179 = vperm.xlu0 %4952, %v9836_v16  }
0x3180   :  { %4955 = vset.pattern.permute.xlu0 %v9849_v42  ;;  %v8411_v42 = vpop.permute.xlu1 %3855 }
0x3181   :  { %4272 = vperm.xlu0 %4955, %v9836_v16  }
0x3185   :  { %4958 = vset.pattern.permute.xlu0 %v9850_v2  ;;  %v9867_v2 = vmov 32  }
0x3186   :  { %4365 = vperm.xlu0 %4958, %v9836_v16  }
0x318a   :  { %4961 = vset.pattern.permute.xlu0 %v9851_v62  ;;  %v8414_v62 = vpop.permute.xlu1 %3880 }
0x318b   :  { %4458 = vperm.xlu0 %4961, %v9836_v16  }
0x318f   :  { %4964 = vset.pattern.permute.xlu0 %v9852_v6  ;;  %v9868_v6 = vmov 34  }
0x3190   :  { %4551 = vperm.xlu0 %4964, %v9836_v16  }
0x3194   :  { %4967 = vset.pattern.permute.xlu0 %v9853_v37  ;;  %v8419_v37 = vpop.permute.xlu1 %3882 }
0x3195   :  { %4644 = vperm.xlu0 %4967, %v9836_v16  }
0x3199   :  { %4970 = vset.pattern.permute.xlu0 %v9854_v54 }
0x31db   :  { %v8354_v23 = vpop.permute.xlu0 %3946 }
0x31e8   :  { %v3963_v63 = vpop.permute.xlu0 %3962 }
0x31e9   :  { %v3967_v12 = vmul.f32 %v3963_v63, %v8281_v35  ;;  %v3965_v53 = vmul.f32 %v3963_v63, %v8284_v8  ;;  %v3966_v32 = vmul.f32 %v3963_v63, %v8289_v28 }
0x31eb   :  { %3977 = vrot.lane.b32.xlu0 %v3967_v12, %s4993_s25  ;;  %3973 = vrot.lane.b32.xlu1 %v3965_v53, %s4993_s25  ;;  %v8423_v12 = vpop.permute.xlu1 %3886  ;;  %v3968_v53 = vmul.f32 %v3963_v63, %v8295_v49 }
0x31ed   :  { %v3994_v27 = vpop.permute.xlu0 %3993 }
0x31ee   :  { %v3996_v55 = vmul.f32 %v3994_v27, %v8208_v13  ;;  %v3998_v15 = vmul.f32 %v3994_v27, %v8215_v43 }
0x31ef   :  { %3975 = vrot.lane.b32.xlu1 %v3966_v32, %s4993_s25  ;;  %v8427_v32 = vpop.permute.xlu1 %3911 }
0x31f0   :  { %4004 = vrot.lane.b32.xlu0 %v3996_v55, %s4994_s26  ;;  %v3997_v55 = vmul.f32 %v3994_v27, %v8204_v31 }
0x31f3   :  { %4024 = vperm.xlu1 %4947, %v9836_v16  }
0x31f4   :  { %4008 = vrot.lane.b32.xlu0 %v3998_v15, %s4994_s26  ;;  %v3999_v15 = vmul.f32 %v3994_v27, %v8211_v20 }
0x31f7   :  { %4948 = vset.pattern.permute.xlu1 %v9855_v3  ;;  %v8432_v3 = vpop.permute.xlu1 %3913 }
0x31f8   :  { %4055 = vperm.xlu1 %4948, %v9836_v16  }
0x31fc   :  { %4950 = vset.pattern.permute.xlu1 %v9856_v0 }
0x31fd   :  { %4117 = vperm.xlu1 %4950, %v9836_v16  }
0x3201   :  { %4951 = vset.pattern.permute.xlu1 %v9857_v33 }
0x3202   :  { %4148 = vperm.xlu1 %4951, %v9836_v16  }
0x3206   :  { %4953 = vset.pattern.permute.xlu1 %v9858_v38 }
0x3207   :  { %4210 = vperm.xlu1 %4953, %v9836_v16  }
0x320b   :  { %4954 = vset.pattern.permute.xlu1 %v9859_v61 }
0x320c   :  { %4241 = vperm.xlu1 %4954, %v9836_v16  }
0x3210   :  { %4956 = vset.pattern.permute.xlu1 %v9860_v24 }
0x3211   :  { %4303 = vperm.xlu1 %4956, %v9836_v16  }
0x3215   :  { %4957 = vset.pattern.permute.xlu1 %v9861_v57 }
0x3216   :  { %4334 = vperm.xlu1 %4957, %v9836_v16  }
0x321a   :  { %4959 = vset.pattern.permute.xlu1 %v9862_v11 }
0x321b   :  { %4396 = vperm.xlu1 %4959, %v9836_v16  }
0x321f   :  { %4960 = vset.pattern.permute.xlu1 %v9863_v41 }
0x3220   :  { %4427 = vperm.xlu1 %4960, %v9836_v16  }
0x3224   :  { %4962 = vset.pattern.permute.xlu1 %v9864_v45 }
0x3225   :  { %4489 = vperm.xlu1 %4962, %v9836_v16  }
0x3229   :  { %4963 = vset.pattern.permute.xlu1 %v9865_v14 }
0x322a   :  { %4520 = vperm.xlu1 %4963, %v9836_v16  }
0x322e   :  { %4965 = vset.pattern.permute.xlu1 %v9866_v40 }
0x322f   :  { %4582 = vperm.xlu1 %4965, %v9836_v16  }
0x3233   :  { %4966 = vset.pattern.permute.xlu1 %v9867_v2 }
0x3234   :  { %4613 = vperm.xlu1 %4966, %v9836_v16  }
0x3238   :  { %4968 = vset.pattern.permute.xlu1 %v9868_v6 }
0x3239   :  { %4675 = vperm.xlu1 %4968, %v9836_v16  }
0x323d   :  { %4969 = vset.pattern.permute.xlu1 %v9854_v54  ;;  %v8435_v54 = vpop.permute.xlu1 %3917 }
0x323e   :  { %4706 = vperm.xlu1 %4969, %v9836_v16  }
0x3241   :  { %v8437_v16 = vpop.permute.xlu1 %3942 }
0x3242   :  { %3979 = vrot.lane.b32.xlu1 %v3968_v53, %s4993_s25  ;;  %9869 = vst [vmem:[#allocation37_spill] sm:$0xff] %v8437_v16  ;;  %v4087_v53 = vpop.permute.xlu0 %4086 }
0x3245   :  { %v8439_v0 = vpop.permute.xlu1 %3944 }
0x3246   :  { %4006 = vrot.lane.b32.xlu1 %v3997_v55, %s4994_s26 }
0x3249   :  { %v8441_v63 = vpop.permute.xlu1 %3948 }
0x324a   :  { %4010 = vrot.lane.b32.xlu1 %v3999_v15, %s4994_s26  ;;  %9870 = vst [vmem:[#allocation66_spill] sm:$0xff] %v8441_v63  ;;  %v4090_v15 = vmul.f32 %v4087_v53, %v8289_v28 }
0x325d   :  { %v8443_v33 = vpop.permute.xlu1 %3973 }
0x325e   :  { %9871 = vst [vmem:[#allocation61_spill] sm:$0xff] %v8443_v33 }
0x3261   :  { %v8445_v38 = vpop.permute.xlu1 %3975 }
0x3262   :  { %9872 = vst [vmem:[#allocation16_spill] sm:$0xff] %v8445_v38 }
0x326e   :  { %v4025_v61 = vpop.permute.xlu1 %4024 }
0x326f   :  { %v4028_v24 = vmul.f32 %v4025_v61, %v8241_v7  ;;  %v4027_v27 = vmul.f32 %v4025_v61, %v8233_v9  ;;  %v4030_v11 = vmul.f32 %v4025_v61, %v8247_v58  ;;  %v4029_v41 = vmul.f32 %v4025_v61, %v8236_v39 }
0x3270   :  { %v4089_v61 = vmul.f32 %v4087_v53, %v8284_v8 }
0x3271   :  { %4037 = vrot.lane.b32.xlu1 %v4028_v24, %s4994_s26  ;;  %4035 = vrot.lane.b32.xlu0 %v4027_v27, %s4994_s26  ;;  %v4092_v27 = vmul.f32 %v4087_v53, %v8295_v49 }
0x3273   :  { %v4056_v57 = vpop.permute.xlu1 %4055 }
0x3274   :  { %v4059_v45 = vmul.f32 %v4056_v57, %v8265_v19  ;;  %v4058_v14 = vmul.f32 %v4056_v57, %v8257_v59  ;;  %v4061_v2 = vmul.f32 %v4056_v57, %v8271_v47  ;;  %v4060_v6 = vmul.f32 %v4056_v57, %v8260_v4 }
0x3275   :  { %4041 = vrot.lane.b32.xlu1 %v4030_v11, %s4994_s26  ;;  %4039 = vrot.lane.b32.xlu0 %v4029_v41, %s4994_s26  ;;  %v4091_v11 = vmul.f32 %v4087_v53, %v8281_v35 }
0x3278   :  { %v4118_v40 = vpop.permute.xlu1 %4117 }
0x3279   :  { %4068 = vrot.lane.b32.xlu1 %v4059_v45, %s4994_s26  ;;  %4066 = vrot.lane.b32.xlu0 %v4058_v14, %s4994_s26  ;;  %v4121_v41 = vmul.f32 %v4118_v40, %v8204_v31  ;;  %v4120_v45 = vmul.f32 %v4118_v40, %v8208_v13  ;;  %v4123_v14 = vmul.f32 %v4118_v40, %v8211_v20 }
0x327d   :  { %4072 = vrot.lane.b32.xlu1 %v4061_v2, %s4994_s26  ;;  %4070 = vrot.lane.b32.xlu0 %v4060_v6, %s4994_s26  ;;  %v4149_v55 = vpop.permute.xlu1 %4148  ;;  %v4122_v2 = vmul.f32 %v4118_v40, %v8215_v43 }
0x327e   :  { %v4152_v53 = vmul.f32 %v4149_v55, %v8241_v7  ;;  %v4153_v40 = vmul.f32 %v4149_v55, %v8236_v39 }
0x3281   :  { %4099 = vrot.lane.b32.xlu1 %v4090_v15, %s4994_s26  ;;  %4097 = vrot.lane.b32.xlu0 %v4089_v61, %s4994_s26  ;;  %v4151_v15 = vmul.f32 %v4149_v55, %v8233_v9 }
0x3282   :  { %v4211_v24 = vpop.permute.xlu1 %4210 }
0x3285   :  { %4103 = vrot.lane.b32.xlu1 %v4092_v27, %s4994_s26  ;;  %4101 = vrot.lane.b32.xlu0 %v4091_v11, %s4994_s26  ;;  %v4154_v27 = vmul.f32 %v4149_v55, %v8247_v58  ;;  %v4180_v11 = vpop.permute.xlu0 %4179 }
0x3286   :  { %v4184_v55 = vmul.f32 %v4180_v11, %v8260_v4 }
0x3287   :  { %v4242_v57 = vpop.permute.xlu1 %4241 }
0x3289   :  { %4130 = vrot.lane.b32.xlu1 %v4121_v41, %s4998_s27  ;;  %4128 = vrot.lane.b32.xlu0 %v4120_v45, %s4998_s27  ;;  %v4183_v45 = vmul.f32 %v4180_v11, %v8265_v19 }
0x328c   :  { %v8477_v6 = vpop.permute.xlu1 %4303 }
0x328d   :  { %4134 = vrot.lane.b32.xlu1 %v4123_v14, %s4998_s27  ;;  %4132 = vrot.lane.b32.xlu0 %v4122_v2, %s4998_s27  ;;  %v4182_v14 = vmul.f32 %v4180_v11, %v8257_v59 }
0x3291   :  { %4161 = vrot.lane.b32.xlu1 %v4152_v53, %s4998_s27  ;;  %4159 = vrot.lane.b32.xlu0 %v4151_v15, %s4998_s27  ;;  %v8485_v61 = vpop.permute.xlu1 %4334  ;;  %v4185_v53 = vmul.f32 %v4180_v11, %v8271_v47  ;;  %v4273_v15 = vpop.permute.xlu0 %4272  ;;  %v4215_v11 = vmul.f32 %v4211_v24, %v8281_v35 }
0x3295   :  { %4165 = vrot.lane.b32.xlu1 %v4154_v27, %s4998_s27  ;;  %4163 = vrot.lane.b32.xlu0 %v4153_v40, %s4998_s27  ;;  %v4214_v27 = vmul.f32 %v4211_v24, %v8289_v28  ;;  %v4213_v40 = vmul.f32 %v4211_v24, %v8284_v8 }
0x3296   :  { %v8491_v41 = vpop.permute.xlu1 %4396 }
0x3299   :  { %4192 = vrot.lane.b32.xlu1 %v4183_v45, %s4998_s27  ;;  %4190 = vrot.lane.b32.xlu0 %v4182_v14, %s4998_s27  ;;  %v8509_v45 = vpop.permute.xlu0 %4365  ;;  %v4216_v14 = vmul.f32 %v4211_v24, %v8295_v49  ;;  %v4247_v24 = vmul.f32 %v4242_v57, %v8211_v20 }
0x329b   :  { %v8497_v2 = vpop.permute.xlu1 %4427 }
0x329d   :  { %4196 = vrot.lane.b32.xlu1 %v4185_v53, %s4998_s27  ;;  %4194 = vrot.lane.b32.xlu0 %v4184_v55, %s4998_s27  ;;  %v4245_v55 = vmul.f32 %v4242_v57, %v8204_v31  ;;  %v8519_v38 = vpop.permute.xlu0 %4458 }
0x32a0   :  { %v8505_v33 = vpop.permute.xlu1 %4489 }
0x32a1   :  { %9873 = vst [vmem:[#allocation36_spill] sm:$0xff] %v8505_v33  ;;  %4223 = vrot.lane.b32.xlu1 %v4214_v27, %s4998_s27  ;;  %4221 = vrot.lane.b32.xlu0 %v4213_v40, %s4998_s27  ;;  %v4244_v33 = vmul.f32 %v4242_v57, %v8208_v13  ;;  %v4246_v40 = vmul.f32 %v4242_v57, %v8215_v43 }
0x32a2   :  { %v4277_v57 = vmul.f32 %v4273_v15, %v8236_v39 }
0x32a5   :  { %4227 = vrot.lane.b32.xlu1 %v4216_v14, %s4998_s27  ;;  %4225 = vrot.lane.b32.xlu0 %v4215_v11, %s4998_s27  ;;  %v8515_v53 = vpop.permute.xlu1 %4520  ;;  %v8529_v14 = vpop.permute.xlu0 %4551 }
0x32a6   :  { %9874 = vst [vmem:[#allocation13_spill] sm:$0xff] %v8515_v53  ;;  %9876 = vst [vmem:[#allocation33_spill] sm:$0xff] %v8529_v14  ;;  %v4276_v53 = vmul.f32 %v4273_v15, %v8241_v7  ;;  %v4339_v14 = vmul.f32 %v8485_v61, %v8281_v35 }
0x32a9   :  { %4254 = vrot.lane.b32.xlu1 %v4245_v55, %s5003_s28  ;;  %4252 = vrot.lane.b32.xlu0 %v4244_v33, %s5003_s28  ;;  %v4275_v55 = vmul.f32 %v4273_v15, %v8233_v9  ;;  %v4278_v33 = vmul.f32 %v4273_v15, %v8247_v58 }
0x32aa   :  { %v8523_v27 = vpop.permute.xlu1 %4582 }
0x32ab   :  { %9875 = vst [vmem:[#allocation64_spill] sm:$0xff] %v8523_v27 }
0x32ad   :  { %4258 = vrot.lane.b32.xlu1 %v4247_v24, %s5003_s28  ;;  %4256 = vrot.lane.b32.xlu0 %v4246_v40, %s5003_s28  ;;  %v8541_v24 = vpop.permute.xlu0 %4644  ;;  %v4307_v40 = vmul.f32 %v8477_v6, %v8265_v19 }
0x32ae   :  { %9879 = vst [vmem:[#allocation22_spill] sm:$0xff] %v8541_v24  ;;  %v4340_v24 = vmul.f32 %v8485_v61, %v8295_v49 }
0x32af   :  { %v8531_v11 = vpop.permute.xlu1 %4613 }
0x32b0   :  { %9877 = vst [vmem:[#allocation71_spill] sm:$0xff] %v8531_v11 }
0x32b1   :  { %4285 = vrot.lane.b32.xlu1 %v4276_v53, %s5003_s28  ;;  %4283 = vrot.lane.b32.xlu0 %v4275_v55, %s5003_s28  ;;  %v4306_v53 = vmul.f32 %v8477_v6, %v8257_v59  ;;  %v8549_v11 = vpop.permute.xlu0 %3977  ;;  %v4309_v55 = vmul.f32 %v8477_v6, %v8271_v47 }
0x32b2   :  { %9880 = vst [vmem:[#allocation48_spill] sm:$0xff] %v8549_v11 }
0x32b4   :  { %v8539_v27 = vpop.permute.xlu1 %4675 }
0x32b5   :  { %9878 = vst [vmem:[#allocation39_spill] sm:$0xff] %v8539_v27  ;;  %4289 = vrot.lane.b32.xlu1 %v4278_v33, %s5003_s28  ;;  %4287 = vrot.lane.b32.xlu0 %v4277_v57, %s5003_s28  ;;  %v4308_v33 = vmul.f32 %v8477_v6, %v8260_v4  ;;  %v8563_v27 = vpop.permute.xlu0 %4004  ;;  %v3652_v6 = vmul.f32 %v8164_v44, %v8208_v13 }
0x32b6   :  { %9883 = vst [vmem:[#allocation23_spill] sm:$0xff] %v8563_v27 }
0x32b9   :  { %4316 = vrot.lane.b32.xlu1 %v4307_v40, %s5003_s28  ;;  %4314 = vrot.lane.b32.xlu0 %v4306_v53, %s5003_s28  ;;  %v8553_v15 = vpop.permute.xlu1 %4706  ;;  %v4338_v40 = vmul.f32 %v8485_v61, %v8289_v28  ;;  %v4337_v53 = vmul.f32 %v8485_v61, %v8284_v8 }
0x32ba   :  { %9881 = vst [vmem:[#allocation72_spill] sm:$0xff] %v8553_v15 }
0x32bd   :  { %4320 = vrot.lane.b32.xlu1 %v4309_v55, %s5003_s28  ;;  %4318 = vrot.lane.b32.xlu0 %v4308_v33, %s5003_s28  ;;  %v8561_v57 = vpop.permute.xlu1 %3979  ;;  %v3653_v55 = vmul.f32 %v8164_v44, %v8204_v31  ;;  %v3655_v33 = vmul.f32 %v8164_v44, %v8211_v20 }
0x32be   :  { %9882 = vst [vmem:[#allocation41_spill] sm:$0xff] %v8561_v57 }
0x32c1   :  { %4347 = vrot.lane.b32.xlu1 %v4338_v40, %s5003_s28  ;;  %4345 = vrot.lane.b32.xlu0 %v4337_v53, %s5003_s28  ;;  %v8571_v15 = vpop.permute.xlu1 %4006  ;;  %v3654_v40 = vmul.f32 %v8164_v44, %v8215_v43  ;;  %v8585_v53 = vpop.permute.xlu0 %4008  ;;  %v4369_v44 = vmul.f32 %v8509_v45, %v8204_v31  ;;  %v3682_v31 = vmul.f32 %v8192_v52, %v8236_v39 }
0x32c2   :  { %9884 = vst [vmem:[#allocation53_spill] sm:$0xff] %v8571_v15  ;;  %9885 = vst [vmem:[#allocation24_spill] sm:$0xff] %v8585_v53  ;;  %v9887_v15 = vld [vmem:[#allocation96_spill] sm:$0xff] }
0x32c3   :  { %v3656_v57 = vadd.f32 %v3652_v6, %v9887_v15  ;;  %v3657_v11 = vadd.f32 %v3653_v55, %v9887_v15  ;;  %v3659_v16 = vadd.f32 %v3655_v33, %v9887_v15  ;;  %v3680_v6 = vmul.f32 %v8192_v52, %v8233_v9 }
0x32c4   :  { %v3681_v55 = vmul.f32 %v8192_v52, %v8241_v7  ;;  %v3683_v33 = vmul.f32 %v8192_v52, %v8247_v58  ;;  %v3710_v52 = vmul.f32 %v8226_v51, %v8260_v4 }
0x32c5   :  { %4351 = vrot.lane.b32.xlu1 %v4340_v24, %s5003_s28  ;;  %4349 = vrot.lane.b32.xlu0 %v4339_v14, %s5003_s28  ;;  %v8589_v27 = vpop.permute.xlu1 %4010  ;;  %v4368_v24 = vmul.f32 %v8509_v45, %v8208_v13  ;;  %v3658_v14 = vadd.f32 %v3654_v40, %v9887_v15  ;;  %v4371_v15 = vmul.f32 %v8509_v45, %v8211_v20 }
0x32c6   :  { %9886 = vst [vmem:[#allocation40_spill] sm:$0xff] %v8589_v27  ;;  %v8597_v61 = vsel %vm496_vm2, %v8585_v53, %v8589_v27  ;;  %v3687_v13 = vadd.f32 %v3683_v33, %v3659_v16  ;;  %v3684_v27 = vadd.f32 %v3680_v6, %v3656_v57  ;;  %v4370_v40 = vmul.f32 %v8509_v45, %v8215_v43 }
0x32c7   :  { %9888 = vst [vmem:[#allocation73_spill] sm:$0xff] %v8597_v61  ;;  %v3685_v61 = vadd.f32 %v3681_v55, %v3657_v11  ;;  %v3708_v53 = vmul.f32 %v8226_v51, %v8257_v59  ;;  %v3686_v63 = vadd.f32 %v3682_v31, %v3658_v14  ;;  %v4400_v57 = vmul.f32 %v8491_v41, %v8241_v7 }
0x32c8   :  { %v4399_v6 = vmul.f32 %v8491_v41, %v8233_v9  ;;  %v3737_v31 = vmul.f32 %v8198_v17, %v8289_v28  ;;  %v3739_v14 = vmul.f32 %v8198_v17, %v8295_v49  ;;  %v3736_v33 = vmul.f32 %v8198_v17, %v8284_v8 }
0x32c9   :  { %4378 = vrot.lane.b32.xlu1 %v4369_v44, %s5008_s29  ;;  %4376 = vrot.lane.b32.xlu0 %v4368_v24, %s5008_s29  ;;  %v3709_v44 = vmul.f32 %v8226_v51, %v8265_v19  ;;  %v3711_v24 = vmul.f32 %v8226_v51, %v8271_v47  ;;  %v3712_v45 = vadd.f32 %v3708_v53, %v3684_v27 }
0x32ca   :  { %v3714_v55 = vadd.f32 %v3710_v52, %v3686_v63  ;;  %v3764_v51 = vsel %vm246_vm0, %v8228_v18, %v8369_v25  ;;  %v4402_v18 = vmul.f32 %v8491_v41, %v8247_v58 }
0x32cb   :  { %v3713_v16 = vadd.f32 %v3709_v44, %v3685_v61  ;;  %v3715_v11 = vadd.f32 %v3711_v24, %v3687_v13  ;;  %v3738_v13 = vmul.f32 %v8198_v17, %v8281_v35  ;;  %v3740_v53 = vadd.f32 %v3736_v33, %v3712_v45 }
0x32cc   :  { %v3765_v61 = vsel %vm246_vm0, %v8369_v25, %v8230_v50  ;;  %v3795_v17 = vsel %vm246_vm0, %v8377_v26, %v8381_v30  ;;  %v3796_v25 = vsel %vm246_vm0, %v8381_v30, %v8254_v5  ;;  %v3827_v30 = vsel %vm246_vm0, %v8393_v29, %v8278_v46 }
0x32cd   :  { %4382 = vrot.lane.b32.xlu1 %v4371_v15, %s5008_s29  ;;  %4380 = vrot.lane.b32.xlu0 %v4370_v40, %s5008_s29  ;;  %v3741_v63 = vadd.f32 %v3737_v31, %v3713_v16  ;;  %v3743_v27 = vadd.f32 %v3739_v14, %v3715_v11  ;;  %v3766_v15 = vsel %vm246_vm0, %v8230_v50, %v8373_v56 }
0x32ce   :  { %v4401_v40 = vmul.f32 %v8491_v41, %v8236_v39  ;;  %v3742_v44 = vadd.f32 %v3738_v13, %v3714_v55  ;;  %v3771_v24 = vadd.f32 %v3764_v51, %v3740_v53  ;;  %v3797_v50 = vsel %vm246_vm0, %v8254_v5, %v8385_v22 }
0x32cf   :  { %v3774_v52 = vadd.f32 %v8373_v56, %v3743_v27  ;;  %v3772_v16 = vadd.f32 %v3765_v61, %v3741_v63  ;;  %v3826_v41 = vsel %vm246_vm0, %v8389_v60, %v8393_v29  ;;  %v3828_v45 = vsel %vm246_vm0, %v8278_v46, %v8398_v10 }
0x32d0   :  { %v3773_v26 = vadd.f32 %v3766_v15, %v3742_v44  ;;  %v3802_v11 = vadd.f32 %v3795_v17, %v3771_v24  ;;  %v4431_v5 = vmul.f32 %v8497_v2, %v8265_v19  ;;  %v3857_v60 = vsel %vm246_vm0, %v8401_v34, %v8406_v1  ;;  %v9889_v24 = vld [vmem:[#allocation66_spill] sm:$0xff] }
0x32d1   :  { %4409 = vrot.lane.b32.xlu1 %v4400_v57, %s5008_s29  ;;  %4407 = vrot.lane.b32.xlu0 %v4399_v6, %s5008_s29  ;;  %v3803_v56 = vadd.f32 %v3796_v25, %v3772_v16  ;;  %v4430_v57 = vmul.f32 %v8497_v2, %v8257_v59  ;;  %v3805_v55 = vadd.f32 %v8385_v22, %v3774_v52  ;;  %v9890_v25 = vld [vmem:[#allocation37_spill] sm:$0xff] }
0x32d2   :  { %v3804_v6 = vadd.f32 %v3797_v50, %v3773_v26  ;;  %v3833_v31 = vadd.f32 %v3826_v41, %v3802_v11  ;;  %v3858_v14 = vsel %vm246_vm0, %v8406_v1, %v8302_v21  ;;  %v3859_v22 = vsel %vm246_vm0, %v8302_v21, %v8411_v42  ;;  %v9891_v26 = vld [vmem:[#allocation48_spill] sm:$0xff]  ;;  %v9893_v41 = vld [vmem:[#allocation41_spill] sm:$0xff] }
0x32d3   :  { %v3834_v29 = vadd.f32 %v3827_v30, %v3803_v56  ;;  %v3836_v33 = vadd.f32 %v8398_v10, %v3805_v55  ;;  %v3888_v34 = vsel %vm371_vm1, %v8414_v62, %v8419_v37  ;;  %v3889_v1 = vsel %vm371_vm1, %v8419_v37, %v8314_v36  ;;  %v9892_v11 = vld [vmem:[#allocation16_spill] sm:$0xff]  ;;  %v9894_v56 = vld [vmem:[#allocation61_spill] sm:$0xff] }
0x32d4   :  { %v3835_v46 = vadd.f32 %v3828_v45, %v3804_v6  ;;  %v3864_v13 = vadd.f32 %v3857_v60, %v3833_v31  ;;  %v4433_v51 = vmul.f32 %v8497_v2, %v8271_v47  ;;  %v4432_v63 = vmul.f32 %v8497_v2, %v8260_v4  ;;  %v9895_v31 = vld [vmem:[#allocation24_spill] sm:$0xff] }
0x32d5   :  { %4413 = vrot.lane.b32.xlu1 %v4402_v18, %s5008_s29  ;;  %4411 = vrot.lane.b32.xlu0 %v4401_v40, %s5008_s29  ;;  %v3865_v10 = vadd.f32 %v3858_v14, %v3834_v29  ;;  %v3867_v27 = vadd.f32 %v8411_v42, %v3836_v33  ;;  %v3890_v21 = vsel %vm371_vm1, %v8314_v36, %v8423_v12  ;;  %v9896_v29 = vld [vmem:[#allocation53_spill] sm:$0xff] }
0x32d6   :  { %v3866_v53 = vadd.f32 %v3859_v22, %v3835_v46  ;;  %v3895_v62 = vadd.f32 %v3888_v34, %v3864_v13  ;;  %v3920_v61 = vsel %vm371_vm1, %v8432_v3, %v8326_v48  ;;  %v3919_v42 = vsel %vm371_vm1, %v8427_v32, %v8432_v3  ;;  %v9897_v13 = vld [vmem:[#allocation23_spill] sm:$0xff] }
0x32d7   :  { %v3896_v37 = vadd.f32 %v3889_v1, %v3865_v10  ;;  %v3898_v2 = vadd.f32 %v8423_v12, %v3867_v27  ;;  %v3921_v36 = vsel %vm371_vm1, %v8326_v48, %v8435_v54  ;;  %v3951_v17 = vsel %vm371_vm1, %v8439_v0, %v8354_v23  ;;  %v9898_v1 = vld [vmem:[#allocation40_spill] sm:$0xff]  ;;  %v9899_v10 = vld [vmem:[#allocation73_spill] sm:$0xff] }
0x32d8   :  { %v3897_v15 = vadd.f32 %v3890_v21, %v3866_v53  ;;  %v4462_v18 = vmul.f32 %v8519_v38, %v8289_v28  ;;  %v4461_v40 = vmul.f32 %v8519_v38, %v8284_v8  ;;  %v3952_v32 = vsel %vm371_vm1, %v8354_v23, %v9889_v24 }
0x32d9   :  { %4440 = vrot.lane.b32.xlu1 %v4431_v5, %s5008_s29  ;;  %4438 = vrot.lane.b32.xlu0 %v4430_v57, %s5008_s29  ;;  %v3927_v12 = vadd.f32 %v3920_v61, %v3896_v37  ;;  %v3929_v44 = vadd.f32 %v8435_v54, %v3898_v2  ;;  %v3926_v3 = vadd.f32 %v3919_v42, %v3895_v62  ;;  %v9900_v62 = vld [vmem:[#allocation63_spill] sm:$0xff]  ;;  %v9901_v61 = vld [vmem:[#allocation36_spill] sm:$0xff]  ;;  %v9902_v2 = vld [vmem:[#allocation50_spill] sm:$0xff] }
0x32da   :  { %v3928_v48 = vadd.f32 %v3921_v36, %v3897_v15  ;;  %v3950_v52 = vsel %vm371_vm1, %v9890_v25, %v8439_v0  ;;  %v3982_v54 = vsel %vm371_vm1, %v9892_v11, %v9891_v26  ;;  %v3983_v23 = vsel %vm371_vm1, %v9891_v26, %v9893_v41  ;;  %v9903_v26 = vld [vmem:[#allocation13_spill] sm:$0xff] }
0x32db   :  { %v3958_v16 = vadd.f32 %v3951_v17, %v3927_v12  ;;  %v3960_v50 = vadd.f32 %v9889_v24, %v3929_v44  ;;  %v3981_v0 = vsel %vm371_vm1, %v9894_v56, %v9892_v11  ;;  %v4464_v57 = vmul.f32 %v8519_v38, %v8295_v49 }
0x32dc   :  { %v3959_v30 = vadd.f32 %v3952_v32, %v3928_v48  ;;  %v4463_v6 = vmul.f32 %v8519_v38, %v8281_v35  ;;  %v3957_v55 = vadd.f32 %v3950_v52, %v3926_v3  ;;  %v4013_v14 = vsel %vm496_vm2, %v9896_v29, %v9895_v31 }
0x32dd   :  { %4444 = vrot.lane.b32.xlu1 %v4433_v51, %s5008_s29  ;;  %4442 = vrot.lane.b32.xlu0 %v4432_v63, %s5008_s29  ;;  %v3991_v60 = vadd.f32 %v9893_v41, %v3960_v50  ;;  %v3989_v33 = vadd.f32 %v3982_v54, %v3958_v16  ;;  %v4012_v38 = vsel %vm496_vm2, %v9897_v13, %v9896_v29 }
0x32de   :  { %v3990_v22 = vadd.f32 %v3983_v23, %v3959_v30  ;;  %v3988_v34 = vadd.f32 %v3981_v0, %v3957_v55  ;;  %v4493_v37 = vmul.f32 %v9901_v61, %v9900_v62  ;;  %v4492_v42 = vmul.f32 %v9901_v61, %v9902_v2 }
0x32df   :  { %v4022_v51 = vadd.f32 %v9898_v1, %v3991_v60  ;;  %v4020_v63 = vadd.f32 %v4013_v14, %v3989_v33  ;;  %v4495_v3 = vmul.f32 %v9901_v61, %v8211_v20  ;;  %v4494_v48 = vmul.f32 %v9901_v61, %v8215_v43  ;;  %v9904_v14 = vld [vmem:[#allocation33_spill] sm:$0xff] }
0x32e0   :  { %v4021_v27 = vadd.f32 %v9899_v10, %v3990_v22  ;;  %v4524_v11 = vmul.f32 %v9903_v26, %v8241_v7  ;;  %v4523_v54 = vmul.f32 %v9903_v26, %v8233_v9  ;;  %v4554_v33 = vmul.f32 %v9904_v14, %v8257_v59 }
0x32e1   :  { %4471 = vrot.lane.b32.xlu1 %v4462_v18, %s5008_s29  ;;  %4469 = vrot.lane.b32.xlu0 %v4461_v40, %s5008_s29  ;;  %v4019_v18 = vadd.f32 %v4012_v38, %v3988_v34  ;;  %v4557_v10 = vmul.f32 %v9904_v14, %v8271_v47 }
0x32e3   :  { %v4036_v45 = vpop.permute.xlu0 %4035  ;;  %v4038_v5 = vpop.permute.xlu1 %4037 }
0x32e4   :  { %v4043_v46 = vsel %vm496_vm2, %v4036_v45, %v4038_v5 }
0x32e5   :  { %4475 = vrot.lane.b32.xlu1 %v4464_v57, %s5008_s29  ;;  %4473 = vrot.lane.b32.xlu0 %v4463_v6, %s5008_s29  ;;  %v4050_v44 = vadd.f32 %v4043_v46, %v4019_v18  ;;  %v4526_v57 = vmul.f32 %v9903_v26, %v8247_v58  ;;  %v4525_v6 = vmul.f32 %v9903_v26, %v8236_v39  ;;  %v9906_v26 = vld [vmem:[#allocation71_spill] sm:$0xff] }
0x32e6   :  { %v4555_v46 = vmul.f32 %v9904_v14, %v8265_v19 }
0x32e7   :  { %v4040_v21 = vpop.permute.xlu0 %4039  ;;  %v4042_v53 = vpop.permute.xlu1 %4041 }
0x32e8   :  { %v4044_v36 = vsel %vm496_vm2, %v4038_v5, %v4040_v21  ;;  %v4045_v15 = vsel %vm496_vm2, %v4040_v21, %v4042_v53  ;;  %v4053_v17 = vadd.f32 %v4042_v53, %v4022_v51 }
0x32e9   :  { %v4051_v40 = vadd.f32 %v4044_v36, %v4020_v63  ;;  %v4052_v12 = vadd.f32 %v4045_v15, %v4021_v27  ;;  %4502 = vrot.lane.b32.xlu1 %v4493_v37, %s5013_s30  ;;  %4500 = vrot.lane.b32.xlu0 %v4492_v42, %s5013_s30  ;;  %v4556_v27 = vmul.f32 %v9904_v14, %v8260_v4  ;;  %v9905_v42 = vld [vmem:[#allocation64_spill] sm:$0xff] }
0x32ea   :  { %v4586_v36 = vmul.f32 %v9905_v42, %v8289_v28  ;;  %v4585_v15 = vmul.f32 %v9905_v42, %v8284_v8 }
0x32eb   :  { %v4067_v24 = vpop.permute.xlu0 %4066  ;;  %v4069_v32 = vpop.permute.xlu1 %4068 }
0x32ec   :  { %v4074_v25 = vsel %vm496_vm2, %v4067_v24, %v4069_v32 }
0x32ed   :  { %v4081_v52 = vadd.f32 %v4074_v25, %v4050_v44  ;;  %4506 = vrot.lane.b32.xlu1 %v4495_v3, %s5013_s30  ;;  %4504 = vrot.lane.b32.xlu0 %v4494_v48, %s5013_s30  ;;  %v4588_v3 = vmul.f32 %v9905_v42, %v8295_v49  ;;  %v4587_v48 = vmul.f32 %v9905_v42, %v8281_v35 }
0x32ef   :  { %v4071_v16 = vpop.permute.xlu0 %4070  ;;  %v4073_v50 = vpop.permute.xlu1 %4072 }
0x32f0   :  { %v4075_v41 = vsel %vm496_vm2, %v4069_v32, %v4071_v16  ;;  %v4076_v23 = vsel %vm496_vm2, %v4071_v16, %v4073_v50  ;;  %v4084_v30 = vadd.f32 %v4073_v50, %v4053_v17 }
0x32f1   :  { %v4082_v56 = vadd.f32 %v4075_v41, %v4051_v40  ;;  %v4083_v0 = vadd.f32 %v4076_v23, %v4052_v12  ;;  %4533 = vrot.lane.b32.xlu1 %v4524_v11, %s5013_s30  ;;  %4531 = vrot.lane.b32.xlu0 %v4523_v54, %s5013_s30  ;;  %v4617_v11 = vmul.f32 %v9906_v26, %v9900_v62 }
0x32f2   :  { %v4616_v54 = vmul.f32 %v9906_v26, %v9902_v2  ;;  %v4618_v62 = vmul.f32 %v9906_v26, %v8215_v43 }
0x32f3   :  { %v4098_v45 = vpop.permute.xlu0 %4097  ;;  %v4100_v5 = vpop.permute.xlu1 %4099 }
0x32f4   :  { %v4105_v55 = vsel %vm496_vm2, %v4098_v45, %v4100_v5 }
0x32f5   :  { %v4112_v60 = vadd.f32 %v4105_v55, %v4081_v52  ;;  %4537 = vrot.lane.b32.xlu1 %v4526_v57, %s5013_s30  ;;  %4535 = vrot.lane.b32.xlu0 %v4525_v6, %s5013_s30  ;;  %v4619_v57 = vmul.f32 %v9906_v26, %v8211_v20 }
0x32f7   :  { %v4102_v31 = vpop.permute.xlu0 %4101  ;;  %v4104_v29 = vpop.permute.xlu1 %4103 }
0x32f8   :  { %v4106_v22 = vsel %vm496_vm2, %v4100_v5, %v4102_v31  ;;  %v4107_v34 = vsel %vm496_vm2, %v4102_v31, %v4104_v29  ;;  %v4115_v13 = vadd.f32 %v4104_v29, %v4084_v30  ;;  %v9907_v31 = vld [vmem:[#allocation22_spill] sm:$0xff] }
0x32f9   :  { %v4113_v38 = vadd.f32 %v4106_v22, %v4082_v56  ;;  %v4114_v1 = vadd.f32 %v4107_v34, %v4083_v0  ;;  %4564 = vrot.lane.b32.xlu1 %v4555_v46, %s5013_s30  ;;  %4562 = vrot.lane.b32.xlu0 %v4554_v33, %s5013_s30  ;;  %v4648_v29 = vmul.f32 %v9907_v31, %v8241_v7 }
0x32fa   :  { %v4647_v14 = vmul.f32 %v9907_v31, %v8233_v9  ;;  %v4649_v7 = vmul.f32 %v9907_v31, %v8236_v39 }
0x32fb   :  { %v4129_v51 = vpop.permute.xlu0 %4128  ;;  %v4131_v63 = vpop.permute.xlu1 %4130 }
0x32fc   :  { %v4136_v21 = vsel %vm621_vm3, %v4129_v51, %v4131_v63 }
0x32fd   :  { %v4143_v53 = vadd.f32 %v4136_v21, %v4112_v60  ;;  %4568 = vrot.lane.b32.xlu1 %v4557_v10, %s5013_s30  ;;  %4566 = vrot.lane.b32.xlu0 %v4556_v27, %s5013_s30  ;;  %v9908_v10 = vld [vmem:[#allocation39_spill] sm:$0xff] }
0x32fe   :  { %v4679_v27 = vmul.f32 %v9908_v10, %v8265_v19  ;;  %v4678_v21 = vmul.f32 %v9908_v10, %v8257_v59  ;;  %v4680_v19 = vmul.f32 %v9908_v10, %v8260_v4 }
0x32ff   :  { %v4133_v61 = vpop.permute.xlu0 %4132  ;;  %v4135_v37 = vpop.permute.xlu1 %4134 }
0x3300   :  { %v4137_v17 = vsel %vm621_vm3, %v4131_v63, %v4133_v61  ;;  %v4138_v18 = vsel %vm621_vm3, %v4133_v61, %v4135_v37  ;;  %v4146_v40 = vadd.f32 %v4135_v37, %v4115_v13 }
0x3301   :  { %v4144_v12 = vadd.f32 %v4137_v17, %v4113_v38  ;;  %v4145_v44 = vadd.f32 %v4138_v18, %v4114_v1  ;;  %4595 = vrot.lane.b32.xlu1 %v4586_v36, %s5013_s30  ;;  %4593 = vrot.lane.b32.xlu0 %v4585_v15, %s5013_s30  ;;  %v4650_v38 = vmul.f32 %v9907_v31, %v8247_v58 }
0x3302   :  { %v4681_v15 = vmul.f32 %v9908_v10, %v8271_v47 }
0x3303   :  { %v4160_v24 = vpop.permute.xlu0 %4159  ;;  %v4162_v32 = vpop.permute.xlu1 %4161 }
0x3304   :  { %v4167_v25 = vsel %vm621_vm3, %v4160_v24, %v4162_v32 }
0x3305   :  { %v4174_v52 = vadd.f32 %v4167_v25, %v4143_v53  ;;  %4599 = vrot.lane.b32.xlu1 %v4588_v3, %s5013_s30  ;;  %4597 = vrot.lane.b32.xlu0 %v4587_v48, %s5013_s30 }
0x3307   :  { %v4164_v16 = vpop.permute.xlu0 %4163  ;;  %v4166_v50 = vpop.permute.xlu1 %4165 }
0x3308   :  { %v4168_v41 = vsel %vm621_vm3, %v4162_v32, %v4164_v16  ;;  %v4169_v23 = vsel %vm621_vm3, %v4164_v16, %v4166_v50  ;;  %v4177_v30 = vadd.f32 %v4166_v50, %v4146_v40 }
0x3309   :  { %v4175_v56 = vadd.f32 %v4168_v41, %v4144_v12  ;;  %v4176_v0 = vadd.f32 %v4169_v23, %v4145_v44  ;;  %4626 = vrot.lane.b32.xlu1 %v4617_v11, %s5018_s6  ;;  %4624 = vrot.lane.b32.xlu0 %v4616_v54, %s5018_s6  ;;  %v9909_v12 = vld [vmem:[#allocation72_spill] sm:$0xff] }
0x330a   :  { %v4710_v44 = vmul.f32 %v9909_v12, %v8289_v28  ;;  %v4709_v24 = vmul.f32 %v9909_v12, %v8284_v8  ;;  %v4712_v16 = vmul.f32 %v9909_v12, %v8295_v49  ;;  %v4711_v28 = vmul.f32 %v9909_v12, %v8281_v35 }
0x330b   :  { %v4191_v45 = vpop.permute.xlu0 %4190  ;;  %v4193_v5 = vpop.permute.xlu1 %4192 }
0x330c   :  { %v4198_v2 = vsel %vm621_vm3, %v4191_v45, %v4193_v5 }
0x330d   :  { %v4205_v6 = vadd.f32 %v4198_v2, %v4174_v52  ;;  %4630 = vrot.lane.b32.xlu1 %v4619_v57, %s5018_s6  ;;  %4628 = vrot.lane.b32.xlu0 %v4618_v62, %s5018_s6 }
0x330f   :  { %v4195_v55 = vpop.permute.xlu0 %4194  ;;  %v4197_v60 = vpop.permute.xlu1 %4196 }
0x3310   :  { %v4199_v20 = vsel %vm621_vm3, %v4193_v5, %v4195_v55  ;;  %v4200_v46 = vsel %vm621_vm3, %v4195_v55, %v4197_v60  ;;  %v4208_v43 = vadd.f32 %v4197_v60, %v4177_v30 }
0x3311   :  { %v4206_v33 = vadd.f32 %v4199_v20, %v4175_v56  ;;  %v4207_v22 = vadd.f32 %v4200_v46, %v4176_v0  ;;  %4657 = vrot.lane.b32.xlu1 %v4648_v29, %s5018_s6  ;;  %4655 = vrot.lane.b32.xlu0 %v4647_v14, %s5018_s6 }
0x3313   :  { %v4222_v34 = vpop.permute.xlu0 %4221  ;;  %v4224_v13 = vpop.permute.xlu1 %4223 }
0x3314   :  { %v4229_v9 = vsel %vm621_vm3, %v4222_v34, %v4224_v13 }
0x3315   :  { %v4236_v1 = vadd.f32 %v4229_v9, %v4205_v6  ;;  %4661 = vrot.lane.b32.xlu1 %v4650_v38, %s5018_s6  ;;  %4659 = vrot.lane.b32.xlu0 %v4649_v7, %s5018_s6 }
0x3317   :  { %v4226_v51 = vpop.permute.xlu0 %4225  ;;  %v4228_v63 = vpop.permute.xlu1 %4227 }
0x3318   :  { %v4230_v58 = vsel %vm621_vm3, %v4224_v13, %v4226_v51  ;;  %v4231_v53 = vsel %vm621_vm3, %v4226_v51, %v4228_v63  ;;  %v4239_v39 = vadd.f32 %v4228_v63, %v4208_v43 }
0x3319   :  { %v4237_v61 = vadd.f32 %v4230_v58, %v4206_v33  ;;  %v4238_v37 = vadd.f32 %v4231_v53, %v4207_v22  ;;  %4688 = vrot.lane.b32.xlu1 %v4679_v27, %s5018_s6  ;;  %4686 = vrot.lane.b32.xlu0 %v4678_v21, %s5018_s6 }
0x331b   :  { %v4253_v42 = vpop.permute.xlu0 %4252  ;;  %v4255_v36 = vpop.permute.xlu1 %4254 }
0x331c   :  { %v4260_v59 = vsel %vm746_vm4, %v4253_v42, %v4255_v36 }
0x331d   :  { %v4267_v17 = vadd.f32 %v4260_v59, %v4236_v1  ;;  %4692 = vrot.lane.b32.xlu1 %v4681_v15, %s5018_s6  ;;  %4690 = vrot.lane.b32.xlu0 %v4680_v19, %s5018_s6 }
0x331f   :  { %v4257_v18 = vpop.permute.xlu0 %4256  ;;  %v4259_v40 = vpop.permute.xlu1 %4258 }
0x3320   :  { %v4261_v47 = vsel %vm746_vm4, %v4255_v36, %v4257_v18  ;;  %v4262_v32 = vsel %vm746_vm4, %v4257_v18, %v4259_v40  ;;  %v4270_v4 = vadd.f32 %v4259_v40, %v4239_v39 }
0x3321   :  { %v4268_v3 = vadd.f32 %v4261_v47, %v4237_v61  ;;  %v4269_v48 = vadd.f32 %v4262_v32, %v4238_v37  ;;  %4719 = vrot.lane.b32.xlu1 %v4710_v44, %s5018_s6  ;;  %4717 = vrot.lane.b32.xlu0 %v4709_v24, %s5018_s6 }
0x3323   :  { %v4284_v25 = vpop.permute.xlu0 %4283  ;;  %v4286_v52 = vpop.permute.xlu1 %4285 }
0x3324   :  { %v4291_v8 = vsel %vm746_vm4, %v4284_v25, %v4286_v52 }
0x3325   :  { %v4298_v50 = vadd.f32 %v4291_v8, %v4267_v17  ;;  %4723 = vrot.lane.b32.xlu1 %v4712_v16, %s5018_s6  ;;  %4721 = vrot.lane.b32.xlu0 %v4711_v28, %s5018_s6 }
0x3327   :  { %v4288_v26 = vpop.permute.xlu0 %4287  ;;  %v4290_v11 = vpop.permute.xlu1 %4289 }
0x3328   :  { %v4292_v54 = vsel %vm746_vm4, %v4286_v52, %v4288_v26  ;;  %v4293_v41 = vsel %vm746_vm4, %v4288_v26, %v4290_v11  ;;  %v4301_v23 = vadd.f32 %v4290_v11, %v4270_v4 }
0x3329   :  { %v4299_v30 = vadd.f32 %v4292_v54, %v4268_v3  ;;  %v4300_v56 = vadd.f32 %v4293_v41, %v4269_v48 }
0x332b   :  { %v4315_v49 = vpop.permute.xlu0 %4314  ;;  %v4317_v0 = vpop.permute.xlu1 %4316 }
0x332c   :  { %v4322_v35 = vsel %vm746_vm4, %v4315_v49, %v4317_v0 }
0x332d   :  { %v4329_v45 = vadd.f32 %v4322_v35, %v4298_v50 }
0x332f   :  { %v4319_v5 = vpop.permute.xlu0 %4318  ;;  %v4321_v57 = vpop.permute.xlu1 %4320 }
0x3330   :  { %v4323_v62 = vsel %vm746_vm4, %v4317_v0, %v4319_v5  ;;  %v4324_v2 = vsel %vm746_vm4, %v4319_v5, %v4321_v57  ;;  %v4332_v6 = vadd.f32 %v4321_v57, %v4301_v23 }
0x3331   :  { %v4330_v55 = vadd.f32 %v4323_v62, %v4299_v30  ;;  %v4331_v60 = vadd.f32 %v4324_v2, %v4300_v56 }
0x3333   :  { %v4346_v31 = vpop.permute.xlu0 %4345  ;;  %v4348_v29 = vpop.permute.xlu1 %4347 }
0x3334   :  { %v4353_v14 = vsel %vm746_vm4, %v4346_v31, %v4348_v29 }
0x3335   :  { %v4360_v20 = vadd.f32 %v4353_v14, %v4329_v45 }
0x3337   :  { %v4350_v46 = vpop.permute.xlu0 %4349  ;;  %v4352_v43 = vpop.permute.xlu1 %4351 }
0x3338   :  { %v4354_v33 = vsel %vm746_vm4, %v4348_v29, %v4350_v46  ;;  %v4355_v22 = vsel %vm746_vm4, %v4350_v46, %v4352_v43  ;;  %v4363_v34 = vadd.f32 %v4352_v43, %v4332_v6 }
0x3339   :  { %v4361_v13 = vadd.f32 %v4354_v33, %v4330_v55  ;;  %v4362_v38 = vadd.f32 %v4355_v22, %v4331_v60 }
0x333b   :  { %v4377_v7 = vpop.permute.xlu0 %4376  ;;  %v4379_v9 = vpop.permute.xlu1 %4378 }
0x333c   :  { %v4384_v1 = vsel %vm871_vm5, %v4377_v7, %v4379_v9 }
0x333d   :  { %v4391_v51 = vadd.f32 %v4384_v1, %v4360_v20 }
0x333f   :  { %v4381_v63 = vpop.permute.xlu0 %4380  ;;  %v4383_v10 = vpop.permute.xlu1 %4382 }
0x3340   :  { %v4385_v27 = vsel %vm871_vm5, %v4379_v9, %v4381_v63  ;;  %v4386_v21 = vsel %vm871_vm5, %v4381_v63, %v4383_v10  ;;  %v4394_v58 = vadd.f32 %v4383_v10, %v4363_v34 }
0x3341   :  { %v4392_v53 = vadd.f32 %v4385_v27, %v4361_v13  ;;  %v4393_v39 = vadd.f32 %v4386_v21, %v4362_v38 }
0x3343   :  { %v4408_v61 = vpop.permute.xlu0 %4407  ;;  %v4410_v37 = vpop.permute.xlu1 %4409 }
0x3344   :  { %v4415_v42 = vsel %vm871_vm5, %v4408_v61, %v4410_v37 }
0x3345   :  { %v4422_v36 = vadd.f32 %v4415_v42, %v4391_v51 }
0x3347   :  { %v4412_v15 = vpop.permute.xlu0 %4411  ;;  %v4414_v19 = vpop.permute.xlu1 %4413 }
0x3348   :  { %v4416_v59 = vsel %vm871_vm5, %v4410_v37, %v4412_v15  ;;  %v4417_v57 = vsel %vm871_vm5, %v4412_v15, %v4414_v19  ;;  %v4425_v6 = vadd.f32 %v4414_v19, %v4394_v58 }
0x3349   :  { %v4423_v17 = vadd.f32 %v4416_v59, %v4392_v53  ;;  %v4424_v29 = vadd.f32 %v4417_v57, %v4393_v39 }
0x334b   :  { %v4439_v18 = vpop.permute.xlu0 %4438  ;;  %v4441_v40 = vpop.permute.xlu1 %4440 }
0x334c   :  { %v4446_v55 = vsel %vm871_vm5, %v4439_v18, %v4441_v40 }
0x334d   :  { %v4453_v33 = vadd.f32 %v4446_v55, %v4422_v36 }
0x334f   :  { %v4443_v12 = vpop.permute.xlu0 %4442  ;;  %v4445_v44 = vpop.permute.xlu1 %4444 }
0x3350   :  { %v4447_v60 = vsel %vm871_vm5, %v4441_v40, %v4443_v12  ;;  %v4448_v31 = vsel %vm871_vm5, %v4443_v12, %v4445_v44  ;;  %v4456_v14 = vadd.f32 %v4445_v44, %v4425_v6 }
0x3351   :  { %v4454_v22 = vadd.f32 %v4447_v60, %v4423_v17  ;;  %v4455_v34 = vadd.f32 %v4448_v31, %v4424_v29 }
0x3353   :  { %v4470_v24 = vpop.permute.xlu0 %4469  ;;  %v4472_v47 = vpop.permute.xlu1 %4471 }
0x3354   :  { %v4477_v20 = vsel %vm871_vm5, %v4470_v24, %v4472_v47 }
0x3355   :  { %v4484_v63 = vadd.f32 %v4477_v20, %v4453_v33 }
0x3357   :  { %v4474_v32 = vpop.permute.xlu0 %4473  ;;  %v4476_v4 = vpop.permute.xlu1 %4475 }
0x3358   :  { %v4478_v46 = vsel %vm871_vm5, %v4472_v47, %v4474_v32  ;;  %v4479_v43 = vsel %vm871_vm5, %v4474_v32, %v4476_v4  ;;  %v4487_v7 = vadd.f32 %v4476_v4, %v4456_v14 }
0x3359   :  { %v4485_v10 = vadd.f32 %v4478_v46, %v4454_v22  ;;  %v4486_v27 = vadd.f32 %v4479_v43, %v4455_v34 }
0x335b   :  { %v4501_v3 = vpop.permute.xlu0 %4500  ;;  %v4503_v48 = vpop.permute.xlu1 %4502 }
0x335c   :  { %v4508_v9 = vsel %vm996_vm6, %v4501_v3, %v4503_v48 }
0x335d   :  { %v4515_v61 = vadd.f32 %v4508_v9, %v4484_v63 }
0x335f   :  { %v4505_v25 = vpop.permute.xlu0 %4504  ;;  %v4507_v52 = vpop.permute.xlu1 %4506 }
0x3360   :  { %v4509_v1 = vsel %vm996_vm6, %v4503_v48, %v4505_v25  ;;  %v4510_v51 = vsel %vm996_vm6, %v4505_v25, %v4507_v52  ;;  %v4518_v21 = vadd.f32 %v4507_v52, %v4487_v7 }
0x3361   :  { %v4516_v37 = vadd.f32 %v4509_v1, %v4485_v10  ;;  %v4517_v42 = vadd.f32 %v4510_v51, %v4486_v27 }
0x3363   :  { %v4532_v16 = vpop.permute.xlu0 %4531  ;;  %v4534_v28 = vpop.permute.xlu1 %4533 }
0x3364   :  { %v4539_v58 = vsel %vm996_vm6, %v4532_v16, %v4534_v28 }
0x3365   :  { %v4546_v40 = vadd.f32 %v4539_v58, %v4515_v61 }
0x3367   :  { %v4536_v8 = vpop.permute.xlu0 %4535  ;;  %v4538_v50 = vpop.permute.xlu1 %4537 }
0x3368   :  { %v4540_v53 = vsel %vm996_vm6, %v4534_v28, %v4536_v8  ;;  %v4541_v39 = vsel %vm996_vm6, %v4536_v8, %v4538_v50  ;;  %v4549_v19 = vadd.f32 %v4538_v50, %v4518_v21 }
0x3369   :  { %v4547_v12 = vadd.f32 %v4540_v53, %v4516_v37  ;;  %v4548_v44 = vadd.f32 %v4541_v39, %v4517_v42  ;;  %v4975_v37 = vld [vmem:[%s8950_s0 + $0x10] sm:$0xff] }
0x336b   :  { %v4563_v26 = vpop.permute.xlu0 %4562  ;;  %v4565_v11 = vpop.permute.xlu1 %4564 }
0x336c   :  { %v4570_v59 = vsel %vm996_vm6, %v4563_v26, %v4565_v11 }
0x336d   :  { %v4577_v3 = vadd.f32 %v4570_v59, %v4546_v40 }
0x336f   :  { %v4567_v54 = vpop.permute.xlu0 %4566  ;;  %v4569_v41 = vpop.permute.xlu1 %4568 }
0x3370   :  { %v4571_v17 = vsel %vm996_vm6, %v4565_v11, %v4567_v54  ;;  %v4572_v18 = vsel %vm996_vm6, %v4567_v54, %v4569_v41  ;;  %v4580_v24 = vadd.f32 %v4569_v41, %v4549_v19 }
0x3371   :  { %v4578_v48 = vadd.f32 %v4571_v17, %v4547_v12  ;;  %v4579_v25 = vadd.f32 %v4572_v18, %v4548_v44 }
0x3373   :  { %v4594_v23 = vpop.permute.xlu0 %4593  ;;  %v4596_v30 = vpop.permute.xlu1 %4595 }
0x3374   :  { %v4601_v47 = vsel %vm996_vm6, %v4594_v23, %v4596_v30 }
0x3375   :  { %v4608_v11 = vadd.f32 %v4601_v47, %v4577_v3 }
0x3377   :  { %v4598_v56 = vpop.permute.xlu0 %4597  ;;  %v4600_v49 = vpop.permute.xlu1 %4599 }
0x3378   :  { %v4602_v32 = vsel %vm996_vm6, %v4596_v30, %v4598_v56  ;;  %v4603_v4 = vsel %vm996_vm6, %v4598_v56, %v4600_v49  ;;  %v4611_v28 = vadd.f32 %v4600_v49, %v4580_v24 }
0x3379   :  { %v4609_v54 = vadd.f32 %v4602_v32, %v4578_v48  ;;  %v4610_v41 = vadd.f32 %v4603_v4, %v4579_v25 }
0x337b   :  { %v4625_v0 = vpop.permute.xlu0 %4624  ;;  %v4627_v35 = vpop.permute.xlu1 %4626 }
0x337c   :  { %v4632_v8 = vsel %vm1121_vm7, %v4625_v0, %v4627_v35 }
0x337d   :  { %v4639_v6 = vadd.f32 %v4632_v8, %v4608_v11 }
0x337f   :  { %v4629_v45 = vpop.permute.xlu0 %4628  ;;  %v4631_v5 = vpop.permute.xlu1 %4630 }
0x3380   :  { %v4633_v50 = vsel %vm1121_vm7, %v4627_v35, %v4629_v45  ;;  %v4634_v26 = vsel %vm1121_vm7, %v4629_v45, %v4631_v5  ;;  %v4642_v23 = vadd.f32 %v4631_v5, %v4611_v28 }
0x3381   :  { %v4640_v55 = vadd.f32 %v4633_v50, %v4609_v54  ;;  %v4641_v60 = vadd.f32 %v4634_v26, %v4610_v41 }
0x3383   :  { %v4656_v62 = vpop.permute.xlu0 %4655  ;;  %v4658_v2 = vpop.permute.xlu1 %4657 }
0x3384   :  { %v4663_v30 = vsel %vm1121_vm7, %v4656_v62, %v4658_v2 }
0x3385   :  { %v4670_v14 = vadd.f32 %v4663_v30, %v4639_v6 }
0x3387   :  { %v4660_v13 = vpop.permute.xlu0 %4659  ;;  %v4662_v38 = vpop.permute.xlu1 %4661 }
0x3388   :  { %v4664_v56 = vsel %vm1121_vm7, %v4658_v2, %v4660_v13  ;;  %v4665_v57 = vsel %vm1121_vm7, %v4660_v13, %v4662_v38  ;;  %v4673_v0 = vadd.f32 %v4662_v38, %v4642_v23 }
0x3389   :  { %v4671_v5 = vadd.f32 %v4664_v56, %v4640_v55  ;;  %v4672_v20 = vadd.f32 %v4665_v57, %v4641_v60 }
0x338b   :  { %v4687_v36 = vpop.permute.xlu0 %4686  ;;  %v4689_v15 = vpop.permute.xlu1 %4688 }
0x338c   :  { %v4694_v35 = vsel %vm1121_vm7, %v4687_v36, %v4689_v15 }
0x338d   :  { %v4701_v46 = vadd.f32 %v4694_v35, %v4670_v14 }
0x338f   :  { %v4691_v52 = vpop.permute.xlu0 %4690  ;;  %v4693_v16 = vpop.permute.xlu1 %4692 }
0x3390   :  { %v4695_v45 = vsel %vm1121_vm7, %v4689_v15, %v4691_v52  ;;  %v4696_v29 = vsel %vm1121_vm7, %v4691_v52, %v4693_v16  ;;  %v4704_v62 = vadd.f32 %v4693_v16, %v4673_v0  ;;  %v4976_v15 = vld [vmem:[%s8950_s0 + $0x18] sm:$0xff] }
0x3391   :  { %v4702_v43 = vadd.f32 %v4695_v45, %v4671_v5  ;;  %v4703_v33 = vadd.f32 %v4696_v29, %v4672_v20 }
0x3393   :  { %v4718_v49 = vpop.permute.xlu0 %4717  ;;  %v4720_v31 = vpop.permute.xlu1 %4719 }
0x3394   :  { %v4725_v2 = vsel %vm1121_vm7, %v4718_v49, %v4720_v31 }
0x3395   :  { %v4732_v9 = vadd.f32 %v4725_v2, %v4701_v46 }
0x3397   :  { %v4722_v22 = vpop.permute.xlu0 %4721  ;;  %v4724_v34 = vpop.permute.xlu1 %4723 }
0x3398   :  { %v4726_v13 = vsel %vm1121_vm7, %v4720_v31, %v4722_v22  ;;  %v4727_v38 = vsel %vm1121_vm7, %v4722_v22, %v4724_v34  ;;  %v4735_v7 = vadd.f32 %v4724_v34, %v4704_v62 }
0x3399   :  { %v4733_v1 = vadd.f32 %v4726_v13, %v4702_v43  ;;  %v4734_v51 = vadd.f32 %v4727_v38, %v4703_v33 }
0x339b   :  { %v4740_v63 = vcombine.low %v4732_v9, %v4733_v1  ;;  %v4741_v10 = vcombine.low %v4734_v51, %v4735_v7 }
0x339d   :  { %4742 = vrot.lane.b32.xlu0 %v4740_v63, %s5022_s15  ;;  %4744 = vrot.lane.b32.xlu1 %v4741_v10, %s5022_s15 }
0x340f   :  { %v4743_v27 = vpop.permute.xlu0 %4742  ;;  %v4745_v21 = vpop.permute.xlu1 %4744 }
0x3410   :  { %v4746_v58 = vrot.slane %v4743_v27, 4  ;;  %v4747_v53 = vrot.slane %v4745_v21, 4 }
0x3412   :  { %v4748_v39 = vsel %vm2387_vm12, %v4746_v58, %v4743_v27  ;;  %v4749_v61 = vsel %vm2389_vm13, %v4746_v58, %v4747_v53 }
0x3413   :  { %v4753_v42 = vadd.f32 %v4975_v37, %v4748_v39  ;;  %v4750_v36 = vsel %vm2387_vm12, %v4749_v61, %v4745_v21 }
0x3414   :  { %v4754_v19 = vadd.f32 %v4976_v15, %v4750_v36 }
0x3415   :  { %4757 = vrot.lane.b32.xlu0 %v4753_v42, %s5018_s6 }
0x3416   :  { %4759 = vrot.lane.b32.xlu1 %v4754_v19, %s5018_s6 }
0x3487   :  { %v4758_v59 = vpop.permute.xlu0 %4757 }
0x3488   :  { %v4761_v17 = vrot.slane %v4758_v59, 4  ;;  %v4760_v18 = vpop.permute.xlu1 %4759 }
0x3489   :  { %v4762_v40 = vrot.slane %v4760_v18, 4 }
0x348b   :  { %v4763_v12 = vsel %vm2389_vm13, %v4761_v17, %v4762_v40  ;;  %v4765_v44 = vsel %vm1121_vm7, %v4760_v18, %v4762_v40 }
0x348c   :  { %v4764_v24 = vsel %vm1121_vm7, %v4758_v59, %v4763_v12  ;;  %4778 = vst.msk [vmem:[%s8954_s5 + $0x18] sm:$0xff] %vm7144_vm15, %v4765_v44 }
0x348d   :  { %4777 = vst [vmem:[%s8954_s5 + $0x10] sm:$0xff] %v4764_v24 }

</bundles_post_ra>
